<compile_context>
chip_gen: v7x
topology: tpu7x:2x2x1
jax: 0.10.0
libtpu: 0.0.40
codegen_flags: <defaults>
</compile_context>

<pallas_src>
import numpy as np
import jax
import jax.numpy as jnp
from jax import lax
from jax.experimental import pallas as pl
from jax.experimental.pallas import tpu as pltpu

H_DIM = 32        # h_dim
GRID = 8          # grid_size
NBHD = 2.0        # neighborhood_size
EPS = 1e-5        # BatchNorm1d eps


def _social_pool_kernel(pos_i_ref, pos_t_ref, sid_i_ref, sid_j_ref,
                        c_col_ref, i_col_ref, h_ref, w_ref,
                        b_ref, gamma_ref, beta_ref,
                        out_ref, pooled_ref):
    half = NBHD / 2.0
    RB = pos_i_ref.shape[0]              # G2 * B pair-rows (cell-major r = c*B+i)
    B, H = h_ref.shape
    NP = w_ref.shape[1]                  # lane-padded output width (128)
    G2 = GRID * GRID
    KT = G2 * H

    h = h_ref[...]                                   # (B, H)
    px_j = pos_t_ref[0:1, :]                         # (1, B) other-person x
    py_j = pos_t_ref[1:2, :]                         # (1, B) other-person y
    sid_j = sid_j_ref[...]                           # (1, B)

    # --- stage 1: pooled[i, c*H:(c+1)*H] = sum_j 1[j in cell c of box(i)] h[j] ---
    # Processed in row chunks of 8 cells to keep every intermediate small
    # (<= 8 vregs) instead of materializing the full (G2*B, B) mask at once.
    RC = 8 * B                                       # rows per chunk (8 cells)
    j_iota = lax.broadcasted_iota(jnp.int32, (RC, B), 1)
    for r0 in range(0, RB, RC):
        pxi = pos_i_ref[r0:r0 + RC, 0:1]             # (RC, 1) owner x
        pyi = pos_i_ref[r0:r0 + RC, 1:2]             # (RC, 1) owner y
        tlx = pxi - half
        tly = pyi + half
        brx = pxi + half
        bry = pyi - half
        cx = jnp.floor((px_j - tlx) / NBHD * GRID)
        cy = jnp.floor((tly - py_j) / NBHD * GRID)
        cell = (cx + cy * GRID).astype(jnp.int32)    # (RC, B)
        # "within bound" == strictly inside the box (matches the PyTorch test)
        inb = (px_j > tlx) & (px_j < brx) & (py_j < tly) & (py_j > bry)
        same = sid_i_ref[r0:r0 + RC, :] == sid_j     # same sequence
        not_self = i_col_ref[r0:r0 + RC, :] != j_iota
        in_cell = cell == c_col_ref[r0:r0 + RC, :]
        mask = (inb & same & not_self & in_cell).astype(jnp.float32)   # (RC, B)
        pooled = jnp.dot(mask, h, preferred_element_type=jnp.float32)  # (RC, H)
        c0 = r0 // B
        for t in range(RC // B):                     # repack rows -> lane slices
            c = c0 + t
            pooled_ref[:, c * H:(c + 1) * H] = pooled[t * B:(t + 1) * B, :]

    # --- stage 2: Linear (K = G2*H, lane-dense N) + BatchNorm1d + ReLU ---
    acc = jnp.zeros((B, NP), jnp.float32)
    KC = 256                                         # K chunk (vreg-pressure cap)
    for k0 in range(0, KT, KC):
        ke = min(k0 + KC, KT)
        acc = acc + jnp.dot(pooled_ref[:, k0:ke], w_ref[k0:ke, :],
                            preferred_element_type=jnp.float32)
    lin = acc + b_ref[...]
    # TODO(synk): BatchNorm1d uses training-mode batch statistics (biased var),
    # matching nn.BatchNorm1d in train(); eval-mode would need running stats.
    mean = jnp.mean(lin, axis=0, keepdims=True)
    var = jnp.mean((lin - mean) ** 2, axis=0, keepdims=True)
    y = (lin - mean) * lax.rsqrt(var + EPS) * gamma_ref[...] + beta_ref[...]
    out_ref[...] = jnp.maximum(y, 0.0).astype(out_ref.dtype)


def _seq_ids(seq_start_end, batch):
    sid = np.zeros((batch,), np.int32)
    for s_idx, (start, end) in enumerate(seq_start_end):
        sid[start:end] = s_idx
    return sid


def social_pooling(h_states, seq_start_end, end_pos, w, b, gamma, beta):
    """h_states: (num_layers, B, H); end_pos: (B, 2). Returns (B, Hout)."""
    h = h_states.reshape(-1, H_DIM).astype(jnp.float32)
    B = h.shape[0]
    Hout = w.shape[1]
    G2 = GRID * GRID
    RB = G2 * B
    NP = ((Hout + 127) // 128) * 128                 # lane-dense output width

    sid = jnp.asarray(_seq_ids(seq_start_end, B), jnp.int32)
    pos = end_pos.astype(jnp.float32)

    # Pair-row layout (cell-major): row r = c*B + i  ->  owner person i, cell c.
    pos_tile = jnp.tile(pos, (G2, 1))                               # (RB, 2)
    sid_tile = jnp.tile(sid.reshape(B, 1), (G2, 1))                 # (RB, 1)
    i_col = jnp.tile(jnp.arange(B, dtype=jnp.int32), G2).reshape(RB, 1)
    c_col = jnp.repeat(jnp.arange(G2, dtype=jnp.int32), B).reshape(RB, 1)
    pos_t = pos.T                                                   # (2, B)
    sid_row = sid.reshape(1, B)

    # Zero-pad the feature (lane) axis of the Linear/BN parameters to NP.
    w_pad = jnp.zeros((G2 * H_DIM, NP), jnp.float32).at[:, :Hout].set(
        w.astype(jnp.float32))
    b_pad = jnp.zeros((1, NP), jnp.float32).at[:, :Hout].set(
        b.astype(jnp.float32).reshape(1, Hout))
    g_pad = jnp.zeros((1, NP), jnp.float32).at[:, :Hout].set(
        gamma.astype(jnp.float32).reshape(1, Hout))
    be_pad = jnp.zeros((1, NP), jnp.float32).at[:, :Hout].set(
        beta.astype(jnp.float32).reshape(1, Hout))

    full = lambda i: (0, 0)
    out = pl.pallas_call(
        _social_pool_kernel,
        out_shape=jax.ShapeDtypeStruct((B, NP), jnp.float32),
        grid_spec=pltpu.PrefetchScalarGridSpec(
            num_scalar_prefetch=0,
            grid=(1,),                               # single invocation
            in_specs=[
                pl.BlockSpec((RB, 2), full),          # pos_tile
                pl.BlockSpec((2, B), full),           # pos_t
                pl.BlockSpec((RB, 1), full),          # sid_tile
                pl.BlockSpec((1, B), full),           # sid_row
                pl.BlockSpec((RB, 1), full),          # c_col
                pl.BlockSpec((RB, 1), full),          # i_col
                pl.BlockSpec((B, H_DIM), full),       # h
                pl.BlockSpec((G2 * H_DIM, NP), full), # W fully resident (1 MiB)
                pl.BlockSpec((1, NP), full),          # bias
                pl.BlockSpec((1, NP), full),          # gamma
                pl.BlockSpec((1, NP), full),          # beta
            ],
            out_specs=pl.BlockSpec((B, NP), full),
            scratch_shapes=[pltpu.VMEM((B, G2 * H_DIM), jnp.float32)],
        ),
        compiler_params=pltpu.CompilerParams(dimension_semantics=("arbitrary",)),
    )(pos_tile, pos_t, sid_tile, sid_row, c_col, i_col, h,
      w_pad, b_pad, g_pad, be_pad)
    return out[:, :Hout]


def reference(h_states, seq_start_end, end_pos, w, b, gamma, beta):
    """Pure-JAX reference mirroring the PyTorch forward (train-mode BN)."""
    h = h_states.reshape(-1, H_DIM)
    B = h.shape[0]
    sid = jnp.asarray(_seq_ids(seq_start_end, B))
    pos = end_pos
    half = NBHD / 2.0
    tlx, tly = pos[:, 0] - half, pos[:, 1] + half
    brx, bry = pos[:, 0] + half, pos[:, 1] - half
    pxj, pyj = pos[None, :, 0], pos[None, :, 1]
    cell_x = jnp.floor((pxj - tlx[:, None]) / NBHD * GRID)
    cell_y = jnp.floor((tly[:, None] - pyj) / NBHD * GRID)
    cell = (cell_x + cell_y * GRID).astype(jnp.int32)
    inb = (pxj > tlx[:, None]) & (pxj < brx[:, None]) & \
          (pyj < tly[:, None]) & (pyj > bry[:, None])
    valid = inb & (sid[:, None] == sid[None, :]) & (~jnp.eye(B, dtype=bool))
    onehot = ((cell[:, :, None] == jnp.arange(GRID * GRID)[None, None, :])
              & valid[:, :, None]).astype(jnp.float32)            # (B,B,C)
    pool = jnp.einsum("ijc,jh->ich", onehot, h)                   # (B,C,H)
    lin = pool.reshape(B, GRID * GRID * H_DIM) @ w + b
    mean = lin.mean(0)
    var = ((lin - mean) ** 2).mean(0)
    y = (lin - mean) / jnp.sqrt(var + EPS) * gamma + beta
    return jnp.maximum(y, 0.0)


if __name__ == "__main__":
    key = jax.random.PRNGKey(0)
    k1, k2, k3, k4 = jax.random.split(key, 4)

    B = 8
    num_layers = 1
    seq_start_end = [(0, 4), (4, 8)]                 # two sequences of 4 peds

    h_states = jax.random.normal(k1, (num_layers, B, H_DIM), jnp.float32)
    end_pos = jax.random.uniform(k2, (B, 2), jnp.float32, -1.0, 1.0)

    # mlp_pool parameters: Linear(G*G*H -> H), BatchNorm1d(H) (PyTorch-default
    # gamma=1, beta=0); dropout=0 is a no-op. Deterministic synthetic init.
    G2 = GRID * GRID
    w = jax.random.normal(k3, (G2 * H_DIM, H_DIM), jnp.float32) * 0.02
    b = jax.random.normal(k4, (H_DIM,), jnp.float32) * 0.02
    gamma = jnp.ones((H_DIM,), jnp.float32)
    beta = jnp.zeros((H_DIM,), jnp.float32)

    out = social_pooling(h_states, seq_start_end, end_pos, w, b, gamma, beta)
    out = jax.block_until_ready(out)

    ref = reference(h_states, seq_start_end, end_pos, w, b, gamma, beta)
    np.testing.assert_allclose(np.asarray(out), np.asarray(ref), rtol=1e-4, atol=1e-4)

    print("KERNEL_OK")
</pallas_src>

<mosaic_0001>
module attributes {stable_mosaic.version = 11 : i64} {
  func.func @_social_pool_kernel(%arg0: i32, %arg1: memref<512x2xf32, #tpu.memory_space<vmem>>, %arg2: memref<2x8xf32, #tpu.memory_space<vmem>>, %arg3: memref<512x1xi32, #tpu.memory_space<vmem>>, %arg4: memref<1x8xi32, #tpu.memory_space<vmem>>, %arg5: memref<512x1xi32, #tpu.memory_space<vmem>>, %arg6: memref<512x1xi32, #tpu.memory_space<vmem>>, %arg7: memref<8x32xf32, #tpu.memory_space<vmem>>, %arg8: memref<2048x128xf32, #tpu.memory_space<vmem>>, %arg9: memref<1x128xf32, #tpu.memory_space<vmem>>, %arg10: memref<1x128xf32, #tpu.memory_space<vmem>>, %arg11: memref<1x128xf32, #tpu.memory_space<vmem>>, %arg12: memref<8x128xf32, #tpu.memory_space<vmem>>, %arg13: memref<8x2048xf32, #tpu.memory_space<vmem>>) attributes {dimension_semantics = [#tpu.dimension_semantics<arbitrary>], iteration_bounds = array<i64: 1>, scalar_prefetch = 0 : i64, scratch_operands = 1 : i64, tpu.core_type = #tpu.core_type<tc>, window_params = [{pipeline_mode = #tpu.pipeline_mode<synchronous>, transform_indices = @transform_0, window_bounds = array<i64: 512, 2>}, {pipeline_mode = #tpu.pipeline_mode<synchronous>, transform_indices = @transform_1, window_bounds = array<i64: 2, 8>}, {pipeline_mode = #tpu.pipeline_mode<synchronous>, transform_indices = @transform_2, window_bounds = array<i64: 512, 1>}, {pipeline_mode = #tpu.pipeline_mode<synchronous>, transform_indices = @transform_3, window_bounds = array<i64: 1, 8>}, {pipeline_mode = #tpu.pipeline_mode<synchronous>, transform_indices = @transform_4, window_bounds = array<i64: 512, 1>}, {pipeline_mode = #tpu.pipeline_mode<synchronous>, transform_indices = @transform_5, window_bounds = array<i64: 512, 1>}, {pipeline_mode = #tpu.pipeline_mode<synchronous>, transform_indices = @transform_6, window_bounds = array<i64: 8, 32>}, {pipeline_mode = #tpu.pipeline_mode<synchronous>, transform_indices = @transform_7, window_bounds = array<i64: 2048, 128>}, {pipeline_mode = #tpu.pipeline_mode<synchronous>, transform_indices = @transform_8, window_bounds = array<i64: 1, 128>}, {pipeline_mode = #tpu.pipeline_mode<synchronous>, transform_indices = @transform_9, window_bounds = array<i64: 1, 128>}, {pipeline_mode = #tpu.pipeline_mode<synchronous>, transform_indices = @transform_10, window_bounds = array<i64: 1, 128>}, {pipeline_mode = #tpu.pipeline_mode<synchronous>, transform_indices = @transform_11, window_bounds = array<i64: 8, 128>}]} {
    %c0 = arith.constant 0 : index
    %c0_0 = arith.constant 0 : index
    %0 = vector.load %arg7[%c0, %c0_0] : memref<8x32xf32, #tpu.memory_space<vmem>>, vector<8x32xf32>
    %c0_1 = arith.constant 0 : index
    %c0_2 = arith.constant 0 : index
    %1 = vector.load %arg2[%c0_1, %c0_2] : memref<2x8xf32, #tpu.memory_space<vmem>>, vector<1x8xf32>
    %c1 = arith.constant 1 : index
    %c0_3 = arith.constant 0 : index
    %2 = vector.load %arg2[%c1, %c0_3] : memref<2x8xf32, #tpu.memory_space<vmem>>, vector<1x8xf32>
    %c0_4 = arith.constant 0 : index
    %c0_5 = arith.constant 0 : index
    %3 = vector.load %arg4[%c0_4, %c0_5] : memref<1x8xi32, #tpu.memory_space<vmem>>, vector<1x8xi32>
    %4 = tpu.iota {dimensions = array<i32: 1>} : vector<64x8xi32>
    %c0_6 = arith.constant 0 : index
    %c0_7 = arith.constant 0 : index
    %5 = vector.load %arg1[%c0_6, %c0_7] : memref<512x2xf32, #tpu.memory_space<vmem>>, vector<64x1xf32>
    %c0_8 = arith.constant 0 : index
    %c1_9 = arith.constant 1 : index
    %6 = vector.load %arg1[%c0_8, %c1_9] : memref<512x2xf32, #tpu.memory_space<vmem>>, vector<64x1xf32>
    %cst = arith.constant 1.000000e+00 : f32
    %7 = vector.broadcast %cst : f32 to vector<64x1xf32>
    %8 = arith.subf %5, %7 : vector<64x1xf32>
    %cst_10 = arith.constant 1.000000e+00 : f32
    %9 = vector.broadcast %cst_10 : f32 to vector<64x1xf32>
    %10 = arith.addf %6, %9 : vector<64x1xf32>
    %cst_11 = arith.constant 1.000000e+00 : f32
    %11 = vector.broadcast %cst_11 : f32 to vector<64x1xf32>
    %12 = arith.addf %5, %11 : vector<64x1xf32>
    %cst_12 = arith.constant 1.000000e+00 : f32
    %13 = vector.broadcast %cst_12 : f32 to vector<64x1xf32>
    %14 = arith.subf %6, %13 : vector<64x1xf32>
    %15 = vector.broadcast %1 : vector<1x8xf32> to vector<64x8xf32>
    %16 = vector.broadcast %8 : vector<64x1xf32> to vector<64x8xf32>
    %17 = arith.subf %15, %16 : vector<64x8xf32>
    %cst_13 = arith.constant 2.000000e+00 : f32
    %18 = vector.broadcast %cst_13 : f32 to vector<64x8xf32>
    %19 = arith.divf %17, %18 : vector<64x8xf32>
    %cst_14 = arith.constant 8.000000e+00 : f32
    %20 = vector.broadcast %cst_14 : f32 to vector<64x8xf32>
    %21 = arith.mulf %19, %20 : vector<64x8xf32>
    %22 = math.floor %21 : vector<64x8xf32>
    %23 = vector.broadcast %10 : vector<64x1xf32> to vector<64x8xf32>
    %24 = vector.broadcast %2 : vector<1x8xf32> to vector<64x8xf32>
    %25 = arith.subf %23, %24 : vector<64x8xf32>
    %cst_15 = arith.constant 2.000000e+00 : f32
    %26 = vector.broadcast %cst_15 : f32 to vector<64x8xf32>
    %27 = arith.divf %25, %26 : vector<64x8xf32>
    %cst_16 = arith.constant 8.000000e+00 : f32
    %28 = vector.broadcast %cst_16 : f32 to vector<64x8xf32>
    %29 = arith.mulf %27, %28 : vector<64x8xf32>
    %30 = math.floor %29 : vector<64x8xf32>
    %cst_17 = arith.constant 8.000000e+00 : f32
    %31 = vector.broadcast %cst_17 : f32 to vector<64x8xf32>
    %32 = arith.mulf %30, %31 : vector<64x8xf32>
    %33 = arith.addf %22, %32 : vector<64x8xf32>
    %34 = arith.fptosi %33 : vector<64x8xf32> to vector<64x8xi32>
    %35 = vector.broadcast %1 : vector<1x8xf32> to vector<64x8xf32>
    %36 = vector.broadcast %8 : vector<64x1xf32> to vector<64x8xf32>
    %37 = arith.cmpf ogt, %35, %36 : vector<64x8xf32>
    %38 = vector.broadcast %1 : vector<1x8xf32> to vector<64x8xf32>
    %39 = vector.broadcast %12 : vector<64x1xf32> to vector<64x8xf32>
    %40 = arith.cmpf olt, %38, %39 : vector<64x8xf32>
    %41 = arith.andi %37, %40 : vector<64x8xi1>
    %42 = vector.broadcast %2 : vector<1x8xf32> to vector<64x8xf32>
    %43 = vector.broadcast %10 : vector<64x1xf32> to vector<64x8xf32>
    %44 = arith.cmpf olt, %42, %43 : vector<64x8xf32>
    %45 = arith.andi %41, %44 : vector<64x8xi1>
    %46 = vector.broadcast %2 : vector<1x8xf32> to vector<64x8xf32>
    %47 = vector.broadcast %14 : vector<64x1xf32> to vector<64x8xf32>
    %48 = arith.cmpf ogt, %46, %47 : vector<64x8xf32>
    %49 = arith.andi %45, %48 : vector<64x8xi1>
    %c0_18 = arith.constant 0 : index
    %c0_19 = arith.constant 0 : index
    %50 = vector.load %arg3[%c0_18, %c0_19] : memref<512x1xi32, #tpu.memory_space<vmem>>, vector<64x1xi32>
    %51 = vector.broadcast %50 : vector<64x1xi32> to vector<64x8xi32>
    %52 = vector.broadcast %3 : vector<1x8xi32> to vector<64x8xi32>
    %53 = arith.cmpi eq, %51, %52 : vector<64x8xi32>
    %c0_20 = arith.constant 0 : index
    %c0_21 = arith.constant 0 : index
    %54 = vector.load %arg6[%c0_20, %c0_21] : memref<512x1xi32, #tpu.memory_space<vmem>>, vector<64x1xi32>
    %55 = vector.broadcast %54 : vector<64x1xi32> to vector<64x8xi32>
    %56 = arith.cmpi ne, %55, %4 : vector<64x8xi32>
    %c0_22 = arith.constant 0 : index
    %c0_23 = arith.constant 0 : index
    %57 = vector.load %arg5[%c0_22, %c0_23] : memref<512x1xi32, #tpu.memory_space<vmem>>, vector<64x1xi32>
    %58 = vector.broadcast %57 : vector<64x1xi32> to vector<64x8xi32>
    %59 = arith.cmpi eq, %34, %58 : vector<64x8xi32>
    %60 = arith.andi %49, %53 : vector<64x8xi1>
    %61 = arith.andi %60, %56 : vector<64x8xi1>
    %62 = arith.andi %61, %59 : vector<64x8xi1>
    %63 = arith.extui %62 : vector<64x8xi1> to vector<64x8xi32>
    %64 = arith.sitofp %63 : vector<64x8xi32> to vector<64x8xf32>
    %cst_24 = arith.constant dense<0.000000e+00> : vector<64x32xf32>
    %65 = tpu.matmul %64, %0, %cst_24 {dimension_numbers = #tpu.dot_dimension_numbers<[1], [0], [0], [1], [0, 0, 1, 1], [], []>} : vector<64x8xf32>, vector<8x32xf32>, vector<64x32xf32> -> vector<64x32xf32>
    %66 = vector.extract_strided_slice %65 {offsets = [0, 0], sizes = [8, 32], strides = [1, 1]} : vector<64x32xf32> to vector<8x32xf32>
    %c0_25 = arith.constant 0 : index
    %c0_26 = arith.constant 0 : index
    %67 = vector.load %arg13[%c0_25, %c0_26] : memref<8x2048xf32, #tpu.memory_space<vmem>>, vector<8x32xf32>
    tpu.vector_store %arg13[%c0_25, %c0_26], %66 {strides = array<i32>} : memref<8x2048xf32, #tpu.memory_space<vmem>>, vector<8x32xf32>,
    %68 = vector.extract_strided_slice %65 {offsets = [8, 0], sizes = [8, 32], strides = [1, 1]} : vector<64x32xf32> to vector<8x32xf32>
    %c0_27 = arith.constant 0 : index
    %c32 = arith.constant 32 : index
    %69 = vector.load %arg13[%c0_27, %c32] : memref<8x2048xf32, #tpu.memory_space<vmem>>, vector<8x32xf32>
    tpu.vector_store %arg13[%c0_27, %c32], %68 {strides = array<i32>} : memref<8x2048xf32, #tpu.memory_space<vmem>>, vector<8x32xf32>,
    %70 = vector.extract_strided_slice %65 {offsets = [16, 0], sizes = [8, 32], strides = [1, 1]} : vector<64x32xf32> to vector<8x32xf32>
    %c0_28 = arith.constant 0 : index
    %c64 = arith.constant 64 : index
    %71 = vector.load %arg13[%c0_28, %c64] : memref<8x2048xf32, #tpu.memory_space<vmem>>, vector<8x32xf32>
    tpu.vector_store %arg13[%c0_28, %c64], %70 {strides = array<i32>} : memref<8x2048xf32, #tpu.memory_space<vmem>>, vector<8x32xf32>,
    %72 = vector.extract_strided_slice %65 {offsets = [24, 0], sizes = [8, 32], strides = [1, 1]} : vector<64x32xf32> to vector<8x32xf32>
    %c0_29 = arith.constant 0 : index
    %c96 = arith.constant 96 : index
    %73 = vector.load %arg13[%c0_29, %c96] : memref<8x2048xf32, #tpu.memory_space<vmem>>, vector<8x32xf32>
    tpu.vector_store %arg13[%c0_29, %c96], %72 {strides = array<i32>} : memref<8x2048xf32, #tpu.memory_space<vmem>>, vector<8x32xf32>,
    %74 = vector.extract_strided_slice %65 {offsets = [32, 0], sizes = [8, 32], strides = [1, 1]} : vector<64x32xf32> to vector<8x32xf32>
    %c0_30 = arith.constant 0 : index
    %c128 = arith.constant 128 : index
    %75 = vector.load %arg13[%c0_30, %c128] : memref<8x2048xf32, #tpu.memory_space<vmem>>, vector<8x32xf32>
    tpu.vector_store %arg13[%c0_30, %c128], %74 {strides = array<i32>} : memref<8x2048xf32, #tpu.memory_space<vmem>>, vector<8x32xf32>,
    %76 = vector.extract_strided_slice %65 {offsets = [40, 0], sizes = [8, 32], strides = [1, 1]} : vector<64x32xf32> to vector<8x32xf32>
    %c0_31 = arith.constant 0 : index
    %c160 = arith.constant 160 : index
    %77 = vector.load %arg13[%c0_31, %c160] : memref<8x2048xf32, #tpu.memory_space<vmem>>, vector<8x32xf32>
    tpu.vector_store %arg13[%c0_31, %c160], %76 {strides = array<i32>} : memref<8x2048xf32, #tpu.memory_space<vmem>>, vector<8x32xf32>,
    %78 = vector.extract_strided_slice %65 {offsets = [48, 0], sizes = [8, 32], strides = [1, 1]} : vector<64x32xf32> to vector<8x32xf32>
    %c0_32 = arith.constant 0 : index
    %c192 = arith.constant 192 : index
    %79 = vector.load %arg13[%c0_32, %c192] : memref<8x2048xf32, #tpu.memory_space<vmem>>, vector<8x32xf32>
    tpu.vector_store %arg13[%c0_32, %c192], %78 {strides = array<i32>} : memref<8x2048xf32, #tpu.memory_space<vmem>>, vector<8x32xf32>,
    %80 = vector.extract_strided_slice %65 {offsets = [56, 0], sizes = [8, 32], strides = [1, 1]} : vector<64x32xf32> to vector<8x32xf32>
    %c0_33 = arith.constant 0 : index
    %c224 = arith.constant 224 : index
    %81 = vector.load %arg13[%c0_33, %c224] : memref<8x2048xf32, #tpu.memory_space<vmem>>, vector<8x32xf32>
    tpu.vector_store %arg13[%c0_33, %c224], %80 {strides = array<i32>} : memref<8x2048xf32, #tpu.memory_space<vmem>>, vector<8x32xf32>,
    %c64_34 = arith.constant 64 : index
    %c0_35 = arith.constant 0 : index
    %82 = vector.load %arg1[%c64_34, %c0_35] : memref<512x2xf32, #tpu.memory_space<vmem>>, vector<64x1xf32>
    %c64_36 = arith.constant 64 : index
    %c1_37 = arith.constant 1 : index
    %83 = vector.load %arg1[%c64_36, %c1_37] : memref<512x2xf32, #tpu.memory_space<vmem>>, vector<64x1xf32>
    %cst_38 = arith.constant 1.000000e+00 : f32
    %84 = vector.broadcast %cst_38 : f32 to vector<64x1xf32>
    %85 = arith.subf %82, %84 : vector<64x1xf32>
    %cst_39 = arith.constant 1.000000e+00 : f32
    %86 = vector.broadcast %cst_39 : f32 to vector<64x1xf32>
    %87 = arith.addf %83, %86 : vector<64x1xf32>
    %cst_40 = arith.constant 1.000000e+00 : f32
    %88 = vector.broadcast %cst_40 : f32 to vector<64x1xf32>
    %89 = arith.addf %82, %88 : vector<64x1xf32>
    %cst_41 = arith.constant 1.000000e+00 : f32
    %90 = vector.broadcast %cst_41 : f32 to vector<64x1xf32>
    %91 = arith.subf %83, %90 : vector<64x1xf32>
    %92 = vector.broadcast %1 : vector<1x8xf32> to vector<64x8xf32>
    %93 = vector.broadcast %85 : vector<64x1xf32> to vector<64x8xf32>
    %94 = arith.subf %92, %93 : vector<64x8xf32>
    %cst_42 = arith.constant 2.000000e+00 : f32
    %95 = vector.broadcast %cst_42 : f32 to vector<64x8xf32>
    %96 = arith.divf %94, %95 : vector<64x8xf32>
    %cst_43 = arith.constant 8.000000e+00 : f32
    %97 = vector.broadcast %cst_43 : f32 to vector<64x8xf32>
    %98 = arith.mulf %96, %97 : vector<64x8xf32>
    %99 = math.floor %98 : vector<64x8xf32>
    %100 = vector.broadcast %87 : vector<64x1xf32> to vector<64x8xf32>
    %101 = vector.broadcast %2 : vector<1x8xf32> to vector<64x8xf32>
    %102 = arith.subf %100, %101 : vector<64x8xf32>
    %cst_44 = arith.constant 2.000000e+00 : f32
    %103 = vector.broadcast %cst_44 : f32 to vector<64x8xf32>
    %104 = arith.divf %102, %103 : vector<64x8xf32>
    %cst_45 = arith.constant 8.000000e+00 : f32
    %105 = vector.broadcast %cst_45 : f32 to vector<64x8xf32>
    %106 = arith.mulf %104, %105 : vector<64x8xf32>
    %107 = math.floor %106 : vector<64x8xf32>
    %cst_46 = arith.constant 8.000000e+00 : f32
    %108 = vector.broadcast %cst_46 : f32 to vector<64x8xf32>
    %109 = arith.mulf %107, %108 : vector<64x8xf32>
    %110 = arith.addf %99, %109 : vector<64x8xf32>
    %111 = arith.fptosi %110 : vector<64x8xf32> to vector<64x8xi32>
    %112 = vector.broadcast %1 : vector<1x8xf32> to vector<64x8xf32>
    %113 = vector.broadcast %85 : vector<64x1xf32> to vector<64x8xf32>
    %114 = arith.cmpf ogt, %112, %113 : vector<64x8xf32>
    %115 = vector.broadcast %1 : vector<1x8xf32> to vector<64x8xf32>
    %116 = vector.broadcast %89 : vector<64x1xf32> to vector<64x8xf32>
    %117 = arith.cmpf olt, %115, %116 : vector<64x8xf32>
    %118 = arith.andi %114, %117 : vector<64x8xi1>
    %119 = vector.broadcast %2 : vector<1x8xf32> to vector<64x8xf32>
    %120 = vector.broadcast %87 : vector<64x1xf32> to vector<64x8xf32>
    %121 = arith.cmpf olt, %119, %120 : vector<64x8xf32>
    %122 = arith.andi %118, %121 : vector<64x8xi1>
    %123 = vector.broadcast %2 : vector<1x8xf32> to vector<64x8xf32>
    %124 = vector.broadcast %91 : vector<64x1xf32> to vector<64x8xf32>
    %125 = arith.cmpf ogt, %123, %124 : vector<64x8xf32>
    %126 = arith.andi %122, %125 : vector<64x8xi1>
    %c64_47 = arith.constant 64 : index
    %c0_48 = arith.constant 0 : index
    %127 = vector.load %arg3[%c64_47, %c0_48] : memref<512x1xi32, #tpu.memory_space<vmem>>, vector<64x1xi32>
    %128 = vector.broadcast %127 : vector<64x1xi32> to vector<64x8xi32>
    %129 = vector.broadcast %3 : vector<1x8xi32> to vector<64x8xi32>
    %130 = arith.cmpi eq, %128, %129 : vector<64x8xi32>
    %c64_49 = arith.constant 64 : index
    %c0_50 = arith.constant 0 : index
    %131 = vector.load %arg6[%c64_49, %c0_50] : memref<512x1xi32, #tpu.memory_space<vmem>>, vector<64x1xi32>
    %132 = vector.broadcast %131 : vector<64x1xi32> to vector<64x8xi32>
    %133 = arith.cmpi ne, %132, %4 : vector<64x8xi32>
    %c64_51 = arith.constant 64 : index
    %c0_52 = arith.constant 0 : index
    %134 = vector.load %arg5[%c64_51, %c0_52] : memref<512x1xi32, #tpu.memory_space<vmem>>, vector<64x1xi32>
    %135 = vector.broadcast %134 : vector<64x1xi32> to vector<64x8xi32>
    %136 = arith.cmpi eq, %111, %135 : vector<64x8xi32>
    %137 = arith.andi %126, %130 : vector<64x8xi1>
    %138 = arith.andi %137, %133 : vector<64x8xi1>
    %139 = arith.andi %138, %136 : vector<64x8xi1>
    %140 = arith.extui %139 : vector<64x8xi1> to vector<64x8xi32>
    %141 = arith.sitofp %140 : vector<64x8xi32> to vector<64x8xf32>
    %cst_53 = arith.constant dense<0.000000e+00> : vector<64x32xf32>
    %142 = tpu.matmul %141, %0, %cst_53 {dimension_numbers = #tpu.dot_dimension_numbers<[1], [0], [0], [1], [0, 0, 1, 1], [], []>} : vector<64x8xf32>, vector<8x32xf32>, vector<64x32xf32> -> vector<64x32xf32>
    %143 = vector.extract_strided_slice %142 {offsets = [0, 0], sizes = [8, 32], strides = [1, 1]} : vector<64x32xf32> to vector<8x32xf32>
    %c0_54 = arith.constant 0 : index
    %c256 = arith.constant 256 : index
    %144 = vector.load %arg13[%c0_54, %c256] : memref<8x2048xf32, #tpu.memory_space<vmem>>, vector<8x32xf32>
    tpu.vector_store %arg13[%c0_54, %c256], %143 {strides = array<i32>} : memref<8x2048xf32, #tpu.memory_space<vmem>>, vector<8x32xf32>,
    %145 = vector.extract_strided_slice %142 {offsets = [8, 0], sizes = [8, 32], strides = [1, 1]} : vector<64x32xf32> to vector<8x32xf32>
    %c0_55 = arith.constant 0 : index
    %c288 = arith.constant 288 : index
    %146 = vector.load %arg13[%c0_55, %c288] : memref<8x2048xf32, #tpu.memory_space<vmem>>, vector<8x32xf32>
    tpu.vector_store %arg13[%c0_55, %c288], %145 {strides = array<i32>} : memref<8x2048xf32, #tpu.memory_space<vmem>>, vector<8x32xf32>,
    %147 = vector.extract_strided_slice %142 {offsets = [16, 0], sizes = [8, 32], strides = [1, 1]} : vector<64x32xf32> to vector<8x32xf32>
    %c0_56 = arith.constant 0 : index
    %c320 = arith.constant 320 : index
    %148 = vector.load %arg13[%c0_56, %c320] : memref<8x2048xf32, #tpu.memory_space<vmem>>, vector<8x32xf32>
    tpu.vector_store %arg13[%c0_56, %c320], %147 {strides = array<i32>} : memref<8x2048xf32, #tpu.memory_space<vmem>>, vector<8x32xf32>,
    %149 = vector.extract_strided_slice %142 {offsets = [24, 0], sizes = [8, 32], strides = [1, 1]} : vector<64x32xf32> to vector<8x32xf32>
    %c0_57 = arith.constant 0 : index
    %c352 = arith.constant 352 : index
    %150 = vector.load %arg13[%c0_57, %c352] : memref<8x2048xf32, #tpu.memory_space<vmem>>, vector<8x32xf32>
    tpu.vector_store %arg13[%c0_57, %c352], %149 {strides = array<i32>} : memref<8x2048xf32, #tpu.memory_space<vmem>>, vector<8x32xf32>,
    %151 = vector.extract_strided_slice %142 {offsets = [32, 0], sizes = [8, 32], strides = [1, 1]} : vector<64x32xf32> to vector<8x32xf32>
    %c0_58 = arith.constant 0 : index
    %c384 = arith.constant 384 : index
    %152 = vector.load %arg13[%c0_58, %c384] : memref<8x2048xf32, #tpu.memory_space<vmem>>, vector<8x32xf32>
    tpu.vector_store %arg13[%c0_58, %c384], %151 {strides = array<i32>} : memref<8x2048xf32, #tpu.memory_space<vmem>>, vector<8x32xf32>,
    %153 = vector.extract_strided_slice %142 {offsets = [40, 0], sizes = [8, 32], strides = [1, 1]} : vector<64x32xf32> to vector<8x32xf32>
    %c0_59 = arith.constant 0 : index
    %c416 = arith.constant 416 : index
    %154 = vector.load %arg13[%c0_59, %c416] : memref<8x2048xf32, #tpu.memory_space<vmem>>, vector<8x32xf32>
    tpu.vector_store %arg13[%c0_59, %c416], %153 {strides = array<i32>} : memref<8x2048xf32, #tpu.memory_space<vmem>>, vector<8x32xf32>,
    %155 = vector.extract_strided_slice %142 {offsets = [48, 0], sizes = [8, 32], strides = [1, 1]} : vector<64x32xf32> to vector<8x32xf32>
    %c0_60 = arith.constant 0 : index
    %c448 = arith.constant 448 : index
    %156 = vector.load %arg13[%c0_60, %c448] : memref<8x2048xf32, #tpu.memory_space<vmem>>, vector<8x32xf32>
    tpu.vector_store %arg13[%c0_60, %c448], %155 {strides = array<i32>} : memref<8x2048xf32, #tpu.memory_space<vmem>>, vector<8x32xf32>,
    %157 = vector.extract_strided_slice %142 {offsets = [56, 0], sizes = [8, 32], strides = [1, 1]} : vector<64x32xf32> to vector<8x32xf32>
    %c0_61 = arith.constant 0 : index
    %c480 = arith.constant 480 : index
    %158 = vector.load %arg13[%c0_61, %c480] : memref<8x2048xf32, #tpu.memory_space<vmem>>, vector<8x32xf32>
    tpu.vector_store %arg13[%c0_61, %c480], %157 {strides = array<i32>} : memref<8x2048xf32, #tpu.memory_space<vmem>>, vector<8x32xf32>,
    %c128_62 = arith.constant 128 : index
    %c0_63 = arith.constant 0 : index
    %159 = vector.load %arg1[%c128_62, %c0_63] : memref<512x2xf32, #tpu.memory_space<vmem>>, vector<64x1xf32>
    %c128_64 = arith.constant 128 : index
    %c1_65 = arith.constant 1 : index
    %160 = vector.load %arg1[%c128_64, %c1_65] : memref<512x2xf32, #tpu.memory_space<vmem>>, vector<64x1xf32>
    %cst_66 = arith.constant 1.000000e+00 : f32
    %161 = vector.broadcast %cst_66 : f32 to vector<64x1xf32>
    %162 = arith.subf %159, %161 : vector<64x1xf32>
    %cst_67 = arith.constant 1.000000e+00 : f32
    %163 = vector.broadcast %cst_67 : f32 to vector<64x1xf32>
    %164 = arith.addf %160, %163 : vector<64x1xf32>
    %cst_68 = arith.constant 1.000000e+00 : f32
    %165 = vector.broadcast %cst_68 : f32 to vector<64x1xf32>
    %166 = arith.addf %159, %165 : vector<64x1xf32>
    %cst_69 = arith.constant 1.000000e+00 : f32
    %167 = vector.broadcast %cst_69 : f32 to vector<64x1xf32>
    %168 = arith.subf %160, %167 : vector<64x1xf32>
    %169 = vector.broadcast %1 : vector<1x8xf32> to vector<64x8xf32>
    %170 = vector.broadcast %162 : vector<64x1xf32> to vector<64x8xf32>
    %171 = arith.subf %169, %170 : vector<64x8xf32>
    %cst_70 = arith.constant 2.000000e+00 : f32
    %172 = vector.broadcast %cst_70 : f32 to vector<64x8xf32>
    %173 = arith.divf %171, %172 : vector<64x8xf32>
    %cst_71 = arith.constant 8.000000e+00 : f32
    %174 = vector.broadcast %cst_71 : f32 to vector<64x8xf32>
    %175 = arith.mulf %173, %174 : vector<64x8xf32>
    %176 = math.floor %175 : vector<64x8xf32>
    %177 = vector.broadcast %164 : vector<64x1xf32> to vector<64x8xf32>
    %178 = vector.broadcast %2 : vector<1x8xf32> to vector<64x8xf32>
    %179 = arith.subf %177, %178 : vector<64x8xf32>
    %cst_72 = arith.constant 2.000000e+00 : f32
    %180 = vector.broadcast %cst_72 : f32 to vector<64x8xf32>
    %181 = arith.divf %179, %180 : vector<64x8xf32>
    %cst_73 = arith.constant 8.000000e+00 : f32
    %182 = vector.broadcast %cst_73 : f32 to vector<64x8xf32>
    %183 = arith.mulf %181, %182 : vector<64x8xf32>
    %184 = math.floor %183 : vector<64x8xf32>
    %cst_74 = arith.constant 8.000000e+00 : f32
    %185 = vector.broadcast %cst_74 : f32 to vector<64x8xf32>
    %186 = arith.mulf %184, %185 : vector<64x8xf32>
    %187 = arith.addf %176, %186 : vector<64x8xf32>
    %188 = arith.fptosi %187 : vector<64x8xf32> to vector<64x8xi32>
    %189 = vector.broadcast %1 : vector<1x8xf32> to vector<64x8xf32>
    %190 = vector.broadcast %162 : vector<64x1xf32> to vector<64x8xf32>
    %191 = arith.cmpf ogt, %189, %190 : vector<64x8xf32>
    %192 = vector.broadcast %1 : vector<1x8xf32> to vector<64x8xf32>
    %193 = vector.broadcast %166 : vector<64x1xf32> to vector<64x8xf32>
    %194 = arith.cmpf olt, %192, %193 : vector<64x8xf32>
    %195 = arith.andi %191, %194 : vector<64x8xi1>
    %196 = vector.broadcast %2 : vector<1x8xf32> to vector<64x8xf32>
    %197 = vector.broadcast %164 : vector<64x1xf32> to vector<64x8xf32>
    %198 = arith.cmpf olt, %196, %197 : vector<64x8xf32>
    %199 = arith.andi %195, %198 : vector<64x8xi1>
    %200 = vector.broadcast %2 : vector<1x8xf32> to vector<64x8xf32>
    %201 = vector.broadcast %168 : vector<64x1xf32> to vector<64x8xf32>
    %202 = arith.cmpf ogt, %200, %201 : vector<64x8xf32>
    %203 = arith.andi %199, %202 : vector<64x8xi1>
    %c128_75 = arith.constant 128 : index
    %c0_76 = arith.constant 0 : index
    %204 = vector.load %arg3[%c128_75, %c0_76] : memref<512x1xi32, #tpu.memory_space<vmem>>, vector<64x1xi32>
    %205 = vector.broadcast %204 : vector<64x1xi32> to vector<64x8xi32>
    %206 = vector.broadcast %3 : vector<1x8xi32> to vector<64x8xi32>
    %207 = arith.cmpi eq, %205, %206 : vector<64x8xi32>
    %c128_77 = arith.constant 128 : index
    %c0_78 = arith.constant 0 : index
    %208 = vector.load %arg6[%c128_77, %c0_78] : memref<512x1xi32, #tpu.memory_space<vmem>>, vector<64x1xi32>
    %209 = vector.broadcast %208 : vector<64x1xi32> to vector<64x8xi32>
    %210 = arith.cmpi ne, %209, %4 : vector<64x8xi32>
    %c128_79 = arith.constant 128 : index
    %c0_80 = arith.constant 0 : index
    %211 = vector.load %arg5[%c128_79, %c0_80] : memref<512x1xi32, #tpu.memory_space<vmem>>, vector<64x1xi32>
    %212 = vector.broadcast %211 : vector<64x1xi32> to vector<64x8xi32>
    %213 = arith.cmpi eq, %188, %212 : vector<64x8xi32>
    %214 = arith.andi %203, %207 : vector<64x8xi1>
    %215 = arith.andi %214, %210 : vector<64x8xi1>
    %216 = arith.andi %215, %213 : vector<64x8xi1>
    %217 = arith.extui %216 : vector<64x8xi1> to vector<64x8xi32>
    %218 = arith.sitofp %217 : vector<64x8xi32> to vector<64x8xf32>
    %cst_81 = arith.constant dense<0.000000e+00> : vector<64x32xf32>
    %219 = tpu.matmul %218, %0, %cst_81 {dimension_numbers = #tpu.dot_dimension_numbers<[1], [0], [0], [1], [0, 0, 1, 1], [], []>} : vector<64x8xf32>, vector<8x32xf32>, vector<64x32xf32> -> vector<64x32xf32>
    %220 = vector.extract_strided_slice %219 {offsets = [0, 0], sizes = [8, 32], strides = [1, 1]} : vector<64x32xf32> to vector<8x32xf32>
    %c0_82 = arith.constant 0 : index
    %c512 = arith.constant 512 : index
    %221 = vector.load %arg13[%c0_82, %c512] : memref<8x2048xf32, #tpu.memory_space<vmem>>, vector<8x32xf32>
    tpu.vector_store %arg13[%c0_82, %c512], %220 {strides = array<i32>} : memref<8x2048xf32, #tpu.memory_space<vmem>>, vector<8x32xf32>,
    %222 = vector.extract_strided_slice %219 {offsets = [8, 0], sizes = [8, 32], strides = [1, 1]} : vector<64x32xf32> to vector<8x32xf32>
    %c0_83 = arith.constant 0 : index
    %c544 = arith.constant 544 : index
    %223 = vector.load %arg13[%c0_83, %c544] : memref<8x2048xf32, #tpu.memory_space<vmem>>, vector<8x32xf32>
    tpu.vector_store %arg13[%c0_83, %c544], %222 {strides = array<i32>} : memref<8x2048xf32, #tpu.memory_space<vmem>>, vector<8x32xf32>,
    %224 = vector.extract_strided_slice %219 {offsets = [16, 0], sizes = [8, 32], strides = [1, 1]} : vector<64x32xf32> to vector<8x32xf32>
    %c0_84 = arith.constant 0 : index
    %c576 = arith.constant 576 : index
    %225 = vector.load %arg13[%c0_84, %c576] : memref<8x2048xf32, #tpu.memory_space<vmem>>, vector<8x32xf32>
    tpu.vector_store %arg13[%c0_84, %c576], %224 {strides = array<i32>} : memref<8x2048xf32, #tpu.memory_space<vmem>>, vector<8x32xf32>,
    %226 = vector.extract_strided_slice %219 {offsets = [24, 0], sizes = [8, 32], strides = [1, 1]} : vector<64x32xf32> to vector<8x32xf32>
    %c0_85 = arith.constant 0 : index
    %c608 = arith.constant 608 : index
    %227 = vector.load %arg13[%c0_85, %c608] : memref<8x2048xf32, #tpu.memory_space<vmem>>, vector<8x32xf32>
    tpu.vector_store %arg13[%c0_85, %c608], %226 {strides = array<i32>} : memref<8x2048xf32, #tpu.memory_space<vmem>>, vector<8x32xf32>,
    %228 = vector.extract_strided_slice %219 {offsets = [32, 0], sizes = [8, 32], strides = [1, 1]} : vector<64x32xf32> to vector<8x32xf32>
    %c0_86 = arith.constant 0 : index
    %c640 = arith.constant 640 : index
    %229 = vector.load %arg13[%c0_86, %c640] : memref<8x2048xf32, #tpu.memory_space<vmem>>, vector<8x32xf32>
    tpu.vector_store %arg13[%c0_86, %c640], %228 {strides = array<i32>} : memref<8x2048xf32, #tpu.memory_space<vmem>>, vector<8x32xf32>,
    %230 = vector.extract_strided_slice %219 {offsets = [40, 0], sizes = [8, 32], strides = [1, 1]} : vector<64x32xf32> to vector<8x32xf32>
    %c0_87 = arith.constant 0 : index
    %c672 = arith.constant 672 : index
    %231 = vector.load %arg13[%c0_87, %c672] : memref<8x2048xf32, #tpu.memory_space<vmem>>, vector<8x32xf32>
    tpu.vector_store %arg13[%c0_87, %c672], %230 {strides = array<i32>} : memref<8x2048xf32, #tpu.memory_space<vmem>>, vector<8x32xf32>,
    %232 = vector.extract_strided_slice %219 {offsets = [48, 0], sizes = [8, 32], strides = [1, 1]} : vector<64x32xf32> to vector<8x32xf32>
    %c0_88 = arith.constant 0 : index
    %c704 = arith.constant 704 : index
    %233 = vector.load %arg13[%c0_88, %c704] : memref<8x2048xf32, #tpu.memory_space<vmem>>, vector<8x32xf32>
    tpu.vector_store %arg13[%c0_88, %c704], %232 {strides = array<i32>} : memref<8x2048xf32, #tpu.memory_space<vmem>>, vector<8x32xf32>,
    %234 = vector.extract_strided_slice %219 {offsets = [56, 0], sizes = [8, 32], strides = [1, 1]} : vector<64x32xf32> to vector<8x32xf32>
    %c0_89 = arith.constant 0 : index
    %c736 = arith.constant 736 : index
    %235 = vector.load %arg13[%c0_89, %c736] : memref<8x2048xf32, #tpu.memory_space<vmem>>, vector<8x32xf32>
    tpu.vector_store %arg13[%c0_89, %c736], %234 {strides = array<i32>} : memref<8x2048xf32, #tpu.memory_space<vmem>>, vector<8x32xf32>,
    %c192_90 = arith.constant 192 : index
    %c0_91 = arith.constant 0 : index
    %236 = vector.load %arg1[%c192_90, %c0_91] : memref<512x2xf32, #tpu.memory_space<vmem>>, vector<64x1xf32>
    %c192_92 = arith.constant 192 : index
    %c1_93 = arith.constant 1 : index
    %237 = vector.load %arg1[%c192_92, %c1_93] : memref<512x2xf32, #tpu.memory_space<vmem>>, vector<64x1xf32>
    %cst_94 = arith.constant 1.000000e+00 : f32
    %238 = vector.broadcast %cst_94 : f32 to vector<64x1xf32>
    %239 = arith.subf %236, %238 : vector<64x1xf32>
    %cst_95 = arith.constant 1.000000e+00 : f32
    %240 = vector.broadcast %cst_95 : f32 to vector<64x1xf32>
    %241 = arith.addf %237, %240 : vector<64x1xf32>
    %cst_96 = arith.constant 1.000000e+00 : f32
    %242 = vector.broadcast %cst_96 : f32 to vector<64x1xf32>
    %243 = arith.addf %236, %242 : vector<64x1xf32>
    %cst_97 = arith.constant 1.000000e+00 : f32
    %244 = vector.broadcast %cst_97 : f32 to vector<64x1xf32>
    %245 = arith.subf %237, %244 : vector<64x1xf32>
    %246 = vector.broadcast %1 : vector<1x8xf32> to vector<64x8xf32>
    %247 = vector.broadcast %239 : vector<64x1xf32> to vector<64x8xf32>
    %248 = arith.subf %246, %247 : vector<64x8xf32>
    %cst_98 = arith.constant 2.000000e+00 : f32
    %249 = vector.broadcast %cst_98 : f32 to vector<64x8xf32>
    %250 = arith.divf %248, %249 : vector<64x8xf32>
    %cst_99 = arith.constant 8.000000e+00 : f32
    %251 = vector.broadcast %cst_99 : f32 to vector<64x8xf32>
    %252 = arith.mulf %250, %251 : vector<64x8xf32>
    %253 = math.floor %252 : vector<64x8xf32>
    %254 = vector.broadcast %241 : vector<64x1xf32> to vector<64x8xf32>
    %255 = vector.broadcast %2 : vector<1x8xf32> to vector<64x8xf32>
    %256 = arith.subf %254, %255 : vector<64x8xf32>
    %cst_100 = arith.constant 2.000000e+00 : f32
    %257 = vector.broadcast %cst_100 : f32 to vector<64x8xf32>
    %258 = arith.divf %256, %257 : vector<64x8xf32>
    %cst_101 = arith.constant 8.000000e+00 : f32
    %259 = vector.broadcast %cst_101 : f32 to vector<64x8xf32>
    %260 = arith.mulf %258, %259 : vector<64x8xf32>
    %261 = math.floor %260 : vector<64x8xf32>
    %cst_102 = arith.constant 8.000000e+00 : f32
    %262 = vector.broadcast %cst_102 : f32 to vector<64x8xf32>
    %263 = arith.mulf %261, %262 : vector<64x8xf32>
    %264 = arith.addf %253, %263 : vector<64x8xf32>
    %265 = arith.fptosi %264 : vector<64x8xf32> to vector<64x8xi32>
    %266 = vector.broadcast %1 : vector<1x8xf32> to vector<64x8xf32>
    %267 = vector.broadcast %239 : vector<64x1xf32> to vector<64x8xf32>
    %268 = arith.cmpf ogt, %266, %267 : vector<64x8xf32>
    %269 = vector.broadcast %1 : vector<1x8xf32> to vector<64x8xf32>
    %270 = vector.broadcast %243 : vector<64x1xf32> to vector<64x8xf32>
    %271 = arith.cmpf olt, %269, %270 : vector<64x8xf32>
    %272 = arith.andi %268, %271 : vector<64x8xi1>
    %273 = vector.broadcast %2 : vector<1x8xf32> to vector<64x8xf32>
    %274 = vector.broadcast %241 : vector<64x1xf32> to vector<64x8xf32>
    %275 = arith.cmpf olt, %273, %274 : vector<64x8xf32>
    %276 = arith.andi %272, %275 : vector<64x8xi1>
    %277 = vector.broadcast %2 : vector<1x8xf32> to vector<64x8xf32>
    %278 = vector.broadcast %245 : vector<64x1xf32> to vector<64x8xf32>
    %279 = arith.cmpf ogt, %277, %278 : vector<64x8xf32>
    %280 = arith.andi %276, %279 : vector<64x8xi1>
    %c192_103 = arith.constant 192 : index
    %c0_104 = arith.constant 0 : index
    %281 = vector.load %arg3[%c192_103, %c0_104] : memref<512x1xi32, #tpu.memory_space<vmem>>, vector<64x1xi32>
    %282 = vector.broadcast %281 : vector<64x1xi32> to vector<64x8xi32>
    %283 = vector.broadcast %3 : vector<1x8xi32> to vector<64x8xi32>
    %284 = arith.cmpi eq, %282, %283 : vector<64x8xi32>
    %c192_105 = arith.constant 192 : index
    %c0_106 = arith.constant 0 : index
    %285 = vector.load %arg6[%c192_105, %c0_106] : memref<512x1xi32, #tpu.memory_space<vmem>>, vector<64x1xi32>
    %286 = vector.broadcast %285 : vector<64x1xi32> to vector<64x8xi32>
    %287 = arith.cmpi ne, %286, %4 : vector<64x8xi32>
    %c192_107 = arith.constant 192 : index
    %c0_108 = arith.constant 0 : index
    %288 = vector.load %arg5[%c192_107, %c0_108] : memref<512x1xi32, #tpu.memory_space<vmem>>, vector<64x1xi32>
    %289 = vector.broadcast %288 : vector<64x1xi32> to vector<64x8xi32>
    %290 = arith.cmpi eq, %265, %289 : vector<64x8xi32>
    %291 = arith.andi %280, %284 : vector<64x8xi1>
    %292 = arith.andi %291, %287 : vector<64x8xi1>
    %293 = arith.andi %292, %290 : vector<64x8xi1>
    %294 = arith.extui %293 : vector<64x8xi1> to vector<64x8xi32>
    %295 = arith.sitofp %294 : vector<64x8xi32> to vector<64x8xf32>
    %cst_109 = arith.constant dense<0.000000e+00> : vector<64x32xf32>
    %296 = tpu.matmul %295, %0, %cst_109 {dimension_numbers = #tpu.dot_dimension_numbers<[1], [0], [0], [1], [0, 0, 1, 1], [], []>} : vector<64x8xf32>, vector<8x32xf32>, vector<64x32xf32> -> vector<64x32xf32>
    %297 = vector.extract_strided_slice %296 {offsets = [0, 0], sizes = [8, 32], strides = [1, 1]} : vector<64x32xf32> to vector<8x32xf32>
    %c0_110 = arith.constant 0 : index
    %c768 = arith.constant 768 : index
    %298 = vector.load %arg13[%c0_110, %c768] : memref<8x2048xf32, #tpu.memory_space<vmem>>, vector<8x32xf32>
    tpu.vector_store %arg13[%c0_110, %c768], %297 {strides = array<i32>} : memref<8x2048xf32, #tpu.memory_space<vmem>>, vector<8x32xf32>,
    %299 = vector.extract_strided_slice %296 {offsets = [8, 0], sizes = [8, 32], strides = [1, 1]} : vector<64x32xf32> to vector<8x32xf32>
    %c0_111 = arith.constant 0 : index
    %c800 = arith.constant 800 : index
    %300 = vector.load %arg13[%c0_111, %c800] : memref<8x2048xf32, #tpu.memory_space<vmem>>, vector<8x32xf32>
    tpu.vector_store %arg13[%c0_111, %c800], %299 {strides = array<i32>} : memref<8x2048xf32, #tpu.memory_space<vmem>>, vector<8x32xf32>,
    %301 = vector.extract_strided_slice %296 {offsets = [16, 0], sizes = [8, 32], strides = [1, 1]} : vector<64x32xf32> to vector<8x32xf32>
    %c0_112 = arith.constant 0 : index
    %c832 = arith.constant 832 : index
    %302 = vector.load %arg13[%c0_112, %c832] : memref<8x2048xf32, #tpu.memory_space<vmem>>, vector<8x32xf32>
    tpu.vector_store %arg13[%c0_112, %c832], %301 {strides = array<i32>} : memref<8x2048xf32, #tpu.memory_space<vmem>>, vector<8x32xf32>,
    %303 = vector.extract_strided_slice %296 {offsets = [24, 0], sizes = [8, 32], strides = [1, 1]} : vector<64x32xf32> to vector<8x32xf32>
    %c0_113 = arith.constant 0 : index
    %c864 = arith.constant 864 : index
    %304 = vector.load %arg13[%c0_113, %c864] : memref<8x2048xf32, #tpu.memory_space<vmem>>, vector<8x32xf32>
    tpu.vector_store %arg13[%c0_113, %c864], %303 {strides = array<i32>} : memref<8x2048xf32, #tpu.memory_space<vmem>>, vector<8x32xf32>,
    %305 = vector.extract_strided_slice %296 {offsets = [32, 0], sizes = [8, 32], strides = [1, 1]} : vector<64x32xf32> to vector<8x32xf32>
    %c0_114 = arith.constant 0 : index
    %c896 = arith.constant 896 : index
    %306 = vector.load %arg13[%c0_114, %c896] : memref<8x2048xf32, #tpu.memory_space<vmem>>, vector<8x32xf32>
    tpu.vector_store %arg13[%c0_114, %c896], %305 {strides = array<i32>} : memref<8x2048xf32, #tpu.memory_space<vmem>>, vector<8x32xf32>,
    %307 = vector.extract_strided_slice %296 {offsets = [40, 0], sizes = [8, 32], strides = [1, 1]} : vector<64x32xf32> to vector<8x32xf32>
    %c0_115 = arith.constant 0 : index
    %c928 = arith.constant 928 : index
    %308 = vector.load %arg13[%c0_115, %c928] : memref<8x2048xf32, #tpu.memory_space<vmem>>, vector<8x32xf32>
    tpu.vector_store %arg13[%c0_115, %c928], %307 {strides = array<i32>} : memref<8x2048xf32, #tpu.memory_space<vmem>>, vector<8x32xf32>,
    %309 = vector.extract_strided_slice %296 {offsets = [48, 0], sizes = [8, 32], strides = [1, 1]} : vector<64x32xf32> to vector<8x32xf32>
    %c0_116 = arith.constant 0 : index
    %c960 = arith.constant 960 : index
    %310 = vector.load %arg13[%c0_116, %c960] : memref<8x2048xf32, #tpu.memory_space<vmem>>, vector<8x32xf32>
    tpu.vector_store %arg13[%c0_116, %c960], %309 {strides = array<i32>} : memref<8x2048xf32, #tpu.memory_space<vmem>>, vector<8x32xf32>,
    %311 = vector.extract_strided_slice %296 {offsets = [56, 0], sizes = [8, 32], strides = [1, 1]} : vector<64x32xf32> to vector<8x32xf32>
    %c0_117 = arith.constant 0 : index
    %c992 = arith.constant 992 : index
    %312 = vector.load %arg13[%c0_117, %c992] : memref<8x2048xf32, #tpu.memory_space<vmem>>, vector<8x32xf32>
    tpu.vector_store %arg13[%c0_117, %c992], %311 {strides = array<i32>} : memref<8x2048xf32, #tpu.memory_space<vmem>>, vector<8x32xf32>,
    %c256_118 = arith.constant 256 : index
    %c0_119 = arith.constant 0 : index
    %313 = vector.load %arg1[%c256_118, %c0_119] : memref<512x2xf32, #tpu.memory_space<vmem>>, vector<64x1xf32>
    %c256_120 = arith.constant 256 : index
    %c1_121 = arith.constant 1 : index
    %314 = vector.load %arg1[%c256_120, %c1_121] : memref<512x2xf32, #tpu.memory_space<vmem>>, vector<64x1xf32>
    %cst_122 = arith.constant 1.000000e+00 : f32
    %315 = vector.broadcast %cst_122 : f32 to vector<64x1xf32>
    %316 = arith.subf %313, %315 : vector<64x1xf32>
    %cst_123 = arith.constant 1.000000e+00 : f32
    %317 = vector.broadcast %cst_123 : f32 to vector<64x1xf32>
    %318 = arith.addf %314, %317 : vector<64x1xf32>
    %cst_124 = arith.constant 1.000000e+00 : f32
    %319 = vector.broadcast %cst_124 : f32 to vector<64x1xf32>
    %320 = arith.addf %313, %319 : vector<64x1xf32>
    %cst_125 = arith.constant 1.000000e+00 : f32
    %321 = vector.broadcast %cst_125 : f32 to vector<64x1xf32>
    %322 = arith.subf %314, %321 : vector<64x1xf32>
    %323 = vector.broadcast %1 : vector<1x8xf32> to vector<64x8xf32>
    %324 = vector.broadcast %316 : vector<64x1xf32> to vector<64x8xf32>
    %325 = arith.subf %323, %324 : vector<64x8xf32>
    %cst_126 = arith.constant 2.000000e+00 : f32
    %326 = vector.broadcast %cst_126 : f32 to vector<64x8xf32>
    %327 = arith.divf %325, %326 : vector<64x8xf32>
    %cst_127 = arith.constant 8.000000e+00 : f32
    %328 = vector.broadcast %cst_127 : f32 to vector<64x8xf32>
    %329 = arith.mulf %327, %328 : vector<64x8xf32>
    %330 = math.floor %329 : vector<64x8xf32>
    %331 = vector.broadcast %318 : vector<64x1xf32> to vector<64x8xf32>
    %332 = vector.broadcast %2 : vector<1x8xf32> to vector<64x8xf32>
    %333 = arith.subf %331, %332 : vector<64x8xf32>
    %cst_128 = arith.constant 2.000000e+00 : f32
    %334 = vector.broadcast %cst_128 : f32 to vector<64x8xf32>
    %335 = arith.divf %333, %334 : vector<64x8xf32>
    %cst_129 = arith.constant 8.000000e+00 : f32
    %336 = vector.broadcast %cst_129 : f32 to vector<64x8xf32>
    %337 = arith.mulf %335, %336 : vector<64x8xf32>
    %338 = math.floor %337 : vector<64x8xf32>
    %cst_130 = arith.constant 8.000000e+00 : f32
    %339 = vector.broadcast %cst_130 : f32 to vector<64x8xf32>
    %340 = arith.mulf %338, %339 : vector<64x8xf32>
    %341 = arith.addf %330, %340 : vector<64x8xf32>
    %342 = arith.fptosi %341 : vector<64x8xf32> to vector<64x8xi32>
    %343 = vector.broadcast %1 : vector<1x8xf32> to vector<64x8xf32>
    %344 = vector.broadcast %316 : vector<64x1xf32> to vector<64x8xf32>
    %345 = arith.cmpf ogt, %343, %344 : vector<64x8xf32>
    %346 = vector.broadcast %1 : vector<1x8xf32> to vector<64x8xf32>
    %347 = vector.broadcast %320 : vector<64x1xf32> to vector<64x8xf32>
    %348 = arith.cmpf olt, %346, %347 : vector<64x8xf32>
    %349 = arith.andi %345, %348 : vector<64x8xi1>
    %350 = vector.broadcast %2 : vector<1x8xf32> to vector<64x8xf32>
    %351 = vector.broadcast %318 : vector<64x1xf32> to vector<64x8xf32>
    %352 = arith.cmpf olt, %350, %351 : vector<64x8xf32>
    %353 = arith.andi %349, %352 : vector<64x8xi1>
    %354 = vector.broadcast %2 : vector<1x8xf32> to vector<64x8xf32>
    %355 = vector.broadcast %322 : vector<64x1xf32> to vector<64x8xf32>
    %356 = arith.cmpf ogt, %354, %355 : vector<64x8xf32>
    %357 = arith.andi %353, %356 : vector<64x8xi1>
    %c256_131 = arith.constant 256 : index
    %c0_132 = arith.constant 0 : index
    %358 = vector.load %arg3[%c256_131, %c0_132] : memref<512x1xi32, #tpu.memory_space<vmem>>, vector<64x1xi32>
    %359 = vector.broadcast %358 : vector<64x1xi32> to vector<64x8xi32>
    %360 = vector.broadcast %3 : vector<1x8xi32> to vector<64x8xi32>
    %361 = arith.cmpi eq, %359, %360 : vector<64x8xi32>
    %c256_133 = arith.constant 256 : index
    %c0_134 = arith.constant 0 : index
    %362 = vector.load %arg6[%c256_133, %c0_134] : memref<512x1xi32, #tpu.memory_space<vmem>>, vector<64x1xi32>
    %363 = vector.broadcast %362 : vector<64x1xi32> to vector<64x8xi32>
    %364 = arith.cmpi ne, %363, %4 : vector<64x8xi32>
    %c256_135 = arith.constant 256 : index
    %c0_136 = arith.constant 0 : index
    %365 = vector.load %arg5[%c256_135, %c0_136] : memref<512x1xi32, #tpu.memory_space<vmem>>, vector<64x1xi32>
    %366 = vector.broadcast %365 : vector<64x1xi32> to vector<64x8xi32>
    %367 = arith.cmpi eq, %342, %366 : vector<64x8xi32>
    %368 = arith.andi %357, %361 : vector<64x8xi1>
    %369 = arith.andi %368, %364 : vector<64x8xi1>
    %370 = arith.andi %369, %367 : vector<64x8xi1>
    %371 = arith.extui %370 : vector<64x8xi1> to vector<64x8xi32>
    %372 = arith.sitofp %371 : vector<64x8xi32> to vector<64x8xf32>
    %cst_137 = arith.constant dense<0.000000e+00> : vector<64x32xf32>
    %373 = tpu.matmul %372, %0, %cst_137 {dimension_numbers = #tpu.dot_dimension_numbers<[1], [0], [0], [1], [0, 0, 1, 1], [], []>} : vector<64x8xf32>, vector<8x32xf32>, vector<64x32xf32> -> vector<64x32xf32>
    %374 = vector.extract_strided_slice %373 {offsets = [0, 0], sizes = [8, 32], strides = [1, 1]} : vector<64x32xf32> to vector<8x32xf32>
    %c0_138 = arith.constant 0 : index
    %c1024 = arith.constant 1024 : index
    %375 = vector.load %arg13[%c0_138, %c1024] : memref<8x2048xf32, #tpu.memory_space<vmem>>, vector<8x32xf32>
    tpu.vector_store %arg13[%c0_138, %c1024], %374 {strides = array<i32>} : memref<8x2048xf32, #tpu.memory_space<vmem>>, vector<8x32xf32>,
    %376 = vector.extract_strided_slice %373 {offsets = [8, 0], sizes = [8, 32], strides = [1, 1]} : vector<64x32xf32> to vector<8x32xf32>
    %c0_139 = arith.constant 0 : index
    %c1056 = arith.constant 1056 : index
    %377 = vector.load %arg13[%c0_139, %c1056] : memref<8x2048xf32, #tpu.memory_space<vmem>>, vector<8x32xf32>
    tpu.vector_store %arg13[%c0_139, %c1056], %376 {strides = array<i32>} : memref<8x2048xf32, #tpu.memory_space<vmem>>, vector<8x32xf32>,
    %378 = vector.extract_strided_slice %373 {offsets = [16, 0], sizes = [8, 32], strides = [1, 1]} : vector<64x32xf32> to vector<8x32xf32>
    %c0_140 = arith.constant 0 : index
    %c1088 = arith.constant 1088 : index
    %379 = vector.load %arg13[%c0_140, %c1088] : memref<8x2048xf32, #tpu.memory_space<vmem>>, vector<8x32xf32>
    tpu.vector_store %arg13[%c0_140, %c1088], %378 {strides = array<i32>} : memref<8x2048xf32, #tpu.memory_space<vmem>>, vector<8x32xf32>,
    %380 = vector.extract_strided_slice %373 {offsets = [24, 0], sizes = [8, 32], strides = [1, 1]} : vector<64x32xf32> to vector<8x32xf32>
    %c0_141 = arith.constant 0 : index
    %c1120 = arith.constant 1120 : index
    %381 = vector.load %arg13[%c0_141, %c1120] : memref<8x2048xf32, #tpu.memory_space<vmem>>, vector<8x32xf32>
    tpu.vector_store %arg13[%c0_141, %c1120], %380 {strides = array<i32>} : memref<8x2048xf32, #tpu.memory_space<vmem>>, vector<8x32xf32>,
    %382 = vector.extract_strided_slice %373 {offsets = [32, 0], sizes = [8, 32], strides = [1, 1]} : vector<64x32xf32> to vector<8x32xf32>
    %c0_142 = arith.constant 0 : index
    %c1152 = arith.constant 1152 : index
    %383 = vector.load %arg13[%c0_142, %c1152] : memref<8x2048xf32, #tpu.memory_space<vmem>>, vector<8x32xf32>
    tpu.vector_store %arg13[%c0_142, %c1152], %382 {strides = array<i32>} : memref<8x2048xf32, #tpu.memory_space<vmem>>, vector<8x32xf32>,
    %384 = vector.extract_strided_slice %373 {offsets = [40, 0], sizes = [8, 32], strides = [1, 1]} : vector<64x32xf32> to vector<8x32xf32>
    %c0_143 = arith.constant 0 : index
    %c1184 = arith.constant 1184 : index
    %385 = vector.load %arg13[%c0_143, %c1184] : memref<8x2048xf32, #tpu.memory_space<vmem>>, vector<8x32xf32>
    tpu.vector_store %arg13[%c0_143, %c1184], %384 {strides = array<i32>} : memref<8x2048xf32, #tpu.memory_space<vmem>>, vector<8x32xf32>,
    %386 = vector.extract_strided_slice %373 {offsets = [48, 0], sizes = [8, 32], strides = [1, 1]} : vector<64x32xf32> to vector<8x32xf32>
    %c0_144 = arith.constant 0 : index
    %c1216 = arith.constant 1216 : index
    %387 = vector.load %arg13[%c0_144, %c1216] : memref<8x2048xf32, #tpu.memory_space<vmem>>, vector<8x32xf32>
    tpu.vector_store %arg13[%c0_144, %c1216], %386 {strides = array<i32>} : memref<8x2048xf32, #tpu.memory_space<vmem>>, vector<8x32xf32>,
    %388 = vector.extract_strided_slice %373 {offsets = [56, 0], sizes = [8, 32], strides = [1, 1]} : vector<64x32xf32> to vector<8x32xf32>
    %c0_145 = arith.constant 0 : index
    %c1248 = arith.constant 1248 : index
    %389 = vector.load %arg13[%c0_145, %c1248] : memref<8x2048xf32, #tpu.memory_space<vmem>>, vector<8x32xf32>
    tpu.vector_store %arg13[%c0_145, %c1248], %388 {strides = array<i32>} : memref<8x2048xf32, #tpu.memory_space<vmem>>, vector<8x32xf32>,
    %c320_146 = arith.constant 320 : index
    %c0_147 = arith.constant 0 : index
    %390 = vector.load %arg1[%c320_146, %c0_147] : memref<512x2xf32, #tpu.memory_space<vmem>>, vector<64x1xf32>
    %c320_148 = arith.constant 320 : index
    %c1_149 = arith.constant 1 : index
    %391 = vector.load %arg1[%c320_148, %c1_149] : memref<512x2xf32, #tpu.memory_space<vmem>>, vector<64x1xf32>
    %cst_150 = arith.constant 1.000000e+00 : f32
    %392 = vector.broadcast %cst_150 : f32 to vector<64x1xf32>
    %393 = arith.subf %390, %392 : vector<64x1xf32>
    %cst_151 = arith.constant 1.000000e+00 : f32
    %394 = vector.broadcast %cst_151 : f32 to vector<64x1xf32>
    %395 = arith.addf %391, %394 : vector<64x1xf32>
    %cst_152 = arith.constant 1.000000e+00 : f32
    %396 = vector.broadcast %cst_152 : f32 to vector<64x1xf32>
    %397 = arith.addf %390, %396 : vector<64x1xf32>
    %cst_153 = arith.constant 1.000000e+00 : f32
    %398 = vector.broadcast %cst_153 : f32 to vector<64x1xf32>
    %399 = arith.subf %391, %398 : vector<64x1xf32>
    %400 = vector.broadcast %1 : vector<1x8xf32> to vector<64x8xf32>
    %401 = vector.broadcast %393 : vector<64x1xf32> to vector<64x8xf32>
    %402 = arith.subf %400, %401 : vector<64x8xf32>
    %cst_154 = arith.constant 2.000000e+00 : f32
    %403 = vector.broadcast %cst_154 : f32 to vector<64x8xf32>
    %404 = arith.divf %402, %403 : vector<64x8xf32>
    %cst_155 = arith.constant 8.000000e+00 : f32
    %405 = vector.broadcast %cst_155 : f32 to vector<64x8xf32>
    %406 = arith.mulf %404, %405 : vector<64x8xf32>
    %407 = math.floor %406 : vector<64x8xf32>
    %408 = vector.broadcast %395 : vector<64x1xf32> to vector<64x8xf32>
    %409 = vector.broadcast %2 : vector<1x8xf32> to vector<64x8xf32>
    %410 = arith.subf %408, %409 : vector<64x8xf32>
    %cst_156 = arith.constant 2.000000e+00 : f32
    %411 = vector.broadcast %cst_156 : f32 to vector<64x8xf32>
    %412 = arith.divf %410, %411 : vector<64x8xf32>
    %cst_157 = arith.constant 8.000000e+00 : f32
    %413 = vector.broadcast %cst_157 : f32 to vector<64x8xf32>
    %414 = arith.mulf %412, %413 : vector<64x8xf32>
    %415 = math.floor %414 : vector<64x8xf32>
    %cst_158 = arith.constant 8.000000e+00 : f32
    %416 = vector.broadcast %cst_158 : f32 to vector<64x8xf32>
    %417 = arith.mulf %415, %416 : vector<64x8xf32>
    %418 = arith.addf %407, %417 : vector<64x8xf32>
    %419 = arith.fptosi %418 : vector<64x8xf32> to vector<64x8xi32>
    %420 = vector.broadcast %1 : vector<1x8xf32> to vector<64x8xf32>
    %421 = vector.broadcast %393 : vector<64x1xf32> to vector<64x8xf32>
    %422 = arith.cmpf ogt, %420, %421 : vector<64x8xf32>
    %423 = vector.broadcast %1 : vector<1x8xf32> to vector<64x8xf32>
    %424 = vector.broadcast %397 : vector<64x1xf32> to vector<64x8xf32>
    %425 = arith.cmpf olt, %423, %424 : vector<64x8xf32>
    %426 = arith.andi %422, %425 : vector<64x8xi1>
    %427 = vector.broadcast %2 : vector<1x8xf32> to vector<64x8xf32>
    %428 = vector.broadcast %395 : vector<64x1xf32> to vector<64x8xf32>
    %429 = arith.cmpf olt, %427, %428 : vector<64x8xf32>
    %430 = arith.andi %426, %429 : vector<64x8xi1>
    %431 = vector.broadcast %2 : vector<1x8xf32> to vector<64x8xf32>
    %432 = vector.broadcast %399 : vector<64x1xf32> to vector<64x8xf32>
    %433 = arith.cmpf ogt, %431, %432 : vector<64x8xf32>
    %434 = arith.andi %430, %433 : vector<64x8xi1>
    %c320_159 = arith.constant 320 : index
    %c0_160 = arith.constant 0 : index
    %435 = vector.load %arg3[%c320_159, %c0_160] : memref<512x1xi32, #tpu.memory_space<vmem>>, vector<64x1xi32>
    %436 = vector.broadcast %435 : vector<64x1xi32> to vector<64x8xi32>
    %437 = vector.broadcast %3 : vector<1x8xi32> to vector<64x8xi32>
    %438 = arith.cmpi eq, %436, %437 : vector<64x8xi32>
    %c320_161 = arith.constant 320 : index
    %c0_162 = arith.constant 0 : index
    %439 = vector.load %arg6[%c320_161, %c0_162] : memref<512x1xi32, #tpu.memory_space<vmem>>, vector<64x1xi32>
    %440 = vector.broadcast %439 : vector<64x1xi32> to vector<64x8xi32>
    %441 = arith.cmpi ne, %440, %4 : vector<64x8xi32>
    %c320_163 = arith.constant 320 : index
    %c0_164 = arith.constant 0 : index
    %442 = vector.load %arg5[%c320_163, %c0_164] : memref<512x1xi32, #tpu.memory_space<vmem>>, vector<64x1xi32>
    %443 = vector.broadcast %442 : vector<64x1xi32> to vector<64x8xi32>
    %444 = arith.cmpi eq, %419, %443 : vector<64x8xi32>
    %445 = arith.andi %434, %438 : vector<64x8xi1>
    %446 = arith.andi %445, %441 : vector<64x8xi1>
    %447 = arith.andi %446, %444 : vector<64x8xi1>
    %448 = arith.extui %447 : vector<64x8xi1> to vector<64x8xi32>
    %449 = arith.sitofp %448 : vector<64x8xi32> to vector<64x8xf32>
    %cst_165 = arith.constant dense<0.000000e+00> : vector<64x32xf32>
    %450 = tpu.matmul %449, %0, %cst_165 {dimension_numbers = #tpu.dot_dimension_numbers<[1], [0], [0], [1], [0, 0, 1, 1], [], []>} : vector<64x8xf32>, vector<8x32xf32>, vector<64x32xf32> -> vector<64x32xf32>
    %451 = vector.extract_strided_slice %450 {offsets = [0, 0], sizes = [8, 32], strides = [1, 1]} : vector<64x32xf32> to vector<8x32xf32>
    %c0_166 = arith.constant 0 : index
    %c1280 = arith.constant 1280 : index
    %452 = vector.load %arg13[%c0_166, %c1280] : memref<8x2048xf32, #tpu.memory_space<vmem>>, vector<8x32xf32>
    tpu.vector_store %arg13[%c0_166, %c1280], %451 {strides = array<i32>} : memref<8x2048xf32, #tpu.memory_space<vmem>>, vector<8x32xf32>,
    %453 = vector.extract_strided_slice %450 {offsets = [8, 0], sizes = [8, 32], strides = [1, 1]} : vector<64x32xf32> to vector<8x32xf32>
    %c0_167 = arith.constant 0 : index
    %c1312 = arith.constant 1312 : index
    %454 = vector.load %arg13[%c0_167, %c1312] : memref<8x2048xf32, #tpu.memory_space<vmem>>, vector<8x32xf32>
    tpu.vector_store %arg13[%c0_167, %c1312], %453 {strides = array<i32>} : memref<8x2048xf32, #tpu.memory_space<vmem>>, vector<8x32xf32>,
    %455 = vector.extract_strided_slice %450 {offsets = [16, 0], sizes = [8, 32], strides = [1, 1]} : vector<64x32xf32> to vector<8x32xf32>
    %c0_168 = arith.constant 0 : index
    %c1344 = arith.constant 1344 : index
    %456 = vector.load %arg13[%c0_168, %c1344] : memref<8x2048xf32, #tpu.memory_space<vmem>>, vector<8x32xf32>
    tpu.vector_store %arg13[%c0_168, %c1344], %455 {strides = array<i32>} : memref<8x2048xf32, #tpu.memory_space<vmem>>, vector<8x32xf32>,
    %457 = vector.extract_strided_slice %450 {offsets = [24, 0], sizes = [8, 32], strides = [1, 1]} : vector<64x32xf32> to vector<8x32xf32>
    %c0_169 = arith.constant 0 : index
    %c1376 = arith.constant 1376 : index
    %458 = vector.load %arg13[%c0_169, %c1376] : memref<8x2048xf32, #tpu.memory_space<vmem>>, vector<8x32xf32>
    tpu.vector_store %arg13[%c0_169, %c1376], %457 {strides = array<i32>} : memref<8x2048xf32, #tpu.memory_space<vmem>>, vector<8x32xf32>,
    %459 = vector.extract_strided_slice %450 {offsets = [32, 0], sizes = [8, 32], strides = [1, 1]} : vector<64x32xf32> to vector<8x32xf32>
    %c0_170 = arith.constant 0 : index
    %c1408 = arith.constant 1408 : index
    %460 = vector.load %arg13[%c0_170, %c1408] : memref<8x2048xf32, #tpu.memory_space<vmem>>, vector<8x32xf32>
    tpu.vector_store %arg13[%c0_170, %c1408], %459 {strides = array<i32>} : memref<8x2048xf32, #tpu.memory_space<vmem>>, vector<8x32xf32>,
    %461 = vector.extract_strided_slice %450 {offsets = [40, 0], sizes = [8, 32], strides = [1, 1]} : vector<64x32xf32> to vector<8x32xf32>
    %c0_171 = arith.constant 0 : index
    %c1440 = arith.constant 1440 : index
    %462 = vector.load %arg13[%c0_171, %c1440] : memref<8x2048xf32, #tpu.memory_space<vmem>>, vector<8x32xf32>
    tpu.vector_store %arg13[%c0_171, %c1440], %461 {strides = array<i32>} : memref<8x2048xf32, #tpu.memory_space<vmem>>, vector<8x32xf32>,
    %463 = vector.extract_strided_slice %450 {offsets = [48, 0], sizes = [8, 32], strides = [1, 1]} : vector<64x32xf32> to vector<8x32xf32>
    %c0_172 = arith.constant 0 : index
    %c1472 = arith.constant 1472 : index
    %464 = vector.load %arg13[%c0_172, %c1472] : memref<8x2048xf32, #tpu.memory_space<vmem>>, vector<8x32xf32>
    tpu.vector_store %arg13[%c0_172, %c1472], %463 {strides = array<i32>} : memref<8x2048xf32, #tpu.memory_space<vmem>>, vector<8x32xf32>,
    %465 = vector.extract_strided_slice %450 {offsets = [56, 0], sizes = [8, 32], strides = [1, 1]} : vector<64x32xf32> to vector<8x32xf32>
    %c0_173 = arith.constant 0 : index
    %c1504 = arith.constant 1504 : index
    %466 = vector.load %arg13[%c0_173, %c1504] : memref<8x2048xf32, #tpu.memory_space<vmem>>, vector<8x32xf32>
    tpu.vector_store %arg13[%c0_173, %c1504], %465 {strides = array<i32>} : memref<8x2048xf32, #tpu.memory_space<vmem>>, vector<8x32xf32>,
    %c384_174 = arith.constant 384 : index
    %c0_175 = arith.constant 0 : index
    %467 = vector.load %arg1[%c384_174, %c0_175] : memref<512x2xf32, #tpu.memory_space<vmem>>, vector<64x1xf32>
    %c384_176 = arith.constant 384 : index
    %c1_177 = arith.constant 1 : index
    %468 = vector.load %arg1[%c384_176, %c1_177] : memref<512x2xf32, #tpu.memory_space<vmem>>, vector<64x1xf32>
    %cst_178 = arith.constant 1.000000e+00 : f32
    %469 = vector.broadcast %cst_178 : f32 to vector<64x1xf32>
    %470 = arith.subf %467, %469 : vector<64x1xf32>
    %cst_179 = arith.constant 1.000000e+00 : f32
    %471 = vector.broadcast %cst_179 : f32 to vector<64x1xf32>
    %472 = arith.addf %468, %471 : vector<64x1xf32>
    %cst_180 = arith.constant 1.000000e+00 : f32
    %473 = vector.broadcast %cst_180 : f32 to vector<64x1xf32>
    %474 = arith.addf %467, %473 : vector<64x1xf32>
    %cst_181 = arith.constant 1.000000e+00 : f32
    %475 = vector.broadcast %cst_181 : f32 to vector<64x1xf32>
    %476 = arith.subf %468, %475 : vector<64x1xf32>
    %477 = vector.broadcast %1 : vector<1x8xf32> to vector<64x8xf32>
    %478 = vector.broadcast %470 : vector<64x1xf32> to vector<64x8xf32>
    %479 = arith.subf %477, %478 : vector<64x8xf32>
    %cst_182 = arith.constant 2.000000e+00 : f32
    %480 = vector.broadcast %cst_182 : f32 to vector<64x8xf32>
    %481 = arith.divf %479, %480 : vector<64x8xf32>
    %cst_183 = arith.constant 8.000000e+00 : f32
    %482 = vector.broadcast %cst_183 : f32 to vector<64x8xf32>
    %483 = arith.mulf %481, %482 : vector<64x8xf32>
    %484 = math.floor %483 : vector<64x8xf32>
    %485 = vector.broadcast %472 : vector<64x1xf32> to vector<64x8xf32>
    %486 = vector.broadcast %2 : vector<1x8xf32> to vector<64x8xf32>
    %487 = arith.subf %485, %486 : vector<64x8xf32>
    %cst_184 = arith.constant 2.000000e+00 : f32
    %488 = vector.broadcast %cst_184 : f32 to vector<64x8xf32>
    %489 = arith.divf %487, %488 : vector<64x8xf32>
    %cst_185 = arith.constant 8.000000e+00 : f32
    %490 = vector.broadcast %cst_185 : f32 to vector<64x8xf32>
    %491 = arith.mulf %489, %490 : vector<64x8xf32>
    %492 = math.floor %491 : vector<64x8xf32>
    %cst_186 = arith.constant 8.000000e+00 : f32
    %493 = vector.broadcast %cst_186 : f32 to vector<64x8xf32>
    %494 = arith.mulf %492, %493 : vector<64x8xf32>
    %495 = arith.addf %484, %494 : vector<64x8xf32>
    %496 = arith.fptosi %495 : vector<64x8xf32> to vector<64x8xi32>
    %497 = vector.broadcast %1 : vector<1x8xf32> to vector<64x8xf32>
    %498 = vector.broadcast %470 : vector<64x1xf32> to vector<64x8xf32>
    %499 = arith.cmpf ogt, %497, %498 : vector<64x8xf32>
    %500 = vector.broadcast %1 : vector<1x8xf32> to vector<64x8xf32>
    %501 = vector.broadcast %474 : vector<64x1xf32> to vector<64x8xf32>
    %502 = arith.cmpf olt, %500, %501 : vector<64x8xf32>
    %503 = arith.andi %499, %502 : vector<64x8xi1>
    %504 = vector.broadcast %2 : vector<1x8xf32> to vector<64x8xf32>
    %505 = vector.broadcast %472 : vector<64x1xf32> to vector<64x8xf32>
    %506 = arith.cmpf olt, %504, %505 : vector<64x8xf32>
    %507 = arith.andi %503, %506 : vector<64x8xi1>
    %508 = vector.broadcast %2 : vector<1x8xf32> to vector<64x8xf32>
    %509 = vector.broadcast %476 : vector<64x1xf32> to vector<64x8xf32>
    %510 = arith.cmpf ogt, %508, %509 : vector<64x8xf32>
    %511 = arith.andi %507, %510 : vector<64x8xi1>
    %c384_187 = arith.constant 384 : index
    %c0_188 = arith.constant 0 : index
    %512 = vector.load %arg3[%c384_187, %c0_188] : memref<512x1xi32, #tpu.memory_space<vmem>>, vector<64x1xi32>
    %513 = vector.broadcast %512 : vector<64x1xi32> to vector<64x8xi32>
    %514 = vector.broadcast %3 : vector<1x8xi32> to vector<64x8xi32>
    %515 = arith.cmpi eq, %513, %514 : vector<64x8xi32>
    %c384_189 = arith.constant 384 : index
    %c0_190 = arith.constant 0 : index
    %516 = vector.load %arg6[%c384_189, %c0_190] : memref<512x1xi32, #tpu.memory_space<vmem>>, vector<64x1xi32>
    %517 = vector.broadcast %516 : vector<64x1xi32> to vector<64x8xi32>
    %518 = arith.cmpi ne, %517, %4 : vector<64x8xi32>
    %c384_191 = arith.constant 384 : index
    %c0_192 = arith.constant 0 : index
    %519 = vector.load %arg5[%c384_191, %c0_192] : memref<512x1xi32, #tpu.memory_space<vmem>>, vector<64x1xi32>
    %520 = vector.broadcast %519 : vector<64x1xi32> to vector<64x8xi32>
    %521 = arith.cmpi eq, %496, %520 : vector<64x8xi32>
    %522 = arith.andi %511, %515 : vector<64x8xi1>
    %523 = arith.andi %522, %518 : vector<64x8xi1>
    %524 = arith.andi %523, %521 : vector<64x8xi1>
    %525 = arith.extui %524 : vector<64x8xi1> to vector<64x8xi32>
    %526 = arith.sitofp %525 : vector<64x8xi32> to vector<64x8xf32>
    %cst_193 = arith.constant dense<0.000000e+00> : vector<64x32xf32>
    %527 = tpu.matmul %526, %0, %cst_193 {dimension_numbers = #tpu.dot_dimension_numbers<[1], [0], [0], [1], [0, 0, 1, 1], [], []>} : vector<64x8xf32>, vector<8x32xf32>, vector<64x32xf32> -> vector<64x32xf32>
    %528 = vector.extract_strided_slice %527 {offsets = [0, 0], sizes = [8, 32], strides = [1, 1]} : vector<64x32xf32> to vector<8x32xf32>
    %c0_194 = arith.constant 0 : index
    %c1536 = arith.constant 1536 : index
    %529 = vector.load %arg13[%c0_194, %c1536] : memref<8x2048xf32, #tpu.memory_space<vmem>>, vector<8x32xf32>
    tpu.vector_store %arg13[%c0_194, %c1536], %528 {strides = array<i32>} : memref<8x2048xf32, #tpu.memory_space<vmem>>, vector<8x32xf32>,
    %530 = vector.extract_strided_slice %527 {offsets = [8, 0], sizes = [8, 32], strides = [1, 1]} : vector<64x32xf32> to vector<8x32xf32>
    %c0_195 = arith.constant 0 : index
    %c1568 = arith.constant 1568 : index
    %531 = vector.load %arg13[%c0_195, %c1568] : memref<8x2048xf32, #tpu.memory_space<vmem>>, vector<8x32xf32>
    tpu.vector_store %arg13[%c0_195, %c1568], %530 {strides = array<i32>} : memref<8x2048xf32, #tpu.memory_space<vmem>>, vector<8x32xf32>,
    %532 = vector.extract_strided_slice %527 {offsets = [16, 0], sizes = [8, 32], strides = [1, 1]} : vector<64x32xf32> to vector<8x32xf32>
    %c0_196 = arith.constant 0 : index
    %c1600 = arith.constant 1600 : index
    %533 = vector.load %arg13[%c0_196, %c1600] : memref<8x2048xf32, #tpu.memory_space<vmem>>, vector<8x32xf32>
    tpu.vector_store %arg13[%c0_196, %c1600], %532 {strides = array<i32>} : memref<8x2048xf32, #tpu.memory_space<vmem>>, vector<8x32xf32>,
    %534 = vector.extract_strided_slice %527 {offsets = [24, 0], sizes = [8, 32], strides = [1, 1]} : vector<64x32xf32> to vector<8x32xf32>
    %c0_197 = arith.constant 0 : index
    %c1632 = arith.constant 1632 : index
    %535 = vector.load %arg13[%c0_197, %c1632] : memref<8x2048xf32, #tpu.memory_space<vmem>>, vector<8x32xf32>
    tpu.vector_store %arg13[%c0_197, %c1632], %534 {strides = array<i32>} : memref<8x2048xf32, #tpu.memory_space<vmem>>, vector<8x32xf32>,
    %536 = vector.extract_strided_slice %527 {offsets = [32, 0], sizes = [8, 32], strides = [1, 1]} : vector<64x32xf32> to vector<8x32xf32>
    %c0_198 = arith.constant 0 : index
    %c1664 = arith.constant 1664 : index
    %537 = vector.load %arg13[%c0_198, %c1664] : memref<8x2048xf32, #tpu.memory_space<vmem>>, vector<8x32xf32>
    tpu.vector_store %arg13[%c0_198, %c1664], %536 {strides = array<i32>} : memref<8x2048xf32, #tpu.memory_space<vmem>>, vector<8x32xf32>,
    %538 = vector.extract_strided_slice %527 {offsets = [40, 0], sizes = [8, 32], strides = [1, 1]} : vector<64x32xf32> to vector<8x32xf32>
    %c0_199 = arith.constant 0 : index
    %c1696 = arith.constant 1696 : index
    %539 = vector.load %arg13[%c0_199, %c1696] : memref<8x2048xf32, #tpu.memory_space<vmem>>, vector<8x32xf32>
    tpu.vector_store %arg13[%c0_199, %c1696], %538 {strides = array<i32>} : memref<8x2048xf32, #tpu.memory_space<vmem>>, vector<8x32xf32>,
    %540 = vector.extract_strided_slice %527 {offsets = [48, 0], sizes = [8, 32], strides = [1, 1]} : vector<64x32xf32> to vector<8x32xf32>
    %c0_200 = arith.constant 0 : index
    %c1728 = arith.constant 1728 : index
    %541 = vector.load %arg13[%c0_200, %c1728] : memref<8x2048xf32, #tpu.memory_space<vmem>>, vector<8x32xf32>
    tpu.vector_store %arg13[%c0_200, %c1728], %540 {strides = array<i32>} : memref<8x2048xf32, #tpu.memory_space<vmem>>, vector<8x32xf32>,
    %542 = vector.extract_strided_slice %527 {offsets = [56, 0], sizes = [8, 32], strides = [1, 1]} : vector<64x32xf32> to vector<8x32xf32>
    %c0_201 = arith.constant 0 : index
    %c1760 = arith.constant 1760 : index
    %543 = vector.load %arg13[%c0_201, %c1760] : memref<8x2048xf32, #tpu.memory_space<vmem>>, vector<8x32xf32>
    tpu.vector_store %arg13[%c0_201, %c1760], %542 {strides = array<i32>} : memref<8x2048xf32, #tpu.memory_space<vmem>>, vector<8x32xf32>,
    %c448_202 = arith.constant 448 : index
    %c0_203 = arith.constant 0 : index
    %544 = vector.load %arg1[%c448_202, %c0_203] : memref<512x2xf32, #tpu.memory_space<vmem>>, vector<64x1xf32>
    %c448_204 = arith.constant 448 : index
    %c1_205 = arith.constant 1 : index
    %545 = vector.load %arg1[%c448_204, %c1_205] : memref<512x2xf32, #tpu.memory_space<vmem>>, vector<64x1xf32>
    %cst_206 = arith.constant 1.000000e+00 : f32
    %546 = vector.broadcast %cst_206 : f32 to vector<64x1xf32>
    %547 = arith.subf %544, %546 : vector<64x1xf32>
    %cst_207 = arith.constant 1.000000e+00 : f32
    %548 = vector.broadcast %cst_207 : f32 to vector<64x1xf32>
    %549 = arith.addf %545, %548 : vector<64x1xf32>
    %cst_208 = arith.constant 1.000000e+00 : f32
    %550 = vector.broadcast %cst_208 : f32 to vector<64x1xf32>
    %551 = arith.addf %544, %550 : vector<64x1xf32>
    %cst_209 = arith.constant 1.000000e+00 : f32
    %552 = vector.broadcast %cst_209 : f32 to vector<64x1xf32>
    %553 = arith.subf %545, %552 : vector<64x1xf32>
    %554 = vector.broadcast %1 : vector<1x8xf32> to vector<64x8xf32>
    %555 = vector.broadcast %547 : vector<64x1xf32> to vector<64x8xf32>
    %556 = arith.subf %554, %555 : vector<64x8xf32>
    %cst_210 = arith.constant 2.000000e+00 : f32
    %557 = vector.broadcast %cst_210 : f32 to vector<64x8xf32>
    %558 = arith.divf %556, %557 : vector<64x8xf32>
    %cst_211 = arith.constant 8.000000e+00 : f32
    %559 = vector.broadcast %cst_211 : f32 to vector<64x8xf32>
    %560 = arith.mulf %558, %559 : vector<64x8xf32>
    %561 = math.floor %560 : vector<64x8xf32>
    %562 = vector.broadcast %549 : vector<64x1xf32> to vector<64x8xf32>
    %563 = vector.broadcast %2 : vector<1x8xf32> to vector<64x8xf32>
    %564 = arith.subf %562, %563 : vector<64x8xf32>
    %cst_212 = arith.constant 2.000000e+00 : f32
    %565 = vector.broadcast %cst_212 : f32 to vector<64x8xf32>
    %566 = arith.divf %564, %565 : vector<64x8xf32>
    %cst_213 = arith.constant 8.000000e+00 : f32
    %567 = vector.broadcast %cst_213 : f32 to vector<64x8xf32>
    %568 = arith.mulf %566, %567 : vector<64x8xf32>
    %569 = math.floor %568 : vector<64x8xf32>
    %cst_214 = arith.constant 8.000000e+00 : f32
    %570 = vector.broadcast %cst_214 : f32 to vector<64x8xf32>
    %571 = arith.mulf %569, %570 : vector<64x8xf32>
    %572 = arith.addf %561, %571 : vector<64x8xf32>
    %573 = arith.fptosi %572 : vector<64x8xf32> to vector<64x8xi32>
    %574 = vector.broadcast %1 : vector<1x8xf32> to vector<64x8xf32>
    %575 = vector.broadcast %547 : vector<64x1xf32> to vector<64x8xf32>
    %576 = arith.cmpf ogt, %574, %575 : vector<64x8xf32>
    %577 = vector.broadcast %1 : vector<1x8xf32> to vector<64x8xf32>
    %578 = vector.broadcast %551 : vector<64x1xf32> to vector<64x8xf32>
    %579 = arith.cmpf olt, %577, %578 : vector<64x8xf32>
    %580 = arith.andi %576, %579 : vector<64x8xi1>
    %581 = vector.broadcast %2 : vector<1x8xf32> to vector<64x8xf32>
    %582 = vector.broadcast %549 : vector<64x1xf32> to vector<64x8xf32>
    %583 = arith.cmpf olt, %581, %582 : vector<64x8xf32>
    %584 = arith.andi %580, %583 : vector<64x8xi1>
    %585 = vector.broadcast %2 : vector<1x8xf32> to vector<64x8xf32>
    %586 = vector.broadcast %553 : vector<64x1xf32> to vector<64x8xf32>
    %587 = arith.cmpf ogt, %585, %586 : vector<64x8xf32>
    %588 = arith.andi %584, %587 : vector<64x8xi1>
    %c448_215 = arith.constant 448 : index
    %c0_216 = arith.constant 0 : index
    %589 = vector.load %arg3[%c448_215, %c0_216] : memref<512x1xi32, #tpu.memory_space<vmem>>, vector<64x1xi32>
    %590 = vector.broadcast %589 : vector<64x1xi32> to vector<64x8xi32>
    %591 = vector.broadcast %3 : vector<1x8xi32> to vector<64x8xi32>
    %592 = arith.cmpi eq, %590, %591 : vector<64x8xi32>
    %c448_217 = arith.constant 448 : index
    %c0_218 = arith.constant 0 : index
    %593 = vector.load %arg6[%c448_217, %c0_218] : memref<512x1xi32, #tpu.memory_space<vmem>>, vector<64x1xi32>
    %594 = vector.broadcast %593 : vector<64x1xi32> to vector<64x8xi32>
    %595 = arith.cmpi ne, %594, %4 : vector<64x8xi32>
    %c448_219 = arith.constant 448 : index
    %c0_220 = arith.constant 0 : index
    %596 = vector.load %arg5[%c448_219, %c0_220] : memref<512x1xi32, #tpu.memory_space<vmem>>, vector<64x1xi32>
    %597 = vector.broadcast %596 : vector<64x1xi32> to vector<64x8xi32>
    %598 = arith.cmpi eq, %573, %597 : vector<64x8xi32>
    %599 = arith.andi %588, %592 : vector<64x8xi1>
    %600 = arith.andi %599, %595 : vector<64x8xi1>
    %601 = arith.andi %600, %598 : vector<64x8xi1>
    %602 = arith.extui %601 : vector<64x8xi1> to vector<64x8xi32>
    %603 = arith.sitofp %602 : vector<64x8xi32> to vector<64x8xf32>
    %cst_221 = arith.constant dense<0.000000e+00> : vector<64x32xf32>
    %604 = tpu.matmul %603, %0, %cst_221 {dimension_numbers = #tpu.dot_dimension_numbers<[1], [0], [0], [1], [0, 0, 1, 1], [], []>} : vector<64x8xf32>, vector<8x32xf32>, vector<64x32xf32> -> vector<64x32xf32>
    %605 = vector.extract_strided_slice %604 {offsets = [0, 0], sizes = [8, 32], strides = [1, 1]} : vector<64x32xf32> to vector<8x32xf32>
    %c0_222 = arith.constant 0 : index
    %c1792 = arith.constant 1792 : index
    %606 = vector.load %arg13[%c0_222, %c1792] : memref<8x2048xf32, #tpu.memory_space<vmem>>, vector<8x32xf32>
    tpu.vector_store %arg13[%c0_222, %c1792], %605 {strides = array<i32>} : memref<8x2048xf32, #tpu.memory_space<vmem>>, vector<8x32xf32>,
    %607 = vector.extract_strided_slice %604 {offsets = [8, 0], sizes = [8, 32], strides = [1, 1]} : vector<64x32xf32> to vector<8x32xf32>
    %c0_223 = arith.constant 0 : index
    %c1824 = arith.constant 1824 : index
    %608 = vector.load %arg13[%c0_223, %c1824] : memref<8x2048xf32, #tpu.memory_space<vmem>>, vector<8x32xf32>
    tpu.vector_store %arg13[%c0_223, %c1824], %607 {strides = array<i32>} : memref<8x2048xf32, #tpu.memory_space<vmem>>, vector<8x32xf32>,
    %609 = vector.extract_strided_slice %604 {offsets = [16, 0], sizes = [8, 32], strides = [1, 1]} : vector<64x32xf32> to vector<8x32xf32>
    %c0_224 = arith.constant 0 : index
    %c1856 = arith.constant 1856 : index
    %610 = vector.load %arg13[%c0_224, %c1856] : memref<8x2048xf32, #tpu.memory_space<vmem>>, vector<8x32xf32>
    tpu.vector_store %arg13[%c0_224, %c1856], %609 {strides = array<i32>} : memref<8x2048xf32, #tpu.memory_space<vmem>>, vector<8x32xf32>,
    %611 = vector.extract_strided_slice %604 {offsets = [24, 0], sizes = [8, 32], strides = [1, 1]} : vector<64x32xf32> to vector<8x32xf32>
    %c0_225 = arith.constant 0 : index
    %c1888 = arith.constant 1888 : index
    %612 = vector.load %arg13[%c0_225, %c1888] : memref<8x2048xf32, #tpu.memory_space<vmem>>, vector<8x32xf32>
    tpu.vector_store %arg13[%c0_225, %c1888], %611 {strides = array<i32>} : memref<8x2048xf32, #tpu.memory_space<vmem>>, vector<8x32xf32>,
    %613 = vector.extract_strided_slice %604 {offsets = [32, 0], sizes = [8, 32], strides = [1, 1]} : vector<64x32xf32> to vector<8x32xf32>
    %c0_226 = arith.constant 0 : index
    %c1920 = arith.constant 1920 : index
    %614 = vector.load %arg13[%c0_226, %c1920] : memref<8x2048xf32, #tpu.memory_space<vmem>>, vector<8x32xf32>
    tpu.vector_store %arg13[%c0_226, %c1920], %613 {strides = array<i32>} : memref<8x2048xf32, #tpu.memory_space<vmem>>, vector<8x32xf32>,
    %615 = vector.extract_strided_slice %604 {offsets = [40, 0], sizes = [8, 32], strides = [1, 1]} : vector<64x32xf32> to vector<8x32xf32>
    %c0_227 = arith.constant 0 : index
    %c1952 = arith.constant 1952 : index
    %616 = vector.load %arg13[%c0_227, %c1952] : memref<8x2048xf32, #tpu.memory_space<vmem>>, vector<8x32xf32>
    tpu.vector_store %arg13[%c0_227, %c1952], %615 {strides = array<i32>} : memref<8x2048xf32, #tpu.memory_space<vmem>>, vector<8x32xf32>,
    %617 = vector.extract_strided_slice %604 {offsets = [48, 0], sizes = [8, 32], strides = [1, 1]} : vector<64x32xf32> to vector<8x32xf32>
    %c0_228 = arith.constant 0 : index
    %c1984 = arith.constant 1984 : index
    %618 = vector.load %arg13[%c0_228, %c1984] : memref<8x2048xf32, #tpu.memory_space<vmem>>, vector<8x32xf32>
    tpu.vector_store %arg13[%c0_228, %c1984], %617 {strides = array<i32>} : memref<8x2048xf32, #tpu.memory_space<vmem>>, vector<8x32xf32>,
    %619 = vector.extract_strided_slice %604 {offsets = [56, 0], sizes = [8, 32], strides = [1, 1]} : vector<64x32xf32> to vector<8x32xf32>
    %c0_229 = arith.constant 0 : index
    %c2016 = arith.constant 2016 : index
    %620 = vector.load %arg13[%c0_229, %c2016] : memref<8x2048xf32, #tpu.memory_space<vmem>>, vector<8x32xf32>
    tpu.vector_store %arg13[%c0_229, %c2016], %619 {strides = array<i32>} : memref<8x2048xf32, #tpu.memory_space<vmem>>, vector<8x32xf32>,
    %cst_230 = arith.constant 0.000000e+00 : f32
    %621 = vector.broadcast %cst_230 : f32 to vector<8x128xf32>
    %c0_231 = arith.constant 0 : index
    %c0_232 = arith.constant 0 : index
    %622 = vector.load %arg13[%c0_231, %c0_232] : memref<8x2048xf32, #tpu.memory_space<vmem>>, vector<8x256xf32>
    %c0_233 = arith.constant 0 : index
    %c0_234 = arith.constant 0 : index
    %623 = vector.load %arg8[%c0_233, %c0_234] : memref<2048x128xf32, #tpu.memory_space<vmem>>, vector<256x128xf32>
    %cst_235 = arith.constant dense<0.000000e+00> : vector<8x128xf32>
    %624 = tpu.matmul %622, %623, %cst_235 {dimension_numbers = #tpu.dot_dimension_numbers<[1], [0], [0], [1], [0, 0, 1, 1], [], []>} : vector<8x256xf32>, vector<256x128xf32>, vector<8x128xf32> -> vector<8x128xf32>
    %625 = arith.addf %621, %624 : vector<8x128xf32>
    %c0_236 = arith.constant 0 : index
    %c256_237 = arith.constant 256 : index
    %626 = vector.load %arg13[%c0_236, %c256_237] : memref<8x2048xf32, #tpu.memory_space<vmem>>, vector<8x256xf32>
    %c256_238 = arith.constant 256 : index
    %c0_239 = arith.constant 0 : index
    %627 = vector.load %arg8[%c256_238, %c0_239] : memref<2048x128xf32, #tpu.memory_space<vmem>>, vector<256x128xf32>
    %cst_240 = arith.constant dense<0.000000e+00> : vector<8x128xf32>
    %628 = tpu.matmul %626, %627, %cst_240 {dimension_numbers = #tpu.dot_dimension_numbers<[1], [0], [0], [1], [0, 0, 1, 1], [], []>} : vector<8x256xf32>, vector<256x128xf32>, vector<8x128xf32> -> vector<8x128xf32>
    %629 = arith.addf %625, %628 : vector<8x128xf32>
    %c0_241 = arith.constant 0 : index
    %c512_242 = arith.constant 512 : index
    %630 = vector.load %arg13[%c0_241, %c512_242] : memref<8x2048xf32, #tpu.memory_space<vmem>>, vector<8x256xf32>
    %c512_243 = arith.constant 512 : index
    %c0_244 = arith.constant 0 : index
    %631 = vector.load %arg8[%c512_243, %c0_244] : memref<2048x128xf32, #tpu.memory_space<vmem>>, vector<256x128xf32>
    %cst_245 = arith.constant dense<0.000000e+00> : vector<8x128xf32>
    %632 = tpu.matmul %630, %631, %cst_245 {dimension_numbers = #tpu.dot_dimension_numbers<[1], [0], [0], [1], [0, 0, 1, 1], [], []>} : vector<8x256xf32>, vector<256x128xf32>, vector<8x128xf32> -> vector<8x128xf32>
    %633 = arith.addf %629, %632 : vector<8x128xf32>
    %c0_246 = arith.constant 0 : index
    %c768_247 = arith.constant 768 : index
    %634 = vector.load %arg13[%c0_246, %c768_247] : memref<8x2048xf32, #tpu.memory_space<vmem>>, vector<8x256xf32>
    %c768_248 = arith.constant 768 : index
    %c0_249 = arith.constant 0 : index
    %635 = vector.load %arg8[%c768_248, %c0_249] : memref<2048x128xf32, #tpu.memory_space<vmem>>, vector<256x128xf32>
    %cst_250 = arith.constant dense<0.000000e+00> : vector<8x128xf32>
    %636 = tpu.matmul %634, %635, %cst_250 {dimension_numbers = #tpu.dot_dimension_numbers<[1], [0], [0], [1], [0, 0, 1, 1], [], []>} : vector<8x256xf32>, vector<256x128xf32>, vector<8x128xf32> -> vector<8x128xf32>
    %637 = arith.addf %633, %636 : vector<8x128xf32>
    %c0_251 = arith.constant 0 : index
    %c1024_252 = arith.constant 1024 : index
    %638 = vector.load %arg13[%c0_251, %c1024_252] : memref<8x2048xf32, #tpu.memory_space<vmem>>, vector<8x256xf32>
    %c1024_253 = arith.constant 1024 : index
    %c0_254 = arith.constant 0 : index
    %639 = vector.load %arg8[%c1024_253, %c0_254] : memref<2048x128xf32, #tpu.memory_space<vmem>>, vector<256x128xf32>
    %cst_255 = arith.constant dense<0.000000e+00> : vector<8x128xf32>
    %640 = tpu.matmul %638, %639, %cst_255 {dimension_numbers = #tpu.dot_dimension_numbers<[1], [0], [0], [1], [0, 0, 1, 1], [], []>} : vector<8x256xf32>, vector<256x128xf32>, vector<8x128xf32> -> vector<8x128xf32>
    %641 = arith.addf %637, %640 : vector<8x128xf32>
    %c0_256 = arith.constant 0 : index
    %c1280_257 = arith.constant 1280 : index
    %642 = vector.load %arg13[%c0_256, %c1280_257] : memref<8x2048xf32, #tpu.memory_space<vmem>>, vector<8x256xf32>
    %c1280_258 = arith.constant 1280 : index
    %c0_259 = arith.constant 0 : index
    %643 = vector.load %arg8[%c1280_258, %c0_259] : memref<2048x128xf32, #tpu.memory_space<vmem>>, vector<256x128xf32>
    %cst_260 = arith.constant dense<0.000000e+00> : vector<8x128xf32>
    %644 = tpu.matmul %642, %643, %cst_260 {dimension_numbers = #tpu.dot_dimension_numbers<[1], [0], [0], [1], [0, 0, 1, 1], [], []>} : vector<8x256xf32>, vector<256x128xf32>, vector<8x128xf32> -> vector<8x128xf32>
    %645 = arith.addf %641, %644 : vector<8x128xf32>
    %c0_261 = arith.constant 0 : index
    %c1536_262 = arith.constant 1536 : index
    %646 = vector.load %arg13[%c0_261, %c1536_262] : memref<8x2048xf32, #tpu.memory_space<vmem>>, vector<8x256xf32>
    %c1536_263 = arith.constant 1536 : index
    %c0_264 = arith.constant 0 : index
    %647 = vector.load %arg8[%c1536_263, %c0_264] : memref<2048x128xf32, #tpu.memory_space<vmem>>, vector<256x128xf32>
    %cst_265 = arith.constant dense<0.000000e+00> : vector<8x128xf32>
    %648 = tpu.matmul %646, %647, %cst_265 {dimension_numbers = #tpu.dot_dimension_numbers<[1], [0], [0], [1], [0, 0, 1, 1], [], []>} : vector<8x256xf32>, vector<256x128xf32>, vector<8x128xf32> -> vector<8x128xf32>
    %649 = arith.addf %645, %648 : vector<8x128xf32>
    %c0_266 = arith.constant 0 : index
    %c1792_267 = arith.constant 1792 : index
    %650 = vector.load %arg13[%c0_266, %c1792_267] : memref<8x2048xf32, #tpu.memory_space<vmem>>, vector<8x256xf32>
    %c1792_268 = arith.constant 1792 : index
    %c0_269 = arith.constant 0 : index
    %651 = vector.load %arg8[%c1792_268, %c0_269] : memref<2048x128xf32, #tpu.memory_space<vmem>>, vector<256x128xf32>
    %cst_270 = arith.constant dense<0.000000e+00> : vector<8x128xf32>
    %652 = tpu.matmul %650, %651, %cst_270 {dimension_numbers = #tpu.dot_dimension_numbers<[1], [0], [0], [1], [0, 0, 1, 1], [], []>} : vector<8x256xf32>, vector<256x128xf32>, vector<8x128xf32> -> vector<8x128xf32>
    %653 = arith.addf %649, %652 : vector<8x128xf32>
    %c0_271 = arith.constant 0 : index
    %c0_272 = arith.constant 0 : index
    %654 = vector.load %arg9[%c0_271, %c0_272] : memref<1x128xf32, #tpu.memory_space<vmem>>, vector<1x128xf32>
    %655 = vector.broadcast %654 : vector<1x128xf32> to vector<8x128xf32>
    %656 = arith.addf %653, %655 : vector<8x128xf32>
    %cst_273 = arith.constant dense<0.000000e+00> : vector<128xf32>
    %657 = vector.multi_reduction <add>, %656, %cst_273 [0] : vector<8x128xf32> to vector<128xf32>
    %658 = vector.shape_cast %657 : vector<128xf32> to vector<1x128xf32>
    %cst_274 = arith.constant 8.000000e+00 : f32
    %659 = vector.broadcast %cst_274 : f32 to vector<1x128xf32>
    %660 = arith.divf %658, %659 : vector<1x128xf32>
    %661 = vector.broadcast %660 : vector<1x128xf32> to vector<8x128xf32>
    %662 = arith.subf %656, %661 : vector<8x128xf32>
    %663 = arith.mulf %662, %662 : vector<8x128xf32>
    %cst_275 = arith.constant dense<0.000000e+00> : vector<128xf32>
    %664 = vector.multi_reduction <add>, %663, %cst_275 [0] : vector<8x128xf32> to vector<128xf32>
    %665 = vector.shape_cast %664 : vector<128xf32> to vector<1x128xf32>
    %cst_276 = arith.constant 8.000000e+00 : f32
    %666 = vector.broadcast %cst_276 : f32 to vector<1x128xf32>
    %667 = arith.divf %665, %666 : vector<1x128xf32>
    %668 = vector.broadcast %660 : vector<1x128xf32> to vector<8x128xf32>
    %669 = arith.subf %656, %668 : vector<8x128xf32>
    %cst_277 = arith.constant 9.99999974E-6 : f32
    %670 = vector.broadcast %cst_277 : f32 to vector<1x128xf32>
    %671 = arith.addf %667, %670 : vector<1x128xf32>
    %672 = math.rsqrt %671 : vector<1x128xf32>
    %673 = vector.broadcast %672 : vector<1x128xf32> to vector<8x128xf32>
    %674 = arith.mulf %669, %673 : vector<8x128xf32>
    %c0_278 = arith.constant 0 : index
    %c0_279 = arith.constant 0 : index
    %675 = vector.load %arg10[%c0_278, %c0_279] : memref<1x128xf32, #tpu.memory_space<vmem>>, vector<1x128xf32>
    %676 = vector.broadcast %675 : vector<1x128xf32> to vector<8x128xf32>
    %677 = arith.mulf %674, %676 : vector<8x128xf32>
    %c0_280 = arith.constant 0 : index
    %c0_281 = arith.constant 0 : index
    %678 = vector.load %arg11[%c0_280, %c0_281] : memref<1x128xf32, #tpu.memory_space<vmem>>, vector<1x128xf32>
    %679 = vector.broadcast %678 : vector<1x128xf32> to vector<8x128xf32>
    %680 = arith.addf %677, %679 : vector<8x128xf32>
    %cst_282 = arith.constant 0.000000e+00 : f32
    %681 = vector.broadcast %cst_282 : f32 to vector<8x128xf32>
    %682 = arith.maximumf %680, %681 : vector<8x128xf32>
    %c0_283 = arith.constant 0 : index
    %c0_284 = arith.constant 0 : index
    %683 = vector.load %arg12[%c0_283, %c0_284] : memref<8x128xf32, #tpu.memory_space<vmem>>, vector<8x128xf32>
    tpu.vector_store %arg12[%c0_283, %c0_284], %682 {strides = array<i32>} : memref<8x128xf32, #tpu.memory_space<vmem>>, vector<8x128xf32>,
    return
  }
  func.func @transform_0(%arg0: i32) -> (i32, i32) {
    %c0_i32 = arith.constant 0 : i32
    %c0_i32_0 = arith.constant 0 : i32
    %c0_i32_1 = arith.constant 0 : i32
    return %c0_i32, %c0_i32_0 : i32, i32
  }
  func.func @transform_1(%arg0: i32) -> (i32, i32) {
    %c0_i32 = arith.constant 0 : i32
    %c0_i32_0 = arith.constant 0 : i32
    %c0_i32_1 = arith.constant 0 : i32
    return %c0_i32, %c0_i32_0 : i32, i32
  }
  func.func @transform_2(%arg0: i32) -> (i32, i32) {
    %c0_i32 = arith.constant 0 : i32
    %c0_i32_0 = arith.constant 0 : i32
    %c0_i32_1 = arith.constant 0 : i32
    return %c0_i32, %c0_i32_0 : i32, i32
  }
  func.func @transform_3(%arg0: i32) -> (i32, i32) {
    %c0_i32 = arith.constant 0 : i32
    %c0_i32_0 = arith.constant 0 : i32
    %c0_i32_1 = arith.constant 0 : i32
    return %c0_i32, %c0_i32_0 : i32, i32
  }
  func.func @transform_4(%arg0: i32) -> (i32, i32) {
    %c0_i32 = arith.constant 0 : i32
    %c0_i32_0 = arith.constant 0 : i32
    %c0_i32_1 = arith.constant 0 : i32
    return %c0_i32, %c0_i32_0 : i32, i32
  }
  func.func @transform_5(%arg0: i32) -> (i32, i32) {
    %c0_i32 = arith.constant 0 : i32
    %c0_i32_0 = arith.constant 0 : i32
    %c0_i32_1 = arith.constant 0 : i32
    return %c0_i32, %c0_i32_0 : i32, i32
  }
  func.func @transform_6(%arg0: i32) -> (i32, i32) {
    %c0_i32 = arith.constant 0 : i32
    %c0_i32_0 = arith.constant 0 : i32
    %c0_i32_1 = arith.constant 0 : i32
    return %c0_i32, %c0_i32_0 : i32, i32
  }
  func.func @transform_7(%arg0: i32) -> (i32, i32) {
    %c0_i32 = arith.constant 0 : i32
    %c0_i32_0 = arith.constant 0 : i32
    %c0_i32_1 = arith.constant 0 : i32
    return %c0_i32, %c0_i32_0 : i32, i32
  }
  func.func @transform_8(%arg0: i32) -> (i32, i32) {
    %c0_i32 = arith.constant 0 : i32
    %c0_i32_0 = arith.constant 0 : i32
    %c0_i32_1 = arith.constant 0 : i32
    return %c0_i32, %c0_i32_0 : i32, i32
  }
  func.func @transform_9(%arg0: i32) -> (i32, i32) {
    %c0_i32 = arith.constant 0 : i32
    %c0_i32_0 = arith.constant 0 : i32
    %c0_i32_1 = arith.constant 0 : i32
    return %c0_i32, %c0_i32_0 : i32, i32
  }
  func.func @transform_10(%arg0: i32) -> (i32, i32) {
    %c0_i32 = arith.constant 0 : i32
    %c0_i32_0 = arith.constant 0 : i32
    %c0_i32_1 = arith.constant 0 : i32
    return %c0_i32, %c0_i32_0 : i32, i32
  }
  func.func @transform_11(%arg0: i32) -> (i32, i32) {
    %c0_i32 = arith.constant 0 : i32
    %c0_i32_0 = arith.constant 0 : i32
    %c0_i32_1 = arith.constant 0 : i32
    return %c0_i32, %c0_i32_0 : i32, i32
  }
}

</mosaic_0001>

<bundles_post_ra>
// kernel: tpu_custom_call.1
= control target key start
LH: loop header
LB: loop body
LE: loop exit
PB: predicated region body
PF: predicated region fallthrough
CT: control target
= control target key end

     0   :  { %v12874_v3 = vmov 1   ;;  %v12872_v4 = vmov 0   ;;  %s12860_s0 = inlined_call_operand.vmem [shape: f32[512,2], index: 0, kind: input, shape index: {}]   ;;  %s12861_s1 = inlined_call_operand.vmem [shape: f32[2,8], index: 1, kind: input, shape index: {}]   ;;  %s12862_s2 = inlined_call_operand.vmem [shape: s32[512,1], index: 2, kind: input, shape index: {}]   ;;  %s12863_s3 = inlined_call_operand.vmem [shape: s32[1,8], index: 3, kind: input, shape index: {}]   ;;  %s12864_s4 = inlined_call_operand.vmem [shape: s32[512,1], index: 4, kind: input, shape index: {}]   ;;  %s12865_s5 = inlined_call_operand.vmem [shape: s32[512,1], index: 5, kind: input, shape index: {}]   ;;  %s12866_s6 = inlined_call_operand.vmem [shape: f32[8,32], index: 6, kind: input, shape index: {}]   ;;  %s12867_s7 = inlined_call_operand.vmem [shape: f32[2048,128], index: 7, kind: input, shape index: {}]   ;;  %s12868_s8 = inlined_call_operand.vmem [shape: f32[1,128], index: 8, kind: input, shape index: {}]   ;;  %s12869_s9 = inlined_call_operand.vmem [shape: f32[1,128], index: 9, kind: input, shape index: {}]   ;;  %s12870_s10 = inlined_call_operand.vmem [shape: f32[1,128], index: 10, kind: input, shape index: {}]   ;;  %s12871_s11 = inlined_call_operand.hbm [shape: f32[8,128], index: 11, kind: output, shape index: {}]  }
   0x1   :  { %v47_v0 = vld [vmem:[%s12860_s0 + $0x10] sm:$0xff]  ;;  %v45_v1 = vld [vmem:[%s12860_s0] sm:$0xff]  ;;  %v48_v2 = vld [vmem:[%s12860_s0 + $0x18] sm:$0xff]  ;;  %7079 = vset.pattern.permute.xlu0 %v12874_v3  ;;  %7078 = vset.pattern.permute.xlu1 %v12872_v4 }
   0x2   :  { %v7272_v5 = vadd.f32 -1.0, %v47_v0  ;;  %v61_v6 = vadd.f32 1.0, %v45_v1  ;;  %v6028_v7 = vadd.f32 -1.0, %v48_v2  ;;  %v64_v8 = vadd.f32 1.0, %v48_v2  ;;  %v50_v9 = vld [vmem:[%s12860_s0 + $0x28] sm:$0xff]  ;;  %v52_v12 = vld [vmem:[%s12860_s0 + $0x38] sm:$0xff] }
   0x3   :  { %v6030_v10 = vadd.f32 -1.0, %v50_v9  ;;  %v66_v11 = vadd.f32 1.0, %v50_v9  ;;  %v6032_v13 = vadd.f32 -1.0, %v52_v12  ;;  %v68_v14 = vadd.f32 1.0, %v52_v12  ;;  %v46_v15 = vld [vmem:[%s12860_s0 + $0x8] sm:$0xff] }
   0x4   :  { %85 = vperm.xlu1 %7078, %v7272_v5   ;;  %148 = vperm.xlu0 %7079, %v61_v6   ;;  %v6025_v16 = vadd.f32 -1.0, %v45_v1 }
   0x8   :  { %90 = vperm.xlu1 %7078, %v6028_v7   ;;  %163 = vperm.xlu0 %7079, %v64_v8  }
   0xc   :  { %100 = vperm.xlu1 %7078, %v6030_v10   ;;  %173 = vperm.xlu0 %7079, %v66_v11  }
  0x10   :  { %110 = vperm.xlu1 %7078, %v6032_v13   ;;  %183 = vperm.xlu0 %7079, %v68_v14  }
  0x11   :  { %16 = vsyncpa [#allocation4], 0  ;;  %v62_v17 = vadd.f32 1.0, %v46_v15  ;;  %v63_v18 = vadd.f32 1.0, %v47_v0  ;;  %v49_v19 = vld [vmem:[%s12860_s0 + $0x20] sm:$0xff]  ;;  %v51_v21 = vld [vmem:[%s12860_s0 + $0x30] sm:$0xff] }
  0x12   :  { %v65_v20 = vadd.f32 1.0, %v49_v19  ;;  %v67_v22 = vadd.f32 1.0, %v51_v21  ;;  %v696_v23 = vld [vmem:[%s12860_s0 + $0x40] sm:$0xff]  ;;  %v699_v25 = vld [vmem:[%s12860_s0 + $0x58] sm:$0xff]  ;;  %v701_v27 = vld [vmem:[%s12860_s0 + $0x68] sm:$0xff]  ;;  %v6026_v33 = vadd.f32 -1.0, %v46_v15 }
  0x13   :  { %v7294_v24 = vadd.f32 1.0, %v696_v23  ;;  %v7300_v26 = vadd.f32 1.0, %v699_v25  ;;  %v7307_v28 = vadd.f32 1.0, %v701_v27  ;;  %v703_v29 = vld [vmem:[%s12860_s0 + $0x78] sm:$0xff]  ;;  %v7316_v31 = vadd.f32 -1.0, %v696_v23  ;;  %v366_v38 = vld [vmem:[%s12862_s2] sm:$0xff] }
  0x14   :  { %7080 = vset.pattern.permute.xlu1 %v12874_v3  ;;  %319 = vperm.xlu0 %7079, %v6025_v16   ;;  %v7313_v30 = vadd.f32 1.0, %v703_v29  ;;  %v7319_v32 = vadd.f32 -1.0, %v699_v25  ;;  %v7322_v34 = vadd.f32 -1.0, %v701_v27  ;;  %v7326_v35 = vadd.f32 -1.0, %v703_v29  ;;  %v368_v39 = vld [vmem:[%s12862_s2 + $0x10] sm:$0xff]  ;;  %v369_v40 = vld [vmem:[%s12862_s2 + $0x18] sm:$0xff] }
  0x15   :  { %153 = vperm.xlu1 %7080, %v62_v17   ;;  %v6029_v36 = vadd.f32 -1.0, %v49_v19  ;;  %v6031_v37 = vadd.f32 -1.0, %v51_v21  ;;  %v371_v41 = vld [vmem:[%s12862_s2 + $0x28] sm:$0xff]  ;;  %v373_v42 = vld [vmem:[%s12862_s2 + $0x38] sm:$0xff]  ;;  %v370_v46 = vld [vmem:[%s12862_s2 + $0x20] sm:$0xff]  ;;  %s7197_s25 = smov 32  }
  0x16   :  { %v411_v43 = vld [vmem:[%s12865_s5 + $0x8] sm:$0xff]  ;;  %v413_v45 = vld [vmem:[%s12865_s5 + $0x18] sm:$0xff]  ;;  %v372_v48 = vld [vmem:[%s12862_s2 + $0x30] sm:$0xff]  ;;  %s7198_s26 = smov 64   ;;  %s7199_s27 = smov 96  }
  0x17   :  { %v367_v44 = vld [vmem:[%s12862_s2 + $0x8] sm:$0xff]  ;;  %v417_v49 = vld [vmem:[%s12865_s5 + $0x38] sm:$0xff]  ;;  %v410_v50 = vld [vmem:[%s12865_s5] sm:$0xff]  ;;  %s7200_s20 = smov [#allocation3]  }
  0x18   :  { %331 = vperm.xlu0 %7079, %v6028_v7   ;;  %v415_v47 = vld [vmem:[%s12865_s5 + $0x28] sm:$0xff]  ;;  %v412_v52 = vld [vmem:[%s12865_s5 + $0x10] sm:$0xff]  ;;  %v453_v53 = vld [vmem:[%s12864_s4 + $0x18] sm:$0xff]  ;;  %s6017_s21 = sshll.u32 %s7200_s20, 4  ;;  %s6018_s21 = int_to_ptr.vmem [resolvable:$true] %s6017_s21 }
  0x19   :  { %158 = vperm.xlu1 %7080, %v63_v18   ;;  %v451_v51 = vld [vmem:[%s12864_s4 + $0x8] sm:$0xff]  ;;  %v414_v54 = vld [vmem:[%s12865_s5 + $0x20] sm:$0xff]  ;;  %v416_v56 = vld [vmem:[%s12865_s5 + $0x30] sm:$0xff]  ;;  %s7170_s22 = scalar_lea.vmem %s6018_s21, 128  ;;  %p7175_p1 = scmp.lt.s32.totalorder %s6018_s21, %s6018_s21 }
  0x1a   :  { %v455_v55 = vld [vmem:[%s12864_s4 + $0x28] sm:$0xff]  ;;  %v457_v57 = vld [vmem:[%s12864_s4 + $0x38] sm:$0xff]  ;;  %v450_v59 = vld [vmem:[%s12864_s4] sm:$0xff]  ;;  %p7171_p0 = scmp.ne.s32.totalorder %s6018_s21, %s7170_s22  ;;  %p7176_p2 = scmp.lt.s32.totalorder %s7170_s22, %s7170_s22 }
  0x1b   :  { %v697_v58 = vld [vmem:[%s12860_s0 + $0x48] sm:$0xff]  ;;  %v452_v61 = vld [vmem:[%s12864_s4 + $0x10] sm:$0xff]  ;;  %v7406_v62 = vld [vmem:[%s12866_s6] sm:$0xff] }
  0x1c   :  { %339 = vperm.xlu0 %7079, %v6030_v10   ;;  %v7398_v60 = vadd.f32 -1.0, %v697_v58  ;;  %6575 = vmatprep.subr.mxu0 %v7406_v62  ;;  %v454_v63 = vld [vmem:[%s12864_s4 + $0x20] sm:$0xff]  ;;  %v456_v2 = vld [vmem:[%s12864_s4 + $0x30] sm:$0xff]  ;;  %v713_v10 = vadd.f32 1.0, %v697_v58  ;;  %p7177_p3 = por %p7176_p2, %p7175_p1 }
  0x1d   :  { %168 = vperm.xlu1 %7080, %v65_v20   ;;  %6576 = vmatpush3.msra.mxu0 %v7406_v62  ;;  %v698_v7 = vld [vmem:[%s12860_s0 + $0x50] sm:$0xff]  ;;  %v700_v12 = vld [vmem:[%s12860_s0 + $0x60] sm:$0xff] }
  0x1e   :  { %6589 = vmatprep.subr.mxu1 %v7406_v62  ;;  %6603 = vmatprep.subr.mxu0 %v7406_v62  ;;  %v714_v15 = vadd.f32 1.0, %v698_v7  ;;  %v1010_v58 = vld [vmem:[%s12862_s2 + $0x50] sm:$0xff]  ;;  %p7178_p4 = pnand %p7177_p3, %p7171_p0 }
  0x1f   :  { %6590 = vmatpush3.msra.mxu1 %v7406_v62 }
  0x20   :  { %347 = vperm.xlu0 %7079, %v6032_v13   ;;  %6617 = vmatprep.subr.mxu1 %v7406_v62 }
  0x21   :  { %178 = vperm.xlu1 %7080, %v67_v22  }
  0x24   :  { %794 = vperm.xlu0 %7079, %v7294_v24  }
  0x25   :  { %7081 = vset.pattern.permute.xlu1 %v12872_v4 }
  0x26   :  { %255 = vperm.xlu1 %7081, %v61_v6  }
  0x28   :  { %809 = vperm.xlu0 %7079, %v7300_v26  }
  0x2a   :  { %263 = vperm.xlu1 %7081, %v63_v18  }
  0x2c   :  { %819 = vperm.xlu0 %7079, %v7307_v28  }
  0x2e   :  { %267 = vperm.xlu1 %7081, %v64_v8  }
  0x30   :  { %829 = vperm.xlu0 %7079, %v7313_v30  }
  0x32   :  { %275 = vperm.xlu1 %7081, %v66_v11   ;;  %v6054_v11 = vadd.f32 -1.0, %v698_v7  ;;  %v7562_v7 = vld [vmem:[%s12860_s0 + $0x80] sm:$0xff] }
  0x33   :  { %12913 = vst [vmem:[#allocation14_spill] sm:$0xff] %v7562_v7 }
  0x34   :  { %961 = vperm.xlu0 %7079, %v7316_v31  }
  0x36   :  { %283 = vperm.xlu1 %7081, %v68_v14  }
  0x38   :  { %973 = vperm.xlu0 %7079, %v7319_v32  }
  0x3a   :  { %7082 = vset.pattern.permute.xlu1 %v12874_v3 }
  0x3b   :  { %323 = vperm.xlu1 %7082, %v6026_v33  }
  0x3c   :  { %981 = vperm.xlu0 %7079, %v7322_v34  }
  0x3f   :  { %327 = vperm.xlu1 %7082, %v7272_v5  }
  0x40   :  { %989 = vperm.xlu0 %7079, %v7326_v35  }
  0x43   :  { %335 = vperm.xlu1 %7082, %v6029_v36  }
  0x44   :  { %7087 = vset.pattern.permute.xlu0 %v12872_v4 }
  0x45   :  { %75 = vperm.xlu0 %7087, %v6025_v16   ;;  %v6056_v16 = vadd.f32 -1.0, %v700_v12 }
  0x47   :  { %343 = vperm.xlu1 %7082, %v6031_v37  }
  0x49   :  { %80 = vperm.xlu0 %7087, %v6026_v33  }
  0x4b   :  { %7083 = vset.pattern.permute.xlu1 %v12872_v4 }
  0x4c   :  { %375 = vperm.xlu1 %7083, %v366_v38  }
  0x4d   :  { %95 = vperm.xlu0 %7087, %v6029_v36  }
  0x50   :  { %381 = vperm.xlu1 %7083, %v368_v39  }
  0x51   :  { %105 = vperm.xlu0 %7087, %v6031_v37  }
  0x54   :  { %384 = vperm.xlu1 %7083, %v369_v40   ;;  %v1014_v40 = vld [vmem:[%s12862_s2 + $0x70] sm:$0xff] }
  0x55   :  { %259 = vperm.xlu0 %7087, %v62_v17   ;;  %v702_v17 = vld [vmem:[%s12860_s0 + $0x70] sm:$0xff] }
  0x56   :  { %v6058_v21 = vadd.f32 -1.0, %v702_v17  ;;  %v718_v25 = vadd.f32 1.0, %v702_v17  ;;  %v7582_v17 = vld [vmem:[%s12860_s0 + $0x90] sm:$0xff] }
  0x57   :  { %12915 = vst [vmem:[#allocation16_spill] sm:$0xff] %v7582_v17 }
  0x58   :  { %390 = vperm.xlu1 %7083, %v371_v41  }
  0x59   :  { %271 = vperm.xlu0 %7087, %v65_v20   ;;  %v716_v20 = vadd.f32 1.0, %v700_v12  ;;  %v1013_v12 = vld [vmem:[%s12862_s2 + $0x68] sm:$0xff] }
  0x5c   :  { %396 = vperm.xlu1 %7083, %v373_v42  }
  0x5d   :  { %279 = vperm.xlu0 %7087, %v67_v22  }
  0x60   :  { %422 = vperm.xlu1 %7083, %v411_v43  }
  0x61   :  { %378 = vperm.xlu0 %7087, %v367_v44  }
  0x64   :  { %428 = vperm.xlu1 %7083, %v413_v45  }
  0x65   :  { %387 = vperm.xlu0 %7087, %v370_v46   ;;  %v1052_v46 = vld [vmem:[%s12865_s5 + $0x60] sm:$0xff] }
  0x68   :  { %434 = vperm.xlu1 %7083, %v415_v47  }
  0x69   :  { %393 = vperm.xlu0 %7087, %v372_v48  }
  0x6c   :  { %440 = vperm.xlu1 %7083, %v417_v49   ;;  %v1054_v49 = vld [vmem:[%s12865_s5 + $0x70] sm:$0xff] }
  0x6d   :  { %419 = vperm.xlu0 %7087, %v410_v50  }
  0x70   :  { %462 = vperm.xlu1 %7083, %v451_v51  }
  0x71   :  { %425 = vperm.xlu0 %7087, %v412_v52   ;;  %v1088_v52 = vld [vmem:[%s12864_s4 + $0x40] sm:$0xff] }
  0x74   :  { %468 = vperm.xlu1 %7083, %v453_v53  }
  0x75   :  { %431 = vperm.xlu0 %7087, %v414_v54   ;;  %v1008_v54 = vld [vmem:[%s12862_s2 + $0x40] sm:$0xff] }
  0x78   :  { %474 = vperm.xlu1 %7083, %v455_v55  }
  0x79   :  { %437 = vperm.xlu0 %7087, %v416_v56   ;;  %v1090_v56 = vld [vmem:[%s12864_s4 + $0x50] sm:$0xff] }
  0x7c   :  { %480 = vperm.xlu1 %7083, %v457_v57  }
  0x7d   :  { %459 = vperm.xlu0 %7087, %v450_v59   ;;  %v1092_v59 = vld [vmem:[%s12864_s4 + $0x60] sm:$0xff] }
  0x80   :  { %727 = vperm.xlu1 %7083, %v7398_v60  }
  0x81   :  { %465 = vperm.xlu0 %7087, %v452_v61  }
  0x83   :  { %v7416_v0 = vpop.permute.xlu1 %85  ;;  %v7418_v1 = vpop.permute.xlu0 %148 }
  0x84   :  { %737 = vperm.xlu1 %7083, %v7319_v32  }
  0x85   :  { %471 = vperm.xlu0 %7087, %v454_v63   ;;  %v1011_v63 = vld [vmem:[%s12862_s2 + $0x58] sm:$0xff] }
  0x87   :  { %v7426_v5 = vpop.permute.xlu1 %90  ;;  %v7428_v6 = vpop.permute.xlu0 %163 }
  0x88   :  { %747 = vperm.xlu1 %7083, %v7322_v34  }
  0x89   :  { %477 = vperm.xlu0 %7087, %v456_v2   ;;  %v1094_v2 = vld [vmem:[%s12864_s4 + $0x70] sm:$0xff] }
  0x8b   :  { %v7434_v8 = vpop.permute.xlu1 %100  ;;  %v7436_v9 = vpop.permute.xlu0 %173 }
  0x8c   :  { %757 = vperm.xlu1 %7083, %v7326_v35   ;;  %v1009_v35 = vld [vmem:[%s12862_s2 + $0x48] sm:$0xff] }
  0x8d   :  { %722 = vperm.xlu0 %7087, %v7316_v31  }
  0x8f   :  { %v7443_v13 = vpop.permute.xlu1 %110  ;;  %v7445_v14 = vpop.permute.xlu0 %183 }
  0x90   :  { %7084 = vset.pattern.permute.xlu1 %v12874_v3 }
  0x91   :  { %799 = vperm.xlu1 %7084, %v713_v10   ;;  %732 = vperm.xlu0 %7087, %v6054_v11  }
  0x93   :  { %v7451_v18 = vpop.permute.xlu0 %319 }
  0x94   :  { %v7453_v19 = vpop.permute.xlu1 %153 }
  0x95   :  { %804 = vperm.xlu1 %7084, %v714_v15   ;;  %742 = vperm.xlu0 %7087, %v6056_v16  }
  0x97   :  { %v7455_v22 = vpop.permute.xlu0 %331 }
  0x98   :  { %v7457_v23 = vpop.permute.xlu1 %158 }
  0x99   :  { %814 = vperm.xlu1 %7084, %v716_v20   ;;  %752 = vperm.xlu0 %7087, %v6058_v21  }
  0x9b   :  { %v7459_v27 = vpop.permute.xlu0 %339 }
  0x9c   :  { %v7461_v29 = vpop.permute.xlu1 %168 }
  0x9d   :  { %824 = vperm.xlu1 %7084, %v718_v25   ;;  %901 = vperm.xlu0 %7087, %v713_v10  }
  0x9f   :  { %v7463_v31 = vpop.permute.xlu0 %347 }
  0xa0   :  { %v7465_v32 = vpop.permute.xlu1 %178 }
  0xa1   :  { %7085 = vset.pattern.permute.xlu1 %v12872_v4  ;;  %913 = vperm.xlu0 %7087, %v716_v20   ;;  %v7587_v20 = vld [vmem:[%s12861_s1] ss:$0 sm:$0xff] }
  0xa2   :  { %897 = vperm.xlu1 %7085, %v7294_v24   ;;  %v1012_v24 = vld [vmem:[%s12862_s2 + $0x60] sm:$0xff]  ;;  %vm248_vm1 = vcmp.gt.f32.partialorder %v7587_v20, %v7416_v0  ;;  %vm249_vm3 = vcmp.gt.f32.partialorder %v7587_v20, %v7426_v5  ;;  %vm251_vm7 = vcmp.gt.f32.partialorder %v7587_v20, %v7434_v8 }
  0xa3   :  { %v7469_v33 = vpop.permute.xlu0 %794 }
  0xa4   :  { %12905 = vst [vmem:[#allocation6_spill] sm:$0xff] %v7469_v33 }
  0xa5   :  { %v7471_v34 = vpop.permute.xlu1 %255  ;;  %921 = vperm.xlu0 %7087, %v718_v25  }
  0xa6   :  { %905 = vperm.xlu1 %7085, %v714_v15   ;;  %v7572_v15 = vadd.f32 -1.0, %v7562_v7 }
  0xa7   :  { %v7476_v36 = vpop.permute.xlu0 %809 }
  0xa8   :  { %12906 = vst [vmem:[#allocation7_spill] sm:$0xff] %v7476_v36  ;;  %12914 = vst [vmem:[#allocation15_spill] sm:$0xff] %v7572_v15 }
  0xa9   :  { %v7478_v37 = vpop.permute.xlu1 %263  ;;  %1020 = vperm.xlu0 %7087, %v1009_v35  }
  0xaa   :  { %909 = vperm.xlu1 %7085, %v7300_v26   ;;  %v1048_v26 = vld [vmem:[%s12865_s5 + $0x40] sm:$0xff]  ;;  %vm288_vm2 = vcmp.lt.f32.partialorder %v7587_v20, %v7478_v37 }
  0xab   :  { %v7484_v38 = vpop.permute.xlu0 %819  ;;  %vm7703_vm9 = vmand %vm248_vm1, %vm288_vm2 }
  0xac   :  { %12907 = vst [vmem:[#allocation8_spill] sm:$0xff] %v7484_v38 }
  0xad   :  { %v7486_v39 = vpop.permute.xlu1 %267  ;;  %1029 = vperm.xlu0 %7087, %v1012_v24   ;;  %v1015_v24 = vld [vmem:[%s12862_s2 + $0x78] sm:$0xff] }
  0xae   :  { %917 = vperm.xlu1 %7085, %v7307_v28   ;;  %v1050_v28 = vld [vmem:[%s12865_s5 + $0x50] sm:$0xff]  ;;  %vm289_vm0 = vcmp.lt.f32.partialorder %v7587_v20, %v7486_v39  ;;  %v1089_v39 = vld [vmem:[%s12864_s4 + $0x48] sm:$0xff] }
  0xaf   :  { %v7492_v41 = vpop.permute.xlu0 %829  ;;  %vm7683_vm5 = vmand %vm249_vm3, %vm289_vm0  ;;  %vm253_vm0 = vcmp.gt.f32.partialorder %v7587_v20, %v7443_v13  ;;  %vm286_vm3 = vcmp.lt.f32.partialorder %v7587_v20, %v7471_v34 }
  0xb0   :  { %12908 = vst [vmem:[#allocation9_spill] sm:$0xff] %v7492_v41 }
  0xb1   :  { %v7494_v42 = vpop.permute.xlu1 %275  ;;  %1035 = vperm.xlu0 %7087, %v1014_v40   ;;  %v7600_v40 = vadd.f32 -1.0, %v7582_v17 }
  0xb2   :  { %925 = vperm.xlu1 %7085, %v7313_v30   ;;  %vm291_vm10 = vcmp.lt.f32.partialorder %v7587_v20, %v7494_v42 }
  0xb3   :  { %v7500_v43 = vpop.permute.xlu0 %961  ;;  %12916 = vst [vmem:[#allocation17_spill] sm:$0xff] %v7600_v40  ;;  %vm7755_vm2 = vmand %vm251_vm7, %vm291_vm10 }
  0xb4   :  { %12909 = vst [vmem:[#allocation10_spill] sm:$0xff] %v7500_v43 }
  0xb5   :  { %v7502_v44 = vpop.permute.xlu1 %283  ;;  %1057 = vperm.xlu0 %7087, %v1048_v26   ;;  %v115_v26 = vsub.f32 %v7587_v20, %v7416_v0 }
  0xb6   :  { %7086 = vset.pattern.permute.xlu1 %v12874_v3  ;;  %vm293_vm13 = vcmp.lt.f32.partialorder %v7587_v20, %v7502_v44 }
  0xb7   :  { %965 = vperm.xlu1 %7086, %v7398_v60   ;;  %v7509_v45 = vpop.permute.xlu0 %973 }
  0xb8   :  { %12910 = vst [vmem:[#allocation11_spill] sm:$0xff] %v7509_v45  ;;  %v1051_v45 = vld [vmem:[%s12865_s5 + $0x58] sm:$0xff] }
  0xb9   :  { %1063 = vperm.xlu0 %7087, %v1050_v28   ;;  %v1333_v28 = vld [vmem:[%s12860_s0 + $0xa0] sm:$0xff] }
  0xba   :  { %v7511_v30 = vpop.permute.xlu1 %323  ;;  %v7643_v41 = vadd.f32 1.0, %v1333_v28 }
  0xbb   :  { %969 = vperm.xlu1 %7086, %v6054_v11   ;;  %v7516_v47 = vpop.permute.xlu0 %981 }
  0xbc   :  { %12911 = vst [vmem:[#allocation12_spill] sm:$0xff] %v7516_v47 }
  0xbd   :  { %1069 = vperm.xlu0 %7087, %v1052_v46  }
  0xbe   :  { %v7518_v48 = vpop.permute.xlu1 %327 }
  0xbf   :  { %977 = vperm.xlu1 %7086, %v6056_v16   ;;  %v7523_v50 = vpop.permute.xlu0 %989  ;;  %v7577_v16 = vld [vmem:[%s12861_s1 + $0x1] ss:$0 sm:$0xff] }
  0xc0   :  { %12912 = vst [vmem:[#allocation13_spill] sm:$0xff] %v7523_v50  ;;  %vm305_vm4 = vcmp.lt.f32.partialorder %v7577_v16, %v7428_v6  ;;  %vm302_vm6 = vcmp.lt.f32.partialorder %v7577_v16, %v7418_v1  ;;  %vm307_vm8 = vcmp.lt.f32.partialorder %v7577_v16, %v7436_v9  ;;  %vm304_vm11 = vcmp.lt.f32.partialorder %v7577_v16, %v7457_v23 }
  0xc1   :  { %1075 = vperm.xlu0 %7087, %v1054_v49   ;;  %vm7722_vm12 = vmand %vm7683_vm5, %vm305_vm4  ;;  %vm353_vm1 = vcmp.gt.f32.partialorder %v7577_v16, %v7455_v22  ;;  %vm309_vm7 = vcmp.lt.f32.partialorder %v7577_v16, %v7445_v14  ;;  %v194_v44 = vsub.f32 %v7461_v29, %v7577_v16 }
  0xc2   :  { %v7525_v51 = vpop.permute.xlu1 %335  ;;  %vm7735_vm14 = vmand %vm7703_vm9, %vm304_vm11 }
  0xc3   :  { %985 = vperm.xlu1 %7086, %v6058_v21   ;;  %v190_v21 = vsub.f32 %v7418_v1, %v7577_v16  ;;  %vm7766_vm4 = vmand %vm253_vm0, %vm293_vm13  ;;  %v7845_v1 = vld [vmem:[%s12863_s3] ss:$0 sm:$0xff] }
  0xc4   :  { %v7530_v53 = vpop.permute.xlu0 %75  ;;  %vm7772_vm5 = vmand %vm7722_vm12, %vm353_vm1  ;;  %vm350_vm1 = vcmp.gt.f32.partialorder %v7577_v16, %v7451_v18 }
  0xc5   :  { %1097 = vperm.xlu0 %7087, %v1088_v52   ;;  %v198_v46 = vmul.f32 0.5, %v190_v21  ;;  %v1330_v21 = vld [vmem:[%s12860_s0 + $0x88] sm:$0xff]  ;;  %vm246_vm15 = vcmp.gt.f32.partialorder %v7587_v20, %v7530_v53  ;;  %vm7798_vm10 = vmand %vm7755_vm2, %vm307_vm8  ;;  %vm352_vm8 = vcmp.gt.f32.partialorder %v7577_v16, %v7518_v48  ;;  %vm303_vm2 = vcmp.lt.f32.partialorder %v7577_v16, %v7453_v19 }
  0xc6   :  { %v7535_v55 = vpop.permute.xlu1 %343  ;;  %vm7785_vm9 = vmand %vm246_vm15, %vm286_vm3  ;;  %vm355_vm15 = vcmp.gt.f32.partialorder %v7577_v16, %v7459_v27  ;;  %v202_v27 = vmul.f32 0.5, %v194_v44  ;;  %v1091_v44 = vld [vmem:[%s12864_s4 + $0x58] sm:$0xff] }
  0xc7   :  { %7088 = vset.pattern.permute.xlu1 %v12872_v4  ;;  %vm7811_vm13 = vmand %vm7766_vm4, %vm309_vm7 }
  0xc8   :  { %1017 = vperm.xlu1 %7088, %v1008_v54   ;;  %v7541_v57 = vpop.permute.xlu0 %80  ;;  %v43_v54 = vlaneseq  ;;  %vm7830_vm0 = vmand %vm7785_vm9, %vm302_vm6 }
  0xc9   :  { %1103 = vperm.xlu0 %7087, %v1090_v56   ;;  %v193_v56 = vsub.f32 %v7428_v6, %v7577_v16  ;;  %vm247_vm11 = vcmp.gt.f32.partialorder %v7587_v20, %v7541_v57  ;;  %vm7859_vm3 = vmand %vm7798_vm10, %vm355_vm15 }
  0xca   :  { %vm7872_vm4 = vmand %vm7735_vm14, %vm352_vm8 }
  0xcb   :  { %v7549_v60 = vpop.permute.xlu1 %375  ;;  %v201_v47 = vmul.f32 0.5, %v193_v56  ;;  %v118_v56 = vsub.f32 %v7587_v20, %v7434_v8  ;;  %vm7886_vm9 = vmand %vm7830_vm0, %vm350_vm1  ;;  %vm351_vm1 = vcmp.gt.f32.partialorder %v7577_v16, %v7511_v30  ;;  %v1645_v8 = vld [vmem:[%s12862_s2 + $0xa0] sm:$0xff] }
  0xcc   :  { %1023 = vperm.xlu1 %7088, %v1010_v58   ;;  %v7551_v61 = vpop.permute.xlu0 %95  ;;  %v1049_v58 = vld [vmem:[%s12865_s5 + $0x48] sm:$0xff] }
  0xcd   :  { %1109 = vperm.xlu0 %7087, %v1092_v59   ;;  %v7617_v59 = vadd.f32 -1.0, %v1333_v28  ;;  %v195_v28 = vsub.f32 %v7436_v9, %v7577_v16  ;;  %v117_v0 = vsub.f32 %v7587_v20, %v7551_v61  ;;  %vm250_vm14 = vcmp.gt.f32.partialorder %v7587_v20, %v7551_v61 }
  0xcf   :  { %v7564_v10 = vpop.permute.xlu1 %381  ;;  %12917 = vst [vmem:[#allocation18_spill] sm:$0xff] %v7617_v59  ;;  %v126_v6 = vmul.f32 0.5, %v117_v0 }
  0xd0   :  { %1026 = vperm.xlu1 %7088, %v1011_v63   ;;  %v7566_v11 = vpop.permute.xlu0 %105  ;;  %v1335_v63 = vld [vmem:[%s12860_s0 + $0xb0] sm:$0xff] }
  0xd1   :  { %1115 = vperm.xlu0 %7087, %v1094_v2   ;;  %v124_v2 = vmul.f32 0.5, %v115_v26  ;;  %v7633_v50 = vadd.f32 -1.0, %v1335_v63  ;;  %v191_v26 = vsub.f32 %v7453_v19, %v7577_v16  ;;  %v7647_v38 = vadd.f32 1.0, %v1335_v63 }
  0xd2   :  { %v114_v63 = vsub.f32 %v7587_v20, %v7541_v57  ;;  %vm252_vm8 = vcmp.gt.f32.partialorder %v7587_v20, %v7566_v11  ;;  %v7957_v61 = vmul.f32 8.0, %v126_v6 }
  0xd3   :  { %v7591_v25 = vpop.permute.xlu1 %384  ;;  %12918 = vst [vmem:[#allocation19_spill] sm:$0xff] %v7633_v50  ;;  %12919 = vst [vmem:[#allocation20_spill] sm:$0xff] %v7647_v38 }
  0xd4   :  { %1032 = vperm.xlu1 %7088, %v1013_v12   ;;  %v7593_v35 = vpop.permute.xlu0 %259  ;;  %v116_v12 = vsub.f32 %v7587_v20, %v7426_v5  ;;  %vm405_vm7 = vcmp.eq.s32.totalorder %v7591_v25, %v7845_v1 }
  0xd5   :  { %1355 = vperm.xlu0 %7087, %v7572_v15   ;;  %v7631_v15 = vand.u32 127, %v43_v54  ;;  %vm287_vm12 = vcmp.lt.f32.partialorder %v7587_v20, %v7593_v35  ;;  %vm7922_vm15 = vmand %vm7772_vm5, %vm405_vm7 }
  0xd6   :  { %v125_v54 = vmul.f32 0.5, %v116_v12  ;;  %v209_v12 = vmul.f32 8.0, %v201_v47  ;;  %v113_v47 = vsub.f32 %v7587_v20, %v7530_v53  ;;  %vm7853_vm6 = vmand %vm247_vm11, %vm287_vm12  ;;  %vm402_vm11 = vcmp.eq.s32.totalorder %v7549_v60, %v7845_v1 }
  0xd7   :  { %v7607_v49 = vpop.permute.xlu1 %390  ;;  %vm7905_vm12 = vmand %vm7853_vm6, %vm303_vm2 }
  0xd8   :  { %1038 = vperm.xlu1 %7088, %v1015_v24   ;;  %v7609_v52 = vpop.permute.xlu0 %271  ;;  %v206_v24 = vmul.f32 8.0, %v198_v46  ;;  %v7641_v46 = vadd.f32 1.0, %v1330_v21  ;;  %v7676_v33 = vmul.f32 8.0, %v125_v54  ;;  %v127_v54 = vmul.f32 0.5, %v118_v56  ;;  %vm7953_vm2 = vmand %vm7886_vm9, %vm402_vm11 }
  0xd9   :  { %1365 = vperm.xlu0 %7087, %v7600_v40   ;;  %v203_v40 = vmul.f32 0.5, %v195_v28  ;;  %v197_v56 = vsub.f32 %v7445_v14, %v7577_v16  ;;  %v217_v37 = vfloor.f32 %v209_v12  ;;  %v1055_v28 = vld [vmem:[%s12865_s5 + $0x78] sm:$0xff]  ;;  %v122_v12 = vmul.f32 0.5, %v113_v47  ;;  %v1642_v14 = vld [vmem:[%s12862_s2 + $0x88] sm:$0xff]  ;;  %vm7963_vm7 = vmand %vm7905_vm12, %vm351_vm1 }
  0xda   :  { %v214_v43 = vfloor.f32 %v206_v24  ;;  %v1053_v24 = vld [vmem:[%s12865_s5 + $0x68] sm:$0xff]  ;;  %vm290_vm10 = vcmp.lt.f32.partialorder %v7587_v20, %v7609_v52  ;;  %vm407_vm6 = vcmp.eq.s32.totalorder %v7607_v49, %v7845_v1  ;;  %vm306_vm9 = vcmp.lt.f32.partialorder %v7577_v16, %v7461_v29  ;;  %v1647_v49 = vld [vmem:[%s12862_s2 + $0xb0] sm:$0xff] }
  0xdb   :  { %v7627_v4 = vpop.permute.xlu1 %396  ;;  %v211_v47 = vmul.f32 8.0, %v203_v40  ;;  %v225_v40 = vmul.f32 8.0, %v217_v37  ;;  %v130_v53 = vmul.f32 8.0, %v122_v12  ;;  %vm7940_vm5 = vmand %vm250_vm14, %vm290_vm10  ;;  %vm357_vm10 = vcmp.gt.f32.partialorder %v7577_v16, %v7463_v31 }
  0xdc   :  { %1060 = vperm.xlu1 %7088, %v1049_v58   ;;  %v7629_v3 = vpop.permute.xlu0 %279  ;;  %v7645_v58 = vmul.f32 8.0, %v124_v2  ;;  %vm404_vm11 = vcmp.eq.s32.totalorder %v7564_v10, %v7845_v1  ;;  %vm7992_vm1 = vmand %vm7940_vm5, %vm306_vm9  ;;  %vm354_vm5 = vcmp.gt.f32.partialorder %v7577_v16, %v7525_v51  ;;  %v8060_v10 = vld [vmem:[%s12860_s0 + $0x98] sm:$0xff] }
  0xdd   :  { %1375 = vperm.xlu0 %7087, %v7617_v59   ;;  %v7655_v59 = vadd.f32 -1.0, %v1330_v21  ;;  %v199_v21 = vmul.f32 0.5, %v191_v26  ;;  %v7689_v26 = vmul.f32 8.0, %v214_v43  ;;  %vm292_vm0 = vcmp.lt.f32.partialorder %v7587_v20, %v7629_v3 }
  0xde   :  { %vm7983_vm12 = vmand %vm252_vm8, %vm292_vm0  ;;  %vm308_vm0 = vcmp.lt.f32.partialorder %v7577_v16, %v7465_v32 }
  0xdf   :  { %v7653_v36 = vpop.permute.xlu1 %422  ;;  %v207_v17 = vmul.f32 8.0, %v199_v21  ;;  %v7741_v21 = vmul.f32 8.0, %v127_v54  ;;  %v205_v54 = vmul.f32 0.5, %v197_v56  ;;  %vm7998_vm8 = vmand %vm7811_vm13, %vm357_vm10 }
  0xe0   :  { %1066 = vperm.xlu1 %7088, %v1051_v45   ;;  %v7665_v2 = vpop.permute.xlu0 %378  ;;  %v192_v45 = vsub.f32 %v7457_v23, %v7577_v16  ;;  %v141_v23 = vfloor.f32 %v7676_v33  ;;  %v1093_v33 = vld [vmem:[%s12864_s4 + $0x68] sm:$0xff]  ;;  %vm8015_vm13 = vmand %vm7859_vm3, %vm407_vm6 }
  0xe1   :  { %1385 = vperm.xlu0 %7087, %v7633_v50   ;;  %v123_v50 = vmul.f32 0.5, %v114_v63  ;;  %v215_v34 = vfloor.f32 %v207_v17  ;;  %v7821_v12 = vmul.f32 8.0, %v205_v54  ;;  %vm403_vm14 = vcmp.eq.s32.totalorder %v7665_v2, %v7845_v1  ;;  %vm8043_vm3 = vmand %vm7872_vm4, %vm404_vm11 }
  0xe2   :  { %v200_v63 = vmul.f32 0.5, %v192_v45  ;;  %v7913_v17 = vadd.f32 %v225_v40, %v141_v23  ;;  %vm8024_vm9 = vmand %vm7963_vm7, %vm403_vm14  ;;  %vm443_vm4 = vcmp.ne.s32.totalorder %v7653_v36, %v7631_v15  ;;  %vm356_vm11 = vcmp.gt.f32.partialorder %v7577_v16, %v7535_v55 }
  0xe3   :  { %v7707_v43 = vpop.permute.xlu1 %428  ;;  %v131_v22 = vmul.f32 8.0, %v123_v50  ;;  %v223_v35 = vmul.f32 8.0, %v215_v34  ;;  %v119_v34 = vsub.f32 %v7587_v20, %v7566_v11  ;;  %v221_v23 = vfloor.f32 %v7821_v12  ;;  %vm8049_vm6 = vmand %vm7983_vm12, %vm308_vm0 }
  0xe4   :  { %1072 = vperm.xlu1 %7088, %v1053_v24   ;;  %v7713_v7 = vpop.permute.xlu0 %387  ;;  %v120_v24 = vsub.f32 %v7587_v20, %v7443_v13  ;;  %v208_v56 = vmul.f32 8.0, %v200_v63  ;;  %v219_v63 = vfloor.f32 %v211_v47  ;;  %v196_v47 = vsub.f32 %v7465_v32, %v7577_v16  ;;  %vm8069_vm14 = vmand %vm7992_vm1, %vm354_vm5 }
  0xe5   :  { %1534 = vperm.xlu0 %7087, %v7641_v46   ;;  %v128_v52 = vmul.f32 0.5, %v119_v34  ;;  %v6949_v11 = vtrunc.f32 %v7913_v17  ;;  %v12970_v32 = vfloor.f32 %v7741_v21  ;;  %vm445_vm7 = vcmp.ne.s32.totalorder %v7707_v43, %v7631_v15  ;;  %vm8083_vm1 = vmand %vm8024_vm9, %vm443_vm4 }
  0xe6   :  { %v7807_v37 = vmul.f32 0.5, %v120_v24  ;;  %v139_v24 = vfloor.f32 %v131_v22  ;;  %v216_v50 = vfloor.f32 %v208_v56  ;;  %v12971_v22 = vfloor.f32 %v7645_v58  ;;  %vm8092_vm0 = vmand %vm7922_vm15, %vm445_vm7 }
  0xe7   :  { %v7759_v5 = vpop.permute.xlu1 %434  ;;  %v136_v21 = vmul.f32 8.0, %v128_v52  ;;  %v229_v57 = vmul.f32 8.0, %v221_v23  ;;  %vm406_vm10 = vcmp.eq.s32.totalorder %v7713_v7, %v7845_v1  ;;  %vm8098_vm5 = vmand %vm8049_vm6, %vm356_vm11  ;;  %v8107_v43 = vadd.f32 -1.0, %v8060_v10 }
  0xe8   :  { %1078 = vperm.xlu1 %7088, %v1055_v28   ;;  %v7776_v42 = vpop.permute.xlu0 %393  ;;  %v231_v0 = vadd.f32 %v223_v35, %v139_v24  ;;  %v224_v40 = vmul.f32 8.0, %v216_v50  ;;  %v137_v29 = vmul.f32 8.0, %v7807_v37  ;;  %v1095_v37 = vld [vmem:[%s12864_s4 + $0x78] sm:$0xff]  ;;  %v142_v50 = vfloor.f32 %v7957_v61  ;;  %vm8116_vm6 = vmand %vm8069_vm14, %vm406_vm10 }
  0xe9   :  { %1546 = vperm.xlu0 %7087, %v7643_v41   ;;  %vm409_vm15 = vcmp.eq.s32.totalorder %v7627_v4, %v7845_v1  ;;  %v6950_v61 = vcvt.f32.s32 %v6949_v11 }
  0xea   :  { %v232_v35 = vadd.f32 %v224_v40, %v12971_v22  ;;  %v145_v51 = vfloor.f32 %v137_v29 }
  0xeb   :  { %v7819_v28 = vpop.permute.xlu1 %440 }
  0xec   :  { %1100 = vperm.xlu1 %7088, %v1089_v39   ;;  %v7834_v13 = vpop.permute.xlu0 %419  ;;  %v138_v39 = vfloor.f32 %v130_v53  ;;  %v227_v53 = vmul.f32 8.0, %v219_v63  ;;  %v210_v63 = vmul.f32 8.0, %v202_v27  ;;  %v6945_v27 = vtrunc.f32 %v231_v0  ;;  %v13007_v0 = vld [vmem:[#allocation16_spill] sm:$0xff] }
  0xed   :  { %1554 = vperm.xlu0 %7087, %v7647_v38   ;;  %v204_v38 = vmul.f32 0.5, %v196_v47  ;;  %vm442_vm12 = vcmp.ne.s32.totalorder %v7834_v13, %v7631_v15  ;;  %v6947_v19 = vtrunc.f32 %v232_v35  ;;  %v237_v52 = vadd.f32 %v229_v57, %v145_v51 }
  0xee   :  { %v230_v12 = vadd.f32 %v7689_v26, %v138_v39  ;;  %v218_v31 = vfloor.f32 %v210_v63  ;;  %v8030_v9 = vadd.f32 %v227_v53, %v12970_v32  ;;  %v6946_v6 = vcvt.f32.s32 %v6945_v27  ;;  %v1681_v63 = vld [vmem:[%s12865_s5 + $0x80] sm:$0xff]  ;;  %vm498_vm4 = vmand %vm7953_vm2, %vm442_vm12  ;;  %v8200_v32 = vld [vmem:[%s12860_s0 + $0xb8] sm:$0xff] }
  0xef   :  { %v7896_v56 = vpop.permute.xlu1 %462  ;;  %v212_v54 = vmul.f32 8.0, %v204_v38  ;;  %vm8151_vm2 = vmand %vm7998_vm8, %vm409_vm15  ;;  %vm408_vm8 = vcmp.eq.s32.totalorder %v7776_v42, %v7845_v1  ;;  %vm12993_vm15 = vcmask 64512   ;;  %v1687_v39 = vld [vmem:[%s12865_s5 + $0xb0] sm:$0xff]  ;;  %v1347_v55 = vadd.f32 1.0, %v13007_v0  ;;  %v1641_v0 = vld [vmem:[%s12862_s2 + $0x80] sm:$0xff] }
  0xf0   :  { %1106 = vperm.xlu1 %7088, %v1091_v44   ;;  %v7909_v45 = vpop.permute.xlu0 %425  ;;  %v226_v53 = vmul.f32 8.0, %v218_v31  ;;  %vm483_vm9 = vcmp.eq.s32.totalorder %v6946_v6, %v7896_v56  ;;  %v6953_v7 = vtrunc.f32 %v8030_v9  ;;  %v1683_v56 = vld [vmem:[%s12865_s5 + $0x90] sm:$0xff]  ;;  %v6948_v31 = vcvt.f32.s32 %v6947_v19  ;;  %v1721_v6 = vld [vmem:[%s12864_s4 + $0x80] sm:$0xff] }
  0xf1   :  { %1653 = vperm.xlu0 %7087, %v1642_v14   ;;  %v6943_v14 = vtrunc.f32 %v230_v12  ;;  %v220_v18 = vfloor.f32 %v212_v54  ;;  %vm8140_vm14 = vmand %vm8083_vm1, %vm483_vm9  ;;  %vm444_vm10 = vcmp.ne.s32.totalorder %v7909_v45, %v7631_v15  ;;  %vm12990_vm9 = vcmp.ne.s32.totalorder %v7759_v5, %v7631_v15 }
  0xf2   :  { %v234_v12 = vadd.f32 %v226_v53, %v142_v50  ;;  %vm8167_vm7 = vmand %vm8015_vm13, %vm12990_vm9  ;;  %v12888_v54 = vmov 0.0   ;;  %v6954_v5 = vcvt.f32.s32 %v6953_v7  ;;  %v13010_v7 = vld [vmem:[#allocation14_spill] sm:$0xff]  ;;  %v13011_v27 = vmov 0  }
  0xf3   :  { %v7969_v60 = vpop.permute.xlu1 %468  ;;  %v6944_v25 = vcvt.f32.s32 %v6943_v14  ;;  %v228_v26 = vmul.f32 8.0, %v220_v18  ;;  %vm500_vm13 = vmand %vm8043_vm3, %vm444_vm10  ;;  %v6037_v17 = vsel %vm8140_vm14, 1.0, %v12888_v54  ;;  %v13005_v18 = vmov 1  }
  0xf4   :  { %1112 = vperm.xlu1 %7088, %v1093_v33   ;;  %v7987_v47 = vpop.permute.xlu0 %431  ;;  %v144_v33 = vfloor.f32 %v136_v21  ;;  %vm485_vm12 = vcmp.eq.s32.totalorder %v6950_v61, %v7969_v60  ;;  %v6951_v3 = vtrunc.f32 %v234_v12  ;;  %v1685_v60 = vld [vmem:[%s12865_s5 + $0xa0] sm:$0xff]  ;;  %v13009_v61 = vld [vmem:[#allocation20_spill] sm:$0xff] }
  0xf5   :  { %1662 = vperm.xlu0 %7087, %v1645_v8   ;;  %v8125_v8 = vld [vmem:[%s12860_s0 + $0xa8] sm:$0xff]  ;;  %vm446_vm3 = vcmp.ne.s32.totalorder %v7987_v47, %v7631_v15 }
  0xf6   :  { %v8160_v30 = vadd.f32 -1.0, %v8125_v8  ;;  %v236_v11 = vadd.f32 %v228_v26, %v144_v33  ;;  %v6952_v22 = vcvt.f32.s32 %v6951_v3 }
  0xf7   :  { %v8055_v58 = vpop.permute.xlu1 %474 }
  0xf8   :  { %1118 = vperm.xlu1 %7088, %v1095_v37   ;;  %v8075_v34 = vpop.permute.xlu0 %437  ;;  %v6957_v37 = vtrunc.f32 %v237_v52  ;;  %vm487_vm14 = vcmp.eq.s32.totalorder %v6954_v5, %v8055_v58  ;;  %v6955_v50 = vtrunc.f32 %v236_v11  ;;  %v8301_v52 = vadd.f32 1.0, %v13010_v7 }
  0xf9   :  { %1668 = vperm.xlu0 %7087, %v1647_v49   ;;  %v8328_v5 = vadd.f32 1.0, %v8200_v32 }
  0xfa   :  { %v6958_v42 = vcvt.f32.s32 %v6957_v37  ;;  %v6956_v14 = vcvt.f32.s32 %v6955_v50 }
  0xfb   :  { %v8120_v40 = vpop.permute.xlu1 %480 }
  0xfc   :  { %1360 = vperm.xlu1 %7088, %v7655_v59   ;;  %v460_v24 = vpop.permute.xlu0 %459 }
  0xfd   :  { %vm482_vm11 = vcmp.eq.s32.totalorder %v6944_v25, %v460_v24  ;;  %1690 = vperm.xlu0 %7087, %v1681_v63   ;;  %v1723_v63 = vld [vmem:[%s12864_s4 + $0x90] sm:$0xff] }
  0xfe   :  { %vm506_vm1 = vmand %vm498_vm4, %vm482_vm11 }
  0xff   :  { %v8171_v29 = vpop.permute.xlu1 %727  ;;  %v6036_v44 = vsel %vm506_vm1, 1.0, %v12888_v54  ;;  %vm8190_vm4 = vmand %vm8092_vm0, %vm485_vm12  ;;  %vm449_vm12 = vcmp.ne.s32.totalorder %v7819_v28, %v7631_v15 }
 0x100   :  { %1370 = vperm.xlu1 %7088, %v8107_v43   ;;  %v466_v38 = vpop.permute.xlu0 %465  ;;  %6577 = vmatprep.mubr.msk.f32.mxu0 %vm12993_vm15, %v6036_v44  ;;  %vm12996_vm11 = vmmov %vm12993_vm15  ;;  %v6039_v21 = vsel %vm8190_vm4, 1.0, %v12888_v54  ;;  %vm489_vm4 = vcmp.eq.s32.totalorder %v6958_v42, %v8120_v40  ;;  %v8320_v44 = vadd.f32 1.0, %v8125_v8  ;;  %v13013_v42 = vld [vmem:[#allocation17_spill] sm:$0xff] }
 0x101   :  { %vm484_vm10 = vcmp.eq.s32.totalorder %v6948_v31, %v466_v38  ;;  %1696 = vperm.xlu0 %7087, %v1683_v56   ;;  %6578 = vmatmul.mubr.msk.f32.vlgmr.msra.gmra.mrb[0].mxu0 %vm12996_vm11, %v6037_v17  ;;  %vm8212_vm0 = vmand %vm8098_vm5, %vm408_vm8  ;;  %v8312_v56 = vadd.f32 1.0, %v8060_v10  ;;  %v13012_v38 = vld [vmem:[#allocation6_spill] sm:$0xff] }
 0x102   :  { %vm508_vm1 = vmand %vm500_vm13, %vm484_vm10  ;;  %6604 = vmatpush3.msra.mxu0 %v7406_v62  ;;  %v832_v17 = vsub.f32 %v13012_v38, %v7577_v16 }
 0x103   :  { %v8216_v49 = vpop.permute.xlu1 %737  ;;  %v6038_v35 = vsel %vm508_vm1, 1.0, %v12888_v54  ;;  %6631 = vmatprep.subr.mxu0 %v7406_v62  ;;  %vm502_vm5 = vmand %vm8116_vm6, %vm446_vm3  ;;  %v8233_v62 = vadd.f32 -1.0, %v8200_v32  ;;  %vm448_vm6 = vcmp.ne.s32.totalorder %v8075_v34, %v7631_v15 }
 0x104   :  { %1380 = vperm.xlu1 %7088, %v8160_v30   ;;  %v472_v2 = vpop.permute.xlu0 %471  ;;  %vm12999_vm9 = vmmov %vm12996_vm11  ;;  %v840_v9 = vmul.f32 0.5, %v832_v17 }
 0x105   :  { %6580 = vmatprep.mubr.msk.f32.mxu0 %vm12999_vm9, %v6038_v35  ;;  %vm8239_vm8 = vmand %vm8167_vm7, %vm487_vm14  ;;  %vm486_vm13 = vcmp.eq.s32.totalorder %v6952_v22, %v472_v2  ;;  %1702 = vperm.xlu0 %7087, %v1685_v60  }
 0x106   :  { %vm13002_vm15 = vmmov %vm12999_vm9  ;;  %v6041_v28 = vsel %vm8239_vm8, 1.0, %v12888_v54  ;;  %v848_v35 = vmul.f32 8.0, %v840_v9 }
 0x107   :  { %6581 = vmatmul.mubr.msk.f32.gmra.mrb[2].mxu0 %vm13002_vm15, %v6039_v21  ;;  %vm510_vm3 = vmand %vm502_vm5, %vm486_vm13  ;;  %v8255_v58 = vpop.permute.xlu1 %747  ;;  %vm944_vm13 = vcmp.lt.f32.partialorder %v7577_v16, %v13012_v38  ;;  %v1644_v38 = vld [vmem:[%s12862_s2 + $0x98] sm:$0xff] }
 0x108   :  { %vm505_vm7 = vmand %vm8151_vm2, %vm449_vm12  ;;  %v6040_v57 = vsel %vm510_vm3, 1.0, %v12888_v54  ;;  %1390 = vperm.xlu1 %7088, %v8233_v62   ;;  %v478_v48 = vpop.permute.xlu0 %477  ;;  %v856_v47 = vfloor.f32 %v848_v35 }
 0x109   :  { %vm504_vm10 = vmand %vm8212_vm0, %vm448_vm6  ;;  %vm488_vm1 = vcmp.eq.s32.totalorder %v6956_v14, %v478_v48  ;;  %1708 = vperm.xlu0 %7087, %v1687_v39   ;;  %v13014_v14 = vld [vmem:[#allocation18_spill] sm:$0xff] }
 0x10a   :  { %vm13003_vm11 = vmmov %vm12999_vm9 }
 0x10b   :  { %6583 = vmatprep.mubr.msk.f32.mxu0 %vm13003_vm11, %v6040_v57  ;;  %vm513_vm14 = vmand %vm505_vm7, %vm489_vm4  ;;  %v8269_v34 = vpop.permute.xlu1 %757 }
 0x10c   :  { %vm13004_vm2 = vmmov %vm12999_vm9  ;;  %7089 = vset.pattern.permute.xlu1 %v13005_v18  ;;  %v8273_v36 = vpop.permute.xlu0 %722  ;;  %v6043_v51 = vsel %vm513_vm14, 1.0, %v12888_v54 }
 0x10d   :  { %6584 = vmatmul.mubr.msk.f32.gmra.mrb[4].mxu0 %vm13004_vm2, %v6041_v28  ;;  %vm512_vm12 = vmand %vm504_vm10, %vm488_vm1  ;;  %1432 = vperm.xlu1 %7089, %v7641_v46   ;;  %v1725_v46 = vld [vmem:[%s12864_s4 + $0xa0] sm:$0xff]  ;;  %v760_v8 = vsub.f32 %v7587_v20, %v8273_v36  ;;  %v864_v28 = vmul.f32 8.0, %v856_v47  ;;  %vm888_vm8 = vcmp.gt.f32.partialorder %v7587_v20, %v8273_v36  ;;  %v1643_v36 = vld [vmem:[%s12862_s2 + $0x90] sm:$0xff] }
 0x10e   :  { %v6042_v53 = vsel %vm512_vm12, 1.0, %v12888_v54  ;;  %vm13006_vm0 = vmmov %vm13004_vm2  ;;  %1730 = vperm.xlu0 %7087, %v1721_v6   ;;  %v13015_v6 = vld [vmem:[#allocation19_spill] sm:$0xff]  ;;  %v1646_v47 = vld [vmem:[%s12862_s2 + $0xa8] sm:$0xff] }
 0x10f   :  { %6586 = vmatprep.mubr.msk.f32.mxu0 %vm13006_vm0, %v6042_v53  ;;  %vm13008_vm5 = vmmov %vm13006_vm0  ;;  %v768_v32 = vmul.f32 0.5, %v760_v8 }
 0x110   :  { %v8283_v19 = vpop.permute.xlu1 %799  ;;  %v8285_v33 = vpop.permute.xlu0 %732  ;;  %vm13018_vm12 = vmmov %vm13006_vm0 }
 0x111   :  { %6587 = vmatmul.mubr.msk.f32.gmra.mrb[6].mxu0 %vm13008_vm5, %v6043_v51  ;;  %1437 = vperm.xlu1 %7089, %v1347_v55   ;;  %v776_v2 = vmul.f32 8.0, %v768_v32 }
 0x112   :  { %1736 = vperm.xlu0 %7087, %v1723_v63   ;;  %v13016_v63 = vld [vmem:[#allocation7_spill] sm:$0xff] }
 0x113   :  { %v784_v57 = vfloor.f32 %v776_v2 }
 0x114   :  { %v8290_v23 = vpop.permute.xlu1 %804  ;;  %v8292_v40 = vpop.permute.xlu0 %742 }
 0x115   :  { %1447 = vperm.xlu1 %7089, %v7643_v41   ;;  %v872_v53 = vadd.f32 %v864_v28, %v784_v57  ;;  %v833_v28 = vsub.f32 %v8283_v19, %v7577_v16 }
 0x116   :  { %1742 = vperm.xlu0 %7087, %v1725_v46   ;;  %v835_v46 = vsub.f32 %v13016_v63, %v7577_v16 }
 0x118   :  { %v8295_v25 = vpop.permute.xlu1 %814  ;;  %v8297_v12 = vpop.permute.xlu0 %752  ;;  %v843_v7 = vmul.f32 0.5, %v835_v46 }
 0x119   :  { %1457 = vperm.xlu1 %7089, %v13009_v61   ;;  %v6959_v61 = vtrunc.f32 %v872_v53 }
 0x11a   :  { %v851_v32 = vmul.f32 8.0, %v843_v7 }
 0x11b   :  { %v6960_v9 = vcvt.f32.s32 %v6959_v61  ;;  %v763_v61 = vsub.f32 %v7587_v20, %v8216_v49 }
 0x11c   :  { %v8303_v24 = vpop.permute.xlu1 %824  ;;  %v8305_v26 = vpop.permute.xlu0 %901 }
 0x11d   :  { %7090 = vset.pattern.permute.xlu1 %v13011_v27  ;;  %v838_v7 = vsub.f32 %v8303_v24, %v7577_v16  ;;  %vm929_vm0 = vcmp.lt.f32.partialorder %v7587_v20, %v8305_v26  ;;  %v765_v26 = vsub.f32 %v7587_v20, %v8255_v58 }
 0x11e   :  { %1530 = vperm.xlu1 %7090, %v8301_v52  }
 0x120   :  { %v8309_v13 = vpop.permute.xlu0 %913 }
 0x121   :  { %v898_v41 = vpop.permute.xlu1 %897  ;;  %vm932_vm5 = vcmp.lt.f32.partialorder %v7587_v20, %v8309_v13 }
 0x122   :  { %1538 = vperm.xlu1 %7090, %v1347_v55   ;;  %vm928_vm9 = vcmp.lt.f32.partialorder %v7587_v20, %v898_v41  ;;  %v13017_v41 = vld [vmem:[#allocation10_spill] sm:$0xff] }
 0x123   :  { %vm936_vm6 = vmand %vm888_vm8, %vm928_vm9  ;;  %vm992_vm4 = vcmp.gt.f32.partialorder %v7577_v16, %v13017_v41  ;;  %v1648_v41 = vld [vmem:[%s12862_s2 + $0xb8] sm:$0xff]  ;;  %vm889_vm9 = vcmp.gt.f32.partialorder %v7587_v20, %v8171_v29 }
 0x124   :  { %v8314_v4 = vpop.permute.xlu0 %921  ;;  %vm952_vm15 = vmand %vm936_vm6, %vm944_vm13  ;;  %vm947_vm6 = vcmp.lt.f32.partialorder %v7577_v16, %v13016_v63  ;;  %vm892_vm13 = vcmp.gt.f32.partialorder %v7587_v20, %v8292_v40 }
 0x125   :  { %v8316_v31 = vpop.permute.xlu1 %905  ;;  %vm1000_vm3 = vmand %vm952_vm15, %vm992_vm4 }
 0x126   :  { %1542 = vperm.xlu1 %7090, %v8312_v56   ;;  %vm930_vm8 = vcmp.lt.f32.partialorder %v7587_v20, %v8316_v31  ;;  %vm8434_vm15 = vmand %vm889_vm9, %vm929_vm0 }
 0x128   :  { %v8322_v3 = vpop.permute.xlu0 %1020 }
 0x129   :  { %v8324_v11 = vpop.permute.xlu1 %909 }
 0x12a   :  { %1550 = vperm.xlu1 %7090, %v8320_v44  }
 0x12c   :  { %v8330_v10 = vpop.permute.xlu0 %1029 }
 0x12d   :  { %v8332_v37 = vpop.permute.xlu1 %917 }
 0x12e   :  { %1558 = vperm.xlu1 %7090, %v8328_v5  }
 0x130   :  { %v8339_v45 = vpop.permute.xlu0 %1035 }
 0x131   :  { %v8341_v60 = vpop.permute.xlu1 %925 }
 0x132   :  { %7091 = vset.pattern.permute.xlu1 %v13005_v18 }
 0x133   :  { %1598 = vperm.xlu1 %7091, %v7655_v59  }
 0x134   :  { %v1058_v22 = vpop.permute.xlu0 %1057 }
 0x135   :  { %vm1080_vm10 = vcmp.ne.s32.totalorder %v1058_v22, %v7631_v15  ;;  %v836_v22 = vsub.f32 %v8295_v25, %v7577_v16 }
 0x136   :  { %v8345_v50 = vpop.permute.xlu1 %965 }
 0x137   :  { %1602 = vperm.xlu1 %7091, %v13013_v42   ;;  %v834_v42 = vsub.f32 %v8290_v23, %v7577_v16 }
 0x138   :  { %v8348_v21 = vpop.permute.xlu0 %1063 }
 0x139   :  { %v842_v46 = vmul.f32 0.5, %v834_v42 }
 0x13a   :  { %v8350_v39 = vpop.permute.xlu1 %969 }
 0x13b   :  { %1610 = vperm.xlu1 %7091, %v13014_v14   ;;  %v13019_v14 = vld [vmem:[#allocation8_spill] sm:$0xff] }
 0x13c   :  { %v8353_v48 = vpop.permute.xlu0 %1069  ;;  %v837_v57 = vsub.f32 %v13019_v14, %v7577_v16  ;;  %vm949_vm4 = vcmp.lt.f32.partialorder %v7577_v16, %v13019_v14 }
 0x13e   :  { %v8355_v59 = vpop.permute.xlu1 %977 }
 0x13f   :  { %1618 = vperm.xlu1 %7091, %v13015_v6   ;;  %v859_v6 = vfloor.f32 %v851_v32  ;;  %v13020_v32 = vld [vmem:[#allocation9_spill] sm:$0xff] }
 0x140   :  { %v8361_v51 = vpop.permute.xlu0 %1075  ;;  %v839_v42 = vsub.f32 %v13020_v32, %v7577_v16 }
 0x142   :  { %v8366_v55 = vpop.permute.xlu1 %985 }
 0x143   :  { %7092 = vset.pattern.permute.xlu1 %v13011_v27 }
 0x144   :  { %1650 = vperm.xlu1 %7092, %v1641_v0   ;;  %v1098_v17 = vpop.permute.xlu0 %1097  ;;  %v761_v0 = vsub.f32 %v7587_v20, %v8171_v29  ;;  %v1682_v29 = vld [vmem:[%s12865_s5 + $0x88] sm:$0xff] }
 0x145   :  { %vm1120_vm14 = vcmp.eq.s32.totalorder %v6960_v9, %v1098_v17  ;;  %v845_v17 = vmul.f32 0.5, %v837_v57  ;;  %v762_v9 = vsub.f32 %v7587_v20, %v8285_v33  ;;  %v850_v57 = vmul.f32 8.0, %v842_v46 }
 0x147   :  { %v1018_v8 = vpop.permute.xlu1 %1017 }
 0x148   :  { %vm1040_vm7 = vcmp.eq.s32.totalorder %v1018_v8, %v7845_v1  ;;  %1656 = vperm.xlu1 %7092, %v1643_v36   ;;  %v844_v36 = vmul.f32 0.5, %v836_v22  ;;  %v841_v8 = vmul.f32 0.5, %v833_v28  ;;  %v771_v28 = vmul.f32 0.5, %v763_v61 }
 0x149   :  { %vm1128_vm11 = vmand %vm1000_vm3, %vm1040_vm7  ;;  %v770_v61 = vmul.f32 0.5, %v762_v9  ;;  %vm890_vm3 = vcmp.gt.f32.partialorder %v7587_v20, %v8285_v33  ;;  %v766_v33 = vsub.f32 %v7587_v20, %v8297_v12  ;;  %v1684_v9 = vld [vmem:[%s12865_s5 + $0x98] sm:$0xff] }
 0x14a   :  { %vm1136_vm1 = vmand %vm1128_vm11, %vm1080_vm10  ;;  %v849_v46 = vmul.f32 8.0, %v841_v8  ;;  %vm934_vm10 = vcmp.lt.f32.partialorder %v7587_v20, %v8314_v4  ;;  %vm945_vm11 = vcmp.lt.f32.partialorder %v7577_v16, %v8283_v19  ;;  %v13057_v4 = vld [vmem:[#allocation11_spill] sm:$0xff] }
 0x14b   :  { %v8383_v35 = vpop.permute.xlu1 %1023  ;;  %vm1144_vm2 = vmand %vm1136_vm1, %vm1120_vm14  ;;  %vm946_vm1 = vcmp.lt.f32.partialorder %v7577_v16, %v8290_v23 }
 0x14c   :  { %1659 = vperm.xlu1 %7092, %v1644_v38   ;;  %v6060_v2 = vsel %vm1144_vm2, 1.0, %v12888_v54  ;;  %v8413_v38 = vmul.f32 8.0, %v859_v6  ;;  %v852_v6 = vmul.f32 8.0, %v844_v36  ;;  %v846_v54 = vmul.f32 0.5, %v838_v7  ;;  %vm8448_vm7 = vmand %vm892_vm13, %vm932_vm5 }
 0x14d   :  { %6591 = vmatprep.mubr.msk.f32.mxu1 %vm13018_vm12, %v6060_v2  ;;  %v764_v2 = vsub.f32 %v7587_v20, %v8292_v40  ;;  %vm8463_vm14 = vmand %vm890_vm3, %vm930_vm8  ;;  %vm894_vm2 = vcmp.gt.f32.partialorder %v7587_v20, %v8297_v12  ;;  %vm931_vm12 = vcmp.lt.f32.partialorder %v7587_v20, %v8324_v11  ;;  %vm948_vm5 = vcmp.lt.f32.partialorder %v7577_v16, %v8295_v25  ;;  %v8584_v12 = vpop.permute.xlu0 %1103 }
 0x14e   :  { %vm8477_vm0 = vmand %vm8434_vm15, %vm945_vm11  ;;  %v860_v31 = vfloor.f32 %v852_v6  ;;  %v854_v8 = vmul.f32 8.0, %v846_v54  ;;  %vm933_vm8 = vcmp.lt.f32.partialorder %v7587_v20, %v8332_v37  ;;  %vm891_vm13 = vcmp.gt.f32.partialorder %v7587_v20, %v8216_v49 }
 0x14f   :  { %v8398_v53 = vpop.permute.xlu1 %1026  ;;  %v772_v36 = vmul.f32 0.5, %v764_v2  ;;  %vm8486_vm9 = vmand %vm894_vm2, %vm934_vm10  ;;  %v8495_v2 = vmul.f32 8.0, %v845_v17  ;;  %v857_v54 = vfloor.f32 %v849_v46  ;;  %v778_v25 = vmul.f32 8.0, %v770_v61 }
 0x150   :  { %1665 = vperm.xlu1 %7092, %v1646_v47   ;;  %v769_v47 = vmul.f32 0.5, %v761_v0  ;;  %vm8504_vm15 = vmand %vm8463_vm14, %vm946_vm1  ;;  %vm893_vm10 = vcmp.gt.f32.partialorder %v7587_v20, %v8255_v58  ;;  %v774_v6 = vmul.f32 0.5, %v766_v33  ;;  %v779_v46 = vmul.f32 8.0, %v771_v28 }
 0x151   :  { %vm8510_vm3 = vmand %vm8448_vm7, %vm948_vm5  ;;  %v780_v49 = vmul.f32 8.0, %v772_v36  ;;  %vm950_vm7 = vcmp.lt.f32.partialorder %v7577_v16, %v8303_v24  ;;  %v773_v11 = vmul.f32 0.5, %v765_v26  ;;  %v862_v40 = vfloor.f32 %v854_v8  ;;  %v1686_v24 = vld [vmem:[%s12865_s5 + $0xa8] sm:$0xff] }
 0x152   :  { %v777_v17 = vmul.f32 8.0, %v769_v47  ;;  %vm8519_vm11 = vmand %vm891_vm13, %vm931_vm12  ;;  %v868_v47 = vmul.f32 8.0, %v860_v31  ;;  %vm993_vm1 = vcmp.gt.f32.partialorder %v7577_v16, %v8345_v50  ;;  %v767_v37 = vsub.f32 %v7587_v20, %v8269_v34  ;;  %v8596_v50 = vld [vmem:[%s12861_s1 + $0x1] ss:$0 sm:$0xff] }
 0x153   :  { %v8421_v22 = vpop.permute.xlu1 %1032  ;;  %vm8530_vm14 = vmand %vm893_vm10, %vm933_vm8  ;;  %v865_v28 = vmul.f32 8.0, %v857_v54  ;;  %v786_v26 = vfloor.f32 %v778_v25  ;;  %vm935_vm5 = vcmp.lt.f32.partialorder %v7587_v20, %v8341_v60  ;;  %v788_v13 = vfloor.f32 %v780_v49 }
 0x154   :  { %1671 = vperm.xlu1 %7092, %v1648_v41   ;;  %v858_v41 = vfloor.f32 %v850_v57  ;;  %vm8538_vm2 = vmand %vm8486_vm9, %vm950_vm7  ;;  %v785_v33 = vfloor.f32 %v777_v17  ;;  %v787_v8 = vfloor.f32 %v779_v46  ;;  %vm895_vm8 = vcmp.gt.f32.partialorder %v7587_v20, %v8269_v34  ;;  %v1688_v17 = vld [vmem:[%s12865_s5 + $0xb8] sm:$0xff] }
 0x155   :  { %vm8552_vm12 = vmand %vm8519_vm11, %vm947_vm6  ;;  %vm994_vm6 = vcmp.gt.f32.partialorder %v7577_v16, %v8350_v39  ;;  %v781_v54 = vmul.f32 8.0, %v773_v11  ;;  %v870_v25 = vmul.f32 8.0, %v862_v40  ;;  %v876_v19 = vadd.f32 %v868_v47, %v788_v13  ;;  %v1110_v11 = vpop.permute.xlu0 %1109 }
 0x156   :  { %v866_v61 = vmul.f32 8.0, %v858_v41  ;;  %v782_v41 = vmul.f32 8.0, %v774_v6  ;;  %vm8563_vm9 = vmand %vm8530_vm14, %vm949_vm4  ;;  %vm996_vm4 = vcmp.gt.f32.partialorder %v7577_v16, %v8355_v59  ;;  %v775_v49 = vmul.f32 0.5, %v767_v37 }
 0x157   :  { %v8467_v7 = vpop.permute.xlu1 %1038  ;;  %vm8578_vm13 = vmand %vm8477_vm0, %vm993_vm1  ;;  %vm998_vm0 = vcmp.gt.f32.partialorder %v8596_v50, %v8366_v55  ;;  %vm1041_vm11 = vcmp.eq.s32.totalorder %v8322_v3, %v7845_v1  ;;  %vm1042_vm14 = vcmp.eq.s32.totalorder %v8383_v35, %v7845_v1  ;;  %v873_v60 = vadd.f32 %v865_v28, %v785_v33  ;;  %v13066_v28 = vld [vmem:[#allocation12_spill] sm:$0xff] }
 0x158   :  { %1693 = vperm.xlu1 %7092, %v1682_v29   ;;  %v847_v29 = vmul.f32 0.5, %v839_v42  ;;  %vm8589_vm10 = vmand %vm895_vm8, %vm935_vm5  ;;  %v861_v55 = vfloor.f32 %v8495_v2  ;;  %v790_v23 = vfloor.f32 %v782_v41  ;;  %v875_v59 = vadd.f32 %v8413_v38, %v787_v8  ;;  %v1724_v41 = vld [vmem:[%s12864_s4 + $0x98] sm:$0xff] }
 0x159   :  { %vm8610_vm7 = vmand %vm8504_vm15, %vm994_vm6  ;;  %vm1044_vm6 = vcmp.eq.s32.totalorder %v8330_v10, %v7845_v1  ;;  %v789_v58 = vfloor.f32 %v781_v54  ;;  %v783_v38 = vmul.f32 8.0, %v775_v49  ;;  %v6961_v40 = vtrunc.f32 %v873_v60 }
 0x15a   :  { %v855_v6 = vmul.f32 8.0, %v847_v29  ;;  %vm8622_vm1 = vmand %vm8510_vm3, %vm996_vm4  ;;  %vm995_vm3 = vcmp.gt.f32.partialorder %v8596_v50, %v13057_v4  ;;  %v6967_v29 = vtrunc.f32 %v876_v19  ;;  %v878_v46 = vadd.f32 %v870_v25, %v790_v23 }
 0x15b   :  { %v8523_v0 = vpop.permute.xlu1 %1060  ;;  %vm8628_vm15 = vmand %vm8578_vm13, %vm1041_vm11  ;;  %v869_v42 = vmul.f32 8.0, %v861_v55  ;;  %vm1082_vm11 = vcmp.ne.s32.totalorder %v8348_v21, %v7631_v15  ;;  %v6965_v21 = vtrunc.f32 %v875_v59  ;;  %v791_v8 = vfloor.f32 %v783_v38 }
 0x15c   :  { %1699 = vperm.xlu1 %7092, %v1684_v9   ;;  %v874_v9 = vadd.f32 %v866_v61, %v786_v26  ;;  %vm8636_vm5 = vmand %vm8538_vm2, %vm998_vm0  ;;  %v1722_v61 = vld [vmem:[%s12864_s4 + $0x88] sm:$0xff]  ;;  %vm1046_vm2 = vcmp.eq.s32.totalorder %v8339_v45, %v7845_v1  ;;  %vm951_vm0 = vcmp.lt.f32.partialorder %v8596_v50, %v13020_v32  ;;  %v6968_v33 = vcvt.f32.s32 %v6967_v29 }
 0x15d   :  { %vm8647_vm8 = vmand %vm8610_vm7, %vm1042_vm14  ;;  %vm1084_vm14 = vcmp.ne.s32.totalorder %v8353_v48, %v7631_v15  ;;  %v6971_v48 = vtrunc.f32 %v878_v46  ;;  %v877_v54 = vadd.f32 %v869_v42, %v789_v58  ;;  %v13081_v49 = vmov 0.0  }
 0x15e   :  { %v6963_v16 = vtrunc.f32 %v874_v9  ;;  %vm8658_vm13 = vmand %vm8622_vm1, %vm1044_vm6  ;;  %vm1081_vm6 = vcmp.ne.s32.totalorder %v8523_v0, %v7631_v15  ;;  %v6962_v9 = vcvt.f32.s32 %v6961_v40 }
 0x15f   :  { %v8569_v63 = vpop.permute.xlu1 %1066  ;;  %vm8664_vm4 = vmand %vm8552_vm12, %vm995_vm3  ;;  %vm997_vm12 = vcmp.gt.f32.partialorder %v8596_v50, %v13066_v28  ;;  %v6972_v32 = vcvt.f32.s32 %v6971_v48  ;;  %v6969_v0 = vtrunc.f32 %v877_v54 }
 0x160   :  { %1705 = vperm.xlu1 %7092, %v1686_v24   ;;  %v863_v24 = vfloor.f32 %v855_v6  ;;  %vm8674_vm7 = vmand %vm8636_vm5, %vm1046_vm2  ;;  %v6964_v26 = vcvt.f32.s32 %v6963_v16  ;;  %vm1086_vm5 = vcmp.ne.s32.totalorder %v8361_v51, %v7631_v15  ;;  %v8762_v6 = vld [vmem:[%s12866_s6] sm:$0xff] }
 0x161   :  { %vm8686_vm1 = vmand %vm8647_vm8, %vm1082_vm11  ;;  %13084 = vst [vmem:[#allocation16_spill] sm:$0xff] %v8762_v6  ;;  %v6970_v23 = vcvt.f32.s32 %v6969_v0  ;;  %v13089_v16 = vld [vmem:[#allocation13_spill] sm:$0xff] }
 0x162   :  { %vm8694_vm3 = vmand %vm8658_vm13, %vm1084_vm14  ;;  %vm1122_vm8 = vcmp.eq.s32.totalorder %v6964_v26, %v8584_v12  ;;  %v871_v19 = vmul.f32 8.0, %v863_v24 }
 0x163   :  { %v8632_v35 = vpop.permute.xlu1 %1072  ;;  %vm8706_vm2 = vmand %vm8674_vm7, %vm1086_vm5  ;;  %vm1124_vm7 = vcmp.eq.s32.totalorder %v6968_v33, %v1110_v11 }
 0x164   :  { %1711 = vperm.xlu1 %7092, %v1688_v17   ;;  %vm8715_vm13 = vmand %vm8563_vm9, %vm997_vm12  ;;  %vm1043_vm9 = vcmp.eq.s32.totalorder %v8398_v53, %v7845_v1  ;;  %v1116_v17 = vpop.permute.xlu0 %1115  ;;  %vm1083_vm12 = vcmp.ne.s32.totalorder %v8569_v63, %v7631_v15  ;;  %v6966_v53 = vcvt.f32.s32 %v6965_v21  ;;  %v879_v60 = vadd.f32 %v871_v19, %v791_v8 }
 0x165   :  { %vm8724_vm11 = vmand %vm8589_vm10, %vm951_vm0 }
 0x166   :  { %vm8730_vm14 = vmand %vm8686_vm1, %vm1122_vm8  ;;  %vm13082_vm8 = vcmask 64512   ;;  %v6973_v39 = vtrunc.f32 %v879_v60 }
 0x167   :  { %v8678_v37 = vpop.permute.xlu1 %1078  ;;  %vm1137_vm10 = vmand %vm8628_vm15, %vm1081_vm6  ;;  %vm1126_vm6 = vcmp.eq.s32.totalorder %v6972_v32, %v1116_v17  ;;  %v6062_v63 = vsel %vm8730_vm14, 1.0, %v13081_v49 }
 0x168   :  { %1733 = vperm.xlu1 %7092, %v1722_v61   ;;  %vm8745_vm5 = vmand %vm8694_vm3, %vm1124_vm7  ;;  %vm1045_vm3 = vcmp.eq.s32.totalorder %v8421_v22, %v7845_v1  ;;  %v6974_v59 = vcvt.f32.s32 %v6973_v39  ;;  %v8828_v48 = vpop.permute.xlu0 %1355 }
 0x169   :  { %vm1131_vm15 = vmand %vm8664_vm4, %vm1043_vm9  ;;  %vm1085_vm4 = vcmp.ne.s32.totalorder %v8632_v35, %v7631_v15  ;;  %v6064_v35 = vsel %vm8745_vm5, 1.0, %v13081_v49 }
 0x16a   :  { %vm1139_vm7 = vmand %vm1131_vm15, %vm1083_vm12 }
 0x16b   :  { %v1101_v25 = vpop.permute.xlu1 %1100  ;;  %vm8770_vm14 = vmand %vm8706_vm2, %vm1126_vm6  ;;  %vm1047_vm2 = vcmp.eq.s32.totalorder %v8467_v7, %v7845_v1 }
 0x16c   :  { %vm1121_vm0 = vcmp.eq.s32.totalorder %v6962_v9, %v1101_v25  ;;  %1739 = vperm.xlu1 %7092, %v1724_v41   ;;  %vm1133_vm12 = vmand %vm8715_vm13, %vm1045_vm3  ;;  %vm1087_vm13 = vcmp.ne.s32.totalorder %v8678_v37, %v7631_v15  ;;  %v6066_v1 = vsel %vm8770_vm14, 1.0, %v13081_v49  ;;  %v8832_v8 = vpop.permute.xlu0 %1365  ;;  %vm12894_vm14 = vcmask 523520  }
 0x16d   :  { %vm1145_vm1 = vmand %vm1137_vm10, %vm1121_vm0 }
 0x16e   :  { %v6061_v20 = vsel %vm1145_vm1, 1.0, %v13081_v49  ;;  %vm13083_vm0 = vmmov %vm13082_vm8 }
 0x16f   :  { %v1107_v55 = vpop.permute.xlu1 %1106  ;;  %6592 = vmatmul.mubr.msk.f32.vlgmr.msra.gmra.mrb[0].mxu1 %vm13082_vm8, %v6061_v20  ;;  %vm13087_vm1 = vmmov %vm13083_vm0 }
 0x170   :  { %vm1123_vm10 = vcmp.eq.s32.totalorder %v6966_v53, %v1107_v55  ;;  %6594 = vmatprep.mubr.msk.f32.mxu1 %vm13083_vm0, %v6062_v63  ;;  %6618 = vmatpush3.msra.mxu1 %v8762_v6  ;;  %vm1141_vm15 = vmand %vm1133_vm12, %vm1085_vm4  ;;  %v8836_v14 = vpop.permute.xlu0 %1375 }
 0x171   :  { %vm1147_vm9 = vmand %vm1139_vm7, %vm1123_vm10  ;;  %6645 = vmatprep.subr.mxu1 %v8762_v6  ;;  %vm999_vm7 = vcmp.gt.f32.partialorder %v8596_v50, %v13089_v16 }
 0x172   :  { %v6063_v3 = vsel %vm1147_vm9, 1.0, %v13081_v49  ;;  %vm13088_vm8 = vmmov %vm13083_vm0 }
 0x173   :  { %v1113_v2 = vpop.permute.xlu1 %1112  ;;  %6595 = vmatmul.mubr.msk.f32.gmra.mrb[2].mxu1 %vm13087_vm1, %v6063_v3  ;;  %vm1007_vm10 = vmand %vm8724_vm11, %vm999_vm7  ;;  %vm12895_vm11 = vcmask 261120  }
 0x174   :  { %vm1125_vm6 = vcmp.eq.s32.totalorder %v6970_v23, %v1113_v2  ;;  %6597 = vmatprep.mubr.msk.f32.mxu1 %vm13088_vm8, %v6064_v35  ;;  %vm1135_vm5 = vmand %vm1007_vm10, %vm1047_vm2  ;;  %v8840_v54 = vpop.permute.xlu0 %1385  ;;  %vm12897_vm2 = vcmask 785920  }
 0x175   :  { %vm1149_vm3 = vmand %vm1141_vm15, %vm1125_vm6  ;;  %vm12896_vm6 = vcmask 1048320  }
 0x176   :  { %v6065_v4 = vsel %vm1149_vm3, 1.0, %v13081_v49  ;;  %vm1143_vm4 = vmand %vm1135_vm5, %vm1087_vm13 }
 0x177   :  { %v1119_v57 = vpop.permute.xlu1 %1118  ;;  %6598 = vmatmul.mubr.msk.f32.gmra.mrb[4].mxu1 %vm13083_vm0, %v6065_v4  ;;  %vm13090_vm12 = vmmov %vm13083_vm0 }
 0x178   :  { %vm1127_vm9 = vcmp.eq.s32.totalorder %v6974_v59, %v1119_v57  ;;  %6600 = vmatprep.mubr.msk.f32.mxu1 %vm13090_vm12, %v6066_v1  ;;  %vm13091_vm15 = vmmov %vm13083_vm0  ;;  %v8844_v25 = vpop.permute.xlu0 %1534 }
 0x179   :  { %vm1151_vm1 = vmand %vm1143_vm4, %vm1127_vm9 }
 0x17a   :  { %v6067_v7 = vsel %vm1151_vm1, 1.0, %v13081_v49 }
 0x17b   :  { %6601 = vmatmul.mubr.msk.f32.gmra.mrb[6].mxu1 %vm13091_vm15, %v6067_v7  ;;  %v8798_v29 = vpop.permute.xlu1 %1360 }
 0x17c   :  { %v8848_v19 = vpop.permute.xlu0 %1546 }
 0x17f   :  { %v8800_v46 = vpop.permute.xlu1 %1370 }
 0x180   :  { %v8852_v32 = vpop.permute.xlu0 %1554 }
 0x183   :  { %v8802_v61 = vpop.permute.xlu1 %1380 }
 0x184   :  { %v8856_v53 = vpop.permute.xlu0 %1653 }
 0x187   :  { %v8804_v58 = vpop.permute.xlu1 %1390 }
 0x188   :  { %v8860_v0 = vpop.permute.xlu0 %1662 }
 0x18c   :  { %v8806_v38 = vpop.permute.xlu1 %1432  ;;  %v8864_v55 = vpop.permute.xlu0 %1668 }
 0x18d   :  { %vm1578_vm0 = vcmp.lt.f32.partialorder %v8596_v50, %v8806_v38 }
 0x190   :  { %v8808_v10 = vpop.permute.xlu1 %1437  ;;  %v8868_v22 = vpop.permute.xlu0 %1690 }
 0x194   :  { %v8810_v11 = vpop.permute.xlu1 %1447  ;;  %v8872_v3 = vpop.permute.xlu0 %1696 }
 0x195   :  { %vm1581_vm12 = vcmp.lt.f32.partialorder %v8596_v50, %v8810_v11 }
 0x198   :  { %v8812_v47 = vpop.permute.xlu1 %1457  ;;  %v8876_v2 = vpop.permute.xlu0 %1702 }
 0x19c   :  { %v8880_v16 = vpop.permute.xlu0 %1708 }
 0x19d   :  { %v8815_v24 = vpop.permute.xlu1 %1530 }
 0x1a0   :  { %v8884_v4 = vpop.permute.xlu0 %1730 }
 0x1a1   :  { %v8819_v28 = vpop.permute.xlu1 %1538 }
 0x1a4   :  { %v8888_v1 = vpop.permute.xlu0 %1736 }
 0x1a5   :  { %v8824_v33 = vpop.permute.xlu1 %1542 }
 0x1a9   :  { %v8830_v41 = vpop.permute.xlu1 %1550 }
 0x1ad   :  { %v8834_v51 = vpop.permute.xlu1 %1558 }
 0x1ae   :  { %13092 = vst [vmem:[#allocation20_spill] sm:$0xff] %v8834_v51 }
 0x1b2   :  { %v8838_v9 = vpop.permute.xlu1 %1598 }
 0x1b6   :  { %v8842_v12 = vpop.permute.xlu1 %1602 }
 0x1ba   :  { %v8846_v31 = vpop.permute.xlu1 %1610 }
 0x1be   :  { %v8850_v17 = vpop.permute.xlu1 %1618 }
 0x1c3   :  { %v8854_v34 = vpop.permute.xlu1 %1650 }
 0x1c7   :  { %v8858_v20 = vpop.permute.xlu1 %1656 }
 0x1cb   :  { %v8862_v60 = vpop.permute.xlu1 %1659 }
 0x1cf   :  { %v8866_v63 = vpop.permute.xlu1 %1665 }
 0x1d0   :  { %13093 = vst [vmem:[#allocation14_spill] sm:$0xff] %v8866_v63 }
 0x1d3   :  { %v8870_v23 = vpop.permute.xlu1 %1671 }
 0x1d4   :  { %v6579_v40 = vpop.f32.mrb[0].mxu0  ;;  %13094 = vst [vmem:[#allocation6_spill] sm:$0xff] %v8870_v23 }
 0x1d5   :  { %663 = vrot.lane.b32.xlu0 %v6579_v40, %s7197_s25  ;;  %v621_v42 = vpop.f32.mrb[1].mxu0 }
 0x1d6   :  { %661 = vst.msk [vmem:[#allocation2] sm:$0xff] %vm12895_vm11, %v621_v42  ;;  %v8892_v42 = vpop.permute.xlu0 %1742 }
 0x1d7   :  { %v8874_v39 = vpop.permute.xlu1 %1693 }
 0x1da   :  { %v6582_v45 = vpop.f32.mrb[2].mxu0 }
 0x1db   :  { %v631_v37 = vpop.f32.mrb[3].mxu0  ;;  %v8878_v35 = vpop.permute.xlu1 %1699 }
 0x1dc   :  { %669 = vrot.lane.b32.xlu1 %v631_v37, %s7198_s26  ;;  %13095 = vst [vmem:[#allocation17_spill] sm:$0xff] %v8878_v35 }
 0x1df   :  { %v8882_v59 = vpop.permute.xlu1 %1705 }
 0x1e0   :  { %v6585_v26 = vpop.f32.mrb[4].mxu0  ;;  %13096 = vst [vmem:[#allocation18_spill] sm:$0xff] %v8882_v59 }
 0x1e1   :  { %v641_v36 = vpop.f32.mrb[5].mxu0 }
 0x1e2   :  { %680 = vst.msk [vmem:[#allocation2 + $0x8] sm:$0xff] %vm12895_vm11, %v641_v36 }
 0x1e3   :  { %v8886_v57 = vpop.permute.xlu1 %1711 }
 0x1e4   :  { %v8822_v21 = vpop.f32.mrb[6].mxu0  ;;  %13097 = vst [vmem:[#allocation19_spill] sm:$0xff] %v8886_v57 }
 0x1e5   :  { %v8826_v13 = vpop.f32.mrb[7].mxu0 }
 0x1e7   :  { %v8890_v7 = vpop.permute.xlu1 %1733 }
 0x1eb   :  { %v8896_v27 = vpop.permute.xlu1 %1739 }
 0x1ec   :  { %13098 = vst [vmem:[#allocation7_spill] sm:$0xff] %v8896_v27 }
 0x242   :  { %v6593_v40 = vpop.f32.mrb[0].mxu1 }
 0x243   :  { %v1258_v37 = vpop.f32.mrb[1].mxu1  ;;  %1299 = vrot.lane.b32.xlu0 %v6593_v40, %s7197_s25 }
 0x244   :  { %1297 = vst.msk [vmem:[#allocation2 + $0x10] sm:$0xff] %vm12895_vm11, %v1258_v37  ;;  %v1727_v37 = vld [vmem:[%s12864_s4 + $0xb0] sm:$0xff] }
 0x246   :  { %v6596_v36 = vpop.f32.mrb[2].mxu1 }
 0x247   :  { %v1268_v23 = vpop.f32.mrb[3].mxu1  ;;  %v664_v51 = vpop.permute.xlu0 %663  ;;  %675 = vrot.lane.b32.xlu0 %v6582_v45, %s7199_s27 }
 0x248   :  { %667 = vst.msk [vmem:[#allocation2] sm:$0xff] %vm12894_vm14, %v664_v51  ;;  %1304 = vrot.lane.b32.xlu1 %v1268_v23, %s7198_s26  ;;  %v1728_v23 = vld [vmem:[%s12864_s4 + $0xb8] sm:$0xff] }
 0x24a   :  { %v6599_v57 = vpop.f32.mrb[4].mxu1 }
 0x24b   :  { %v1278_v59 = vpop.f32.mrb[5].mxu1  ;;  %1309 = vrot.lane.b32.xlu0 %v6596_v36, %s7199_s27  ;;  %v8945_v36 = vld [vmem:[%s12861_s1] ss:$0 sm:$0xff] }
 0x24c   :  { %1313 = vst.msk [vmem:[#allocation2 + $0x18] sm:$0xff] %vm12895_vm11, %v1278_v59  ;;  %682 = vrot.lane.b32.xlu1 %v6585_v26, %s7197_s25  ;;  %v1726_v26 = vld [vmem:[%s12864_s4 + $0xa8] sm:$0xff]  ;;  %vm1565_vm8 = vcmp.lt.f32.partialorder %v8945_v36, %v8848_v19  ;;  %vm1567_vm7 = vcmp.lt.f32.partialorder %v8945_v36, %v8852_v32  ;;  %vm1525_vm13 = vcmp.gt.f32.partialorder %v8945_v36, %v8836_v14 }
 0x24d   :  { %vm1527_vm3 = vcmp.gt.f32.partialorder %v8945_v36, %v8840_v54  ;;  %vm1522_vm10 = vcmp.gt.f32.partialorder %v8945_v36, %v8798_v29  ;;  %vm8973_vm5 = vmand %vm1525_vm13, %vm1565_vm8  ;;  %vm1562_vm4 = vcmp.lt.f32.partialorder %v8945_v36, %v8844_v25  ;;  %vm1521_vm1 = vcmp.gt.f32.partialorder %v8945_v36, %v8828_v48 }
 0x24e   :  { %v670_v40 = vpop.permute.xlu1 %669  ;;  %v6602_v45 = vpop.f32.mrb[6].mxu1  ;;  %vm8983_vm9 = vmand %vm1527_vm3, %vm1567_vm7  ;;  %vm1563_vm8 = vcmp.lt.f32.partialorder %v8945_v36, %v8819_v28  ;;  %vm1523_vm7 = vcmp.gt.f32.partialorder %v8945_v36, %v8832_v8  ;;  %vm1626_vm3 = vcmp.gt.f32.partialorder %v8596_v50, %v8838_v9 }
 0x24f   :  { %673 = vst.msk [vmem:[#allocation2] sm:$0xff] %vm12897_vm2, %v670_v40  ;;  %v1288_v51 = vpop.f32.mrb[7].mxu1  ;;  %1748 = vperm.xlu0 %7087, %v1727_v37   ;;  %v1393_v40 = vsub.f32 %v8945_v36, %v8828_v48  ;;  %v1395_v37 = vsub.f32 %v8945_v36, %v8832_v8  ;;  %vm1570_vm15 = vmand %vm1522_vm10, %vm1562_vm4  ;;  %vm1583_vm10 = vcmp.lt.f32.partialorder %v8596_v50, %v8812_v47 }
 0x250   :  { %1315 = vrot.lane.b32.xlu1 %v6599_v57, %s7197_s25  ;;  %v1469_v57 = vsub.f32 %v8810_v11, %v8596_v50  ;;  %vm9001_vm13 = vmand %vm1570_vm15, %vm1578_vm0  ;;  %vm1579_vm0 = vcmp.lt.f32.partialorder %v8596_v50, %v8808_v10 }
 0x251   :  { %vm9014_vm4 = vmand %vm8973_vm5, %vm1581_vm12 }
 0x252   :  { %vm9024_vm15 = vmand %vm1523_vm7, %vm1563_vm8  ;;  %vm1627_vm8 = vcmp.gt.f32.partialorder %v8596_v50, %v8842_v12 }
 0x253   :  { %7093 = vset.pattern.permute.xlu0 %v13005_v18  ;;  %vm9039_vm12 = vmand %vm9001_vm13, %vm1626_vm3  ;;  %vm1629_vm13 = vcmp.gt.f32.partialorder %v8596_v50, %v8846_v31 }
 0x254   :  { %1427 = vperm.xlu0 %7093, %v8301_v52   ;;  %692 = vrot.lane.b32.xlu1 %v8822_v21, %s7199_s27  ;;  %v13099_v52 = vld [vmem:[#allocation15_spill] sm:$0xff]  ;;  %vm9058_vm3 = vmand %vm8983_vm9, %vm1583_vm10  ;;  %vm1564_vm9 = vcmp.lt.f32.partialorder %v8945_v36, %v8824_v33 }
 0x255   :  { %vm1587_vm11 = vmand %vm9024_vm15, %vm1579_vm0 }
 0x256   :  { %vm9076_vm10 = vmand %vm1587_vm11, %vm1627_vm8  ;;  %vm1566_vm11 = vcmp.lt.f32.partialorder %v8945_v36, %v8830_v41 }
 0x257   :  { %vm9100_vm15 = vmand %vm9014_vm4, %vm1629_vm13  ;;  %vm1715_vm13 = vcmp.ne.s32.totalorder %v8872_v3, %v7631_v15 }
 0x258   :  { %1442 = vperm.xlu0 %7093, %v8312_v56   ;;  %1325 = vrot.lane.b32.xlu1 %v6602_v45, %s7199_s27 }
 0x25c   :  { %1452 = vperm.xlu0 %7093, %v8320_v44   ;;  %1745 = vperm.xlu1 %7092, %v1726_v26   ;;  %v1399_v26 = vsub.f32 %v8945_v36, %v8840_v54 }
 0x260   :  { %1462 = vperm.xlu0 %7093, %v8328_v5   ;;  %1751 = vperm.xlu1 %7092, %v1728_v23   ;;  %v1394_v23 = vsub.f32 %v8945_v36, %v8798_v29 }
 0x264   :  { %1594 = vperm.xlu0 %7093, %v13099_v52  }
 0x268   :  { %1606 = vperm.xlu0 %7093, %v8107_v43  }
 0x26c   :  { %1614 = vperm.xlu0 %7093, %v8160_v30   ;;  %v1467_v30 = vsub.f32 %v8808_v10, %v8596_v50 }
 0x270   :  { %687 = vrot.lane.b32.xlu0 %v8826_v13, %s7198_s26  ;;  %v1475_v13 = vmul.f32 0.5, %v1467_v30 }
 0x272   :  { %v1483_v52 = vmul.f32 8.0, %v1475_v13 }
 0x274   :  { %1320 = vrot.lane.b32.xlu0 %v1288_v51, %s7198_s26  ;;  %v1397_v51 = vsub.f32 %v8945_v36, %v8836_v14  ;;  %v1491_v18 = vfloor.f32 %v1483_v52 }
 0x276   :  { %v1499_v32 = vmul.f32 8.0, %v1491_v18 }
 0x278   :  { %1622 = vperm.xlu0 %7093, %v8233_v62   ;;  %v1466_v62 = vsub.f32 %v8806_v38, %v8596_v50 }
 0x27a   :  { %v1474_v45 = vmul.f32 0.5, %v1466_v62  ;;  %v1402_v62 = vmul.f32 0.5, %v1394_v23 }
 0x27c   :  { %v1482_v30 = vmul.f32 8.0, %v1474_v45 }
 0x27e   :  { %v1490_v13 = vfloor.f32 %v1482_v30 }
 0x280   :  { %v1498_v18 = vmul.f32 8.0, %v1490_v13 }
 0x2b5   :  { %v1300_v56 = vpop.permute.xlu0 %1299 }
 0x2b6   :  { %1302 = vst.msk [vmem:[#allocation2 + $0x10] sm:$0xff] %vm12894_vm14, %v1300_v56  ;;  %v1477_v56 = vmul.f32 0.5, %v1469_v57 }
 0x2b8   :  { %v1485_v63 = vmul.f32 8.0, %v1477_v56  ;;  %v1400_v56 = vsub.f32 %v8945_v36, %v8804_v58 }
 0x2b9   :  { %v676_v44 = vpop.permute.xlu0 %675 }
 0x2ba   :  { %679 = vst.msk [vmem:[#allocation2] sm:$0xff] %vm12896_vm6, %v676_v44  ;;  %v1305_v5 = vpop.permute.xlu1 %1304  ;;  %v1471_v44 = vsub.f32 %v8812_v47, %v8596_v50  ;;  %v1493_v29 = vfloor.f32 %v1485_v63  ;;  %v1396_v63 = vsub.f32 %v8945_v36, %v8800_v46 }
 0x2bb   :  { %1307 = vst.msk [vmem:[#allocation2 + $0x10] sm:$0xff] %vm12897_vm2, %v1305_v5  ;;  %v1401_v5 = vmul.f32 0.5, %v1393_v40 }
 0x2bc   :  { %v1479_v6 = vmul.f32 0.5, %v1471_v44  ;;  %v1501_v9 = vmul.f32 8.0, %v1493_v29  ;;  %v9033_v44 = vld [vmem:[%s12863_s3] ss:$0 sm:$0xff]  ;;  %v1404_v30 = vmul.f32 0.5, %v1396_v63 }
 0x2bd   :  { %v1310_v43 = vpop.permute.xlu0 %1309  ;;  %v8961_v27 = vmul.f32 8.0, %v1401_v5  ;;  %vm1674_vm5 = vcmp.eq.s32.totalorder %v8856_v53, %v9033_v44  ;;  %vm1675_vm2 = vcmp.eq.s32.totalorder %v8858_v20, %v9033_v44  ;;  %v1963_v5 = vld [vmem:[%s12860_s0 + $0xc8] sm:$0xff] }
 0x2be   :  { %1312 = vst.msk [vmem:[#allocation2 + $0x10] sm:$0xff] %vm12896_vm6, %v1310_v43  ;;  %v683_v21 = vpop.permute.xlu1 %682  ;;  %v1403_v43 = vmul.f32 0.5, %v1395_v37  ;;  %v1410_v37 = vmul.f32 8.0, %v1402_v62  ;;  %v1487_v54 = vmul.f32 8.0, %v1479_v6  ;;  %vm1631_vm6 = vcmp.gt.f32.partialorder %v8596_v50, %v8850_v17  ;;  %vm9087_vm0 = vmand %vm9039_vm12, %vm1674_vm5 }
 0x2bf   :  { %685 = vst.msk [vmem:[#allocation2 + $0x8] sm:$0xff] %vm12894_vm14, %v683_v21  ;;  %v1405_v21 = vmul.f32 0.5, %v1397_v51  ;;  %v1417_v25 = vfloor.f32 %v8961_v27  ;;  %v1412_v14 = vmul.f32 8.0, %v1404_v30  ;;  %vm1524_vm12 = vcmp.gt.f32.partialorder %v8945_v36, %v8800_v46  ;;  %vm1639_vm8 = vmand %vm9058_vm3, %vm1631_vm6 }
 0x2c0   :  { %v1411_v35 = vmul.f32 8.0, %v1403_v43  ;;  %v1495_v52 = vfloor.f32 %v1487_v54  ;;  %vm1526_vm5 = vcmp.gt.f32.partialorder %v8945_v36, %v8802_v61  ;;  %vm9132_vm7 = vmand %vm1524_vm12, %vm1564_vm9  ;;  %vm1717_vm6 = vcmp.ne.s32.totalorder %v8876_v2, %v7631_v15  ;;  %v13157_v54 = vld [vmem:[#allocation16_spill] sm:$0xff] }
 0x2c1   :  { %v1413_v57 = vmul.f32 8.0, %v1405_v21  ;;  %v1398_v21 = vsub.f32 %v8945_v36, %v8802_v61  ;;  %vm13129_vm9 = vcmp.eq.s32.totalorder %v8864_v55, %v9033_v44 }
 0x2c2   :  { %v1316_v59 = vpop.permute.xlu1 %1315  ;;  %v1419_v51 = vfloor.f32 %v1411_v35 }
 0x2c3   :  { %1318 = vst.msk [vmem:[#allocation2 + $0x18] sm:$0xff] %vm12894_vm14, %v1316_v59  ;;  %v1407_v59 = vmul.f32 0.5, %v1399_v26  ;;  %v1421_v35 = vfloor.f32 %v1413_v57  ;;  %v1418_v26 = vfloor.f32 %v1410_v37  ;;  %vm1561_vm14 = vcmp.lt.f32.partialorder %v8945_v36, %v8815_v24 }
 0x2c4   :  { %v1507_v23 = vadd.f32 %v1499_v32, %v1419_v51  ;;  %v1503_v57 = vmul.f32 8.0, %v1495_v52  ;;  %v1406_v29 = vmul.f32 0.5, %v1398_v21  ;;  %vm9116_vm4 = vmand %vm1521_vm1, %vm1561_vm14 }
 0x2c5   :  { %v8971_v19 = vmul.f32 8.0, %v1407_v59  ;;  %v1506_v28 = vadd.f32 %v1498_v18, %v1418_v26  ;;  %v1509_v13 = vadd.f32 %v1501_v9, %v1421_v35  ;;  %vm9141_vm14 = vmand %vm9076_vm10, %vm1675_vm2  ;;  %vm13128_vm2 = vcmp.eq.s32.totalorder %v8860_v0, %v9033_v44 }
 0x2c6   :  { %v6979_v62 = vtrunc.f32 %v1507_v23  ;;  %vm9150_vm1 = vmand %vm1526_vm5, %vm1566_vm11  ;;  %v1420_v26 = vfloor.f32 %v1412_v14  ;;  %v1414_v23 = vmul.f32 8.0, %v1406_v29  ;;  %vm1719_vm11 = vcmp.ne.s32.totalorder %v8880_v16, %v7631_v15 }
 0x2c7   :  { %v1423_v8 = vfloor.f32 %v8971_v19  ;;  %v6977_v53 = vtrunc.f32 %v1506_v28  ;;  %v6983_v33 = vtrunc.f32 %v1509_v13  ;;  %vm1765_vm3 = vmand %vm9100_vm15, %vm13128_vm2  ;;  %vm1714_vm5 = vcmp.ne.s32.totalorder %v8874_v39, %v7631_v15  ;;  %v13169_v39 = vld [vmem:[#allocation19_spill] sm:$0xff]  ;;  %v1967_v13 = vld [vmem:[%s12860_s0 + $0xe8] sm:$0xff] }
 0x2c8   :  { %v6980_v61 = vcvt.f32.s32 %v6979_v62  ;;  %vm9162_vm10 = vmand %vm1639_vm8, %vm13129_vm9 }
 0x2c9   :  { %v1511_v20 = vadd.f32 %v1503_v57, %v1423_v8  ;;  %v6978_v41 = vcvt.f32.s32 %v6977_v53  ;;  %vm9174_vm15 = vmand %vm9141_vm14, %vm1715_vm13  ;;  %v6984_v8 = vcvt.f32.s32 %v6983_v33  ;;  %v693_v57 = vpop.permute.xlu1 %692  ;;  %v1408_v53 = vmul.f32 0.5, %v1400_v56  ;;  %v13155_v33 = vld [vmem:[#allocation7_spill] sm:$0xff] }
 0x2ca   :  { %vm9183_vm12 = vmand %vm1765_vm3, %vm1717_vm6  ;;  %vm1755_vm13 = vcmp.eq.s32.totalorder %v6980_v61, %v8888_v1 }
 0x2cb   :  { %vm1754_vm8 = vcmp.eq.s32.totalorder %v6978_v41, %v8890_v7  ;;  %v6987_v9 = vtrunc.f32 %v1511_v20  ;;  %vm9193_vm14 = vmand %vm9162_vm10, %vm1719_vm11  ;;  %v1422_v7 = vfloor.f32 %v1414_v23  ;;  %v1416_v31 = vmul.f32 8.0, %v1408_v53  ;;  %v13159_v41 = vld [vmem:[#allocation18_spill] sm:$0xff]  ;;  %v1964_v53 = vld [vmem:[%s12860_s0 + $0xd0] sm:$0xff] }
 0x2cc   :  { %vm1770_vm2 = vmand %vm9087_vm0, %vm1714_vm5 }
 0x2cd   :  { %vm9209_vm9 = vmand %vm9174_vm15, %vm1755_vm13  ;;  %vm1757_vm15 = vcmp.eq.s32.totalorder %v6984_v8, %v8892_v42  ;;  %v6988_v62 = vcvt.f32.s32 %v6987_v9  ;;  %vm1673_vm13 = vcmp.eq.s32.totalorder %v8854_v34, %v9033_v44  ;;  %v1326_v24 = vpop.permute.xlu1 %1325  ;;  %v1424_v20 = vfloor.f32 %v1416_v31  ;;  %v13168_v9 = vld [vmem:[#allocation6_spill] sm:$0xff]  ;;  %v1968_v34 = vld [vmem:[%s12860_s0 + $0xf0] sm:$0xff] }
 0x2ce   :  { %v8979_v45 = vpop.permute.xlu0 %1748  ;;  %vm9217_vm0 = vmand %vm1770_vm2, %vm1754_vm8  ;;  %v6086_v61 = vsel %vm9209_vm9, 1.0, %v13081_v49  ;;  %vm1718_vm9 = vcmp.ne.s32.totalorder %v13159_v41, %v7631_v15  ;;  %v13174_v31 = vmov 0   ;;  %v2320_v41 = vld [vmem:[%s12865_s5 + $0xf0] sm:$0xff] }
 0x2cf   :  { %v6085_v46 = vsel %vm9217_vm0, 1.0, %v13081_v49 }
 0x2d3   :  { %v9028_v11 = vpop.permute.xlu0 %1427 }
 0x2d4   :  { %v1465_v43 = vsub.f32 %v9028_v11, %v8596_v50  ;;  %vm1577_vm6 = vcmp.lt.f32.partialorder %v8596_v50, %v9028_v11 }
 0x2d5   :  { %vm9227_vm11 = vmand %vm9116_vm4, %vm1577_vm6  ;;  %vm1759_vm6 = vcmp.eq.s32.totalorder %v6988_v62, %v8979_v45 }
 0x2d6   :  { %v1473_v47 = vmul.f32 0.5, %v1465_v43 }
 0x2d7   :  { %v9091_v40 = vpop.permute.xlu0 %1442 }
 0x2d8   :  { %v1481_v37 = vmul.f32 8.0, %v1473_v47  ;;  %v1468_v32 = vsub.f32 %v9091_v40, %v8596_v50  ;;  %vm1580_vm3 = vcmp.lt.f32.partialorder %v8596_v50, %v9091_v40 }
 0x2d9   :  { %vm9237_vm5 = vmand %vm9132_vm7, %vm1580_vm3 }
 0x2da   :  { %v1489_v48 = vfloor.f32 %v1481_v37  ;;  %v1476_v17 = vmul.f32 0.5, %v1468_v32  ;;  %vm9252_vm7 = vmand %vm9183_vm12, %vm1757_vm15 }
 0x2db   :  { %v1453_v51 = vpop.permute.xlu0 %1452  ;;  %vm9266_vm15 = vmand %vm9193_vm14, %vm1759_vm6  ;;  %vm13153_vm6 = vcmask 64512  }
 0x2dc   :  { %v1497_v63 = vmul.f32 8.0, %v1489_v48  ;;  %v1484_v6 = vmul.f32 8.0, %v1476_v17  ;;  %v1470_v35 = vsub.f32 %v1453_v51, %v8596_v50  ;;  %vm1582_vm10 = vcmp.lt.f32.partialorder %v8596_v50, %v1453_v51  ;;  %v13158_v51 = vld [vmem:[#allocation14_spill] sm:$0xff] }
 0x2dd   :  { %vm9246_vm8 = vmand %vm9150_vm1, %vm1582_vm10  ;;  %vm1713_vm1 = vcmp.ne.s32.totalorder %v8868_v22, %v7631_v15 }
 0x2de   :  { %v1505_v3 = vadd.f32 %v1497_v63, %v1417_v25  ;;  %v1492_v16 = vfloor.f32 %v1484_v6  ;;  %v1478_v38 = vmul.f32 0.5, %v1470_v35  ;;  %v1746_v63 = vpop.permute.xlu1 %1745 }
 0x2df   :  { %v9199_v2 = vpop.permute.xlu0 %1462 }
 0x2e0   :  { %v1500_v27 = vmul.f32 8.0, %v1492_v16  ;;  %v1486_v1 = vmul.f32 8.0, %v1478_v38  ;;  %v1472_v25 = vsub.f32 %v9199_v2, %v8596_v50  ;;  %v6975_v28 = vtrunc.f32 %v1505_v3  ;;  %v13164_v16 = vld [vmem:[#allocation20_spill] sm:$0xff] }
 0x2e1   :  { %v6090_v3 = vsel %vm9266_vm15, 1.0, %v13081_v49 }
 0x2e2   :  { %v1508_v43 = vadd.f32 %v1500_v27, %v1420_v26  ;;  %v1494_v30 = vfloor.f32 %v1486_v1  ;;  %v1480_v21 = vmul.f32 0.5, %v1472_v25  ;;  %v6976_v11 = vcvt.f32.s32 %v6975_v28  ;;  %v1752_v27 = vpop.permute.xlu1 %1751  ;;  %v1962_v28 = vld [vmem:[%s12860_s0 + $0xc0] sm:$0xff] }
 0x2e3   :  { %v1595_v47 = vpop.permute.xlu0 %1594  ;;  %v6088_v26 = vsel %vm9252_vm7, 1.0, %v13081_v49  ;;  %vm1568_vm7 = vcmp.lt.f32.partialorder %v8945_v36, %v13164_v16  ;;  %v1978_v59 = vadd.f32 1.0, %v1962_v28  ;;  %v6100_v12 = vadd.f32 -1.0, %v1962_v28 }
 0x2e4   :  { %v1502_v19 = vmul.f32 8.0, %v1494_v30  ;;  %v1488_v10 = vmul.f32 8.0, %v1480_v21  ;;  %vm1625_vm4 = vcmp.gt.f32.partialorder %v8596_v50, %v1595_v47  ;;  %v6981_v40 = vtrunc.f32 %v1508_v43 }
 0x2e5   :  { %vm1633_vm2 = vmand %vm9227_vm11, %vm1625_vm4  ;;  %vm1753_vm12 = vcmp.eq.s32.totalorder %v6976_v11, %v8884_v4  ;;  %v13152_v4 = vld [vmem:[#allocation17_spill] sm:$0xff]  ;;  %v6101_v21 = vadd.f32 -1.0, %v1963_v5  ;;  %v6105_v11 = vadd.f32 -1.0, %v1967_v13 }
 0x2e6   :  { %v1510_v37 = vadd.f32 %v1502_v19, %v1422_v7  ;;  %vm1761_vm3 = vmand %vm1633_vm2, %vm1673_vm13  ;;  %v1496_v32 = vfloor.f32 %v1488_v10  ;;  %v6982_v29 = vcvt.f32.s32 %v6981_v40  ;;  %vm1676_vm13 = vcmp.eq.s32.totalorder %v8862_v60, %v9033_v44  ;;  %v1965_v7 = vld [vmem:[%s12860_s0 + $0xd8] sm:$0xff] }
 0x2e7   :  { %vm1769_vm10 = vmand %vm1761_vm3, %vm1713_vm1  ;;  %v1607_v14 = vpop.permute.xlu0 %1606  ;;  %vm1716_vm1 = vcmp.ne.s32.totalorder %v13152_v4, %v7631_v15  ;;  %v6103_v62 = vadd.f32 -1.0, %v1965_v7  ;;  %v1981_v47 = vadd.f32 1.0, %v1965_v7  ;;  %v1969_v19 = vld [vmem:[%s12860_s0 + $0xf8] sm:$0xff]  ;;  %v1979_v40 = vadd.f32 1.0, %v1963_v5 }
 0x2e8   :  { %v6985_v45 = vtrunc.f32 %v1510_v37  ;;  %vm1628_vm11 = vcmp.gt.f32.partialorder %v8596_v50, %v1607_v14  ;;  %vm1777_vm4 = vmand %vm1769_vm10, %vm1753_vm12  ;;  %v1504_v17 = vmul.f32 8.0, %v1496_v32  ;;  %v6107_v10 = vadd.f32 -1.0, %v1969_v19  ;;  %v1966_v14 = vld [vmem:[%s12860_s0 + $0xe0] sm:$0xff] }
 0x2e9   :  { %vm1636_vm2 = vmand %vm9237_vm5, %vm1628_vm11  ;;  %v6084_v22 = vsel %vm1777_vm4, 1.0, %v13081_v49  ;;  %vm1756_vm5 = vcmp.eq.s32.totalorder %v6982_v29, %v13155_v33  ;;  %vm1678_vm4 = vcmp.eq.s32.totalorder %v13158_v51, %v9033_v44  ;;  %v1985_v42 = vadd.f32 1.0, %v1969_v19  ;;  %v2276_v33 = vld [vmem:[%s12862_s2 + $0xd0] sm:$0xff]  ;;  %v2318_v51 = vld [vmem:[%s12865_s5 + $0xe0] sm:$0xff] }
 0x2ea   :  { %vm1764_vm14 = vmand %vm1636_vm2, %vm1676_vm13  ;;  %6605 = vmatprep.mubr.msk.f32.mxu0 %vm13153_vm6, %v6084_v22  ;;  %v6986_v48 = vcvt.f32.s32 %v6985_v45  ;;  %v1512_v6 = vadd.f32 %v1504_v17, %v1424_v20  ;;  %v13173_v37 = vmov 1   ;;  %v1980_v32 = vadd.f32 1.0, %v1964_v53  ;;  %v2280_v17 = vld [vmem:[%s12862_s2 + $0xf0] sm:$0xff]  ;;  %v2277_v20 = vld [vmem:[%s12862_s2 + $0xd8] sm:$0xff] }
 0x2eb   :  { %vm1772_vm3 = vmand %vm1764_vm14, %vm1716_vm1  ;;  %v1615_v60 = vpop.permute.xlu0 %1614  ;;  %v1982_v29 = vadd.f32 1.0, %v1966_v14  ;;  %v1984_v45 = vadd.f32 1.0, %v1968_v34  ;;  %v6102_v22 = vadd.f32 -1.0, %v1964_v53  ;;  %v6104_v4 = vadd.f32 -1.0, %v1966_v14 }
 0x2ec   :  { %vm13154_vm10 = vmmov %vm13153_vm6  ;;  %vm1630_vm12 = vcmp.gt.f32.partialorder %v8596_v50, %v1615_v60  ;;  %vm1758_vm1 = vcmp.eq.s32.totalorder %v6986_v48, %v1746_v63  ;;  %v6989_v0 = vtrunc.f32 %v1512_v6  ;;  %v2278_v48 = vld [vmem:[%s12862_s2 + $0xe0] sm:$0xff]  ;;  %v2281_v63 = vld [vmem:[%s12862_s2 + $0xf8] sm:$0xff] }
 0x2ed   :  { %6606 = vmatmul.mubr.msk.f32.vlgmr.msra.gmra.mrb[8].mxu0 %vm13154_vm10, %v6085_v46  ;;  %vm13156_vm11 = vmmov %vm13153_vm6  ;;  %v6106_v46 = vadd.f32 -1.0, %v1968_v34  ;;  %v2274_v60 = vld [vmem:[%s12862_s2 + $0xc0] sm:$0xff] }
 0x2ee   :  { %6608 = vmatprep.mubr.msk.f32.mxu0 %vm13156_vm11, %v6086_v61  ;;  %vm1780_vm0 = vmand %vm1772_vm3, %vm1756_vm5  ;;  %6632 = vmatpush3.msra.mxu0 %v13157_v54  ;;  %vm13162_vm5 = vcmask 1048320   ;;  %v6990_v38 = vcvt.f32.s32 %v6989_v0  ;;  %v2314_v61 = vld [vmem:[%s12865_s5 + $0xc0] sm:$0xff]  ;;  %v2317_v0 = vld [vmem:[%s12865_s5 + $0xd8] sm:$0xff] }
 0x2ef   :  { %vm1638_vm13 = vmand %vm9246_vm8, %vm1630_vm12  ;;  %v6087_v18 = vsel %vm1780_vm0, 1.0, %v13081_v49  ;;  %6659 = vmatprep.subr.mxu0 %v13157_v54  ;;  %v688_v35 = vpop.permute.xlu0 %687  ;;  %vm13160_vm8 = vcmask 785920   ;;  %v2316_v54 = vld [vmem:[%s12865_s5 + $0xd0] sm:$0xff]  ;;  %v2354_v6 = vld [vmem:[%s12864_s4 + $0xc0] sm:$0xff] }
 0x2f0   :  { %vm1766_vm2 = vmand %vm1638_vm13, %vm1678_vm4  ;;  %690 = vst.msk [vmem:[#allocation2 + $0x8] sm:$0xff] %vm13160_vm8, %v688_v35  ;;  %vm1584_vm4 = vcmp.lt.f32.partialorder %v8596_v50, %v9199_v2  ;;  %v2315_v35 = vld [vmem:[%s12865_s5 + $0xc8] sm:$0xff] }
 0x2f1   :  { %vm1774_vm14 = vmand %vm1766_vm2, %vm1718_vm9  ;;  %6609 = vmatmul.mubr.msk.f32.gmra.mrb[10].mxu0 %vm13153_vm6, %v6087_v18  ;;  %695 = vst.msk [vmem:[#allocation2 + $0x8] sm:$0xff] %vm13162_vm5, %v693_v57  ;;  %vm1528_vm9 = vcmp.gt.f32.partialorder %v8945_v36, %v8804_v58  ;;  %v1983_v57 = vadd.f32 1.0, %v1967_v13  ;;  %v2279_v18 = vld [vmem:[%s12862_s2 + $0xe8] sm:$0xff] }
 0x2f2   :  { %vm13161_vm3 = vmmov %vm13153_vm6 }
 0x2f3   :  { %6611 = vmatprep.mubr.msk.f32.mxu0 %vm13161_vm3, %v6088_v26  ;;  %vm1782_vm10 = vmand %vm1774_vm14, %vm1758_vm1  ;;  %v1321_v55 = vpop.permute.xlu0 %1320  ;;  %vm1680_vm14 = vcmp.eq.s32.totalorder %v13168_v9, %v9033_v44 }
 0x2f4   :  { %v6089_v23 = vsel %vm1782_vm10, 1.0, %v13081_v49  ;;  %vm13163_vm12 = vmmov %vm13161_vm3  ;;  %vm1760_vm10 = vcmp.eq.s32.totalorder %v6990_v38, %v1752_v27  ;;  %v2319_v38 = vld [vmem:[%s12865_s5 + $0xe8] sm:$0xff] }
 0x2f5   :  { %6612 = vmatmul.mubr.msk.f32.gmra.mrb[12].mxu0 %vm13163_vm12, %v6089_v23  ;;  %vm13165_vm11 = vmmov %vm13160_vm8  ;;  %vm1720_vm8 = vcmp.ne.s32.totalorder %v13169_v39, %v7631_v15  ;;  %v2356_v23 = vld [vmem:[%s12864_s4 + $0xd0] sm:$0xff]  ;;  %v2321_v39 = vld [vmem:[%s12865_s5 + $0xf8] sm:$0xff] }
 0x2f6   :  { %1323 = vst.msk [vmem:[#allocation2 + $0x18] sm:$0xff] %vm13165_vm11, %v1321_v55  ;;  %vm13166_vm0 = vmmov %vm13161_vm3  ;;  %vm13171_vm11 = vcmask 261120   ;;  %v2358_v55 = vld [vmem:[%s12864_s4 + $0xe0] sm:$0xff]  ;;  %v2355_v27 = vld [vmem:[%s12864_s4 + $0xc8] sm:$0xff] }
 0x2f7   :  { %6614 = vmatprep.mubr.msk.f32.mxu0 %vm13166_vm0, %v6090_v3  ;;  %vm13167_vm13 = vmmov %vm13162_vm5  ;;  %v1623_v8 = vpop.permute.xlu0 %1622 }
 0x2f8   :  { %1328 = vst.msk [vmem:[#allocation2 + $0x18] sm:$0xff] %vm13167_vm13, %v1326_v24  ;;  %vm1576_vm2 = vmand %vm1528_vm9, %vm1568_vm7  ;;  %vm1632_vm15 = vcmp.gt.f32.partialorder %v8596_v50, %v1623_v8  ;;  %v2275_v24 = vld [vmem:[%s12862_s2 + $0xc8] sm:$0xff]  ;;  %vm13176_vm13 = vcmask 785920   ;;  %vm13177_vm9 = vcmask 1048320   ;;  %v2360_v8 = vld [vmem:[%s12864_s4 + $0xf0] sm:$0xff] }
 0x2f9   :  { %vm1592_vm1 = vmand %vm1576_vm2, %vm1584_vm4  ;;  %vm13175_vm4 = vcmask 523520  }
 0x2fa   :  { %vm1640_vm6 = vmand %vm1592_vm1, %vm1632_vm15 }
 0x2fb   :  { %vm1768_vm3 = vmand %vm1640_vm6, %vm1680_vm14 }
 0x2fc   :  { %vm1776_vm5 = vmand %vm1768_vm3, %vm1720_vm8 }
 0x2fd   :  { %vm1784_vm12 = vmand %vm1776_vm5, %vm1760_vm10 }
 0x2fe   :  { %v6091_v58 = vsel %vm1784_vm12, 1.0, %v13081_v49  ;;  %vm13170_vm7 = vmmov %vm13166_vm0 }
 0x2ff   :  { %6615 = vmatmul.mubr.msk.f32.gmra.mrb[14].mxu0 %vm13170_vm7, %v6091_v58  ;;  %vm13172_vm0 = vmmov %vm13171_vm11  ;;  %v2357_v58 = vld [vmem:[%s12864_s4 + $0xd8] sm:$0xff] }
 0x300   :  { %vm13178_vm2 = vmmov %vm13175_vm4 }
 0x301   :  { %vm13179_vm1 = vmmov %vm13176_vm13 }
 0x302   :  { %vm13180_vm15 = vmmov %vm13177_vm9 }
 0x3c0   :  { %v6607_v2 = vpop.f32.mrb[8].mxu0 }
 0x3c1   :  { %1932 = vrot.lane.b32.xlu0 %v6607_v2, %s7197_s25  ;;  %v1891_v50 = vpop.f32.mrb[9].mxu0 }
 0x3c2   :  { %1930 = vst.msk [vmem:[#allocation2 + $0x20] sm:$0xff] %vm13171_vm11, %v1891_v50 }
 0x3c4   :  { %v6610_v1 = vpop.f32.mrb[10].mxu0 }
 0x3c5   :  { %1942 = vrot.lane.b32.xlu0 %v6610_v1, %s7199_s27  ;;  %v1901_v25 = vpop.f32.mrb[11].mxu0  ;;  %v2359_v1 = vld [vmem:[%s12864_s4 + $0xe8] sm:$0xff] }
 0x3c6   :  { %1937 = vrot.lane.b32.xlu1 %v1901_v25, %s7198_s26  ;;  %v2361_v25 = vld [vmem:[%s12864_s4 + $0xf8] sm:$0xff] }
 0x3c8   :  { %v6613_v52 = vpop.f32.mrb[12].mxu0 }
 0x3c9   :  { %v1911_v56 = vpop.f32.mrb[13].mxu0 }
 0x3ca   :  { %1946 = vst.msk [vmem:[#allocation2 + $0x28] sm:$0xff] %vm13172_vm0, %v1911_v56  ;;  %1948 = vrot.lane.b32.xlu1 %v6613_v52, %s7197_s25 }
 0x3d2   :  { %v6616_v43 = vpop.f32.mrb[14].mxu0 }
 0x3d3   :  { %1958 = vrot.lane.b32.xlu1 %v6616_v43, %s7199_s27  ;;  %v1921_v30 = vpop.f32.mrb[15].mxu0 }
 0x3d4   :  { %1953 = vrot.lane.b32.xlu0 %v1921_v30, %s7198_s26 }
 0x3d7   :  { %1993 = vperm.xlu1 %7092, %v6101_v21  }
 0x3d8   :  { %2060 = vperm.xlu0 %7093, %v1978_v59  }
 0x3db   :  { %2003 = vperm.xlu1 %7092, %v6103_v62  }
 0x3dc   :  { %2075 = vperm.xlu0 %7093, %v1981_v47  }
 0x3df   :  { %2013 = vperm.xlu1 %7092, %v6105_v11  }
 0x3e0   :  { %2085 = vperm.xlu0 %7093, %v1983_v57  }
 0x3e3   :  { %2023 = vperm.xlu1 %7092, %v6107_v10  }
 0x3e4   :  { %2095 = vperm.xlu0 %7093, %v1985_v42  }
 0x3e7   :  { %7094 = vset.pattern.permute.xlu1 %v13173_v37 }
 0x3e8   :  { %2065 = vperm.xlu1 %7094, %v1979_v40   ;;  %2227 = vperm.xlu0 %7093, %v6100_v12  }
 0x3ec   :  { %2070 = vperm.xlu1 %7094, %v1980_v32   ;;  %2239 = vperm.xlu0 %7093, %v6103_v62  }
 0x3f0   :  { %2080 = vperm.xlu1 %7094, %v1982_v29   ;;  %2247 = vperm.xlu0 %7093, %v6105_v11  }
 0x3f4   :  { %2090 = vperm.xlu1 %7094, %v1984_v45   ;;  %2255 = vperm.xlu0 %7093, %v6107_v10  }
 0x3f8   :  { %7095 = vset.pattern.permute.xlu1 %v13174_v31  ;;  %7097 = vset.pattern.permute.xlu0 %v13174_v31 }
 0x3f9   :  { %2163 = vperm.xlu1 %7095, %v1978_v59   ;;  %1988 = vperm.xlu0 %7097, %v6100_v12  }
 0x3fd   :  { %2171 = vperm.xlu1 %7095, %v1980_v32   ;;  %1998 = vperm.xlu0 %7097, %v6102_v22  }
 0x401   :  { %2175 = vperm.xlu1 %7095, %v1981_v47   ;;  %2008 = vperm.xlu0 %7097, %v6104_v4  }
 0x405   :  { %2183 = vperm.xlu1 %7095, %v1983_v57   ;;  %2018 = vperm.xlu0 %7097, %v6106_v46  }
 0x409   :  { %2191 = vperm.xlu1 %7095, %v1985_v42   ;;  %2167 = vperm.xlu0 %7097, %v1979_v40  }
 0x40d   :  { %7096 = vset.pattern.permute.xlu1 %v13173_v37  ;;  %2179 = vperm.xlu0 %7097, %v1982_v29  }
 0x40e   :  { %2231 = vperm.xlu1 %7096, %v6101_v21  }
 0x411   :  { %2187 = vperm.xlu0 %7097, %v1984_v45  }
 0x412   :  { %2235 = vperm.xlu1 %7096, %v6102_v22  }
 0x415   :  { %2286 = vperm.xlu0 %7097, %v2275_v24  }
 0x416   :  { %2243 = vperm.xlu1 %7096, %v6104_v4  }
 0x419   :  { %2295 = vperm.xlu0 %7097, %v2278_v48  }
 0x41a   :  { %2251 = vperm.xlu1 %7096, %v6106_v46  }
 0x41d   :  { %2301 = vperm.xlu0 %7097, %v2280_v17  }
 0x41e   :  { %7098 = vset.pattern.permute.xlu1 %v13174_v31 }
 0x41f   :  { %2283 = vperm.xlu1 %7098, %v2274_v60   ;;  %v9502_v60 = vld [vmem:[%s12861_s1 + $0x1] ss:$0 sm:$0xff] }
 0x421   :  { %2323 = vperm.xlu0 %7097, %v2314_v61  }
 0x423   :  { %2289 = vperm.xlu1 %7098, %v2276_v33  }
 0x425   :  { %2329 = vperm.xlu0 %7097, %v2316_v54  }
 0x427   :  { %2292 = vperm.xlu1 %7098, %v2277_v20  }
 0x429   :  { %2335 = vperm.xlu0 %7097, %v2318_v51  }
 0x42b   :  { %2298 = vperm.xlu1 %7098, %v2279_v18  }
 0x42d   :  { %2341 = vperm.xlu0 %7097, %v2320_v41  }
 0x42f   :  { %2304 = vperm.xlu1 %7098, %v2281_v63  }
 0x431   :  { %2363 = vperm.xlu0 %7097, %v2354_v6  }
 0x433   :  { %v1933_v26 = vpop.permute.xlu0 %1932  ;;  %2326 = vperm.xlu1 %7098, %v2315_v35  }
 0x434   :  { %1935 = vst.msk [vmem:[#allocation2 + $0x20] sm:$0xff] %vm13175_vm4, %v1933_v26 }
 0x435   :  { %2369 = vperm.xlu0 %7097, %v2356_v23  }
 0x437   :  { %2332 = vperm.xlu1 %7098, %v2317_v0   ;;  %v1943_v16 = vpop.permute.xlu0 %1942 }
 0x438   :  { %v1938_v3 = vpop.permute.xlu1 %1937 }
 0x439   :  { %1940 = vst.msk [vmem:[#allocation2 + $0x20] sm:$0xff] %vm13176_vm13, %v1938_v3  ;;  %2375 = vperm.xlu0 %7097, %v2358_v55  }
 0x43a   :  { %1945 = vst.msk [vmem:[#allocation2 + $0x20] sm:$0xff] %vm13177_vm9, %v1943_v16 }
 0x43b   :  { %2338 = vperm.xlu1 %7098, %v2319_v38  }
 0x43c   :  { %v1949_v9 = vpop.permute.xlu1 %1948 }
 0x43d   :  { %1951 = vst.msk [vmem:[#allocation2 + $0x28] sm:$0xff] %vm13178_vm2, %v1949_v9  ;;  %2381 = vperm.xlu0 %7097, %v2360_v8  }
 0x43f   :  { %2344 = vperm.xlu1 %7098, %v2321_v39  }
 0x443   :  { %2366 = vperm.xlu1 %7098, %v2355_v27  }
 0x445   :  { %v1959_v50 = vpop.permute.xlu1 %1958 }
 0x446   :  { %v1954_v2 = vpop.permute.xlu0 %1953 }
 0x447   :  { %1956 = vst.msk [vmem:[#allocation2 + $0x28] sm:$0xff] %vm13179_vm1, %v1954_v2  ;;  %2372 = vperm.xlu1 %7098, %v2357_v58  }
 0x448   :  { %1961 = vst.msk [vmem:[#allocation2 + $0x28] sm:$0xff] %vm13180_vm15, %v1959_v50 }
 0x44b   :  { %2378 = vperm.xlu1 %7098, %v2359_v1  }
 0x44f   :  { %2384 = vperm.xlu1 %7098, %v2361_v25  }
 0x456   :  { %v9441_v52 = vpop.permute.xlu1 %1993 }
 0x457   :  { %v9443_v56 = vpop.permute.xlu0 %2060  ;;  %v2027_v41 = vsub.f32 %v8945_v36, %v9441_v52  ;;  %vm2155_vm12 = vcmp.gt.f32.partialorder %v8945_v36, %v9441_v52 }
 0x458   :  { %v2098_v61 = vsub.f32 %v9443_v56, %v9502_v60  ;;  %vm2210_vm3 = vcmp.lt.f32.partialorder %v9502_v60, %v9443_v56 }
 0x459   :  { %v2035_v26 = vmul.f32 0.5, %v2027_v41 }
 0x45a   :  { %v9445_v5 = vpop.permute.xlu1 %2003  ;;  %v2106_v51 = vmul.f32 0.5, %v2098_v61 }
 0x45b   :  { %v9447_v28 = vpop.permute.xlu0 %2075  ;;  %v2029_v0 = vsub.f32 %v8945_v36, %v9445_v5  ;;  %v9525_v38 = vmul.f32 8.0, %v2035_v26  ;;  %vm2157_vm10 = vcmp.gt.f32.partialorder %v8945_v36, %v9445_v5  ;;  %v9720_v5 = vld [vmem:[%s12861_s1] ss:$0 sm:$0xff] }
 0x45c   :  { %v2114_v35 = vmul.f32 8.0, %v2106_v51  ;;  %v2101_v39 = vsub.f32 %v9447_v28, %v9502_v60  ;;  %vm2213_vm5 = vcmp.lt.f32.partialorder %v9502_v60, %v9447_v28 }
 0x45d   :  { %v2037_v9 = vmul.f32 0.5, %v2029_v0 }
 0x45e   :  { %v9449_v43 = vpop.permute.xlu1 %2013  ;;  %v2122_v16 = vfloor.f32 %v2114_v35  ;;  %v2109_v61 = vmul.f32 0.5, %v2101_v39 }
 0x45f   :  { %v9451_v30 = vpop.permute.xlu0 %2085  ;;  %v9550_v56 = vmul.f32 8.0, %v2037_v9  ;;  %v2031_v0 = vsub.f32 %v8945_v36, %v9449_v43  ;;  %vm2159_vm9 = vcmp.gt.f32.partialorder %v8945_v36, %v9449_v43 }
 0x460   :  { %v2130_v50 = vmul.f32 8.0, %v2122_v16  ;;  %v9586_v39 = vmul.f32 8.0, %v2109_v61  ;;  %vm2215_vm15 = vcmp.lt.f32.partialorder %v9502_v60, %v9451_v30 }
 0x461   :  { %v9613_v25 = vmul.f32 0.5, %v2031_v0 }
 0x462   :  { %v9453_v21 = vpop.permute.xlu1 %2023 }
 0x463   :  { %v9455_v59 = vpop.permute.xlu0 %2095 }
 0x467   :  { %v9457_v7 = vpop.permute.xlu1 %2065  ;;  %v9459_v62 = vpop.permute.xlu0 %2227 }
 0x468   :  { %v2099_v1 = vsub.f32 %v9457_v7, %v9502_v60  ;;  %vm2258_vm4 = vcmp.gt.f32.partialorder %v9502_v60, %v9459_v62 }
 0x46b   :  { %v9461_v47 = vpop.permute.xlu1 %2070  ;;  %v9463_v13 = vpop.permute.xlu0 %2239 }
 0x46c   :  { %v2100_v58 = vsub.f32 %v9461_v47, %v9502_v60 }
 0x46f   :  { %v9465_v11 = vpop.permute.xlu1 %2080  ;;  %v9467_v57 = vpop.permute.xlu0 %2247 }
 0x470   :  { %v2102_v35 = vsub.f32 %v9465_v11, %v9502_v60 }
 0x473   :  { %v9469_v19 = vpop.permute.xlu1 %2090  ;;  %v9471_v10 = vpop.permute.xlu0 %2255 }
 0x474   :  { %v2104_v61 = vsub.f32 %v9469_v19, %v9502_v60 }
 0x478   :  { %v2164_v42 = vpop.permute.xlu1 %2163  ;;  %v1989_v40 = vpop.permute.xlu0 %1988 }
 0x479   :  { %v2026_v54 = vsub.f32 %v8945_v36, %v1989_v40  ;;  %vm2194_vm14 = vcmp.lt.f32.partialorder %v8945_v36, %v2164_v42  ;;  %vm2154_vm6 = vcmp.gt.f32.partialorder %v8945_v36, %v1989_v40 }
 0x47a   :  { %vm2202_vm8 = vmand %vm2154_vm6, %vm2194_vm14 }
 0x47b   :  { %v2034_v63 = vmul.f32 0.5, %v2026_v54  ;;  %v2103_v54 = vsub.f32 %v9451_v30, %v9502_v60  ;;  %vm9554_vm7 = vmand %vm2202_vm8, %vm2210_vm3  ;;  %vm2212_vm3 = vcmp.lt.f32.partialorder %v9502_v60, %v9461_v47 }
 0x47c   :  { %v9473_v12 = vpop.permute.xlu1 %2171  ;;  %v9475_v53 = vpop.permute.xlu0 %1998  ;;  %vm9580_vm1 = vmand %vm9554_vm7, %vm2258_vm4  ;;  %vm2161_vm4 = vcmp.gt.f32.partialorder %v8945_v36, %v9453_v21 }
 0x47d   :  { %v2042_v55 = vmul.f32 8.0, %v2034_v63  ;;  %v2028_v42 = vsub.f32 %v8945_v36, %v9475_v53  ;;  %v2108_v63 = vmul.f32 0.5, %v2100_v58  ;;  %vm2196_vm11 = vcmp.lt.f32.partialorder %v8945_v36, %v9473_v12 }
 0x47e   :  { %vm2156_vm0 = vcmp.gt.f32.partialorder %v8945_v36, %v9475_v53 }
 0x47f   :  { %v2050_v27 = vfloor.f32 %v2042_v55  ;;  %v2107_v55 = vmul.f32 0.5, %v2099_v1  ;;  %v2036_v16 = vmul.f32 0.5, %v2028_v42  ;;  %vm9593_vm14 = vmand %vm2156_vm0, %vm2196_vm11  ;;  %v2116_v1 = vmul.f32 8.0, %v2108_v63 }
 0x480   :  { %v9477_v32 = vpop.permute.xlu1 %2175  ;;  %v9479_v14 = vpop.permute.xlu0 %2008  ;;  %v2110_v42 = vmul.f32 0.5, %v2102_v35  ;;  %v2105_v35 = vsub.f32 %v9455_v59, %v9502_v60 }
 0x481   :  { %v2138_v41 = vadd.f32 %v2130_v50, %v2050_v27  ;;  %vm2197_vm13 = vcmp.lt.f32.partialorder %v8945_v36, %v9477_v32  ;;  %v2030_v9 = vsub.f32 %v8945_v36, %v9479_v14  ;;  %v2111_v50 = vmul.f32 0.5, %v2103_v54 }
 0x482   :  { %vm9607_vm8 = vmand %vm2157_vm10, %vm2197_vm13  ;;  %v2115_v54 = vmul.f32 8.0, %v2107_v55  ;;  %v2044_v32 = vmul.f32 8.0, %v2036_v16  ;;  %v2118_v53 = vmul.f32 8.0, %v2110_v42 }
 0x483   :  { %v6991_v58 = vtrunc.f32 %v2138_v41  ;;  %v2038_v41 = vmul.f32 0.5, %v2030_v9  ;;  %vm9654_vm13 = vmand %vm9607_vm8, %vm2213_vm5  ;;  %v9664_v16 = vmul.f32 8.0, %v2111_v50  ;;  %v2124_v9 = vfloor.f32 %v2116_v1 }
 0x484   :  { %v9481_v29 = vpop.permute.xlu1 %2183  ;;  %v9483_v34 = vpop.permute.xlu0 %2018  ;;  %v2123_v12 = vfloor.f32 %v2115_v54  ;;  %v2052_v52 = vfloor.f32 %v2044_v32  ;;  %v2113_v50 = vmul.f32 0.5, %v2105_v35  ;;  %v2126_v42 = vfloor.f32 %v2118_v53 }
 0x485   :  { %vm2199_vm2 = vcmp.lt.f32.partialorder %v8945_v36, %v9481_v29  ;;  %v2032_v63 = vsub.f32 %v8945_v36, %v9483_v34  ;;  %v2125_v29 = vfloor.f32 %v9586_v39  ;;  %v6992_v55 = vcvt.f32.s32 %v6991_v58 }
 0x486   :  { %vm9623_vm7 = vmand %vm2159_vm9, %vm2199_vm2  ;;  %v2112_v39 = vmul.f32 0.5, %v2104_v61  ;;  %vm2211_vm2 = vcmp.lt.f32.partialorder %v9502_v60, %v9457_v7  ;;  %v2046_v7 = vmul.f32 8.0, %v2038_v41  ;;  %v2132_v1 = vmul.f32 8.0, %v2124_v9 }
 0x487   :  { %vm9660_vm9 = vmand %vm9593_vm14, %vm2212_vm3  ;;  %vm2158_vm3 = vcmp.gt.f32.partialorder %v8945_v36, %v9479_v14  ;;  %v2131_v14 = vmul.f32 8.0, %v2123_v12  ;;  %v2133_v47 = vmul.f32 8.0, %v2125_v29  ;;  %v2127_v35 = vfloor.f32 %v9664_v16 }
 0x488   :  { %v9485_v45 = vpop.permute.xlu1 %2191  ;;  %v9487_v22 = vpop.permute.xlu0 %2167  ;;  %v2120_v61 = vmul.f32 8.0, %v2112_v39  ;;  %v2054_v32 = vfloor.f32 %v2046_v7 }
 0x489   :  { %vm2195_vm10 = vcmp.lt.f32.partialorder %v8945_v36, %v9487_v22  ;;  %v2040_v22 = vmul.f32 0.5, %v2032_v63 }
 0x48a   :  { %vm9672_vm5 = vmand %vm2155_vm12, %vm2195_vm10 }
 0x48b   :  { %v2048_v41 = vmul.f32 8.0, %v2040_v22 }
 0x48c   :  { %v9489_v4 = vpop.permute.xlu0 %2179 }
 0x48d   :  { %v9491_v46 = vpop.permute.xlu1 %2231  ;;  %vm2198_vm12 = vcmp.lt.f32.partialorder %v8945_v36, %v9489_v4  ;;  %v2056_v9 = vfloor.f32 %v2048_v41 }
 0x48e   :  { %vm2259_vm8 = vcmp.gt.f32.partialorder %v9502_v60, %v9491_v46  ;;  %v2140_v46 = vadd.f32 %v2132_v1, %v2052_v52  ;;  %v2601_v1 = vld [vmem:[%s12860_s0 + $0x130] sm:$0xff] }
 0x490   :  { %v9493_v24 = vpop.permute.xlu0 %2187  ;;  %v6995_v53 = vtrunc.f32 %v2140_v46 }
 0x491   :  { %v9495_v48 = vpop.permute.xlu1 %2235  ;;  %vm2200_vm10 = vcmp.lt.f32.partialorder %v8945_v36, %v9493_v24 }
 0x492   :  { %v6996_v52 = vcvt.f32.s32 %v6995_v53 }
 0x494   :  { %v9497_v17 = vpop.permute.xlu0 %2286 }
 0x495   :  { %v9506_v33 = vpop.permute.xlu1 %2243 }
 0x498   :  { %v9509_v20 = vpop.permute.xlu0 %2295 }
 0x499   :  { %v9511_v18 = vpop.permute.xlu1 %2251 }
 0x49c   :  { %v9515_v6 = vpop.permute.xlu0 %2301 }
 0x49e   :  { %v9517_v23 = vpop.permute.xlu1 %2283 }
 0x49f   :  { %vm2306_vm6 = vcmp.eq.s32.totalorder %v9517_v23, %v9033_v44  ;;  %v2121_v23 = vmul.f32 8.0, %v2113_v50 }
 0x4a0   :  { %v9521_v3 = vpop.permute.xlu0 %2323  ;;  %vm9636_vm11 = vmand %vm9580_vm1, %vm2306_vm6 }
 0x4a1   :  { %vm2346_vm0 = vcmp.ne.s32.totalorder %v9521_v3, %v7631_v15  ;;  %vm9683_vm1 = vmand %vm9623_vm7, %vm2215_vm15 }
 0x4a2   :  { %v9527_v8 = vpop.permute.xlu1 %2289  ;;  %vm2402_vm14 = vmand %vm9636_vm11, %vm2346_vm0  ;;  %vm2201_vm11 = vcmp.lt.f32.partialorder %v8945_v36, %v9485_v45  ;;  %v2128_v45 = vfloor.f32 %v2120_v61  ;;  %v6130_v61 = vadd.f32 -1.0, %v2601_v1 }
 0x4a3   :  { %vm2219_vm7 = vmand %vm9672_vm5, %vm2211_vm2  ;;  %vm2261_vm5 = vcmp.gt.f32.partialorder %v9502_v60, %v9463_v13  ;;  %vm2160_vm2 = vcmp.gt.f32.partialorder %v9720_v5, %v9483_v34  ;;  %v2053_v13 = vfloor.f32 %v9550_v56 }
 0x4a4   :  { %v9533_v2 = vpop.permute.xlu0 %2329  ;;  %vm9710_vm0 = vmand %vm2158_vm3, %vm2198_vm12  ;;  %v2136_v12 = vmul.f32 8.0, %v2128_v45  ;;  %v9943_v45 = vld [vmem:[%s12866_s6] sm:$0xff] }
 0x4a5   :  { %vm9727_vm12 = vmand %vm2219_vm7, %vm2259_vm8  ;;  %vm2307_vm7 = vcmp.eq.s32.totalorder %v9497_v17, %v9033_v44  ;;  %v2135_v17 = vmul.f32 8.0, %v2127_v35 }
 0x4a6   :  { %v9546_v40 = vpop.permute.xlu1 %2292  ;;  %vm9738_vm3 = vmand %vm2160_vm2, %vm2200_vm10  ;;  %vm2310_vm2 = vcmp.eq.s32.totalorder %v9509_v20, %v9033_v44  ;;  %v2144_v20 = vadd.f32 %v2136_v12, %v2056_v9 }
 0x4a7   :  { %vm9753_vm8 = vmand %vm2161_vm4, %vm2201_vm11  ;;  %vm2216_vm4 = vcmp.lt.f32.partialorder %v9502_v60, %v9469_v19 }
 0x4a8   :  { %v9564_v26 = vpop.permute.xlu0 %2335  ;;  %v7003_v4 = vtrunc.f32 %v2144_v20  ;;  %v2599_v20 = vld [vmem:[%s12860_s0 + $0x120] sm:$0xff] }
 0x4aa   :  { %v9584_v62 = vpop.permute.xlu1 %2298 }
 0x4ac   :  { %v9611_v51 = vpop.permute.xlu0 %2341 }
 0x4ae   :  { %v9642_v43 = vpop.permute.xlu1 %2304 }
 0x4b0   :  { %v2364_v27 = vpop.permute.xlu0 %2363 }
 0x4b1   :  { %vm2386_vm6 = vcmp.eq.s32.totalorder %v6992_v55, %v2364_v27  ;;  %v2033_v55 = vsub.f32 %v9720_v5, %v9453_v21  ;;  %v2134_v21 = vmul.f32 8.0, %v2126_v42 }
 0x4b2   :  { %vm2410_vm15 = vmand %vm2402_vm14, %vm2386_vm6  ;;  %v9696_v30 = vpop.permute.xlu1 %2326  ;;  %vm13203_vm14 = vcmask 64512   ;;  %vm2260_vm6 = vcmp.gt.f32.partialorder %v9502_v60, %v9495_v48  ;;  %v13218_v48 = vfloor.f32 %v9525_v38  ;;  %v2047_v38 = vmul.f32 8.0, %v9613_v25 }
 0x4b3   :  { %v6108_v3 = vsel %vm2410_vm15, 1.0, %v13081_v49  ;;  %vm2214_vm15 = vcmp.lt.f32.partialorder %v9502_v60, %v9465_v11  ;;  %vm9781_vm11 = vmand %vm9660_vm9, %vm2260_vm6  ;;  %v2142_v39 = vadd.f32 %v2134_v21, %v2054_v32  ;;  %v2041_v27 = vmul.f32 0.5, %v2033_v55  ;;  %v2910_v21 = vld [vmem:[%s12862_s2 + $0x118] sm:$0xff] }
 0x4b4   :  { %6619 = vmatprep.mubr.msk.f32.mxu1 %vm13203_vm14, %v6108_v3  ;;  %vm9761_vm10 = vmand %vm9710_vm0, %vm2214_vm15  ;;  %v2370_v19 = vpop.permute.xlu0 %2369  ;;  %v2139_v0 = vadd.f32 %v2131_v14, %v13218_v48  ;;  %vm2263_vm6 = vcmp.gt.f32.partialorder %v9502_v60, %v9467_v57  ;;  %vm2264_vm15 = vcmp.gt.f32.partialorder %v9502_v60, %v9511_v18  ;;  %v2129_v18 = vfloor.f32 %v2121_v23  ;;  %v9902_v14 = vld [vmem:[%s12863_s3] ss:$0 sm:$0xff] }
 0x4b5   :  { %vm9770_vm14 = vmand %vm9654_vm13, %vm2261_vm5  ;;  %vm2262_vm13 = vcmp.gt.f32.partialorder %v9502_v60, %v9506_v33  ;;  %vm2308_vm5 = vcmp.eq.s32.totalorder %v9527_v8, %v9033_v44  ;;  %v2141_v33 = vadd.f32 %v2133_v47, %v2053_v13  ;;  %v6999_v7 = vtrunc.f32 %v2142_v39  ;;  %v2597_v8 = vld [vmem:[%s12860_s0 + $0x110] sm:$0xff] }
 0x4b6   :  { %v9742_v63 = vpop.permute.xlu1 %2332  ;;  %vm9790_vm0 = vmand %vm9738_vm3, %vm2216_vm4  ;;  %v6993_v58 = vtrunc.f32 %v2139_v0  ;;  %v2055_v50 = vfloor.f32 %v2047_v38  ;;  %v2049_v3 = vmul.f32 8.0, %v2041_v27  ;;  %v2596_v27 = vld [vmem:[%s12860_s0 + $0x108] sm:$0xff] }
 0x4b7   :  { %vm9803_vm9 = vmand %vm9727_vm12, %vm2307_vm7  ;;  %vm2348_vm7 = vcmp.ne.s32.totalorder %v9533_v2, %v7631_v15  ;;  %v6997_v54 = vtrunc.f32 %v2141_v33  ;;  %v6125_v57 = vadd.f32 -1.0, %v2596_v27  ;;  %v2612_v2 = vadd.f32 1.0, %v2596_v27 }
 0x4b8   :  { %vm2270_vm12 = vmand %vm9761_vm10, %vm2262_vm13  ;;  %vm2309_vm13 = vcmp.eq.s32.totalorder %v9546_v40, %v9033_v44  ;;  %v2376_v42 = vpop.permute.xlu0 %2375  ;;  %v13235_v40 = vmov 0  ;;  %v2057_v41 = vfloor.f32 %v2049_v3  ;;  %v2602_v3 = vld [vmem:[%s12860_s0 + $0x138] sm:$0xff] }
 0x4b9   :  { %vm9826_vm3 = vmand %vm9781_vm11, %vm2308_vm5  ;;  %vm2312_vm11 = vcmp.eq.s32.totalorder %v9515_v6, %v9033_v44  ;;  %vm2350_vm5 = vcmp.ne.s32.totalorder %v9564_v26, %v7631_v15  ;;  %v6994_v6 = vcvt.f32.s32 %v6993_v58  ;;  %v2143_v44 = vadd.f32 %v2135_v17, %v2055_v50  ;;  %v2595_v17 = vld [vmem:[%s12860_s0 + $0x100] sm:$0xff] }
 0x4ba   :  { %v9809_v28 = vpop.permute.xlu1 %2338  ;;  %vm9834_vm10 = vmand %vm9683_vm1, %vm2263_vm6  ;;  %vm2217_vm6 = vcmp.lt.f32.partialorder %v9502_v60, %v9455_v59  ;;  %v7000_v26 = vcvt.f32.s32 %v6999_v7  ;;  %v6998_v35 = vcvt.f32.s32 %v6997_v54  ;;  %v9988_v33 = vadd.f32 -1.0, %v2595_v17  ;;  %v2600_v7 = vld [vmem:[%s12860_s0 + $0x128] sm:$0xff] }
 0x4bb   :  { %vm9841_vm4 = vmand %vm2270_vm12, %vm2310_vm2  ;;  %v7001_v55 = vtrunc.f32 %v2143_v44  ;;  %v6128_v50 = vadd.f32 -1.0, %v2599_v20  ;;  %v2613_v59 = vadd.f32 1.0, %v2597_v8  ;;  %v2908_v54 = vld [vmem:[%s12862_s2 + $0x108] sm:$0xff]  ;;  %v2911_v44 = vld [vmem:[%s12862_s2 + $0x120] sm:$0xff]  ;;  %v2616_v34 = vadd.f32 1.0, %v2600_v7 }
 0x4bc   :  { %vm2272_vm1 = vmand %vm9790_vm0, %vm2264_vm15  ;;  %vm2347_vm0 = vcmp.ne.s32.totalorder %v9696_v30, %v7631_v15  ;;  %v2137_v30 = vmul.f32 8.0, %v2129_v18  ;;  %v2382_v46 = vpop.permute.xlu0 %2381  ;;  %v2598_v18 = vld [vmem:[%s12860_s0 + $0x118] sm:$0xff] }
 0x4bd   :  { %vm9860_vm2 = vmand %vm9826_vm3, %vm2348_vm7  ;;  %vm2388_vm3 = vcmp.eq.s32.totalorder %v6996_v52, %v2370_v19  ;;  %v7002_v29 = vcvt.f32.s32 %v7001_v55  ;;  %v9997_v58 = vadd.f32 -1.0, %v2598_v18  ;;  %v6126_v52 = vadd.f32 -1.0, %v2597_v8  ;;  %v2989_v55 = vld [vmem:[%s12864_s4 + $0x110] sm:$0xff] }
 0x4be   :  { %v9853_v22 = vpop.permute.xlu1 %2344  ;;  %vm9871_vm12 = vmand %vm2272_vm1, %vm2312_vm11  ;;  %v2145_v11 = vadd.f32 %v2137_v30, %v2057_v41  ;;  %v2615_v30 = vadd.f32 1.0, %v2599_v20  ;;  %v2949_v41 = vld [vmem:[%s12865_s5 + $0x110] sm:$0xff] }
 0x4bf   :  { %vm9880_vm15 = vmand %vm9770_vm14, %vm2309_vm13  ;;  %vm2349_vm13 = vcmp.ne.s32.totalorder %v9742_v63, %v7631_v15  ;;  %v7004_v63 = vcvt.f32.s32 %v7003_v4  ;;  %v2947_v4 = vld [vmem:[%s12865_s5 + $0x100] sm:$0xff] }
 0x4c0   :  { %vm9889_vm7 = vmand %vm9841_vm4, %vm2350_vm5  ;;  %vm2311_vm4 = vcmp.eq.s32.totalorder %v9584_v62, %v9902_v14  ;;  %vm2390_vm5 = vcmp.eq.s32.totalorder %v7000_v26, %v2376_v42  ;;  %v7005_v23 = vtrunc.f32 %v2145_v11  ;;  %v10015_v42 = vadd.f32 -1.0, %v2602_v3  ;;  %v2913_v26 = vld [vmem:[%s12862_s2 + $0x130] sm:$0xff]  ;;  %v2951_v62 = vld [vmem:[%s12865_s5 + $0x120] sm:$0xff] }
 0x4c1   :  { %vm9895_vm14 = vmand %vm9753_vm8, %vm2217_vm6  ;;  %v2991_v11 = vld [vmem:[%s12864_s4 + $0x120] sm:$0xff] }
 0x4c2   :  { %v13236_v40 = vsel %vm9895_vm14, 4294967295, %v13235_v40  ;;  %vm2403_vm11 = vmand %vm9803_vm9, %vm2347_vm0  ;;  %v2367_v32 = vpop.permute.xlu1 %2366  ;;  %vm2352_vm9 = vcmp.ne.s32.totalorder %v9611_v51, %v7631_v15  ;;  %vm13241_vm0 = vcmask 64512   ;;  %v7006_v51 = vcvt.f32.s32 %v7005_v23  ;;  %v2948_v23 = vld [vmem:[%s12865_s5 + $0x108] sm:$0xff] }
 0x4c3   :  { %vm9910_vm8 = vmand %vm9860_vm2, %vm2388_vm3  ;;  %vm2387_vm1 = vcmp.eq.s32.totalorder %v6994_v6, %v2367_v32  ;;  %vm2351_vm3 = vcmp.ne.s32.totalorder %v9809_v28, %v7631_v15  ;;  %v2617_v6 = vadd.f32 1.0, %v2601_v1  ;;  %v2614_v32 = vadd.f32 1.0, %v2598_v18 }
 0x4c4   :  { %vm2411_vm6 = vmand %vm2403_vm11, %vm2387_vm1  ;;  %v6110_v36 = vsel %vm9910_vm8, 1.0, %v13081_v49 }
 0x4c5   :  { %vm9918_vm14 = vmand %vm9834_vm10, %vm2311_vm4  ;;  %v6109_v47 = vsel %vm2411_vm6, 1.0, %v13081_v49 }
 0x4c6   :  { %vm2405_vm2 = vmand %vm9880_vm15, %vm2349_vm13  ;;  %v2373_v24 = vpop.permute.xlu1 %2372  ;;  %6620 = vmatmul.mubr.msk.f32.vlgmr.msra.gmra.mrb[8].mxu1 %vm13241_vm0, %v6109_v47  ;;  %vm2392_vm15 = vcmp.eq.s32.totalorder %v7004_v63, %v2382_v46  ;;  %v2618_v46 = vadd.f32 1.0, %v2602_v3  ;;  %v2953_v47 = vld [vmem:[%s12865_s5 + $0x130] sm:$0xff] }
 0x4c7   :  { %vm9933_vm10 = vmand %vm9889_vm7, %vm2390_vm5  ;;  %vm2389_vm4 = vcmp.eq.s32.totalorder %v6998_v35, %v2373_v24  ;;  %6646 = vmatpush3.msra.mxu1 %v9943_v45  ;;  %vm2313_vm5 = vcmp.eq.s32.totalorder %v9642_v43, %v9902_v14  ;;  %v2987_v35 = vld [vmem:[%s12864_s4 + $0x100] sm:$0xff]  ;;  %v2993_v63 = vld [vmem:[%s12864_s4 + $0x130] sm:$0xff] }
 0x4c8   :  { %vm13244_vm11 = vmmov %vm13241_vm0  ;;  %6673 = vmatprep.subr.mxu1 %v9943_v45  ;;  %v6112_v19 = vsel %vm9933_vm10, 1.0, %v13081_v49  ;;  %v2907_v24 = vld [vmem:[%s12862_s2 + $0x100] sm:$0xff] }
 0x4c9   :  { %6622 = vmatprep.mubr.msk.f32.mxu1 %vm13244_vm11, %v6110_v36  ;;  %vm2413_vm8 = vmand %vm2405_vm2, %vm2389_vm4  ;;  %v2909_v36 = vld [vmem:[%s12862_s2 + $0x110] sm:$0xff] }
 0x4ca   :  { %vm2408_vm7 = vmand %vm9871_vm12, %vm2352_vm9  ;;  %v6111_v13 = vsel %vm2413_vm8, 1.0, %v13081_v49  ;;  %v2379_v16 = vpop.permute.xlu1 %2378  ;;  %vm2265_vm9 = vcmp.gt.f32.partialorder %v9502_v60, %v9471_v10 }
 0x4cb   :  { %vm2407_vm13 = vmand %vm9918_vm14, %vm2351_vm3  ;;  %vm2391_vm2 = vcmp.eq.s32.totalorder %v7002_v29, %v2379_v16  ;;  %vm2353_vm14 = vcmp.ne.s32.totalorder %v9853_v22, %v7631_v15  ;;  %vm13247_vm3 = vnez %v13236_v40  ;;  %v10006_v22 = vadd.f32 -1.0, %v2600_v7  ;;  %v2912_v29 = vld [vmem:[%s12862_s2 + $0x128] sm:$0xff]  ;;  %v2950_v16 = vld [vmem:[%s12865_s5 + $0x118] sm:$0xff] }
 0x4cc   :  { %vm13245_vm1 = vmmov %vm13241_vm0  ;;  %v2611_v40 = vadd.f32 1.0, %v2595_v17 }
 0x4cd   :  { %6623 = vmatmul.mubr.msk.f32.gmra.mrb[10].mxu1 %vm13245_vm1, %v6111_v13  ;;  %vm2416_vm6 = vmand %vm2408_vm7, %vm2392_vm15  ;;  %v2914_v13 = vld [vmem:[%s12862_s2 + $0x138] sm:$0xff] }
 0x4ce   :  { %vm13246_vm12 = vmmov %vm13241_vm0  ;;  %v2385_v0 = vpop.permute.xlu1 %2384  ;;  %v6114_v43 = vsel %vm2416_vm6, 1.0, %v13081_v49  ;;  %vm13253_vm6 = vcmask 523520  }
 0x4cf   :  { %6625 = vmatprep.mubr.msk.f32.mxu1 %vm13246_vm12, %v6112_v19  ;;  %vm2415_vm0 = vmand %vm2407_vm13, %vm2391_vm2  ;;  %vm2393_vm8 = vcmp.eq.s32.totalorder %v7006_v51, %v2385_v0  ;;  %vm13251_vm2 = vcmask 261120   ;;  %v2952_v51 = vld [vmem:[%s12865_s5 + $0x128] sm:$0xff]  ;;  %vm13254_vm12 = vcmask 785920  }
 0x4d0   :  { %vm2273_vm4 = vmand %vm13247_vm3, %vm2265_vm9  ;;  %v6113_v48 = vsel %vm2415_vm0, 1.0, %v13081_v49  ;;  %vm13255_vm9 = vcmask 1048320  }
 0x4d1   :  { %vm2401_vm10 = vmand %vm2273_vm4, %vm2313_vm5 }
 0x4d2   :  { %vm13248_vm11 = vmmov %vm13245_vm1 }
 0x4d3   :  { %6626 = vmatmul.mubr.msk.f32.gmra.mrb[12].mxu1 %vm13248_vm11, %v6113_v48  ;;  %vm2409_vm15 = vmand %vm2401_vm10, %vm2353_vm14  ;;  %v2954_v48 = vld [vmem:[%s12865_s5 + $0x138] sm:$0xff] }
 0x4d4   :  { %vm13249_vm7 = vmmov %vm13245_vm1 }
 0x4d5   :  { %6628 = vmatprep.mubr.msk.f32.mxu1 %vm13249_vm7, %v6114_v43  ;;  %vm2417_vm1 = vmand %vm2409_vm15, %vm2393_vm8 }
 0x4d6   :  { %v6115_v10 = vsel %vm2417_vm1, 1.0, %v13081_v49  ;;  %vm13250_vm13 = vmmov %vm13249_vm7 }
 0x4d7   :  { %6629 = vmatmul.mubr.msk.f32.gmra.mrb[14].mxu1 %vm13250_vm13, %v6115_v10  ;;  %vm13252_vm5 = vmmov %vm13251_vm2  ;;  %v2988_v10 = vld [vmem:[%s12864_s4 + $0x108] sm:$0xff] }
 0x4d8   :  { %vm13256_vm14 = vmmov %vm13253_vm6 }
 0x4d9   :  { %vm13257_vm0 = vmmov %vm13254_vm12 }
 0x4da   :  { %vm13258_vm3 = vmmov %vm13255_vm9 }
 0x599   :  { %v6621_v9 = vpop.f32.mrb[8].mxu1 }
 0x59a   :  { %2565 = vrot.lane.b32.xlu0 %v6621_v9, %s7197_s25  ;;  %v2524_v56 = vpop.f32.mrb[9].mxu1 }
 0x59b   :  { %2563 = vst.msk [vmem:[#allocation2 + $0x30] sm:$0xff] %vm13251_vm2, %v2524_v56  ;;  %v2990_v56 = vld [vmem:[%s12864_s4 + $0x118] sm:$0xff] }
 0x5a0   :  { %v6624_v53 = vpop.f32.mrb[10].mxu1 }
 0x5a1   :  { %2575 = vrot.lane.b32.xlu0 %v6624_v53, %s7199_s27  ;;  %v2534_v39 = vpop.f32.mrb[11].mxu1 }
 0x5a2   :  { %2570 = vrot.lane.b32.xlu1 %v2534_v39, %s7198_s26 }
 0x5a6   :  { %v6627_v28 = vpop.f32.mrb[12].mxu1 }
 0x5a7   :  { %v2544_v38 = vpop.f32.mrb[13].mxu1  ;;  %2581 = vrot.lane.b32.xlu1 %v6627_v28, %s7197_s25  ;;  %v2992_v28 = vld [vmem:[%s12864_s4 + $0x128] sm:$0xff] }
 0x5a8   :  { %2579 = vst.msk [vmem:[#allocation2 + $0x38] sm:$0xff] %vm13252_vm5, %v2544_v38  ;;  %v2994_v38 = vld [vmem:[%s12864_s4 + $0x138] sm:$0xff] }
 0x5aa   :  { %v6630_v12 = vpop.f32.mrb[14].mxu1 }
 0x5ab   :  { %v2554_v25 = vpop.f32.mrb[15].mxu1  ;;  %2591 = vrot.lane.b32.xlu1 %v6630_v12, %s7199_s27 }
 0x5ac   :  { %2586 = vrot.lane.b32.xlu0 %v2554_v25, %s7198_s26 }
 0x5af   :  { %2626 = vperm.xlu1 %7098, %v6125_v57  }
 0x5b0   :  { %2621 = vperm.xlu0 %7097, %v9988_v33  }
 0x5b3   :  { %2636 = vperm.xlu1 %7098, %v9997_v58  }
 0x5b4   :  { %2631 = vperm.xlu0 %7097, %v6126_v52  }
 0x5b7   :  { %2646 = vperm.xlu1 %7098, %v10006_v22  }
 0x5b8   :  { %2641 = vperm.xlu0 %7097, %v6128_v50  }
 0x5bb   :  { %2656 = vperm.xlu1 %7098, %v10015_v42  }
 0x5bc   :  { %2651 = vperm.xlu0 %7097, %v6130_v61  }
 0x5bf   :  { %7099 = vset.pattern.permute.xlu1 %v13173_v37 }
 0x5c0   :  { %2800 = vperm.xlu0 %7097, %v2612_v2   ;;  %2698 = vperm.xlu1 %7099, %v2612_v2  }
 0x5c4   :  { %2812 = vperm.xlu0 %7097, %v2615_v30   ;;  %2703 = vperm.xlu1 %7099, %v2613_v59  }
 0x5c8   :  { %2820 = vperm.xlu0 %7097, %v2617_v6   ;;  %2713 = vperm.xlu1 %7099, %v2615_v30  }
 0x5cc   :  { %2919 = vperm.xlu0 %7097, %v2908_v54   ;;  %2723 = vperm.xlu1 %7099, %v2617_v6  }
 0x5d0   :  { %2928 = vperm.xlu0 %7097, %v2911_v44   ;;  %7100 = vset.pattern.permute.xlu1 %v13174_v31 }
 0x5d1   :  { %2796 = vperm.xlu1 %7100, %v2611_v40  }
 0x5d4   :  { %2934 = vperm.xlu0 %7097, %v2913_v26  }
 0x5d5   :  { %2804 = vperm.xlu1 %7100, %v2613_v59  }
 0x5d8   :  { %2956 = vperm.xlu0 %7097, %v2947_v4  }
 0x5d9   :  { %2808 = vperm.xlu1 %7100, %v2614_v32  }
 0x5dc   :  { %2962 = vperm.xlu0 %7097, %v2949_v41  }
 0x5dd   :  { %2816 = vperm.xlu1 %7100, %v2616_v34  }
 0x5e0   :  { %2968 = vperm.xlu0 %7097, %v2951_v62  }
 0x5e1   :  { %2824 = vperm.xlu1 %7100, %v2618_v46  }
 0x5e4   :  { %2974 = vperm.xlu0 %7097, %v2953_v47  }
 0x5e5   :  { %7101 = vset.pattern.permute.xlu1 %v13173_v37 }
 0x5e6   :  { %2864 = vperm.xlu1 %7101, %v6125_v57  }
 0x5e8   :  { %2996 = vperm.xlu0 %7097, %v2987_v35  }
 0x5ea   :  { %2868 = vperm.xlu1 %7101, %v6126_v52  }
 0x5ec   :  { %3002 = vperm.xlu0 %7097, %v2989_v55  }
 0x5ee   :  { %2876 = vperm.xlu1 %7101, %v6128_v50  }
 0x5f0   :  { %3008 = vperm.xlu0 %7097, %v2991_v11  }
 0x5f2   :  { %2884 = vperm.xlu1 %7101, %v6130_v61  }
 0x5f4   :  { %3014 = vperm.xlu0 %7097, %v2993_v63  }
 0x5f6   :  { %7102 = vset.pattern.permute.xlu1 %v13174_v31 }
 0x5f7   :  { %2916 = vperm.xlu1 %7102, %v2907_v24  }
 0x5f8   :  { %7103 = vset.pattern.permute.xlu0 %v13173_v37 }
 0x5f9   :  { %2693 = vperm.xlu0 %7103, %v2611_v40  }
 0x5fb   :  { %2922 = vperm.xlu1 %7102, %v2909_v36  }
 0x5fd   :  { %2708 = vperm.xlu0 %7103, %v2614_v32  }
 0x5ff   :  { %2925 = vperm.xlu1 %7102, %v2910_v21  }
 0x601   :  { %2718 = vperm.xlu0 %7103, %v2616_v34  }
 0x603   :  { %2931 = vperm.xlu1 %7102, %v2912_v29  }
 0x605   :  { %2728 = vperm.xlu0 %7103, %v2618_v46  }
 0x607   :  { %2937 = vperm.xlu1 %7102, %v2914_v13  }
 0x609   :  { %2860 = vperm.xlu0 %7103, %v9988_v33  }
 0x60b   :  { %2959 = vperm.xlu1 %7102, %v2948_v23  }
 0x60c   :  { %v2566_v19 = vpop.permute.xlu0 %2565 }
 0x60d   :  { %2872 = vperm.xlu0 %7103, %v9997_v58   ;;  %2568 = vst.msk [vmem:[#allocation2 + $0x30] sm:$0xff] %vm13253_vm6, %v2566_v19 }
 0x60f   :  { %2965 = vperm.xlu1 %7102, %v2950_v16  }
 0x611   :  { %2880 = vperm.xlu0 %7103, %v10006_v22  }
 0x613   :  { %2971 = vperm.xlu1 %7102, %v2952_v51   ;;  %v2576_v43 = vpop.permute.xlu0 %2575 }
 0x614   :  { %v2571_v0 = vpop.permute.xlu1 %2570 }
 0x615   :  { %2888 = vperm.xlu0 %7103, %v10015_v42   ;;  %2573 = vst.msk [vmem:[#allocation2 + $0x30] sm:$0xff] %vm13254_vm12, %v2571_v0 }
 0x616   :  { %2578 = vst.msk [vmem:[#allocation2 + $0x30] sm:$0xff] %vm13255_vm9, %v2576_v43 }
 0x617   :  { %2977 = vperm.xlu1 %7102, %v2954_v48  }
 0x619   :  { %v2582_v9 = vpop.permute.xlu1 %2581 }
 0x61a   :  { %2584 = vst.msk [vmem:[#allocation2 + $0x38] sm:$0xff] %vm13256_vm14, %v2582_v9 }
 0x61b   :  { %2999 = vperm.xlu1 %7102, %v2988_v10  }
 0x61d   :  { %v2592_v53 = vpop.permute.xlu1 %2591 }
 0x61e   :  { %v2587_v39 = vpop.permute.xlu0 %2586 }
 0x61f   :  { %2589 = vst.msk [vmem:[#allocation2 + $0x38] sm:$0xff] %vm13257_vm0, %v2587_v39  ;;  %3005 = vperm.xlu1 %7102, %v2990_v56  }
 0x620   :  { %2594 = vst.msk [vmem:[#allocation2 + $0x38] sm:$0xff] %vm13258_vm3, %v2592_v53 }
 0x623   :  { %3011 = vperm.xlu1 %7102, %v2992_v28  }
 0x627   :  { %3017 = vperm.xlu1 %7102, %v2994_v38  }
 0x62e   :  { %v2627_v27 = vpop.permute.xlu1 %2626 }
 0x62f   :  { %v10105_v17 = vpop.permute.xlu0 %2621  ;;  %v2660_v63 = vsub.f32 %v9720_v5, %v2627_v27  ;;  %vm2788_vm10 = vcmp.gt.f32.partialorder %v9720_v5, %v2627_v27 }
 0x630   :  { %v2659_v35 = vsub.f32 %v9720_v5, %v10105_v17  ;;  %vm2787_vm11 = vcmp.gt.f32.partialorder %v9720_v5, %v10105_v17 }
 0x631   :  { %v2668_v13 = vmul.f32 0.5, %v2660_v63 }
 0x632   :  { %v10107_v12 = vpop.permute.xlu1 %2636  ;;  %v2667_v24 = vmul.f32 0.5, %v2659_v35 }
 0x633   :  { %v10109_v25 = vpop.permute.xlu0 %2631  ;;  %v2662_v51 = vsub.f32 %v9720_v5, %v10107_v12  ;;  %v10200_v39 = vmul.f32 8.0, %v2668_v13 }
 0x634   :  { %v2675_v19 = vmul.f32 8.0, %v2667_v24  ;;  %v2661_v48 = vsub.f32 %v9720_v5, %v10109_v25  ;;  %vm2789_vm7 = vcmp.gt.f32.partialorder %v9720_v5, %v10109_v25 }
 0x635   :  { %v2670_v35 = vmul.f32 0.5, %v2662_v51 }
 0x636   :  { %v10111_v57 = vpop.permute.xlu1 %2646  ;;  %v2669_v63 = vmul.f32 0.5, %v2661_v48 }
 0x637   :  { %v10113_v33 = vpop.permute.xlu0 %2641 }
 0x638   :  { %v2663_v9 = vsub.f32 %v9720_v5, %v10113_v33  ;;  %vm2791_vm2 = vcmp.gt.f32.partialorder %v9720_v5, %v10113_v33 }
 0x63a   :  { %v10115_v18 = vpop.permute.xlu1 %2656 }
 0x63b   :  { %v10117_v8 = vpop.permute.xlu0 %2651 }
 0x63c   :  { %vm2793_vm12 = vcmp.gt.f32.partialorder %v9720_v5, %v10117_v8 }
 0x63f   :  { %v2801_v58 = vpop.permute.xlu0 %2800  ;;  %v10119_v52 = vpop.permute.xlu1 %2698 }
 0x640   :  { %vm2828_vm4 = vcmp.lt.f32.partialorder %v9720_v5, %v2801_v58  ;;  %v2732_v56 = vsub.f32 %v10119_v52, %v9502_v60  ;;  %vm2844_vm8 = vcmp.lt.f32.partialorder %v9502_v60, %v10119_v52  ;;  %v2683_v58 = vfloor.f32 %v2675_v19 }
 0x641   :  { %vm10202_vm15 = vmand %vm2788_vm10, %vm2828_vm4  ;;  %vm2790_vm4 = vcmp.gt.f32.partialorder %v9720_v5, %v10107_v12 }
 0x642   :  { %vm10225_vm6 = vmand %vm10202_vm15, %vm2844_vm8 }
 0x643   :  { %v10121_v7 = vpop.permute.xlu0 %2812  ;;  %v10123_v20 = vpop.permute.xlu1 %2703 }
 0x644   :  { %v2733_v36 = vsub.f32 %v10123_v20, %v9502_v60  ;;  %vm2831_vm1 = vcmp.lt.f32.partialorder %v9720_v5, %v10121_v7 }
 0x645   :  { %vm10233_vm9 = vmand %vm2791_vm2, %vm2831_vm1 }
 0x646   :  { %v2741_v0 = vmul.f32 0.5, %v2733_v36 }
 0x647   :  { %v10125_v22 = vpop.permute.xlu0 %2820  ;;  %v10127_v50 = vpop.permute.xlu1 %2713 }
 0x648   :  { %v2735_v23 = vsub.f32 %v10127_v50, %v9502_v60  ;;  %v2749_v24 = vmul.f32 8.0, %v2741_v0  ;;  %vm2833_vm13 = vcmp.lt.f32.partialorder %v9720_v5, %v10125_v22  ;;  %vm2847_vm14 = vcmp.lt.f32.partialorder %v9502_v60, %v10127_v50 }
 0x649   :  { %v10240_v0 = vmul.f32 8.0, %v2670_v35  ;;  %vm10245_vm0 = vmand %vm2793_vm12, %vm2833_vm13 }
 0x64a   :  { %v2743_v38 = vmul.f32 0.5, %v2735_v23  ;;  %v2740_v23 = vmul.f32 0.5, %v2732_v56  ;;  %v2664_v56 = vsub.f32 %v9720_v5, %v10111_v57  ;;  %v2757_v28 = vfloor.f32 %v2749_v24  ;;  %vm10278_vm8 = vmand %vm10233_vm9, %vm2847_vm14 }
 0x64b   :  { %v10129_v3 = vpop.permute.xlu0 %2919  ;;  %v10131_v1 = vpop.permute.xlu1 %2723 }
 0x64c   :  { %v2751_v51 = vmul.f32 8.0, %v2743_v38  ;;  %v2737_v22 = vsub.f32 %v10131_v1, %v9502_v60  ;;  %v2748_v31 = vmul.f32 8.0, %v2740_v23  ;;  %vm2849_vm1 = vcmp.lt.f32.partialorder %v9502_v60, %v10131_v1 }
 0x64d   :  { %v2765_v24 = vmul.f32 8.0, %v2757_v28  ;;  %v2665_v38 = vsub.f32 %v9720_v5, %v10117_v8 }
 0x64f   :  { %v10133_v42 = vpop.permute.xlu0 %2928 }
 0x650   :  { %v10135_v61 = vpop.permute.xlu1 %2796 }
 0x651   :  { %vm2827_vm3 = vcmp.lt.f32.partialorder %v9720_v5, %v10135_v61 }
 0x652   :  { %vm10294_vm13 = vmand %vm2787_vm11, %vm2827_vm3 }
 0x653   :  { %v10137_v2 = vpop.permute.xlu0 %2934 }
 0x654   :  { %v10139_v30 = vpop.permute.xlu1 %2804 }
 0x655   :  { %vm2829_vm5 = vcmp.lt.f32.partialorder %v9720_v5, %v10139_v30 }
 0x656   :  { %vm10265_vm10 = vmand %vm2789_vm7, %vm2829_vm5  ;;  %vm2845_vm7 = vcmp.lt.f32.partialorder %v9502_v60, %v10123_v20  ;;  %vm2792_vm5 = vcmp.gt.f32.partialorder %v9720_v5, %v10111_v57 }
 0x657   :  { %v10141_v59 = vpop.permute.xlu0 %2956  ;;  %vm10304_vm12 = vmand %vm10265_vm10, %vm2845_vm7 }
 0x658   :  { %v10143_v6 = vpop.permute.xlu1 %2808 }
 0x659   :  { %vm2830_vm3 = vcmp.lt.f32.partialorder %v9720_v5, %v10143_v6 }
 0x65b   :  { %v10145_v54 = vpop.permute.xlu0 %2962 }
 0x65c   :  { %v10147_v44 = vpop.permute.xlu1 %2816 }
 0x65f   :  { %v10149_v40 = vpop.permute.xlu0 %2968 }
 0x660   :  { %v10151_v26 = vpop.permute.xlu1 %2824 }
 0x663   :  { %v10153_v4 = vpop.permute.xlu0 %2974 }
 0x665   :  { %v10155_v32 = vpop.permute.xlu1 %2864 }
 0x666   :  { %vm2892_vm15 = vcmp.gt.f32.partialorder %v9502_v60, %v10155_v32 }
 0x667   :  { %v10157_v41 = vpop.permute.xlu0 %2996  ;;  %vm10318_vm11 = vmand %vm10225_vm6, %vm2892_vm15 }
 0x668   :  { %vm10340_vm6 = vmand %vm10245_vm0, %vm2849_vm1  ;;  %vm2832_vm1 = vcmp.lt.f32.partialorder %v9720_v5, %v10147_v44 }
 0x669   :  { %v10159_v34 = vpop.permute.xlu1 %2868 }
 0x66a   :  { %vm2893_vm10 = vcmp.gt.f32.partialorder %v9502_v60, %v10159_v34  ;;  %v10412_v34 = vld [vmem:[%s12861_s1 + $0x1] ss:$0 sm:$0xff] }
 0x66b   :  { %v10161_v62 = vpop.permute.xlu0 %3002 }
 0x66d   :  { %v10163_v46 = vpop.permute.xlu1 %2876 }
 0x66e   :  { %vm2895_vm2 = vcmp.gt.f32.partialorder %v9502_v60, %v10163_v46 }
 0x66f   :  { %v10165_v47 = vpop.permute.xlu0 %3008  ;;  %vm10331_vm14 = vmand %vm10278_vm8, %vm2895_vm2 }
 0x671   :  { %v10169_v55 = vpop.permute.xlu1 %2884 }
 0x673   :  { %v10171_v11 = vpop.permute.xlu0 %3014 }
 0x676   :  { %v10176_v21 = vpop.permute.xlu1 %2916 }
 0x677   :  { %vm2939_vm0 = vcmp.eq.s32.totalorder %v10176_v21, %v9902_v14 }
 0x678   :  { %v10178_v29 = vpop.permute.xlu0 %2693 }
 0x679   :  { %v2731_v16 = vsub.f32 %v10178_v29, %v9502_v60  ;;  %vm2843_vm9 = vcmp.lt.f32.partialorder %v9502_v60, %v10178_v29 }
 0x67a   :  { %v10189_v10 = vpop.permute.xlu1 %2922  ;;  %vm2851_vm15 = vmand %vm10294_vm13, %vm2843_vm9  ;;  %vm2979_vm13 = vcmp.ne.s32.totalorder %v10141_v59, %v7631_v15  ;;  %v2672_v59 = vmul.f32 0.5, %v2664_v56 }
 0x67b   :  { %v2739_v43 = vmul.f32 0.5, %v2731_v16  ;;  %v2671_v16 = vmul.f32 0.5, %v2663_v9  ;;  %vm10370_vm9 = vmand %vm2790_vm4, %vm2830_vm3  ;;  %vm2834_vm4 = vcmp.lt.f32.partialorder %v9720_v5, %v10151_v26 }
 0x67c   :  { %v10198_v53 = vpop.permute.xlu0 %2708  ;;  %v2680_v23 = vmul.f32 8.0, %v2672_v59 }
 0x67d   :  { %v2747_v27 = vmul.f32 8.0, %v2739_v43  ;;  %v2734_v9 = vsub.f32 %v10198_v53, %v9502_v60  ;;  %v2679_v48 = vmul.f32 8.0, %v2671_v16  ;;  %v2745_v16 = vmul.f32 0.5, %v2737_v22 }
 0x67e   :  { %v10214_v13 = vpop.permute.xlu1 %2925 }
 0x67f   :  { %v2755_v36 = vfloor.f32 %v2747_v27  ;;  %v2742_v17 = vmul.f32 0.5, %v2734_v9  ;;  %v2687_v9 = vfloor.f32 %v2679_v48  ;;  %v2753_v43 = vmul.f32 8.0, %v2745_v16 }
 0x680   :  { %v10229_v19 = vpop.permute.xlu0 %2718  ;;  %v13295_v16 = vfloor.f32 %v10200_v39 }
 0x681   :  { %v2763_v52 = vmul.f32 8.0, %v2755_v36  ;;  %v2677_v36 = vmul.f32 8.0, %v2669_v63  ;;  %v2736_v61 = vsub.f32 %v10229_v19, %v9502_v60  ;;  %v2756_v63 = vfloor.f32 %v2748_v31 }
 0x682   :  { %v10269_v35 = vpop.permute.xlu1 %2931  ;;  %v2750_v1 = vmul.f32 8.0, %v2742_v17  ;;  %v2761_v50 = vfloor.f32 %v2753_v43 }
 0x683   :  { %v2771_v27 = vadd.f32 %v2763_v52, %v2683_v58  ;;  %v2759_v58 = vfloor.f32 %v2751_v51  ;;  %v2685_v52 = vfloor.f32 %v2677_v36  ;;  %v2744_v46 = vmul.f32 0.5, %v2736_v61 }
 0x684   :  { %v10282_v30 = vpop.permute.xlu0 %2728  ;;  %v2764_v36 = vmul.f32 8.0, %v2756_v63  ;;  %v2758_v44 = vfloor.f32 %v2750_v1  ;;  %v2666_v63 = vsub.f32 %v9720_v5, %v10115_v18 }
 0x685   :  { %v7007_v51 = vtrunc.f32 %v2771_v27  ;;  %v2767_v31 = vmul.f32 8.0, %v2759_v58  ;;  %v2738_v48 = vsub.f32 %v10282_v30, %v9502_v60  ;;  %v2773_v28 = vadd.f32 %v2765_v24, %v2685_v52 }
 0x686   :  { %v10322_v33 = vpop.permute.xlu1 %2937  ;;  %v2673_v27 = vmul.f32 0.5, %v2665_v38  ;;  %v2752_v57 = vmul.f32 8.0, %v2744_v46  ;;  %v2769_v52 = vmul.f32 8.0, %v2761_v50  ;;  %v2674_v7 = vmul.f32 0.5, %v2666_v63  ;;  %v3581_v63 = vld [vmem:[%s12865_s5 + $0x148] sm:$0xff] }
 0x687   :  { %v7008_v22 = vcvt.f32.s32 %v7007_v51  ;;  %v2775_v12 = vadd.f32 %v2767_v31, %v2687_v9  ;;  %v2746_v56 = vmul.f32 0.5, %v2738_v48  ;;  %v7011_v20 = vtrunc.f32 %v2773_v28 }
 0x688   :  { %v2861_v8 = vpop.permute.xlu0 %2860  ;;  %v2681_v24 = vmul.f32 8.0, %v2673_v27  ;;  %v2760_v39 = vfloor.f32 %v2752_v57  ;;  %v2682_v27 = vmul.f32 8.0, %v2674_v7  ;;  %v3231_v7 = vld [vmem:[%s12860_s0 + $0x158] sm:$0xff] }
 0x689   :  { %vm2891_vm8 = vcmp.gt.f32.partialorder %v9502_v60, %v2861_v8  ;;  %v2754_v51 = vmul.f32 8.0, %v2746_v56  ;;  %v7012_v9 = vcvt.f32.s32 %v7011_v20  ;;  %v10636_v31 = vadd.f32 -1.0, %v3231_v7 }
 0x68a   :  { %vm2899_vm7 = vmand %vm2851_vm15, %vm2891_vm8  ;;  %v10360_v29 = vpop.permute.xlu1 %2959  ;;  %vm2941_vm8 = vcmp.eq.s32.totalorder %v10189_v10, %v9902_v14  ;;  %v2689_v8 = vfloor.f32 %v2681_v24  ;;  %v2768_v48 = vmul.f32 8.0, %v2760_v39 }
 0x68b   :  { %vm3027_vm2 = vmand %vm2899_vm7, %vm2939_vm0  ;;  %vm2943_vm0 = vcmp.eq.s32.totalorder %v10133_v42, %v9902_v14  ;;  %vm2897_vm7 = vcmp.gt.f32.partialorder %v10412_v34, %v10169_v55  ;;  %v2766_v55 = vmul.f32 8.0, %v2758_v44  ;;  %v2762_v43 = vfloor.f32 %v2754_v51 }
 0x68c   :  { %vm10379_vm15 = vmand %vm10304_vm12, %vm2893_vm10  ;;  %v2873_v58 = vpop.permute.xlu0 %2872  ;;  %v2777_v28 = vadd.f32 %v2769_v52, %v2689_v8  ;;  %v2690_v42 = vfloor.f32 %v2682_v27  ;;  %v10634_v8 = vld [vmem:[%s12860_s0 + $0x160] sm:$0xff] }
 0x68d   :  { %vm10389_vm3 = vmand %vm3027_vm2, %vm2979_vm13  ;;  %vm2940_vm2 = vcmp.eq.s32.totalorder %v10129_v3, %v9902_v14  ;;  %v2770_v21 = vmul.f32 8.0, %v2762_v43  ;;  %v10656_v43 = vld [vmem:[%s12860_s0 + $0x180] sm:$0xff] }
 0x68e   :  { %vm10399_vm12 = vmand %vm2792_vm5, %vm2832_vm1  ;;  %vm2794_vm5 = vcmp.gt.f32.partialorder %v9720_v5, %v10115_v18  ;;  %v10427_v61 = vpop.permute.xlu1 %2965  ;;  %vm3019_vm1 = vcmp.eq.s32.totalorder %v7008_v22, %v10157_v41  ;;  %v2772_v41 = vadd.f32 %v2764_v36, %v13295_v16  ;;  %v7015_v18 = vtrunc.f32 %v2775_v12  ;;  %v3230_v22 = vld [vmem:[%s12860_s0 + $0x150] sm:$0xff] }
 0x68f   :  { %vm10405_vm10 = vmand %vm10331_vm14, %vm2943_vm0  ;;  %vm2983_vm0 = vcmp.ne.s32.totalorder %v10149_v40, %v7631_v15  ;;  %v13316_v36 = vmov 0  ;;  %v7019_v6 = vtrunc.f32 %v2777_v28  ;;  %v4494_v28 = vld [vmem:[%s12860_s0 + $0x1c0] sm:$0xff] }
 0x690   :  { %vm10423_vm14 = vmand %vm10379_vm15, %vm2941_vm8  ;;  %vm2981_vm8 = vcmp.ne.s32.totalorder %v10145_v54, %v7631_v15  ;;  %v7009_v54 = vtrunc.f32 %v2772_v41  ;;  %v7016_v1 = vcvt.f32.s32 %v7015_v18 }
 0x691   :  { %vm10437_vm13 = vmand %vm2794_vm5, %vm2834_vm4  ;;  %v7020_v50 = vcvt.f32.s32 %v7019_v6 }
 0x692   :  { %vm3043_vm15 = vmand %vm10389_vm3, %vm3019_vm1  ;;  %v10485_v32 = vpop.permute.xlu1 %2971 }
 0x693   :  { %vm10454_vm4 = vmand %vm10340_vm6, %vm2897_vm7  ;;  %v6132_v26 = vsel %vm3043_vm15, 1.0, %v13081_v49  ;;  %vm2846_vm6 = vcmp.lt.f32.partialorder %v10412_v34, %v10198_v53  ;;  %vm13302_vm7 = vcmask 64512   ;;  %vm3021_vm15 = vcmp.eq.s32.totalorder %v7012_v9, %v10161_v62 }
 0x694   :  { %vm10460_vm3 = vmand %vm10318_vm11, %vm2940_vm2  ;;  %6633 = vmatprep.mubr.msk.f32.mxu0 %vm13302_vm7, %v6132_v26  ;;  %vm2945_vm11 = vcmp.eq.s32.totalorder %v10137_v2, %v9902_v14  ;;  %vm2848_vm2 = vcmp.lt.f32.partialorder %v10412_v34, %v10229_v19  ;;  %v2881_v2 = vpop.permute.xlu0 %2880  ;;  %v10688_v19 = vld [vmem:[%s12860_s0 + $0x1a0] sm:$0xff] }
 0x695   :  { %vm10467_vm5 = vmand %vm10405_vm10, %vm2983_vm0  ;;  %vm2894_vm0 = vcmp.gt.f32.partialorder %v10412_v34, %v2873_v58  ;;  %v2778_v58 = vadd.f32 %v2770_v21, %v2690_v42  ;;  %v10712_v42 = vld [vmem:[%s12860_s0 + $0x1d8] sm:$0xff] }
 0x696   :  { %vm10481_vm10 = vmand %vm10423_vm14, %vm2981_vm8  ;;  %vm2985_vm14 = vcmp.ne.s32.totalorder %v10153_v4, %v7631_v15  ;;  %v13309_v4 = vfloor.f32 %v10240_v0  ;;  %v10674_v0 = vadd.f32 1.0, %v4494_v28 }
 0x697   :  { %vm10489_vm1 = vmand %vm10454_vm4, %vm2945_vm11  ;;  %vm2850_vm4 = vcmp.lt.f32.partialorder %v10412_v34, %v10282_v30  ;;  %vm2980_vm11 = vcmp.ne.s32.totalorder %v10360_v29, %v7631_v15  ;;  %v2688_v30 = vfloor.f32 %v2680_v23  ;;  %v7010_v29 = vcvt.f32.s32 %v7009_v54  ;;  %v3229_v23 = vld [vmem:[%s12860_s0 + $0x148] sm:$0xff] }
 0x698   :  { %vm10503_vm8 = vmand %vm10370_vm9, %vm2846_vm6  ;;  %v2774_v62 = vadd.f32 %v2766_v55, %v13309_v4  ;;  %vm3023_vm9 = vcmp.eq.s32.totalorder %v7016_v1, %v10165_v47  ;;  %v2978_v47 = vpop.permute.xlu1 %2977  ;;  %v2889_v25 = vpop.permute.xlu0 %2888  ;;  %v7021_v16 = vtrunc.f32 %v2778_v58  ;;  %v6149_v38 = vadd.f32 -1.0, %v3229_v23  ;;  %v3233_v54 = vld [vmem:[%s12860_s0 + $0x168] sm:$0xff]  ;;  %v3235_v1 = vld [vmem:[%s12860_s0 + $0x178] sm:$0xff] }
 0x699   :  { %vm10514_vm7 = vmand %vm10481_vm10, %vm3021_vm15  ;;  %vm2896_vm15 = vcmp.gt.f32.partialorder %v10412_v34, %v2881_v2  ;;  %v2776_v12 = vadd.f32 %v2768_v48, %v2688_v30  ;;  %v10639_v2 = vadd.f32 1.0, %v10634_v8  ;;  %v10649_v46 = vadd.f32 -1.0, %v3233_v54  ;;  %v3228_v4 = vld [vmem:[%s12860_s0 + $0x140] sm:$0xff]  ;;  %v10679_v30 = vld [vmem:[%s12860_s0 + $0x1c8] sm:$0xff] }
 0x69a   :  { %vm10521_vm6 = vmand %vm10489_vm1, %vm2985_vm14  ;;  %v7013_v59 = vtrunc.f32 %v2774_v62  ;;  %v10651_v48 = vadd.f32 1.0, %v3235_v1  ;;  %v10664_v62 = vadd.f32 1.0, %v10656_v43  ;;  %v3244_v53 = vadd.f32 1.0, %v3228_v4  ;;  %v10725_v58 = vld [vmem:[%s12860_s0 + $0x1f0] sm:$0xff] }
 0x69b   :  { %vm10532_vm10 = vmand %vm10399_vm12, %vm2848_vm2  ;;  %v7017_v56 = vtrunc.f32 %v2776_v12  ;;  %v10683_v27 = vadd.f32 1.0, %v10679_v30  ;;  %v10694_v21 = vadd.f32 1.0, %v3233_v54  ;;  %v10733_v20 = vadd.f32 -1.0, %v3235_v1  ;;  %v3627_v54 = vld [vmem:[%s12864_s4 + $0x178] sm:$0xff]  ;;  %v3862_v1 = vld [vmem:[%s12860_s0 + $0x188] sm:$0xff] }
 0x69c   :  { %vm10538_vm1 = vmand %vm10467_vm5, %vm3023_vm9  ;;  %vm2942_vm5 = vcmp.eq.s32.totalorder %v10214_v13, %v9902_v14  ;;  %v3000_v60 = vpop.permute.xlu1 %2999  ;;  %vm2944_vm9 = vcmp.eq.s32.totalorder %v10269_v35, %v9902_v14  ;;  %v7014_v57 = vcvt.f32.s32 %v7013_v59  ;;  %v6134_v35 = vsel %vm10514_vm7, 1.0, %v13081_v49  ;;  %v3234_v59 = vld [vmem:[%s12860_s0 + $0x170] sm:$0xff] }
 0x69d   :  { %v13317_v36 = vsel %vm10538_vm1, 4294967295, %v13316_v36  ;;  %vm2902_vm14 = vmand %vm10503_vm8, %vm2894_vm0  ;;  %vm2982_vm8 = vcmp.ne.s32.totalorder %v10427_v61, %v7631_v15  ;;  %vm2898_vm1 = vcmp.gt.f32.partialorder %v10412_v34, %v2889_v25  ;;  %v7018_v24 = vcvt.f32.s32 %v7017_v56  ;;  %v4499_v25 = vld [vmem:[%s12860_s0 + $0x1e8] sm:$0xff] }
 0x69e   :  { %vm10549_vm12 = vmand %vm10437_vm13, %vm2850_vm4  ;;  %vm3020_vm4 = vcmp.eq.s32.totalorder %v7010_v29, %v3000_v60  ;;  %v10692_v29 = vadd.f32 1.0, %v10688_v19  ;;  %v10703_v12 = vadd.f32 1.0, %v4499_v25  ;;  %v3250_v6 = vadd.f32 1.0, %v3234_v59 }
 0x69f   :  { %vm3036_vm2 = vmand %vm10460_vm3, %vm2980_vm11  ;;  %v10707_v60 = vadd.f32 -1.0, %v4494_v28  ;;  %v10716_v13 = vadd.f32 -1.0, %v10712_v42  ;;  %v10720_v56 = vadd.f32 -1.0, %v4499_v25  ;;  %v6152_v61 = vadd.f32 -1.0, %v10634_v8  ;;  %v3624_v8 = vld [vmem:[%s12864_s4 + $0x160] sm:$0xff]  ;;  %v3586_v28 = vld [vmem:[%s12865_s5 + $0x170] sm:$0xff] }
 0x6a0   :  { %vm3030_vm0 = vmand %vm2902_vm14, %vm2942_vm5  ;;  %v3006_v17 = vpop.permute.xlu1 %3005 }
 0x6a1   :  { %vm2904_vm13 = vmand %vm10532_vm10, %vm2896_vm15  ;;  %vm13324_vm10 = vcmask 64512   ;;  %vm2984_vm15 = vcmp.ne.s32.totalorder %v10485_v32, %v7631_v15  ;;  %v3245_v32 = vadd.f32 1.0, %v3229_v23 }
 0x6a2   :  { %vm3044_vm3 = vmand %vm3036_vm2, %vm3020_vm4  ;;  %vm3022_vm2 = vcmp.eq.s32.totalorder %v7014_v57, %v3006_v17  ;;  %v6148_v57 = vadd.f32 -1.0, %v3228_v4  ;;  %v6150_v17 = vadd.f32 -1.0, %v3230_v22 }
 0x6a3   :  { %vm10564_vm11 = vmand %vm3030_vm0, %vm2982_vm8  ;;  %v6133_v44 = vsel %vm3044_vm3, 1.0, %v13081_v49  ;;  %vm3025_vm0 = vcmp.eq.s32.totalorder %v7020_v50, %v10171_v11  ;;  %v10730_v50 = vadd.f32 -1.0, %v10725_v58 }
 0x6a4   :  { %vm10569_vm14 = vmand %vm2904_vm13, %vm2944_vm9  ;;  %6634 = vmatmul.mubr.msk.f32.vlgmr.msra.gmra.mrb[16].mxu0 %vm13324_vm10, %v6133_v44  ;;  %vm13331_vm9 = vnez %v13317_v36  ;;  %v3247_v36 = vadd.f32 1.0, %v3231_v7  ;;  %v13338_v44 = vmov 0   ;;  %v3547_v7 = vld [vmem:[%s12862_s2 + $0x178] sm:$0xff] }
 0x6a5   :  { %vm10581_vm5 = vmand %vm10549_vm12, %vm2898_vm1  ;;  %6660 = vmatpush3.msra.mxu0 %v9943_v45  ;;  %vm2946_vm1 = vcmp.eq.s32.totalorder %v10322_v33, %v9902_v14  ;;  %v3012_v45 = vpop.permute.xlu1 %3011  ;;  %v6136_v11 = vsel %vm13331_vm9, 1.0, %v13081_v49  ;;  %v7022_v14 = vcvt.f32.s32 %v7021_v16  ;;  %v3541_v16 = vld [vmem:[%s12862_s2 + $0x148] sm:$0xff]  ;;  %vm13341_vm9 = vcmask 1048320  }
 0x6a6   :  { %vm13327_vm8 = vmmov %vm13324_vm10  ;;  %vm3024_vm3 = vcmp.eq.s32.totalorder %v7018_v24, %v3012_v45  ;;  %vm2986_vm10 = vcmp.ne.s32.totalorder %v2978_v47, %v7631_v15  ;;  %v3246_v47 = vadd.f32 1.0, %v3230_v22  ;;  %v6154_v24 = vadd.f32 -1.0, %v3234_v59  ;;  %v3582_v45 = vld [vmem:[%s12865_s5 + $0x150] sm:$0xff] }
 0x6a7   :  { %6636 = vmatprep.mubr.msk.f32.mxu0 %vm13327_vm8, %v6134_v35  ;;  %vm3046_vm13 = vmand %vm10564_vm11, %vm3022_vm2  ;;  %v3580_v35 = vld [vmem:[%s12865_s5 + $0x140] sm:$0xff] }
 0x6a8   :  { %vm10592_vm7 = vmand %vm10521_vm6, %vm3025_vm0  ;;  %v6135_v10 = vsel %vm3046_vm13, 1.0, %v13081_v49 }
 0x6a9   :  { %vm3040_vm12 = vmand %vm10569_vm14, %vm2984_vm15  ;;  %v3018_v41 = vpop.permute.xlu1 %3017  ;;  %v6138_v18 = vsel %vm10592_vm7, 1.0, %v13081_v49 }
 0x6aa   :  { %vm13330_vm4 = vmmov %vm13327_vm8  ;;  %vm3026_vm8 = vcmp.eq.s32.totalorder %v7022_v14, %v3018_v41  ;;  %v3583_v14 = vld [vmem:[%s12865_s5 + $0x158] sm:$0xff]  ;;  %v3542_v41 = vld [vmem:[%s12862_s2 + $0x150] sm:$0xff] }
 0x6ab   :  { %6637 = vmatmul.mubr.msk.f32.gmra.mrb[18].mxu0 %vm13330_vm4, %v6135_v10  ;;  %vm3034_vm6 = vmand %vm10581_vm5, %vm2946_vm1  ;;  %vm13336_vm1 = vcmask 261120   ;;  %v3540_v10 = vld [vmem:[%s12862_s2 + $0x140] sm:$0xff] }
 0x6ac   :  { %vm13332_vm11 = vmmov %vm13330_vm4 }
 0x6ad   :  { %6639 = vmatprep.mubr.msk.f32.mxu0 %vm13332_vm11, %v6136_v11  ;;  %vm3048_vm2 = vmand %vm3040_vm12, %vm3024_vm3  ;;  %v3620_v11 = vld [vmem:[%s12864_s4 + $0x140] sm:$0xff]  ;;  %vm13339_vm12 = vcmask 523520  }
 0x6ae   :  { %v6137_v33 = vsel %vm3048_vm2, 1.0, %v13081_v49  ;;  %vm13333_vm14 = vmmov %vm13330_vm4 }
 0x6af   :  { %6640 = vmatmul.mubr.msk.f32.gmra.mrb[20].mxu0 %vm13333_vm14, %v6137_v33  ;;  %vm3042_vm15 = vmand %vm3034_vm6, %vm2986_vm10  ;;  %v3621_v33 = vld [vmem:[%s12864_s4 + $0x148] sm:$0xff] }
 0x6b0   :  { %vm13334_vm0 = vmmov %vm13330_vm4  ;;  %vm13340_vm4 = vcmask 785920  }
 0x6b1   :  { %6642 = vmatprep.mubr.msk.f32.mxu0 %vm13334_vm0, %v6138_v18  ;;  %vm3050_vm5 = vmand %vm3042_vm15, %vm3026_vm8  ;;  %v3543_v18 = vld [vmem:[%s12862_s2 + $0x158] sm:$0xff] }
 0x6b2   :  { %v6139_v5 = vsel %vm3050_vm5, 1.0, %v13081_v49  ;;  %vm13335_vm13 = vmmov %vm13334_vm0 }
 0x6b3   :  { %6643 = vmatmul.mubr.msk.f32.gmra.mrb[22].mxu0 %vm13335_vm13, %v6139_v5  ;;  %vm13337_vm7 = vmmov %vm13336_vm1 }
 0x6b4   :  { %vm13342_vm6 = vmmov %vm13339_vm12 }
 0x6b5   :  { %vm13343_vm3 = vmmov %vm13340_vm4 }
 0x6b6   :  { %vm13344_vm11 = vmmov %vm13341_vm9 }
 0x777   :  { %v6635_v3 = vpop.f32.mrb[16].mxu0 }
 0x778   :  { %3198 = vrot.lane.b32.xlu0 %v6635_v3, %s7197_s25  ;;  %v3157_v26 = vpop.f32.mrb[17].mxu0  ;;  %v3584_v3 = vld [vmem:[%s12865_s5 + $0x160] sm:$0xff] }
 0x779   :  { %3196 = vst.msk [vmem:[#allocation2 + $0x40] sm:$0xff] %vm13336_vm1, %v3157_v26  ;;  %v3622_v26 = vld [vmem:[%s12864_s4 + $0x150] sm:$0xff] }
 0x77e   :  { %v6638_v40 = vpop.f32.mrb[18].mxu0 }
 0x77f   :  { %3208 = vrot.lane.b32.xlu0 %v6638_v40, %s7199_s27  ;;  %v3167_v55 = vpop.f32.mrb[19].mxu0  ;;  %v3585_v40 = vld [vmem:[%s12865_s5 + $0x168] sm:$0xff] }
 0x780   :  { %3203 = vrot.lane.b32.xlu1 %v3167_v55, %s7198_s26 }
 0x782   :  { %v6641_v39 = vpop.f32.mrb[20].mxu0 }
 0x783   :  { %v3177_v51 = vpop.f32.mrb[21].mxu0 }
 0x784   :  { %3212 = vst.msk [vmem:[#allocation2 + $0x48] sm:$0xff] %vm13337_vm7, %v3177_v51  ;;  %3214 = vrot.lane.b32.xlu1 %v6641_v39, %s7197_s25  ;;  %v3623_v39 = vld [vmem:[%s12864_s4 + $0x158] sm:$0xff] }
 0x786   :  { %v6644_v52 = vpop.f32.mrb[22].mxu0 }
 0x787   :  { %v3187_v9 = vpop.f32.mrb[23].mxu0 }
 0x788   :  { %3224 = vrot.lane.b32.xlu1 %v6644_v52, %s7199_s27  ;;  %3219 = vrot.lane.b32.xlu0 %v3187_v9, %s7198_s26  ;;  %v3544_v52 = vld [vmem:[%s12862_s2 + $0x160] sm:$0xff] }
 0x78c   :  { %3259 = vperm.xlu1 %7102, %v6149_v38   ;;  %3331 = vperm.xlu0 %7103, %v3245_v32  }
 0x790   :  { %3269 = vperm.xlu1 %7102, %v10636_v31   ;;  %3346 = vperm.xlu0 %7103, %v10639_v2  }
 0x794   :  { %3279 = vperm.xlu1 %7102, %v10649_v46   ;;  %3361 = vperm.xlu0 %7103, %v10651_v48  }
 0x798   :  { %7104 = vset.pattern.permute.xlu1 %v13173_v37  ;;  %3959 = vperm.xlu0 %7103, %v10664_v62  }
 0x799   :  { %3326 = vperm.xlu1 %7104, %v3244_v53  }
 0x79c   :  { %4592 = vperm.xlu0 %7103, %v10674_v0  }
 0x79d   :  { %3336 = vperm.xlu1 %7104, %v3246_v47  }
 0x7a0   :  { %4597 = vperm.xlu0 %7103, %v10683_v27  }
 0x7a1   :  { %3341 = vperm.xlu1 %7104, %v3247_v36  }
 0x7a4   :  { %3979 = vperm.xlu0 %7103, %v10692_v29  }
 0x7a5   :  { %3351 = vperm.xlu1 %7104, %v10694_v21  }
 0x7a8   :  { %4617 = vperm.xlu0 %7103, %v10703_v12  }
 0x7a9   :  { %3356 = vperm.xlu1 %7104, %v3250_v6  }
 0x7ac   :  { %4759 = vperm.xlu0 %7103, %v10707_v60  }
 0x7ad   :  { %7105 = vset.pattern.permute.xlu1 %v13338_v44 }
 0x7ae   :  { %3433 = vperm.xlu1 %7105, %v3245_v32   ;;  %v3545_v32 = vld [vmem:[%s12862_s2 + $0x168] sm:$0xff] }
 0x7b0   :  { %4771 = vperm.xlu0 %7103, %v10716_v13  }
 0x7b2   :  { %7106 = vset.pattern.permute.xlu1 %v13173_v37 }
 0x7b3   :  { %3493 = vperm.xlu1 %7106, %v6148_v57  }
 0x7b4   :  { %4779 = vperm.xlu0 %7103, %v10720_v56  }
 0x7b7   :  { %3497 = vperm.xlu1 %7106, %v6149_v38  }
 0x7b8   :  { %4783 = vperm.xlu0 %7103, %v10730_v50  }
 0x7bb   :  { %7107 = vset.pattern.permute.xlu1 %v13338_v44 }
 0x7bc   :  { %3289 = vperm.xlu1 %7107, %v10733_v20   ;;  %7148 = vset.pattern.permute.xlu0 %v13338_v44 }
 0x7bd   :  { %3254 = vperm.xlu0 %7148, %v6148_v57  }
 0x7c0   :  { %3437 = vperm.xlu1 %7107, %v3246_v47  }
 0x7c1   :  { %3264 = vperm.xlu0 %7148, %v6150_v17  }
 0x7c4   :  { %3589 = vperm.xlu1 %7107, %v3580_v35  }
 0x7c5   :  { %3274 = vperm.xlu0 %7148, %v6152_v61  }
 0x7c8   :  { %3592 = vperm.xlu1 %7107, %v3581_v63  }
 0x7c9   :  { %3284 = vperm.xlu0 %7148, %v6154_v24  }
 0x7cc   :  { %7108 = vset.pattern.permute.xlu1 %v13173_v37 }
 0x7cd   :  { %3501 = vperm.xlu1 %7108, %v6150_v17   ;;  %3429 = vperm.xlu0 %7148, %v3244_v53   ;;  %v10830_v53 = vadd.f32 1.0, %v3862_v1 }
 0x7d1   :  { %3505 = vperm.xlu1 %7108, %v10636_v31   ;;  %3549 = vperm.xlu0 %7148, %v3540_v10   ;;  %v3587_v31 = vld [vmem:[%s12865_s5 + $0x178] sm:$0xff] }
 0x7d5   :  { %7109 = vset.pattern.permute.xlu1 %v13338_v44  ;;  %3552 = vperm.xlu0 %7148, %v3541_v16  }
 0x7d6   :  { %3445 = vperm.xlu1 %7109, %v10639_v2   ;;  %v3625_v2 = vld [vmem:[%s12864_s4 + $0x168] sm:$0xff] }
 0x7d9   :  { %3441 = vperm.xlu0 %7148, %v3247_v36   ;;  %v10842_v36 = vadd.f32 -1.0, %v10656_v43  ;;  %v3863_v43 = vld [vmem:[%s12860_s0 + $0x190] sm:$0xff] }
 0x7da   :  { %3595 = vperm.xlu1 %7109, %v3582_v45   ;;  %v10864_v17 = vadd.f32 1.0, %v3863_v43  ;;  %v10866_v35 = vadd.f32 -1.0, %v3863_v43 }
 0x7dd   :  { %3629 = vperm.xlu0 %7148, %v3620_v11   ;;  %v10889_v11 = vadd.f32 -1.0, %v10679_v30  ;;  %v4498_v30 = vld [vmem:[%s12860_s0 + $0x1e0] sm:$0xff] }
 0x7de   :  { %3598 = vperm.xlu1 %7109, %v3583_v14   ;;  %v3866_v14 = vld [vmem:[%s12860_s0 + $0x1a8] sm:$0xff] }
 0x7e1   :  { %3632 = vperm.xlu0 %7148, %v3621_v33  }
 0x7e2   :  { %7110 = vset.pattern.permute.xlu1 %v13173_v37 }
 0x7e3   :  { %3509 = vperm.xlu1 %7110, %v6152_v61   ;;  %v3864_v61 = vld [vmem:[%s12860_s0 + $0x198] sm:$0xff] }
 0x7e4   :  { %v10878_v10 = vadd.f32 1.0, %v3864_v61 }
 0x7e5   :  { %3555 = vperm.xlu0 %7148, %v3542_v41  }
 0x7e7   :  { %3513 = vperm.xlu1 %7110, %v10649_v46   ;;  %v3546_v46 = vld [vmem:[%s12862_s2 + $0x170] sm:$0xff] }
 0x7e9   :  { %3558 = vperm.xlu0 %7148, %v3543_v18   ;;  %v4496_v18 = vld [vmem:[%s12860_s0 + $0x1d0] sm:$0xff] }
 0x7ea   :  { %v3199_v5 = vpop.permute.xlu0 %3198 }
 0x7eb   :  { %7111 = vset.pattern.permute.xlu1 %v13338_v44  ;;  %3201 = vst.msk [vmem:[#allocation2 + $0x40] sm:$0xff] %vm13339_vm12, %v3199_v5  ;;  %v10903_v5 = vadd.f32 -1.0, %v3866_v14 }
 0x7ec   :  { %3453 = vperm.xlu1 %7111, %v3250_v6   ;;  %v10853_v6 = vadd.f32 -1.0, %v3862_v1 }
 0x7ed   :  { %3449 = vperm.xlu0 %7148, %v10694_v21   ;;  %v3626_v21 = vld [vmem:[%s12864_s4 + $0x170] sm:$0xff] }
 0x7f0   :  { %3601 = vperm.xlu1 %7111, %v3584_v3  }
 0x7f1   :  { %3635 = vperm.xlu0 %7148, %v3622_v26   ;;  %v3209_v51 = vpop.permute.xlu0 %3208  ;;  %v10911_v26 = vadd.f32 1.0, %v4496_v18 }
 0x7f2   :  { %v3204_v55 = vpop.permute.xlu1 %3203 }
 0x7f3   :  { %3206 = vst.msk [vmem:[#allocation2 + $0x40] sm:$0xff] %vm13340_vm4, %v3204_v55  ;;  %v10916_v55 = vadd.f32 -1.0, %v4498_v30 }
 0x7f4   :  { %3211 = vst.msk [vmem:[#allocation2 + $0x40] sm:$0xff] %vm13341_vm9, %v3209_v51  ;;  %3604 = vperm.xlu1 %7111, %v3585_v40  }
 0x7f5   :  { %3638 = vperm.xlu0 %7148, %v3623_v39   ;;  %13349 = vst [vmem:[#allocation12_spill] sm:$0xff] %v10916_v55  ;;  %v10923_v39 = vadd.f32 1.0, %v10712_v42 }
 0x7f6   :  { %v3215_v23 = vpop.permute.xlu1 %3214 }
 0x7f7   :  { %3217 = vst.msk [vmem:[#allocation2 + $0x48] sm:$0xff] %vm13342_vm6, %v3215_v23  ;;  %v3867_v23 = vld [vmem:[%s12860_s0 + $0x1b0] sm:$0xff] }
 0x7f8   :  { %7112 = vset.pattern.permute.xlu1 %v13173_v37 }
 0x7f9   :  { %3517 = vperm.xlu1 %7112, %v6154_v24   ;;  %3561 = vperm.xlu0 %7148, %v3544_v52  }
 0x7fa   :  { %v3225_v9 = vpop.permute.xlu1 %3224  ;;  %v3220_v38 = vpop.permute.xlu0 %3219 }
 0x7fb   :  { %3222 = vst.msk [vmem:[#allocation2 + $0x48] sm:$0xff] %vm13343_vm3, %v3220_v38  ;;  %v10937_v38 = vadd.f32 -1.0, %v3867_v23 }
 0x7fc   :  { %3227 = vst.msk [vmem:[#allocation2 + $0x48] sm:$0xff] %vm13344_vm11, %v3225_v9  ;;  %v10934_v9 = vadd.f32 -1.0, %v4496_v18 }
 0x7fd   :  { %3521 = vperm.xlu1 %7112, %v10733_v20   ;;  %3564 = vperm.xlu0 %7148, %v3545_v32   ;;  %13352 = vst [vmem:[#allocation17_spill] sm:$0xff] %v10937_v38 }
 0x801   :  { %7113 = vset.pattern.permute.xlu1 %v13338_v44  ;;  %3457 = vperm.xlu0 %7148, %v10651_v48  }
 0x802   :  { %3570 = vperm.xlu1 %7113, %v3547_v7   ;;  %v10946_v7 = vadd.f32 1.0, %v3866_v14 }
 0x805   :  { %3641 = vperm.xlu0 %7148, %v3624_v8  }
 0x806   :  { %3610 = vperm.xlu1 %7113, %v3587_v31  }
 0x809   :  { %3644 = vperm.xlu0 %7148, %v3625_v2   ;;  %v10958_v2 = vadd.f32 -1.0, %v10688_v19 }
 0x80a   :  { %3650 = vperm.xlu1 %7113, %v3627_v54  }
 0x80b   :  { %v10826_v48 = vpop.permute.xlu1 %3259  ;;  %v10828_v4 = vpop.permute.xlu0 %3331 }
 0x80c   :  { %v3365_v19 = vsub.f32 %v10828_v4, %v10412_v34  ;;  %vm3477_vm9 = vcmp.lt.f32.partialorder %v10412_v34, %v10828_v4 }
 0x80d   :  { %3567 = vperm.xlu0 %7148, %v3546_v46  }
 0x80e   :  { %7114 = vset.pattern.permute.xlu1 %v13173_v37 }
 0x80f   :  { %3964 = vperm.xlu1 %7114, %v10830_v53   ;;  %v10837_v22 = vpop.permute.xlu1 %3269  ;;  %v10839_v47 = vpop.permute.xlu0 %3346 }
 0x811   :  { %3607 = vperm.xlu0 %7148, %v3586_v28   ;;  %v10967_v28 = vadd.f32 1.0, %v4498_v30 }
 0x813   :  { %7115 = vset.pattern.permute.xlu1 %v13338_v44  ;;  %v10848_v25 = vpop.permute.xlu1 %3279  ;;  %v10850_v59 = vpop.permute.xlu0 %3361 }
 0x814   :  { %3887 = vperm.xlu1 %7115, %v10842_v36  }
 0x815   :  { %3647 = vperm.xlu0 %7148, %v3626_v21  }
 0x817   :  { %v10858_v57 = vpop.permute.xlu0 %3959 }
 0x818   :  { %3892 = vperm.xlu1 %7115, %v10853_v6   ;;  %v10861_v20 = vpop.permute.xlu1 %3326 }
 0x819   :  { %4520 = vperm.xlu0 %7148, %v10707_v60   ;;  %v10880_v60 = vadd.f32 -1.0, %v3864_v61  ;;  %v3364_v43 = vsub.f32 %v10861_v20, %v10412_v34  ;;  %v10983_v61 = vld [vmem:[%s12861_s1] ss:$0 sm:$0xff]  ;;  %vm3476_vm15 = vcmp.lt.f32.partialorder %v10412_v34, %v10861_v20 }
 0x81a   :  { %vm3421_vm13 = vcmp.gt.f32.partialorder %v10983_v61, %v10826_v48  ;;  %v11048_v20 = vld [vmem:[%s12863_s3] ss:$0 sm:$0xff] }
 0x81b   :  { %v10871_v63 = vpop.permute.xlu0 %4592  ;;  %v3372_v30 = vmul.f32 0.5, %v3364_v43  ;;  %v11002_v43 = vadd.f32 1.0, %v3867_v23  ;;  %v4254_v23 = vld [vmem:[%s12864_s4 + $0x188] sm:$0xff] }
 0x81c   :  { %13345 = vst [vmem:[#allocation10_spill] sm:$0xff] %v10871_v63  ;;  %7116 = vset.pattern.permute.xlu1 %v13173_v37  ;;  %v10874_v24 = vpop.permute.xlu1 %3336 }
 0x81d   :  { %3969 = vperm.xlu1 %7116, %v10864_v17   ;;  %3897 = vperm.xlu0 %7148, %v10866_v35  }
 0x81f   :  { %v10882_v16 = vpop.permute.xlu0 %4597 }
 0x820   :  { %13346 = vst [vmem:[#allocation8_spill] sm:$0xff] %v10882_v16  ;;  %v10884_v45 = vpop.permute.xlu1 %3341 }
 0x821   :  { %3974 = vperm.xlu1 %7116, %v10878_v10   ;;  %3902 = vperm.xlu0 %7148, %v10880_v60  }
 0x823   :  { %v10894_v33 = vpop.permute.xlu0 %3979 }
 0x824   :  { %13347 = vst [vmem:[#allocation9_spill] sm:$0xff] %v10894_v33  ;;  %v10896_v41 = vpop.permute.xlu1 %3351 }
 0x825   :  { %7117 = vset.pattern.permute.xlu1 %v13338_v44  ;;  %4535 = vperm.xlu0 %7148, %v10716_v13  }
 0x826   :  { %4525 = vperm.xlu1 %7117, %v10889_v11  }
 0x827   :  { %v10909_v3 = vpop.permute.xlu0 %4617 }
 0x828   :  { %13348 = vst [vmem:[#allocation11_spill] sm:$0xff] %v10909_v3  ;;  %v10913_v40 = vpop.permute.xlu1 %3356 }
 0x829   :  { %3912 = vperm.xlu0 %7148, %v10903_v5  }
 0x82a   :  { %7118 = vset.pattern.permute.xlu1 %v13173_v37 }
 0x82b   :  { %4602 = vperm.xlu1 %7118, %v10911_v26   ;;  %v10920_v13 = vpop.permute.xlu0 %4759 }
 0x82c   :  { %13350 = vst [vmem:[#allocation13_spill] sm:$0xff] %v10920_v13  ;;  %v3380_v13 = vmul.f32 8.0, %v3372_v30 }
 0x82d   :  { %v10925_v51 = vpop.permute.xlu1 %3433  ;;  %4540 = vperm.xlu0 %7148, %v10916_v55  }
 0x82e   :  { %v3388_v55 = vfloor.f32 %v3380_v13  ;;  %v11021_v13 = vld [vmem:[%s12860_s0 + $0x1b8] sm:$0xff]  ;;  %vm3461_vm0 = vcmp.lt.f32.partialorder %v10983_v61, %v10925_v51 }
 0x82f   :  { %4607 = vperm.xlu1 %7118, %v10923_v39   ;;  %v10932_v52 = vpop.permute.xlu0 %4771  ;;  %vm3469_vm12 = vmand %vm3421_vm13, %vm3461_vm0  ;;  %vm13359_vm13 = vcmask 64512  }
 0x830   :  { %13351 = vst [vmem:[#allocation15_spill] sm:$0xff] %v10932_v52  ;;  %v3293_v52 = vsub.f32 %v10983_v61, %v10826_v48  ;;  %v3367_v48 = vsub.f32 %v10884_v45, %v10412_v34  ;;  %vm3485_vm3 = vmand %vm3469_vm12, %vm3477_vm9 }
 0x831   :  { %4545 = vperm.xlu0 %7148, %v10720_v56   ;;  %v4173_v56 = vld [vmem:[%s12862_s2 + $0x180] sm:$0xff] }
 0x832   :  { %v10939_v42 = vpop.permute.xlu1 %3493  ;;  %v3301_v63 = vmul.f32 0.5, %v3293_v52 }
 0x833   :  { %7119 = vset.pattern.permute.xlu1 %v13338_v44  ;;  %v10942_v32 = vpop.permute.xlu0 %4779  ;;  %vm3524_vm5 = vcmp.gt.f32.partialorder %v10412_v34, %v10939_v42 }
 0x834   :  { %13353 = vst [vmem:[#allocation7_spill] sm:$0xff] %v10942_v32  ;;  %4530 = vperm.xlu1 %7119, %v10934_v9   ;;  %v3309_v52 = vmul.f32 8.0, %v3301_v63  ;;  %v11028_v63 = vadd.f32 1.0, %v11021_v13 }
 0x835   :  { %3917 = vperm.xlu0 %7148, %v10937_v38  }
 0x836   :  { %v10948_v8 = vpop.permute.xlu1 %3497 }
 0x837   :  { %v10953_v31 = vpop.permute.xlu0 %4783  ;;  %vm3525_vm4 = vcmp.gt.f32.partialorder %v10412_v34, %v10948_v8 }
 0x838   :  { %13354 = vst [vmem:[#allocation16_spill] sm:$0xff] %v10953_v31  ;;  %7120 = vset.pattern.permute.xlu1 %v13173_v37  ;;  %v4253_v31 = vld [vmem:[%s12864_s4 + $0x180] sm:$0xff] }
 0x839   :  { %3984 = vperm.xlu1 %7120, %v10946_v7   ;;  %4182 = vperm.xlu0 %7148, %v4173_v56   ;;  %v3373_v56 = vmul.f32 0.5, %v3365_v19 }
 0x83b   :  { %v10960_v54 = vpop.permute.xlu1 %3289  ;;  %v3381_v19 = vmul.f32 8.0, %v3373_v56 }
 0x83c   :  { %v3255_v1 = vpop.permute.xlu0 %3254 }
 0x83d   :  { %7121 = vset.pattern.permute.xlu1 %v13338_v44  ;;  %4699 = vperm.xlu0 %7148, %v10683_v27   ;;  %v4213_v27 = vld [vmem:[%s12865_s5 + $0x180] sm:$0xff]  ;;  %v3292_v14 = vsub.f32 %v10983_v61, %v3255_v1  ;;  %vm3420_vm10 = vcmp.gt.f32.partialorder %v10983_v61, %v3255_v1 }
 0x83e   :  { %3907 = vperm.xlu1 %7121, %v10958_v2  }
 0x83f   :  { %v10965_v46 = vpop.permute.xlu1 %3437  ;;  %v3300_v32 = vmul.f32 0.5, %v3292_v14 }
 0x840   :  { %v10969_v21 = vpop.permute.xlu0 %3264 }
 0x841   :  { %4070 = vperm.xlu0 %7148, %v10864_v17   ;;  %v3308_v14 = vmul.f32 8.0, %v3300_v32  ;;  %v3294_v42 = vsub.f32 %v10983_v61, %v10969_v21  ;;  %vm3422_vm9 = vcmp.gt.f32.partialorder %v10983_v61, %v10969_v21 }
 0x842   :  { %7122 = vset.pattern.permute.xlu1 %v13173_v37 }
 0x843   :  { %4612 = vperm.xlu1 %7122, %v10967_v28   ;;  %v10987_v18 = vpop.permute.xlu1 %3589  ;;  %v3316_v32 = vfloor.f32 %v3308_v14 }
 0x844   :  { %v10989_v17 = vpop.permute.xlu0 %3274 }
 0x845   :  { %4222 = vperm.xlu0 %7148, %v4213_v27   ;;  %v4806_v27 = vld [vmem:[%s12862_s2 + $0x1c0] sm:$0xff] }
 0x847   :  { %7123 = vset.pattern.permute.xlu1 %v13338_v44  ;;  %v10995_v3 = vpop.permute.xlu1 %3592 }
 0x848   :  { %4062 = vperm.xlu1 %7123, %v10664_v62   ;;  %v11000_v33 = vpop.permute.xlu0 %3284  ;;  %v3389_v62 = vfloor.f32 %v3381_v19  ;;  %v3317_v19 = vfloor.f32 %v3309_v52 }
 0x849   :  { %4262 = vperm.xlu0 %7148, %v4253_v31  }
 0x84a   :  { %v3397_v1 = vmul.f32 8.0, %v3389_v62 }
 0x84c   :  { %7124 = vset.pattern.permute.xlu1 %v13173_v37  ;;  %v11008_v16 = vpop.permute.xlu1 %3501  ;;  %v3430_v38 = vpop.permute.xlu0 %3429  ;;  %v3405_v51 = vadd.f32 %v3397_v1, %v3317_v19  ;;  %v3302_v1 = vmul.f32 0.5, %v3294_v42  ;;  %v3295_v19 = vsub.f32 %v10983_v61, %v10837_v22 }
 0x84d   :  { %vm3460_vm2 = vcmp.lt.f32.partialorder %v10983_v61, %v3430_v38  ;;  %3989 = vperm.xlu1 %7124, %v11002_v43   ;;  %4815 = vperm.xlu0 %7148, %v4806_v27   ;;  %v3396_v38 = vmul.f32 8.0, %v3388_v55  ;;  %v3366_v55 = vsub.f32 %v10874_v24, %v10412_v34 }
 0x84e   :  { %vm3468_vm14 = vmand %vm3420_vm10, %vm3460_vm2  ;;  %v7025_v8 = vtrunc.f32 %v3405_v51  ;;  %vm3612_vm2 = vcmp.ne.s32.totalorder %v10987_v18, %v7631_v15 }
 0x84f   :  { %vm3484_vm8 = vmand %vm3468_vm14, %vm3476_vm15  ;;  %v3404_v56 = vadd.f32 %v3396_v38, %v3316_v32  ;;  %v3374_v32 = vmul.f32 0.5, %v3366_v55  ;;  %v3375_v38 = vmul.f32 0.5, %v3367_v48  ;;  %v7164_v55 = vld [vmem:[%s12866_s6] sm:$0xff] }
 0x850   :  { %v11016_v31 = vpop.permute.xlu1 %3505  ;;  %v3550_v30 = vpop.permute.xlu0 %3549  ;;  %vm11041_vm1 = vmand %vm3484_vm8, %vm3524_vm5  ;;  %v7026_v48 = vcvt.f32.s32 %v7025_v8  ;;  %vm3613_vm5 = vcmp.ne.s32.totalorder %v10995_v3, %v7631_v15 }
 0x851   :  { %7125 = vset.pattern.permute.xlu1 %v13338_v44  ;;  %4265 = vperm.xlu0 %7148, %v4254_v23   ;;  %vm3572_vm7 = vcmp.eq.s32.totalorder %v3550_v30, %v11048_v20  ;;  %v7023_v62 = vtrunc.f32 %v3404_v56  ;;  %v4175_v30 = vld [vmem:[%s12862_s2 + $0x190] sm:$0xff]  ;;  %vm3533_vm10 = vmand %vm3485_vm3, %vm3525_vm4  ;;  %v3383_v18 = vmul.f32 8.0, %v3375_v38  ;;  %vm3462_vm4 = vcmp.lt.f32.partialorder %v10983_v61, %v10965_v46 }
 0x852   :  { %4066 = vperm.xlu1 %7125, %v10830_v53   ;;  %vm3660_vm6 = vmand %vm11041_vm1, %vm3572_vm7 }
 0x853   :  { %v7024_v4 = vcvt.f32.s32 %v7023_v62  ;;  %vm3668_vm14 = vmand %vm3660_vm6, %vm3612_vm2  ;;  %v3303_v62 = vmul.f32 0.5, %v3295_v19  ;;  %v3391_v38 = vfloor.f32 %v3383_v18  ;;  %vm3526_vm2 = vcmp.gt.f32.partialorder %v10412_v34, %v11008_v16 }
 0x854   :  { %v3553_v27 = vpop.permute.xlu0 %3552  ;;  %vm13360_vm6 = vmmov %vm13359_vm13  ;;  %v11151_v18 = vadd.f32 -1.0, %v11021_v13 }
 0x855   :  { %v11036_v14 = vpop.permute.xlu1 %3445  ;;  %4703 = vperm.xlu0 %7148, %v10911_v26   ;;  %v4846_v26 = vld [vmem:[%s12865_s5 + $0x1c0] sm:$0xff]  ;;  %vm3573_vm11 = vcmp.eq.s32.totalorder %v3553_v27, %v11048_v20  ;;  %v3382_v27 = vmul.f32 8.0, %v3374_v32  ;;  %v3311_v3 = vmul.f32 8.0, %v3303_v62 }
 0x856   :  { %7126 = vset.pattern.permute.xlu1 %v13173_v37  ;;  %vm11079_vm15 = vmand %vm3533_vm10, %vm3573_vm11  ;;  %vm3423_vm10 = vcmp.gt.f32.partialorder %v10983_v61, %v10837_v22  ;;  %v11142_v22 = vld [vmem:[%s12861_s1 + $0x1] ss:$0 sm:$0xff] }
 0x857   :  { %3994 = vperm.xlu1 %7126, %v11028_v63   ;;  %v3390_v32 = vfloor.f32 %v3382_v27  ;;  %vm3669_vm1 = vmand %vm11079_vm15, %vm3613_vm5  ;;  %v4215_v27 = vld [vmem:[%s12865_s5 + $0x190] sm:$0xff]  ;;  %v3369_v21 = vsub.f32 %v10896_v41, %v11142_v22  ;;  %vm3479_vm5 = vcmp.lt.f32.partialorder %v11142_v22, %v10884_v45 }
 0x858   :  { %v11062_v23 = vpop.permute.xlu0 %3441  ;;  %vm3470_vm11 = vmand %vm3422_vm9, %vm3462_vm4 }
 0x859   :  { %v11068_v52 = vpop.permute.xlu1 %3595  ;;  %4855 = vperm.xlu0 %7148, %v4846_v26   ;;  %v3310_v26 = vmul.f32 8.0, %v3302_v1  ;;  %vm3463_vm3 = vcmp.lt.f32.partialorder %v10983_v61, %v11062_v23  ;;  %v3319_v23 = vfloor.f32 %v3311_v3  ;;  %v3377_v45 = vmul.f32 0.5, %v3369_v21  ;;  %v11190_v3 = vld [vmem:[%s12860_s0 + $0x1f8] sm:$0xff] }
 0x85a   :  { %vm11134_vm15 = vmand %vm3423_vm10, %vm3463_vm3  ;;  %vm3614_vm9 = vcmp.ne.s32.totalorder %v11068_v52, %v7631_v15  ;;  %v3297_v52 = vsub.f32 %v10983_v61, %v10848_v25  ;;  %v3371_v21 = vsub.f32 %v10850_v59, %v11142_v22 }
 0x85b   :  { %4126 = vperm.xlu1 %7126, %v10842_v36   ;;  %v4847_v36 = vld [vmem:[%s12865_s5 + $0x1c8] sm:$0xff]  ;;  %v3318_v8 = vfloor.f32 %v3310_v26  ;;  %v3296_v26 = vsub.f32 %v10983_v61, %v10989_v17 }
 0x85c   :  { %v3630_v56 = vpop.permute.xlu0 %3629 }
 0x85d   :  { %vm3652_vm8 = vcmp.eq.s32.totalorder %v7024_v4, %v3630_v56  ;;  %v11083_v53 = vpop.permute.xlu1 %3598  ;;  %4188 = vperm.xlu0 %7148, %v4175_v30   ;;  %v3398_v4 = vmul.f32 8.0, %v3390_v32  ;;  %v11108_v56 = vadd.f32 1.0, %v10725_v58  ;;  %v3304_v16 = vmul.f32 0.5, %v3296_v26 }
 0x85e   :  { %vm3676_vm0 = vmand %vm3668_vm14, %vm3652_vm8  ;;  %vm3478_vm14 = vcmp.lt.f32.partialorder %v10412_v34, %v10874_v24  ;;  %v4887_v24 = vld [vmem:[%s12864_s4 + $0x1c8] sm:$0xff] }
 0x85f   :  { %7127 = vset.pattern.permute.xlu1 %v13338_v44  ;;  %v6156_v51 = vsel %vm3676_vm0, 1.0, %v13081_v49  ;;  %vm3486_vm8 = vmand %vm3470_vm11, %vm3478_vm14  ;;  %vm3615_vm14 = vcmp.ne.s32.totalorder %v11083_v53, %v7631_v15  ;;  %v4848_v53 = vld [vmem:[%s12865_s5 + $0x1d0] sm:$0xff] }
 0x860   :  { %4695 = vperm.xlu1 %7127, %v10674_v0   ;;  %6647 = vmatprep.mubr.msk.f32.mxu1 %vm13359_vm13, %v6156_v51  ;;  %v3633_v42 = vpop.permute.xlu0 %3632  ;;  %vm3534_vm13 = vmand %vm3486_vm8, %vm3526_vm2 }
 0x861   :  { %vm3653_vm7 = vcmp.eq.s32.totalorder %v7026_v48, %v3633_v42  ;;  %4858 = vperm.xlu0 %7148, %v4847_v36   ;;  %v3368_v36 = vsub.f32 %v10839_v47, %v10412_v34  ;;  %v4216_v34 = vld [vmem:[%s12865_s5 + $0x198] sm:$0xff] }
 0x862   :  { %vm3677_vm12 = vmand %vm3669_vm1, %vm3653_vm7  ;;  %v11096_v30 = vpop.permute.xlu1 %3509 }
 0x863   :  { %v6157_v1 = vsel %vm3677_vm12, 1.0, %v13081_v49  ;;  %vm3487_vm1 = vmand %vm11134_vm15, %vm3479_vm5  ;;  %v3376_v13 = vmul.f32 0.5, %v3368_v36  ;;  %vm3527_vm12 = vcmp.gt.f32.partialorder %v11142_v22, %v11016_v31  ;;  %v4174_v31 = vld [vmem:[%s12862_s2 + $0x188] sm:$0xff]  ;;  %vm13367_vm15 = vcmask 64512  }
 0x864   :  { %7128 = vset.pattern.permute.xlu1 %v13173_v37  ;;  %6648 = vmatmul.mubr.msk.f32.vlgmr.msra.gmra.mrb[16].mxu1 %vm13360_vm6, %v6157_v1  ;;  %v3556_v0 = vpop.permute.xlu0 %3555  ;;  %vm3535_vm6 = vmand %vm3487_vm1, %vm3527_vm12  ;;  %vm3464_vm1 = vcmp.lt.f32.partialorder %v10983_v61, %v11036_v14 }
 0x865   :  { %4130 = vperm.xlu1 %7128, %v10853_v6   ;;  %4078 = vperm.xlu0 %7148, %v10692_v29   ;;  %v3399_v6 = vmul.f32 8.0, %v3391_v38  ;;  %v3406_v29 = vadd.f32 %v3398_v4, %v3318_v8  ;;  %vm3574_vm0 = vcmp.eq.s32.totalorder %v3556_v0, %v11048_v20  ;;  %v3384_v4 = vmul.f32 8.0, %v3376_v13 }
 0x866   :  { %v11112_v19 = vpop.permute.xlu1 %3513  ;;  %6674 = vmatpush3.msra.mxu1 %v7164_v55  ;;  %vm11166_vm7 = vmand %vm3534_vm13, %vm3574_vm0  ;;  %v3385_v55 = vmul.f32 8.0, %v3377_v45  ;;  %v3299_v13 = vsub.f32 %v10983_v61, %v10960_v54  ;;  %vm3424_vm13 = vcmp.gt.f32.partialorder %v10983_v61, %v10989_v17 }
 0x867   :  { %v7027_v48 = vtrunc.f32 %v3406_v29  ;;  %v3407_v42 = vadd.f32 %v3399_v6, %v3319_v23  ;;  %vm3670_vm3 = vmand %vm11166_vm7, %vm3614_vm9  ;;  %v4256_v6 = vld [vmem:[%s12864_s4 + $0x198] sm:$0xff]  ;;  %v3312_v29 = vmul.f32 8.0, %v3304_v16  ;;  %v3392_v26 = vfloor.f32 %v3384_v4 }
 0x868   :  { %v3559_v58 = vpop.permute.xlu0 %3558  ;;  %vm13368_vm7 = vmmov %vm13367_vm15  ;;  %v3307_v14 = vmul.f32 0.5, %v3299_v13 }
 0x869   :  { %4622 = vperm.xlu1 %7128, %v11108_v56   ;;  %4228 = vperm.xlu0 %7148, %v4215_v27   ;;  %vm3575_vm4 = vcmp.eq.s32.totalorder %v3559_v58, %v11048_v20  ;;  %v7028_v8 = vcvt.f32.s32 %v7027_v48  ;;  %v7029_v1 = vtrunc.f32 %v3407_v42  ;;  %v11207_v58 = vadd.f32 1.0, %v11190_v3  ;;  %vm11240_vm9 = vmand %vm3424_vm13, %vm3464_vm1 }
 0x86a   :  { %vm11196_vm11 = vmand %vm3535_vm6, %vm3575_vm4  ;;  %v3305_v48 = vmul.f32 0.5, %v3297_v52  ;;  %v3393_v42 = vfloor.f32 %v3385_v55  ;;  %v3320_v32 = vfloor.f32 %v3312_v29  ;;  %vm3425_vm4 = vcmp.gt.f32.partialorder %v10983_v61, %v10848_v25  ;;  %v4177_v52 = vld [vmem:[%s12862_s2 + $0x1a0] sm:$0xff]  ;;  %v4218_v55 = vld [vmem:[%s12865_s5 + $0x1a8] sm:$0xff] }
 0x86b   :  { %v11160_v51 = vpop.permute.xlu1 %3453  ;;  %v7030_v46 = vcvt.f32.s32 %v7029_v1  ;;  %vm3671_vm8 = vmand %vm11196_vm11, %vm3615_vm14  ;;  %vm3528_vm6 = vcmp.gt.f32.partialorder %v11142_v22, %v11096_v30  ;;  %vm3481_vm14 = vcmp.lt.f32.partialorder %v11142_v22, %v10896_v41 }
 0x86c   :  { %v11164_v62 = vpop.permute.xlu0 %3449  ;;  %v3313_v1 = vmul.f32 8.0, %v3305_v48  ;;  %v3401_v27 = vmul.f32 8.0, %v3393_v42 }
 0x86d   :  { %7129 = vset.pattern.permute.xlu1 %v13338_v44  ;;  %4898 = vperm.xlu0 %7148, %v4887_v24   ;;  %vm3465_vm12 = vcmp.lt.f32.partialorder %v10983_v61, %v11164_v62  ;;  %v3298_v62 = vsub.f32 %v10983_v61, %v11000_v33 }
 0x86e   :  { %3922 = vperm.xlu1 %7129, %v11151_v18   ;;  %vm11254_vm11 = vmand %vm3425_vm4, %vm3465_vm12 }
 0x86f   :  { %v11180_v38 = vpop.permute.xlu1 %3601 }
 0x870   :  { %v3636_v0 = vpop.permute.xlu0 %3635  ;;  %vm3616_vm1 = vcmp.ne.s32.totalorder %v11180_v38, %v7631_v15  ;;  %v4260_v38 = vld [vmem:[%s12864_s4 + $0x1b8] sm:$0xff] }
 0x871   :  { %vm3654_vm10 = vcmp.eq.s32.totalorder %v7028_v8, %v3636_v0  ;;  %4231 = vperm.xlu0 %7148, %v4216_v34   ;;  %v3379_v34 = vmul.f32 0.5, %v3371_v21  ;;  %v3370_v0 = vsub.f32 %v10913_v40, %v11142_v22  ;;  %v3315_v21 = vmul.f32 8.0, %v3307_v14 }
 0x872   :  { %vm3678_vm2 = vmand %vm3670_vm3, %vm3654_vm10  ;;  %4185 = vperm.xlu1 %7129, %v4174_v31   ;;  %v3400_v31 = vmul.f32 8.0, %v3392_v26  ;;  %vm3480_vm3 = vcmp.lt.f32.partialorder %v11142_v22, %v10839_v47  ;;  %v4214_v47 = vld [vmem:[%s12865_s5 + $0x188] sm:$0xff] }
 0x873   :  { %v11203_v23 = vpop.permute.xlu1 %3604  ;;  %v6158_v36 = vsel %vm3678_vm2, 1.0, %v13081_v49  ;;  %v3387_v17 = vmul.f32 8.0, %v3379_v34  ;;  %vm3488_vm10 = vmand %vm11240_vm9, %vm3480_vm3  ;;  %vm3427_vm9 = vcmp.gt.f32.partialorder %v10983_v61, %v10960_v54  ;;  %v4217_v54 = vld [vmem:[%s12865_s5 + $0x1a0] sm:$0xff] }
 0x874   :  { %6650 = vmatprep.mubr.msk.f32.mxu1 %vm13367_vm15, %v6158_v36  ;;  %v3639_v24 = vpop.permute.xlu0 %3638  ;;  %v3408_v25 = vadd.f32 %v3400_v31, %v3320_v32  ;;  %v3321_v36 = vfloor.f32 %v3313_v1  ;;  %vm3536_vm15 = vmand %vm3488_vm10, %vm3528_vm6 }
 0x875   :  { %vm3655_vm0 = vcmp.eq.s32.totalorder %v7030_v46, %v3639_v24  ;;  %4271 = vperm.xlu0 %7148, %v4256_v6   ;;  %v3378_v46 = vmul.f32 0.5, %v3370_v0  ;;  %v3306_v24 = vmul.f32 0.5, %v3298_v62  ;;  %v3395_v42 = vfloor.f32 %v3387_v17  ;;  %v4889_v62 = vld [vmem:[%s12864_s4 + $0x1d8] sm:$0xff] }
 0x876   :  { %vm3679_vm5 = vmand %vm3671_vm8, %vm3655_vm0  ;;  %7130 = vset.pattern.permute.xlu1 %v13173_v37  ;;  %v7031_v26 = vtrunc.f32 %v3408_v25  ;;  %v3409_v48 = vadd.f32 %v3401_v27, %v3321_v36 }
 0x877   :  { %4627 = vperm.xlu1 %7130, %v11207_v58   ;;  %v6159_v45 = vsel %vm3679_vm5, 1.0, %v13081_v49  ;;  %vm3489_vm8 = vmand %vm11254_vm11, %vm3481_vm14  ;;  %v3386_v41 = vmul.f32 8.0, %v3378_v46  ;;  %vm3529_vm5 = vcmp.gt.f32.partialorder %v11142_v22, %v11112_v19  ;;  %v3314_v32 = vmul.f32 8.0, %v3306_v24  ;;  %v4807_v46 = vld [vmem:[%s12862_s2 + $0x1c8] sm:$0xff]  ;;  %v4259_v19 = vld [vmem:[%s12864_s4 + $0x1b0] sm:$0xff] }
 0x878   :  { %v11228_v16 = vpop.permute.xlu1 %3517  ;;  %6651 = vmatmul.mubr.msk.f32.gmra.mrb[18].mxu1 %vm13368_vm7, %v6159_v45  ;;  %v3562_v8 = vpop.permute.xlu0 %3561  ;;  %vm3537_vm7 = vmand %vm3489_vm8, %vm3529_vm5  ;;  %v7032_v45 = vcvt.f32.s32 %v7031_v26  ;;  %v7033_v34 = vtrunc.f32 %v3409_v48  ;;  %vm3483_vm14 = vcmp.lt.f32.partialorder %v11142_v22, %v10850_v59 }
 0x879   :  { %4861 = vperm.xlu0 %7148, %v4848_v53   ;;  %vm3576_vm2 = vcmp.eq.s32.totalorder %v3562_v8, %v11048_v20  ;;  %v3323_v53 = vfloor.f32 %v3315_v21  ;;  %v3403_v8 = vmul.f32 8.0, %v3395_v42  ;;  %v3394_v1 = vfloor.f32 %v3386_v41  ;;  %v4850_v21 = vld [vmem:[%s12865_s5 + $0x1e0] sm:$0xff]  ;;  %v4179_v42 = vld [vmem:[%s12862_s2 + $0x1b0] sm:$0xff] }
 0x87a   :  { %vm3664_vm0 = vmand %vm3536_vm15, %vm3576_vm2  ;;  %v3322_v4 = vfloor.f32 %v3314_v32  ;;  %vm3617_vm2 = vcmp.ne.s32.totalorder %v11203_v23, %v7631_v15  ;;  %vm13377_vm15 = vcmask 64512  }
 0x87b   :  { %7131 = vset.pattern.permute.xlu1 %v13338_v44  ;;  %vm3672_vm4 = vmand %vm3664_vm0, %vm3616_vm1  ;;  %v3411_v14 = vadd.f32 %v3403_v8, %v3323_v53  ;;  %v3402_v27 = vmul.f32 8.0, %v3394_v1  ;;  %vm3466_vm1 = vcmp.lt.f32.partialorder %v10983_v61, %v11160_v51 }
 0x87c   :  { %4074 = vperm.xlu1 %7131, %v10878_v10   ;;  %v11259_v6 = vpop.permute.xlu1 %3521  ;;  %v3565_v29 = vpop.permute.xlu0 %3564  ;;  %v4849_v10 = vld [vmem:[%s12865_s5 + $0x1d8] sm:$0xff] }
 0x87d   :  { %4194 = vperm.xlu0 %7148, %v4177_v52   ;;  %vm3577_vm13 = vcmp.eq.s32.totalorder %v3565_v29, %v11048_v20  ;;  %v7034_v52 = vcvt.f32.s32 %v7033_v34  ;;  %v7037_v59 = vtrunc.f32 %v3411_v14 }
 0x87e   :  { %vm11285_vm6 = vmand %vm3537_vm7, %vm3577_vm13  ;;  %vm3426_vm13 = vcmp.gt.f32.partialorder %v10983_v61, %v11000_v33 }
 0x87f   :  { %vm3673_vm8 = vmand %vm11285_vm6, %vm3617_vm2  ;;  %v7038_v33 = vcvt.f32.s32 %v7037_v59 }
 0x880   :  { %4225 = vperm.xlu1 %7131, %v4214_v47   ;;  %v3458_v13 = vpop.permute.xlu0 %3457  ;;  %vm3474_vm6 = vmand %vm3426_vm13, %vm3466_vm1 }
 0x881   :  { %v3571_v30 = vpop.permute.xlu1 %3570  ;;  %4864 = vperm.xlu0 %7148, %v4849_v10   ;;  %vm3467_vm12 = vcmp.lt.f32.partialorder %v10983_v61, %v3458_v13 }
 0x882   :  { %vm11290_vm3 = vmand %vm3427_vm9, %vm3467_vm12  ;;  %vm3531_vm12 = vcmp.gt.f32.partialorder %v11142_v22, %v11259_v6  ;;  %v11331_v6 = vadd.f32 -1.0, %v11190_v3 }
 0x883   :  { %vm3491_vm0 = vmand %vm11290_vm3, %vm3483_vm14  ;;  %vm3530_vm3 = vcmp.gt.f32.partialorder %v11142_v22, %v11228_v16 }
 0x884   :  { %4550 = vperm.xlu1 %7131, %v10730_v50   ;;  %v3642_v31 = vpop.permute.xlu0 %3641  ;;  %vm13378_vm9 = vmmov %vm13377_vm15 }
 0x885   :  { %vm3656_vm11 = vcmp.eq.s32.totalorder %v7032_v45, %v3642_v31  ;;  %v3611_v0 = vpop.permute.xlu1 %3610  ;;  %4086 = vperm.xlu0 %7148, %v11002_v43   ;;  %v4180_v45 = vld [vmem:[%s12862_s2 + $0x1b8] sm:$0xff] }
 0x886   :  { %vm3680_vm10 = vmand %vm3672_vm4, %vm3656_vm11  ;;  %vm3579_vm11 = vcmp.eq.s32.totalorder %v3571_v30, %v11048_v20  ;;  %vm3619_vm14 = vcmp.ne.s32.totalorder %v3611_v0, %v7631_v15  ;;  %v4851_v30 = vld [vmem:[%s12865_s5 + $0x1e8] sm:$0xff] }
 0x887   :  { %v6160_v50 = vsel %vm3680_vm10, 1.0, %v13081_v49  ;;  %vm3539_vm4 = vmand %vm3491_vm0, %vm3531_vm12  ;;  %vm3482_vm10 = vcmp.lt.f32.partialorder %v11142_v22, %v10913_v40  ;;  %v4258_v40 = vld [vmem:[%s12864_s4 + $0x1a8] sm:$0xff] }
 0x888   :  { %7132 = vset.pattern.permute.xlu1 %v13173_v37  ;;  %6653 = vmatprep.mubr.msk.f32.mxu1 %vm13377_vm15, %v6160_v50  ;;  %v3645_v43 = vpop.permute.xlu0 %3644  ;;  %vm3667_vm2 = vmand %vm3539_vm4, %vm3579_vm11  ;;  %v4892_v50 = vld [vmem:[%s12864_s4 + $0x1f0] sm:$0xff] }
 0x889   :  { %vm3657_vm5 = vcmp.eq.s32.totalorder %v7034_v52, %v3645_v43  ;;  %4763 = vperm.xlu1 %7132, %v10889_v11   ;;  %v3651_v23 = vpop.permute.xlu1 %3650  ;;  %4234 = vperm.xlu0 %7148, %v4217_v54   ;;  %v3410_v11 = vadd.f32 %v3402_v27, %v3322_v4  ;;  %vm3490_vm15 = vmand %vm3474_vm6, %vm3482_vm10  ;;  %v4852_v54 = vld [vmem:[%s12865_s5 + $0x1f0] sm:$0xff] }
 0x88a   :  { %vm3681_vm7 = vmand %vm3673_vm8, %vm3657_vm5  ;;  %vm3659_vm8 = vcmp.eq.s32.totalorder %v7038_v33, %v3651_v23  ;;  %v4808_v27 = vld [vmem:[%s12862_s2 + $0x1d0] sm:$0xff] }
 0x88b   :  { %v6161_v25 = vsel %vm3681_vm7, 1.0, %v13081_v49  ;;  %vm3538_vm0 = vmand %vm3490_vm15, %vm3530_vm3  ;;  %vm13381_vm3 = vcmask 64512  }
 0x88c   :  { %6654 = vmatmul.mubr.msk.f32.gmra.mrb[20].mxu1 %vm13378_vm9, %v6161_v25  ;;  %v3568_v17 = vpop.permute.xlu0 %3567  ;;  %vm3675_vm13 = vmand %vm3667_vm2, %vm3619_vm14 }
 0x88d   :  { %4134 = vperm.xlu1 %7132, %v10866_v35   ;;  %4904 = vperm.xlu0 %7148, %v4889_v62   ;;  %v7035_v35 = vtrunc.f32 %v3410_v11  ;;  %vm3578_vm5 = vcmp.eq.s32.totalorder %v3568_v17, %v11048_v20  ;;  %vm11343_vm7 = vmand %vm3675_vm13, %vm3659_vm8  ;;  %v3997_v11 = vsub.f32 %v10858_v57, %v11142_v22  ;;  %v5142_v17 = vld [vmem:[%s12867_s7 + $0x68] sm:$0xff] }
 0x88e   :  { %v11325_v51 = vpop.permute.xlu1 %3964  ;;  %vm3666_vm12 = vmand %vm3538_vm0, %vm3578_vm5  ;;  %v6163_v48 = vsel %vm11343_vm7, 1.0, %v13081_v49  ;;  %vm4109_vm5 = vcmp.lt.f32.partialorder %v11142_v22, %v10858_v57 }
 0x88f   :  { %v7036_v36 = vcvt.f32.s32 %v7035_v35  ;;  %vm13382_vm11 = vmmov %vm13381_vm3  ;;  %v4005_v35 = vmul.f32 0.5, %v3997_v11  ;;  %v4810_v11 = vld [vmem:[%s12862_s2 + $0x1e0] sm:$0xff] }
 0x890   :  { %v3608_v16 = vpop.permute.xlu0 %3607 }
 0x891   :  { %7133 = vset.pattern.permute.xlu1 %v13338_v44  ;;  %4237 = vperm.xlu0 %7148, %v4218_v55   ;;  %vm3618_vm1 = vcmp.ne.s32.totalorder %v3608_v16, %v7631_v15  ;;  %v4809_v55 = vld [vmem:[%s12862_s2 + $0x1d8] sm:$0xff]  ;;  %v4013_v3 = vmul.f32 8.0, %v4005_v35 }
 0x892   :  { %4555 = vperm.xlu1 %7133, %v11331_v6   ;;  %vm3674_vm4 = vmand %vm3666_vm12, %vm3618_vm1 }
 0x893   :  { %v11347_v29 = vpop.permute.xlu1 %3887 }
 0x894   :  { %v3648_v47 = vpop.permute.xlu0 %3647  ;;  %vm4053_vm8 = vcmp.gt.f32.partialorder %v10983_v61, %v11347_v29 }
 0x895   :  { %vm3658_vm9 = vcmp.eq.s32.totalorder %v7036_v36, %v3648_v47  ;;  %4277 = vperm.xlu0 %7148, %v4258_v40   ;;  %v4021_v47 = vfloor.f32 %v4013_v3  ;;  %v13387_v3 = vld [vmem:[#allocation17_spill] sm:$0xff] }
 0x896   :  { %vm3682_vm6 = vmand %vm3674_vm4, %vm3658_vm9  ;;  %4818 = vperm.xlu1 %7133, %v4807_v46  }
 0x897   :  { %v11355_v10 = vpop.permute.xlu1 %3892  ;;  %v6162_v24 = vsel %vm3682_vm6, 1.0, %v13081_v49 }
 0x898   :  { %6656 = vmatprep.mubr.msk.f32.mxu1 %vm13381_vm3, %v6162_v24  ;;  %v11359_v26 = vpop.permute.xlu0 %4520  ;;  %v4029_v24 = vmul.f32 8.0, %v4021_v47 }
 0x899   :  { %4867 = vperm.xlu0 %7148, %v4850_v21   ;;  %6657 = vmatmul.mubr.msk.f32.gmra.mrb[22].mxu1 %vm13382_vm11, %v6163_v48  ;;  %v4888_v48 = vld [vmem:[%s12864_s4 + $0x1d0] sm:$0xff] }
 0x89a   :  { %7134 = vset.pattern.permute.xlu1 %v13173_v37 }
 0x89b   :  { %4138 = vperm.xlu1 %7134, %v10880_v60   ;;  %v4886_v60 = vld [vmem:[%s12864_s4 + $0x1c0] sm:$0xff] }
 0x89c   :  { %v11370_v13 = vpop.permute.xlu1 %3969  ;;  %v11372_v41 = vpop.permute.xlu0 %3897 }
 0x89d   :  { %4200 = vperm.xlu0 %7148, %v4179_v42   ;;  %vm4055_vm10 = vcmp.gt.f32.partialorder %v10983_v61, %v11372_v41 }
 0x89f   :  { %7135 = vset.pattern.permute.xlu1 %v13338_v44 }
 0x8a0   :  { %4707 = vperm.xlu1 %7135, %v10923_v39   ;;  %v11379_v53 = vpop.permute.xlu1 %3974  ;;  %v11381_v32 = vpop.permute.xlu0 %3902  ;;  %v4176_v39 = vld [vmem:[%s12862_s2 + $0x198] sm:$0xff] }
 0x8a1   :  { %4870 = vperm.xlu0 %7148, %v4851_v30  }
 0x8a4   :  { %4895 = vperm.xlu1 %7135, %v4886_v60   ;;  %v11389_v34 = vpop.permute.xlu0 %4535 }
 0x8a5   :  { %v11391_v8 = vpop.permute.xlu1 %4525  ;;  %4203 = vperm.xlu0 %7148, %v4180_v45  }
 0x8a8   :  { %4191 = vperm.xlu1 %7135, %v4176_v39   ;;  %v11399_v31 = vpop.permute.xlu0 %3912 }
 0x8a9   :  { %4280 = vperm.xlu0 %7148, %v4259_v19  }
 0x8aa   :  { %v11401_v1 = vpop.permute.xlu1 %4602 }
 0x8ac   :  { %7136 = vset.pattern.permute.xlu1 %v13173_v37  ;;  %v11407_v0 = vpop.permute.xlu0 %4540 }
 0x8ad   :  { %4767 = vperm.xlu1 %7136, %v10934_v9   ;;  %4283 = vperm.xlu0 %7148, %v4260_v38   ;;  %v4255_v9 = vld [vmem:[%s12864_s4 + $0x190] sm:$0xff] }
 0x8ae   :  { %v11410_v14 = vpop.permute.xlu1 %4607 }
 0x8b0   :  { %v11415_v4 = vpop.permute.xlu0 %4545 }
 0x8b1   :  { %7137 = vset.pattern.permute.xlu1 %v13338_v44  ;;  %4873 = vperm.xlu0 %7148, %v4852_v54  }
 0x8b2   :  { %4082 = vperm.xlu1 %7137, %v10946_v7  }
 0x8b3   :  { %v11422_v52 = vpop.permute.xlu1 %4530 }
 0x8b4   :  { %v11427_v43 = vpop.permute.xlu0 %3917 }
 0x8b5   :  { %4913 = vperm.xlu0 %7148, %v4892_v50   ;;  %v3998_v50 = vsub.f32 %v11325_v51, %v11142_v22 }
 0x8b6   :  { %4268 = vperm.xlu1 %7137, %v4255_v9   ;;  %v4257_v9 = vld [vmem:[%s12864_s4 + $0x1a0] sm:$0xff] }
 0x8b8   :  { %v11432_v23 = vpop.permute.xlu1 %3984  ;;  %v4183_v7 = vpop.permute.xlu0 %4182 }
 0x8b9   :  { %vm4205_vm7 = vcmp.eq.s32.totalorder %v4183_v7, %v11048_v20 }
 0x8ba   :  { %4821 = vperm.xlu1 %7137, %v4808_v27   ;;  %v3926_v27 = vsub.f32 %v10983_v61, %v11355_v10 }
 0x8bc   :  { %v11434_v59 = vpop.permute.xlu0 %4699 }
 0x8bd   :  { %v11436_v62 = vpop.permute.xlu1 %3907 }
 0x8be   :  { %7138 = vset.pattern.permute.xlu1 %v13173_v37 }
 0x8bf   :  { %4142 = vperm.xlu1 %7138, %v10958_v2   ;;  %v3925_v2 = vsub.f32 %v10983_v61, %v11347_v29  ;;  %v13385_v29 = vld [vmem:[#allocation12_spill] sm:$0xff] }
 0x8c0   :  { %v4071_v25 = vpop.permute.xlu0 %4070 }
 0x8c1   :  { %vm4095_vm2 = vcmp.lt.f32.partialorder %v10983_v61, %v4071_v25  ;;  %v3933_v40 = vmul.f32 0.5, %v3925_v2  ;;  %v4006_v25 = vmul.f32 0.5, %v3998_v50 }
 0x8c2   :  { %vm11445_vm14 = vmand %vm4055_vm10, %vm4095_vm2  ;;  %v11449_v33 = vpop.permute.xlu1 %4612  ;;  %vm13386_vm10 = vcmask 64512  }
 0x8c3   :  { %7139 = vset.pattern.permute.xlu1 %v13338_v44  ;;  %v3941_v36 = vmul.f32 8.0, %v3933_v40  ;;  %v4014_v2 = vmul.f32 8.0, %v4006_v25 }
 0x8c4   :  { %4711 = vperm.xlu1 %7139, %v10967_v28   ;;  %v4223_v30 = vpop.permute.xlu0 %4222 }
 0x8c5   :  { %v3949_v21 = vfloor.f32 %v3941_v36  ;;  %vm4245_vm4 = vcmp.ne.s32.totalorder %v4223_v30, %v7631_v15  ;;  %v4022_v40 = vfloor.f32 %v4014_v2  ;;  %v4811_v30 = vld [vmem:[%s12862_s2 + $0x1e8] sm:$0xff]  ;;  %v5183_v2 = vld [vmem:[%s12867_s7 + $0x1a0] sm:$0xff] }
 0x8c7   :  { %v4063_v16 = vpop.permute.xlu1 %4062  ;;  %v4037_v42 = vadd.f32 %v4029_v24, %v3949_v21  ;;  %v4030_v21 = vmul.f32 8.0, %v4022_v40 }
 0x8c8   :  { %4824 = vperm.xlu1 %7139, %v4809_v55   ;;  %vm4093_vm15 = vcmp.lt.f32.partialorder %v10983_v61, %v4063_v16  ;;  %v4263_v39 = vpop.permute.xlu0 %4262 }
 0x8c9   :  { %vm4101_vm0 = vmand %vm4053_vm8, %vm4093_vm15  ;;  %vm4054_vm15 = vcmp.gt.f32.partialorder %v10983_v61, %v11355_v10  ;;  %v5164_v10 = vld [vmem:[%s12867_s7 + $0x108] sm:$0xff] }
 0x8ca   :  { %vm4117_vm13 = vmand %vm4101_vm0, %vm4109_vm5  ;;  %vm4110_vm5 = vcmp.lt.f32.partialorder %v11142_v22, %v11325_v51  ;;  %v5182_v51 = vld [vmem:[%s12867_s7 + $0x198] sm:$0xff] }
 0x8cc   :  { %7140 = vset.pattern.permute.xlu1 %v13173_v37  ;;  %v11459_v46 = vpop.permute.xlu1 %3989  ;;  %v11504_v16 = vpop.permute.xlu0 %4815 }
 0x8cd   :  { %4146 = vperm.xlu1 %7140, %v10903_v5   ;;  %v4178_v5 = vld [vmem:[%s12862_s2 + $0x1a8] sm:$0xff] }
 0x8d0   :  { %v4266_v24 = vpop.permute.xlu0 %4265 }
 0x8d1   :  { %7141 = vset.pattern.permute.xlu1 %v13338_v44  ;;  %v11463_v28 = vpop.permute.xlu1 %4066 }
 0x8d2   :  { %4715 = vperm.xlu1 %7141, %v10703_v12   ;;  %v7039_v12 = vtrunc.f32 %v4037_v42  ;;  %vm4094_vm2 = vcmp.lt.f32.partialorder %v10983_v61, %v11463_v28  ;;  %v5163_v61 = vld [vmem:[%s12867_s7 + $0x100] sm:$0xff] }
 0x8d3   :  { %vm4102_vm8 = vmand %vm4054_vm15, %vm4094_vm2 }
 0x8d4   :  { %v7040_v19 = vcvt.f32.s32 %v7039_v12 }
 0x8d6   :  { %4901 = vperm.xlu1 %7141, %v4888_v48   ;;  %v11470_v60 = vpop.permute.xlu1 %3994  ;;  %vm4285_vm6 = vcmp.eq.s32.totalorder %v7040_v19, %v4263_v39  ;;  %v11527_v39 = vpop.permute.xlu0 %4703 }
 0x8da   :  { %4197 = vperm.xlu1 %7141, %v4178_v5   ;;  %v4127_v45 = vpop.permute.xlu1 %4126 }
 0x8db   :  { %vm4157_vm1 = vcmp.gt.f32.partialorder %v11142_v22, %v4127_v45  ;;  %v5180_v45 = vld [vmem:[%s12867_s7 + $0x188] sm:$0xff] }
 0x8dc   :  { %vm4165_vm12 = vmand %vm4117_vm13, %vm4157_vm1 }
 0x8dd   :  { %vm4293_vm9 = vmand %vm4165_vm12, %vm4205_vm7 }
 0x8de   :  { %vm4301_vm3 = vmand %vm4293_vm9, %vm4245_vm4  ;;  %7142 = vset.pattern.permute.xlu1 %v13173_v37 }
 0x8df   :  { %4775 = vperm.xlu1 %7142, %v13385_v29   ;;  %v11484_v57 = vpop.permute.xlu1 %4695  ;;  %vm4309_vm11 = vmand %vm4301_vm3, %vm4285_vm6 }
 0x8e0   :  { %v6180_v38 = vsel %vm4309_vm11, 1.0, %v13081_v49  ;;  %vm4118_vm1 = vmand %vm4102_vm8, %vm4110_vm5 }
 0x8e1   :  { %6661 = vmatprep.mubr.msk.f32.mxu0 %vm13386_vm10, %v6180_v38  ;;  %v6689_v38 = vpack.c.bf16 %v5164_v10, %v5163_v61  ;;  %vm13388_vm11 = vmmov %vm13386_vm10  ;;  %v5185_v61 = vld [vmem:[%s12867_s7 + $0x1b0] sm:$0xff]  ;;  %v5186_v10 = vld [vmem:[%s12867_s7 + $0x1b8] sm:$0xff] }
 0x8e3   :  { %7143 = vset.pattern.permute.xlu1 %v13338_v44 }
 0x8e4   :  { %4090 = vperm.xlu1 %7143, %v11028_v63   ;;  %v4131_v54 = vpop.permute.xlu1 %4130  ;;  %v3934_v63 = vmul.f32 0.5, %v3926_v27 }
 0x8e5   :  { %vm4158_vm0 = vcmp.gt.f32.partialorder %v11142_v22, %v4131_v54  ;;  %v11548_v54 = vpop.permute.xlu0 %4855 }
 0x8e6   :  { %v3942_v35 = vmul.f32 8.0, %v3934_v63  ;;  %vm4166_vm7 = vmand %vm4118_vm1, %vm4158_vm0 }
 0x8e8   :  { %4274 = vperm.xlu1 %7143, %v4257_v9   ;;  %v11497_v7 = vpop.permute.xlu1 %4622  ;;  %v3950_v47 = vfloor.f32 %v3942_v35  ;;  %v5166_v9 = vld [vmem:[%s12867_s7 + $0x118] sm:$0xff]  ;;  %v5184_v35 = vld [vmem:[%s12867_s7 + $0x1a8] sm:$0xff] }
 0x8e9   :  { %v6695_v40 = vpack.c.bf16 %v5184_v35, %v5183_v2  ;;  %v5188_v2 = vld [vmem:[%s12867_s7 + $0x1c8] sm:$0xff] }
 0x8ea   :  { %v4038_v42 = vadd.f32 %v4030_v21, %v3950_v47  ;;  %v13390_v21 = vld [vmem:[#allocation10_spill] sm:$0xff] }
 0x8eb   :  { %vm4742_vm5 = vcmp.lt.f32.partialorder %v11142_v22, %v13390_v21 }
 0x8ec   :  { %4827 = vperm.xlu1 %7143, %v4810_v11   ;;  %v7041_v5 = vtrunc.f32 %v4038_v42  ;;  %v4890_v11 = vld [vmem:[%s12864_s4 + $0x1e0] sm:$0xff]  ;;  %v11581_v42 = vpop.permute.xlu0 %4188 }
 0x8ed   :  { %v11502_v55 = vpop.permute.xlu1 %3922 }
 0x8ee   :  { %v7042_v19 = vcvt.f32.s32 %v7041_v5  ;;  %v11588_v5 = vld [vmem:[%s12861_s1] ss:$0 sm:$0xff] }
 0x8ef   :  { %vm4726_vm10 = vcmp.lt.f32.partialorder %v11588_v5, %v11484_v57  ;;  %vm4686_vm2 = vcmp.gt.f32.partialorder %v11588_v5, %v11359_v26  ;;  %vm4727_vm15 = vcmp.lt.f32.partialorder %v11588_v5, %v11434_v59  ;;  %vm4687_vm0 = vcmp.gt.f32.partialorder %v11588_v5, %v11391_v8 }
 0x8f0   :  { %7144 = vset.pattern.permute.xlu1 %v13173_v37  ;;  %vm4286_vm9 = vcmp.eq.s32.totalorder %v7042_v19, %v4266_v24  ;;  %v4630_v24 = vsub.f32 %v13390_v21, %v11142_v22  ;;  %v4558_v19 = vsub.f32 %v11588_v5, %v11359_v26  ;;  %vm11668_vm8 = vmand %vm4686_vm2, %vm4726_vm10  ;;  %v3927_v26 = vsub.f32 %v11588_v5, %v11372_v41 }
 0x8f1   :  { %4150 = vperm.xlu1 %7144, %v13387_v3   ;;  %v4186_v36 = vpop.permute.xlu1 %4185  ;;  %v5168_v3 = vld [vmem:[%s12867_s7 + $0x128] sm:$0xff]  ;;  %vm11699_vm1 = vmand %vm11668_vm8, %vm4742_vm5  ;;  %vm4878_vm5 = vcmp.ne.s32.totalorder %v11548_v54, %v7631_v15  ;;  %v5147_v54 = vld [vmem:[%s12867_s7 + $0x90] sm:$0xff] }
 0x8f2   :  { %vm4206_vm13 = vcmp.eq.s32.totalorder %v4186_v36, %v11048_v20  ;;  %v5181_v20 = vld [vmem:[%s12867_s7 + $0x190] sm:$0xff]  ;;  %v13389_v36 = vld [vmem:[#allocation8_spill] sm:$0xff]  ;;  %v4566_v35 = vmul.f32 0.5, %v4558_v19 }
 0x8f3   :  { %vm4294_vm12 = vmand %vm4166_vm7, %vm4206_vm13  ;;  %v6691_v50 = vpack.c.bf16 %v5182_v51, %v5181_v20  ;;  %v4631_v47 = vsub.f32 %v13389_v36, %v11142_v22  ;;  %v5169_v20 = vld [vmem:[%s12867_s7 + $0x130] sm:$0xff]  ;;  %v5170_v51 = vld [vmem:[%s12867_s7 + $0x138] sm:$0xff]  ;;  %vm4743_vm7 = vcmp.lt.f32.partialorder %v11142_v22, %v13389_v36 }
 0x8f4   :  { %v5189_v19 = vld [vmem:[%s12867_s7 + $0x1d0] sm:$0xff]  ;;  %vm11689_vm13 = vmand %vm4687_vm0, %vm4727_vm15 }
 0x8f5   :  { %7145 = vset.pattern.permute.xlu1 %v13338_v44 }
 0x8f6   :  { %4719 = vperm.xlu1 %7145, %v11108_v56   ;;  %v11510_v48 = vpop.permute.xlu1 %4627  ;;  %v5179_v56 = vld [vmem:[%s12867_s7 + $0x180] sm:$0xff] }
 0x8f7   :  { %v6687_v28 = vpack.c.bf16 %v5180_v45, %v5179_v56  ;;  %v4559_v56 = vsub.f32 %v11588_v5, %v11391_v8  ;;  %v4219_v45 = vld [vmem:[%s12865_s5 + $0x1b0] sm:$0xff] }
 0x8f8   :  { %v5193_v8 = vld [vmem:[%s12867_s7 + $0x1f0] sm:$0xff] }
 0x8f9   :  { %6688 = vmatprep.subr.bf16.mxu0 %v6687_v28 }
 0x8fa   :  { %4830 = vperm.xlu1 %7145, %v4811_v30  }
 0x8fb   :  { %v11519_v12 = vpop.permute.xlu1 %4074 }
 0x8fe   :  { %7146 = vset.pattern.permute.xlu1 %v13173_v37 }
 0x8ff   :  { %4154 = vperm.xlu1 %7146, %v11151_v18   ;;  %v4226_v29 = vpop.permute.xlu1 %4225  ;;  %v5165_v18 = vld [vmem:[%s12867_s7 + $0x110] sm:$0xff] }
 0x900   :  { %vm4246_vm4 = vcmp.ne.s32.totalorder %v4226_v29, %v7631_v15  ;;  %v6693_v63 = vpack.c.bf16 %v5166_v9, %v5165_v18  ;;  %v6699_v29 = vpack.c.bf16 %v5186_v10, %v5185_v61  ;;  %v4567_v9 = vmul.f32 0.5, %v4559_v56  ;;  %v4220_v61 = vld [vmem:[%s12865_s5 + $0x1b8] sm:$0xff] }
 0x901   :  { %vm4302_vm6 = vmand %vm4294_vm12, %vm4246_vm4 }
 0x902   :  { %vm4310_vm3 = vmand %vm4302_vm6, %vm4286_vm9 }
 0x903   :  { %v6181_v27 = vsel %vm4310_vm3, 1.0, %v13081_v49  ;;  %7147 = vset.pattern.permute.xlu1 %v13338_v44  ;;  %v11558_v25 = vpop.permute.xlu1 %4550  ;;  %vm4751_vm9 = vmand %vm11689_vm13, %vm4743_vm7 }
 0x904   :  { %4723 = vperm.xlu1 %7147, %v11207_v58   ;;  %6662 = vmatmul.mubr.msk.f32.vlgmr.msra.gmra.mrb[24].mxu0 %vm13388_vm11, %v6181_v27  ;;  %v5167_v58 = vld [vmem:[%s12867_s7 + $0x120] sm:$0xff]  ;;  %v4891_v27 = vld [vmem:[%s12864_s4 + $0x1e8] sm:$0xff] }
 0x905   :  { %6690 = vmatpush3.bf16.msra.mxu0 %v6689_v38  ;;  %v6697_v28 = vpack.c.bf16 %v5168_v3, %v5167_v58  ;;  %v4639_v38 = vmul.f32 0.5, %v4631_v47  ;;  %v5171_v3 = vld [vmem:[%s12867_s7 + $0x140] sm:$0xff]  ;;  %v5172_v47 = vld [vmem:[%s12867_s7 + $0x148] sm:$0xff] }
 0x906   :  { %6692 = vmatprep.subr.bf16.mxu0 %v6691_v50  ;;  %v4638_v50 = vmul.f32 0.5, %v4630_v24  ;;  %v6705_v10 = vpack.c.bf16 %v5172_v47, %v5171_v3 }
 0x907   :  { %v4647_v24 = vmul.f32 8.0, %v4639_v38  ;;  %v5173_v38 = vld [vmem:[%s12867_s7 + $0x150] sm:$0xff] }
 0x908   :  { %4907 = vperm.xlu1 %7147, %v4890_v11   ;;  %v11583_v30 = vpop.permute.xlu1 %4763  ;;  %v6701_v11 = vpack.c.bf16 %v5170_v51, %v5169_v20  ;;  %v4646_v56 = vmul.f32 8.0, %v4638_v50  ;;  %v4574_v20 = vmul.f32 8.0, %v4566_v35  ;;  %v5174_v50 = vld [vmem:[%s12867_s7 + $0x158] sm:$0xff] }
 0x909   :  { %6694 = vmatpush3.bf16.msra.mxu0 %v6693_v63  ;;  %v5187_v63 = vld [vmem:[%s12867_s7 + $0x1c0] sm:$0xff]  ;;  %v6709_v47 = vpack.c.bf16 %v5174_v50, %v5173_v38  ;;  %vm4791_vm12 = vcmp.gt.f32.partialorder %v11142_v22, %v11583_v30  ;;  %v3935_v30 = vmul.f32 0.5, %v3927_v26 }
 0x90a   :  { %6696 = vmatprep.subr.bf16.mxu0 %v6695_v40  ;;  %v11620_v40 = vpop.permute.xlu0 %4858  ;;  %v6703_v58 = vpack.c.bf16 %v5188_v2, %v5187_v63  ;;  %v4654_v63 = vfloor.f32 %v4646_v56  ;;  %v5192_v56 = vld [vmem:[%s12867_s7 + $0x1e8] sm:$0xff]  ;;  %vm4799_vm11 = vmand %vm4751_vm9, %vm4791_vm12  ;;  %vm4096_vm9 = vcmp.lt.f32.partialorder %v11588_v5, %v11519_v12 }
 0x90b   :  { %vm4879_vm15 = vcmp.ne.s32.totalorder %v11620_v40, %v7631_v15 }
 0x90c   :  { %4240 = vperm.xlu1 %7147, %v4219_v45   ;;  %v11609_v18 = vpop.permute.xlu1 %4134  ;;  %v4575_v45 = vmul.f32 8.0, %v4567_v9  ;;  %v5145_v9 = vld [vmem:[%s12867_s7 + $0x80] sm:$0xff]  ;;  %v4662_v38 = vmul.f32 8.0, %v4654_v63 }
 0x90d   :  { %6698 = vmatpush3.bf16.msra.mxu0 %v6697_v28 }
 0x90e   :  { %6700 = vmatprep.subr.bf16.mxu0 %v6699_v29  ;;  %v5190_v29 = vld [vmem:[%s12867_s7 + $0x1d8] sm:$0xff]  ;;  %v11653_v2 = vpop.permute.xlu0 %4078 }
 0x90f   :  { %v6707_v51 = vpack.c.bf16 %v5190_v29, %v5189_v19  ;;  %v5176_v19 = vld [vmem:[%s12867_s7 + $0x168] sm:$0xff]  ;;  %v4000_v29 = vsub.f32 %v11379_v53, %v11142_v22 }
 0x910   :  { %4910 = vperm.xlu1 %7147, %v4891_v27   ;;  %v4655_v27 = vfloor.f32 %v4647_v24  ;;  %v5191_v24 = vld [vmem:[%s12867_s7 + $0x1e0] sm:$0xff] }
 0x911   :  { %v11628_v28 = vpop.permute.xlu1 %4555  ;;  %6702 = vmatpush3.bf16.msra.mxu0 %v6701_v11  ;;  %v5146_v11 = vld [vmem:[%s12867_s7 + $0x88] sm:$0xff]  ;;  %v4008_v36 = vmul.f32 0.5, %v4000_v29 }
 0x912   :  { %6704 = vmatprep.subr.bf16.mxu0 %v6703_v58  ;;  %v6719_v35 = vpack.c.bf16 %v5146_v11, %v5145_v9  ;;  %v4583_v58 = vfloor.f32 %v4575_v45  ;;  %v6711_v45 = vpack.c.bf16 %v5192_v56, %v5191_v24  ;;  %v4663_v57 = vmul.f32 8.0, %v4655_v27  ;;  %v11707_v9 = vpop.permute.xlu0 %4228  ;;  %v11730_v24 = vld [vmem:[%s12863_s3] ss:$0 sm:$0xff]  ;;  %v4812_v56 = vld [vmem:[%s12862_s2 + $0x1f0] sm:$0xff] }
 0x913   :  { %vm4838_vm2 = vcmp.eq.s32.totalorder %v11504_v16, %v11730_v24  ;;  %v5134_v16 = vld [vmem:[%s12867_s7 + $0x28] sm:$0xff] }
 0x914   :  { %4243 = vperm.xlu1 %7147, %v4220_v61   ;;  %v4582_v61 = vfloor.f32 %v4574_v20  ;;  %6720 = vmatprep.subr.bf16.mxu1 %v6719_v35  ;;  %v3999_v20 = vsub.f32 %v11370_v13, %v11142_v22  ;;  %v4671_v50 = vadd.f32 %v4663_v57, %v4583_v58  ;;  %v5178_v35 = vld [vmem:[%s12867_s7 + $0x178] sm:$0xff]  ;;  %v13397_v58 = vld [vmem:[#allocation13_spill] sm:$0xff] }
 0x915   :  { %v4819_v3 = vpop.permute.xlu1 %4818  ;;  %6706 = vmatpush3.bf16.msra.mxu0 %v6705_v10  ;;  %v5175_v10 = vld [vmem:[%s12867_s7 + $0x160] sm:$0xff]  ;;  %vm4790_vm4 = vcmp.gt.f32.partialorder %v11142_v22, %v13397_v58 }
 0x916   :  { %6708 = vmatprep.subr.bf16.mxu0 %v6707_v51  ;;  %v6713_v59 = vpack.c.bf16 %v5176_v19, %v5175_v10  ;;  %v4670_v11 = vadd.f32 %v4662_v38, %v4582_v61  ;;  %vm4839_vm6 = vcmp.eq.s32.totalorder %v4819_v3, %v11730_v24  ;;  %v4007_v61 = vmul.f32 0.5, %v3999_v20  ;;  %vm11740_vm3 = vmand %vm11699_vm1, %vm4790_vm4  ;;  %v5353_v10 = vld [vmem:[%s12867_s7 + $0x280] sm:$0xff]  ;;  %v5354_v3 = vld [vmem:[%s12867_s7 + $0x288] sm:$0xff]  ;;  %v4899_v21 = vpop.permute.xlu0 %4898 }
 0x917   :  { %v7057_v19 = vtrunc.f32 %v4671_v50  ;;  %vm11754_vm10 = vmand %vm4799_vm11, %vm4839_vm6  ;;  %v6751_v20 = vpack.c.bf16 %v5354_v3, %v5353_v10  ;;  %v4016_v51 = vmul.f32 8.0, %v4008_v36  ;;  %v5148_v36 = vld [vmem:[%s12867_s7 + $0x98] sm:$0xff]  ;;  %v5131_v10 = vld [vmem:[%s12867_s7 + $0x10] sm:$0xff]  ;;  %vm13406_vm6 = vcmask 64512  }
 0x918   :  { %7149 = vset.pattern.permute.xlu1 %v13173_v37  ;;  %v5194_v37 = vld [vmem:[%s12867_s7 + $0x1f8] sm:$0xff]  ;;  %v7055_v57 = vtrunc.f32 %v4670_v11  ;;  %v4015_v22 = vmul.f32 8.0, %v4007_v61  ;;  %vm11769_vm8 = vmand %vm11740_vm3, %vm4838_vm2  ;;  %v5129_v11 = vld [vmem:[%s12867_s7] sm:$0xff]  ;;  %vm4056_vm11 = vcmp.gt.f32.partialorder %v11588_v5, %v11381_v32 }
 0x919   :  { %4787 = vperm.xlu1 %7149, %v11331_v6   ;;  %6710 = vmatpush3.bf16.msra.mxu0 %v6709_v47  ;;  %v6715_v63 = vpack.c.bf16 %v5194_v37, %v5193_v8  ;;  %v5177_v6 = vld [vmem:[%s12867_s7 + $0x170] sm:$0xff]  ;;  %v3928_v47 = vsub.f32 %v11588_v5, %v11381_v32  ;;  %vm11775_vm0 = vmand %vm11754_vm10, %vm4879_vm15  ;;  %v4853_v37 = vld [vmem:[%s12865_s5 + $0x1f8] sm:$0xff] }
 0x91a   :  { %v11713_v27 = vpop.permute.xlu1 %4138  ;;  %6712 = vmatprep.subr.bf16.mxu0 %v6711_v45  ;;  %v6717_v41 = vpack.c.bf16 %v5178_v35, %v5177_v6  ;;  %v7056_v40 = vcvt.f32.s32 %v7055_v57  ;;  %v4024_v6 = vfloor.f32 %v4016_v51  ;;  %vm4934_vm1 = vmand %vm11769_vm8, %vm4878_vm5  ;;  %v6723_v45 = vpack.c.bf16 %v5148_v36, %v5147_v54  ;;  %v5132_v3 = vld [vmem:[%s12867_s7 + $0x18] sm:$0xff]  ;;  %v11836_v32 = vld [vmem:[%s12861_s1 + $0x1] ss:$0 sm:$0xff] }
 0x91b   :  { %v3936_v38 = vmul.f32 0.5, %v3928_v47  ;;  %v4023_v47 = vfloor.f32 %v4015_v22  ;;  %v4893_v51 = vld [vmem:[%s12864_s4 + $0x1f8] sm:$0xff]  ;;  %vm13407_vm3 = vmmov %vm13406_vm6  ;;  %vm4111_vm2 = vcmp.lt.f32.partialorder %v11836_v32, %v11370_v13  ;;  %vm4159_vm15 = vcmp.gt.f32.partialorder %v11836_v32, %v11609_v18  ;;  %v5153_v54 = vld [vmem:[%s12867_s7 + $0xc0] sm:$0xff] }
 0x91c   :  { %v4032_v29 = vmul.f32 8.0, %v4024_v6  ;;  %vm11823_vm10 = vmand %vm4056_vm11, %vm4096_vm9  ;;  %vm4160_vm5 = vcmp.gt.f32.partialorder %v11836_v32, %v11713_v27  ;;  %v5135_v27 = vld [vmem:[%s12867_s7 + $0x30] sm:$0xff]  ;;  %v5154_v36 = vld [vmem:[%s12867_s7 + $0xc8] sm:$0xff]  ;;  %vm4247_vm11 = vcmp.ne.s32.totalorder %v11707_v9, %v7631_v15 }
 0x91d   :  { %7150 = vset.pattern.permute.xlu1 %v13338_v44  ;;  %6714 = vmatpush3.bf16.msra.mxu0 %v6713_v59  ;;  %v4813_v44 = vld [vmem:[%s12862_s2 + $0x1f8] sm:$0xff]  ;;  %v7058_v59 = vcvt.f32.s32 %v7057_v19  ;;  %v3944_v35 = vmul.f32 8.0, %v3936_v38  ;;  %v5149_v38 = vld [vmem:[%s12867_s7 + $0xa0] sm:$0xff]  ;;  %v4031_v12 = vmul.f32 8.0, %v4023_v47  ;;  %vm4119_vm8 = vmand %vm11445_vm14, %vm4111_vm2 }
 0x91e   :  { %4833 = vperm.xlu1 %7150, %v4812_v56   ;;  %6716 = vmatprep.subr.bf16.mxu0 %v6715_v63  ;;  %v5130_v63 = vld [vmem:[%s12867_s7 + $0x8] sm:$0xff]  ;;  %v3943_v56 = vmul.f32 8.0, %v3935_v30  ;;  %v6725_v30 = vpack.c.bf16 %v5132_v3, %v5131_v10  ;;  %v5140_v9 = vld [vmem:[%s12867_s7 + $0x58] sm:$0xff] }
 0x91f   :  { %v11760_v8 = vpop.permute.xlu1 %4707  ;;  %vm4919_vm13 = vcmp.eq.s32.totalorder %v7058_v59, %v4899_v21  ;;  %v6721_v61 = vpack.c.bf16 %v5130_v63, %v5129_v11  ;;  %v3952_v19 = vfloor.f32 %v3944_v35  ;;  %v5133_v59 = vld [vmem:[%s12867_s7 + $0x20] sm:$0xff]  ;;  %v5152_v11 = vld [vmem:[%s12867_s7 + $0xb8] sm:$0xff]  ;;  %v5138_v10 = vld [vmem:[%s12867_s7 + $0x48] sm:$0xff] }
 0x920   :  { %vm4943_vm7 = vmand %vm11775_vm0, %vm4919_vm13  ;;  %v3951_v22 = vfloor.f32 %v3943_v56  ;;  %vm4112_vm0 = vcmp.lt.f32.partialorder %v11836_v32, %v11379_v53  ;;  %v6729_v6 = vpack.c.bf16 %v5134_v16, %v5133_v59  ;;  %v5136_v35 = vld [vmem:[%s12867_s7 + $0x38] sm:$0xff]  ;;  %v5158_v21 = vld [vmem:[%s12867_s7 + $0xe8] sm:$0xff] }
 0x921   :  { %6718 = vmatpush3.bf16.msra.mxu0 %v6717_v41  ;;  %v4232_v41 = vpop.permute.xlu0 %4231  ;;  %v6205_v57 = vsel %vm4943_vm7, 1.0, %v13081_v49  ;;  %vm4120_vm13 = vmand %vm11823_vm10, %vm4112_vm0 }
 0x922   :  { %4836 = vperm.xlu1 %7150, %v4813_v44   ;;  %6752 = vmatprep.subr.bf16.mxu0 %v6751_v20  ;;  %v5150_v44 = vld [vmem:[%s12867_s7 + $0xa8] sm:$0xff]  ;;  %v4039_v18 = vadd.f32 %v4031_v12, %v3951_v22  ;;  %vm11859_vm7 = vmand %vm4119_vm8, %vm4159_vm15  ;;  %vm4248_vm9 = vcmp.ne.s32.totalorder %v4232_v41, %v7631_v15  ;;  %v5156_v41 = vld [vmem:[%s12867_s7 + $0xd8] sm:$0xff]  ;;  %v4633_v22 = vsub.f32 %v11410_v14, %v11836_v32 }
 0x923   :  { %v4896_v58 = vpop.permute.xlu1 %4895  ;;  %v6727_v50 = vpack.c.bf16 %v5150_v44, %v5149_v38  ;;  %vm4168_vm14 = vmand %vm4120_vm13, %vm4160_vm5  ;;  %v5139_v44 = vld [vmem:[%s12867_s7 + $0x50] sm:$0xff]  ;;  %vm13414_vm5 = vcmask 261120   ;;  %vm13415_vm13 = vcmask 64512  }
 0x924   :  { %vm4918_vm12 = vcmp.eq.s32.totalorder %v7056_v40, %v4896_v58  ;;  %v4040_v40 = vadd.f32 %v4032_v29, %v3952_v19  ;;  %v7043_v47 = vtrunc.f32 %v4039_v18  ;;  %v5155_v19 = vld [vmem:[%s12867_s7 + $0xd0] sm:$0xff]  ;;  %v4632_v18 = vsub.f32 %v11401_v1, %v11836_v32 }
 0x925   :  { %vm4942_vm4 = vmand %vm4934_vm1, %vm4918_vm12  ;;  %v4272_v63 = vpop.permute.xlu0 %4271  ;;  %v6739_v38 = vpack.c.bf16 %v5156_v41, %v5155_v19  ;;  %v5458_v41 = vld [vmem:[%s12867_s7 + $0x380] sm:$0xff] }
 0x926   :  { %v6204_v26 = vsel %vm4942_vm4, 1.0, %v13081_v49  ;;  %4876 = vperm.xlu1 %7150, %v4853_v37   ;;  %v5151_v37 = vld [vmem:[%s12867_s7 + $0xb0] sm:$0xff]  ;;  %v7045_v58 = vtrunc.f32 %v4040_v40  ;;  %vm4207_vm4 = vcmp.eq.s32.totalorder %v11581_v42, %v11730_v24  ;;  %v7044_v29 = vcvt.f32.s32 %v7043_v47 }
 0x927   :  { %v4192_v20 = vpop.permute.xlu1 %4191  ;;  %6675 = vmatprep.mubr.msk.f32.mxu1 %vm13406_vm6, %v6204_v26  ;;  %v6731_v53 = vpack.c.bf16 %v5152_v11, %v5151_v37  ;;  %vm4295_vm6 = vmand %vm11859_vm7, %vm4207_vm4  ;;  %v6735_v26 = vpack.c.bf16 %v5154_v36, %v5153_v54  ;;  %v6741_v11 = vpack.c.bf16 %v5140_v9, %v5139_v44  ;;  %v4561_v54 = vsub.f32 %v11588_v5, %v11389_v34 }
 0x928   :  { %6676 = vmatmul.mubr.msk.f32.vlgmr.msra.gmra.mrb[24].mxu1 %vm13407_vm3, %v6205_v57  ;;  %vm4208_vm1 = vcmp.eq.s32.totalorder %v4192_v20, %v11730_v24  ;;  %v7046_v42 = vcvt.f32.s32 %v7045_v58  ;;  %vm4303_vm2 = vmand %vm4295_vm6, %vm4247_vm11  ;;  %v4560_v58 = vsub.f32 %v11588_v5, %v11422_v52  ;;  %v4640_v47 = vmul.f32 0.5, %v4632_v18 }
 0x929   :  { %6722 = vmatpush3.bf16.msra.mxu1 %v6721_v61  ;;  %vm4296_vm12 = vmand %vm4168_vm14, %vm4208_vm1  ;;  %v6733_v61 = vpack.c.bf16 %v5136_v35, %v5135_v27  ;;  %v11888_v3 = vpop.permute.xlu0 %4861  ;;  %v5159_v27 = vld [vmem:[%s12867_s7 + $0xf0] sm:$0xff]  ;;  %v5160_v35 = vld [vmem:[%s12867_s7 + $0xf8] sm:$0xff]  ;;  %vm4729_vm7 = vcmp.lt.f32.partialorder %v11588_v5, %v11760_v8  ;;  %vm4689_vm14 = vcmp.gt.f32.partialorder %v11588_v5, %v11389_v34 }
 0x92a   :  { %4916 = vperm.xlu1 %7150, %v4893_v51   ;;  %6724 = vmatprep.subr.bf16.mxu1 %v6723_v45  ;;  %v5137_v45 = vld [vmem:[%s12867_s7 + $0x40] sm:$0xff]  ;;  %vm4304_vm3 = vmand %vm4296_vm12, %vm4248_vm9  ;;  %vm4288_vm10 = vcmp.eq.s32.totalorder %v7046_v42, %v4272_v63  ;;  %vm4728_vm12 = vcmp.lt.f32.partialorder %v11588_v5, %v11527_v39  ;;  %vm4688_vm9 = vcmp.gt.f32.partialorder %v11588_v5, %v11422_v52 }
 0x92b   :  { %v6737_v20 = vpack.c.bf16 %v5138_v10, %v5137_v45  ;;  %vm11898_vm15 = vmand %vm4304_vm3, %vm4288_vm10  ;;  %v5143_v45 = vld [vmem:[%s12867_s7 + $0x70] sm:$0xff]  ;;  %v5144_v10 = vld [vmem:[%s12867_s7 + $0x78] sm:$0xff]  ;;  %vm4745_vm3 = vcmp.lt.f32.partialorder %v11836_v32, %v11410_v14  ;;  %vm4744_vm10 = vcmp.lt.f32.partialorder %v11836_v32, %v11401_v1 }
 0x92c   :  { %v11854_v13 = vpop.permute.xlu1 %4767  ;;  %v6183_v37 = vsel %vm11898_vm15, 1.0, %v13081_v49  ;;  %vm13416_vm1 = vmmov %vm13415_vm13  ;;  %v6749_v51 = vpack.c.bf16 %v5144_v10, %v5143_v45  ;;  %v13422_v14 = vld [vmem:[#allocation15_spill] sm:$0xff] }
 0x92d   :  { %6726 = vmatpush3.bf16.msra.mxu1 %v6725_v30  ;;  %v5157_v30 = vld [vmem:[%s12867_s7 + $0xe0] sm:$0xff]  ;;  %v11918_v16 = vpop.permute.xlu0 %4194  ;;  %vm4737_vm4 = vmand %vm4689_vm14, %vm4729_vm7  ;;  %vm4793_vm15 = vcmp.gt.f32.partialorder %v11836_v32, %v13422_v14  ;;  %v4003_v14 = vsub.f32 %v11459_v46, %v11836_v32 }
 0x92e   :  { %6728 = vmatprep.subr.bf16.mxu1 %v6727_v50  ;;  %v6743_v63 = vpack.c.bf16 %v5158_v21, %v5157_v30  ;;  %vm11976_vm6 = vmand %vm4688_vm9, %vm4728_vm12  ;;  %vm4880_vm9 = vcmp.ne.s32.totalorder %v11888_v3, %v7631_v15 }
 0x92f   :  { %vm11986_vm11 = vmand %vm4737_vm4, %vm4745_vm3 }
 0x931   :  { %v11877_v56 = vpop.permute.xlu1 %4082  ;;  %6730 = vmatpush3.bf16.msra.mxu1 %v6729_v6  ;;  %v5141_v6 = vld [vmem:[%s12867_s7 + $0x60] sm:$0xff]  ;;  %v11954_v19 = vpop.permute.xlu0 %4864 }
 0x932   :  { %6732 = vmatprep.subr.bf16.mxu1 %v6731_v53  ;;  %v4641_v53 = vmul.f32 0.5, %v4633_v22  ;;  %v6745_v36 = vpack.c.bf16 %v5142_v17, %v5141_v6  ;;  %vm4881_vm14 = vcmp.ne.s32.totalorder %v11954_v19, %v7631_v15 }
 0x934   :  { %v4649_v42 = vmul.f32 8.0, %v4641_v53  ;;  %v13419_v53 = vld [vmem:[#allocation9_spill] sm:$0xff] }
 0x935   :  { %v4269_v57 = vpop.permute.xlu1 %4268  ;;  %6734 = vmatpush3.bf16.msra.mxu1 %v6733_v61  ;;  %v11964_v21 = vpop.permute.xlu0 %4086 }
 0x936   :  { %vm4287_vm8 = vcmp.eq.s32.totalorder %v7044_v29, %v4269_v57  ;;  %6736 = vmatprep.subr.bf16.mxu1 %v6735_v26  ;;  %v6747_v26 = vpack.c.bf16 %v5160_v35, %v5159_v27  ;;  %v5459_v29 = vld [vmem:[%s12867_s7 + $0x388] sm:$0xff]  ;;  %v4568_v57 = vmul.f32 0.5, %v4560_v58  ;;  %v4657_v9 = vfloor.f32 %v4649_v42 }
 0x937   :  { %vm4311_vm0 = vmand %vm4303_vm2, %vm4287_vm8  ;;  %v6649_v12 = vpop.f32.mrb[16].mxu1  ;;  %v6783_v44 = vpack.c.bf16 %v5459_v29, %v5458_v41  ;;  %v4001_v27 = vsub.f32 %v13419_v53, %v11836_v32 }
 0x938   :  { %v6182_v50 = vsel %vm4311_vm0, 1.0, %v13081_v49  ;;  %3831 = vrot.lane.b32.xlu1 %v6649_v12, %s7197_s25  ;;  %v3790_v59 = vpop.f32.mrb[17].mxu1  ;;  %v4576_v12 = vmul.f32 8.0, %v4568_v57  ;;  %vm4752_vm8 = vmand %vm11976_vm6, %vm4744_vm10  ;;  %vm4792_vm0 = vcmp.gt.f32.partialorder %v11836_v32, %v11854_v13 }
 0x939   :  { %3829 = vst.msk [vmem:[#allocation2 + $0x50] sm:$0xff] %vm13414_vm5, %v3790_v59  ;;  %v11921_v40 = vpop.permute.xlu1 %4821  ;;  %6664 = vmatprep.mubr.msk.f32.mxu0 %vm13415_vm13, %v6182_v50  ;;  %6738 = vmatpush3.bf16.msra.mxu1 %v6737_v20  ;;  %v4569_v20 = vmul.f32 0.5, %v4561_v54  ;;  %v4665_v59 = vmul.f32 8.0, %v4657_v9  ;;  %v11980_v17 = vpop.permute.xlu0 %4234  ;;  %vm4801_vm13 = vmand %vm11986_vm11, %vm4793_vm15  ;;  %v4009_v45 = vmul.f32 0.5, %v4001_v27  ;;  %vm4097_vm15 = vcmp.lt.f32.partialorder %v11588_v5, %v11653_v2 }
 0x93a   :  { %6665 = vmatmul.mubr.msk.f32.gmra.mrb[26].mxu0 %vm13416_vm1, %v6183_v37  ;;  %6740 = vmatprep.subr.bf16.mxu1 %v6739_v38  ;;  %v4648_v38 = vmul.f32 8.0, %v4640_v47  ;;  %v3929_v47 = vsub.f32 %v11588_v5, %v11436_v62  ;;  %vm4840_vm5 = vcmp.eq.s32.totalorder %v11921_v40, %v11730_v24  ;;  %vm4800_vm7 = vmand %vm4752_vm8, %vm4792_vm0  ;;  %vm4098_vm8 = vcmp.lt.f32.partialorder %v11588_v5, %v11877_v56 }
 0x93b   :  { %v4577_v30 = vmul.f32 8.0, %v4569_v20  ;;  %vm4928_vm12 = vmand %vm4800_vm7, %vm4840_vm5  ;;  %v4017_v20 = vmul.f32 8.0, %v4009_v45  ;;  %vm13423_vm0 = vcmask 64512   ;;  %vm4057_vm5 = vcmp.gt.f32.partialorder %v11588_v5, %v11436_v62 }
 0x93c   :  { %v4656_v50 = vfloor.f32 %v4648_v38  ;;  %v3937_v13 = vmul.f32 0.5, %v3929_v47  ;;  %vm4936_vm3 = vmand %vm4928_vm12, %vm4880_vm9  ;;  %vm4113_vm12 = vcmp.lt.f32.partialorder %v11836_v32, %v13419_v53  ;;  %v4562_v47 = vsub.f32 %v11588_v5, %v11407_v0 }
 0x93d   :  { %6742 = vmatpush3.bf16.msra.mxu1 %v6741_v11  ;;  %v4584_v11 = vfloor.f32 %v4576_v12  ;;  %v4585_v18 = vfloor.f32 %v4577_v30  ;;  %v4905_v29 = vpop.permute.xlu0 %4904  ;;  %v4025_v19 = vfloor.f32 %v4017_v20  ;;  %vm4105_vm7 = vmand %vm4057_vm5, %vm4097_vm15  ;;  %vm4209_vm5 = vcmp.eq.s32.totalorder %v11918_v16, %v11730_v24 }
 0x93e   :  { %v11946_v61 = vpop.permute.xlu1 %4142  ;;  %6744 = vmatprep.subr.bf16.mxu1 %v6743_v63  ;;  %v4002_v63 = vsub.f32 %v11432_v23, %v11836_v32  ;;  %v4664_v6 = vmul.f32 8.0, %v4656_v50  ;;  %v3945_v9 = vmul.f32 8.0, %v3937_v13  ;;  %vm4121_vm9 = vmand %vm4105_vm7, %vm4113_vm12  ;;  %v4634_v16 = vsub.f32 %v11449_v33, %v11836_v32 }
 0x93f   :  { %v4673_v34 = vadd.f32 %v4665_v59, %v4585_v18  ;;  %v4033_v2 = vmul.f32 8.0, %v4025_v19  ;;  %v4563_v20 = vsub.f32 %v11588_v5, %v11415_v4 }
 0x940   :  { %v4672_v54 = vadd.f32 %v4664_v6, %v4584_v11 }
 0x941   :  { %6746 = vmatpush3.bf16.msra.mxu1 %v6745_v36  ;;  %v4010_v36 = vmul.f32 0.5, %v4002_v63  ;;  %v7061_v1 = vtrunc.f32 %v4673_v34  ;;  %v4238_v56 = vpop.permute.xlu0 %4237 }
 0x942   :  { %6748 = vmatprep.subr.bf16.mxu1 %v6747_v26  ;;  %v3930_v26 = vsub.f32 %v11588_v5, %v11399_v31  ;;  %v7059_v10 = vtrunc.f32 %v4672_v54 }
 0x943   :  { %v11962_v22 = vpop.permute.xlu1 %4711  ;;  %v4018_v42 = vmul.f32 8.0, %v4010_v36  ;;  %v7062_v40 = vcvt.f32.s32 %v7061_v1  ;;  %v4642_v36 = vmul.f32 0.5, %v4634_v16  ;;  %v4636_v16 = vsub.f32 %v11497_v7, %v11836_v32 }
 0x944   :  { %v3938_v57 = vmul.f32 0.5, %v3930_v26 }
 0x945   :  { %6750 = vmatpush3.bf16.msra.mxu1 %v6749_v51  ;;  %v7060_v51 = vcvt.f32.s32 %v7059_v10  ;;  %v4026_v38 = vfloor.f32 %v4018_v42  ;;  %vm4921_vm6 = vcmp.eq.s32.totalorder %v7062_v40, %v4905_v29  ;;  %v4278_v34 = vpop.permute.xlu0 %4277  ;;  %v4650_v1 = vmul.f32 8.0, %v4642_v36  ;;  %v13428_v42 = vld [vmem:[#allocation11_spill] sm:$0xff] }
 0x946   :  { %6784 = vmatprep.subr.bf16.mxu1 %v6783_v44  ;;  %v3946_v12 = vmul.f32 8.0, %v3938_v57  ;;  %v4011_v10 = vmul.f32 0.5, %v4003_v14  ;;  %v4635_v13 = vsub.f32 %v13428_v42, %v11836_v32  ;;  %v4570_v29 = vmul.f32 0.5, %v4562_v47 }
 0x947   :  { %v4825_v37 = vpop.permute.xlu1 %4824  ;;  %v4034_v50 = vmul.f32 8.0, %v4026_v38  ;;  %v3931_v57 = vsub.f32 %v11588_v5, %v11427_v43 }
 0x948   :  { %vm4841_vm2 = vcmp.eq.s32.totalorder %v4825_v37, %v11730_v24  ;;  %v3953_v37 = vfloor.f32 %v3945_v9  ;;  %v3954_v11 = vfloor.f32 %v3946_v12  ;;  %v4019_v38 = vmul.f32 8.0, %v4011_v10  ;;  %v5341_v10 = vld [vmem:[%s12867_s7 + $0x220] sm:$0xff] }
 0x949   :  { %vm4929_vm1 = vmand %vm4801_vm13, %vm4841_vm2  ;;  %v12064_v45 = vpop.permute.xlu0 %4867  ;;  %v4578_v9 = vmul.f32 8.0, %v4570_v29  ;;  %v3939_v19 = vmul.f32 0.5, %v3931_v57  ;;  %v5360_v29 = vld [vmem:[%s12867_s7 + $0x2b8] sm:$0xff] }
 0x94a   :  { %vm4937_vm4 = vmand %vm4929_vm1, %vm4881_vm14  ;;  %vm4058_vm1 = vcmp.gt.f32.partialorder %v11588_v5, %v11399_v31  ;;  %v4042_v18 = vadd.f32 %v4034_v50, %v3954_v11  ;;  %v4041_v31 = vadd.f32 %v4033_v2, %v3953_v37  ;;  %v4027_v37 = vfloor.f32 %v4019_v38 }
 0x94b   :  { %v6652_v39 = vpop.f32.mrb[18].mxu1  ;;  %vm4945_vm11 = vmand %vm4937_vm4, %vm4921_vm6  ;;  %vm4161_vm4 = vcmp.gt.f32.partialorder %v11836_v32, %v11946_v61  ;;  %vm4114_vm6 = vcmp.lt.f32.partialorder %v11836_v32, %v11432_v23  ;;  %v3932_v11 = vsub.f32 %v11588_v5, %v11502_v55 }
 0x94c   :  { %v11990_v52 = vpop.permute.xlu1 %4146  ;;  %v3800_v58 = vpop.f32.mrb[19].mxu1  ;;  %v6207_v59 = vsel %vm4945_vm11, 1.0, %v13081_v49  ;;  %vm13424_vm13 = vmmov %vm13423_vm0  ;;  %v7049_v61 = vtrunc.f32 %v4042_v18  ;;  %v7047_v23 = vtrunc.f32 %v4041_v31  ;;  %v4586_v18 = vfloor.f32 %v4578_v9 }
 0x94d   :  { %3836 = vrot.lane.b32.xlu1 %v3800_v58, %s7198_s26  ;;  %vm4106_vm14 = vmand %vm4058_vm1, %vm4098_vm8  ;;  %vm13425_vm8 = vcmask 261120   ;;  %v12075_v12 = vpop.permute.xlu0 %4200  ;;  %v4637_v9 = vsub.f32 %v11510_v48, %v11836_v32 }
 0x94e   :  { %vm4122_vm11 = vmand %vm4106_vm14, %vm4114_vm6  ;;  %vm4249_vm14 = vcmp.ne.s32.totalorder %v11980_v17, %v7631_v15  ;;  %v7048_v53 = vcvt.f32.s32 %v7047_v23 }
 0x951   :  { %v12010_v41 = vpop.permute.xlu1 %4715  ;;  %3841 = vrot.lane.b32.xlu1 %v6652_v39, %s7199_s27  ;;  %v7050_v39 = vcvt.f32.s32 %v7049_v61  ;;  %v4035_v61 = vmul.f32 8.0, %v4027_v37  ;;  %v4565_v37 = vsub.f32 %v11588_v5, %v11628_v28 }
 0x953   :  { %vm4290_vm12 = vcmp.eq.s32.totalorder %v7050_v39, %v4278_v34 }
 0x955   :  { %v4902_v44 = vpop.permute.xlu1 %4901 }
 0x956   :  { %vm4920_vm10 = vcmp.eq.s32.totalorder %v7060_v51, %v4902_v44  ;;  %v4658_v51 = vfloor.f32 %v4650_v1  ;;  %v4643_v44 = vmul.f32 0.5, %v4635_v13  ;;  %v4644_v1 = vmul.f32 0.5, %v4636_v16  ;;  %v5161_v16 = vld [vmem:[#allocation2 + $0x10] sm:$0xff] }
 0x957   :  { %vm4944_vm2 = vmand %vm4936_vm3, %vm4920_vm10  ;;  %vm4162_vm3 = vcmp.gt.f32.partialorder %v11836_v32, %v11990_v52 }
 0x958   :  { %v6206_v30 = vsel %vm4944_vm2, 1.0, %v13081_v49  ;;  %vm4169_vm2 = vmand %vm4121_vm9, %vm4161_vm4  ;;  %v4651_v2 = vmul.f32 8.0, %v4643_v44 }
 0x959   :  { %v4198_v3 = vpop.permute.xlu1 %4197  ;;  %6678 = vmatprep.mubr.msk.f32.mxu1 %vm13423_vm0, %v6206_v30  ;;  %vm4170_vm15 = vmand %vm4122_vm11, %vm4162_vm3  ;;  %vm13426_vm11 = vcmask 64512   ;;  %v4004_v30 = vsub.f32 %v11470_v60, %v11836_v32 }
 0x95a   :  { %6679 = vmatmul.mubr.msk.f32.gmra.mrb[26].mxu1 %vm13424_vm13, %v6207_v59  ;;  %vm4210_vm10 = vcmp.eq.s32.totalorder %v4198_v3, %v11730_v24  ;;  %vm4250_vm13 = vcmp.ne.s32.totalorder %v4238_v56, %v7631_v15  ;;  %vm4297_vm1 = vmand %vm4169_vm2, %vm4209_vm5  ;;  %v4571_v3 = vmul.f32 0.5, %v4563_v20  ;;  %vm4099_vm2 = vcmp.lt.f32.partialorder %v11588_v5, %v11964_v21 }
 0x95b   :  { %vm4298_vm0 = vmand %vm4170_vm15, %vm4210_vm10  ;;  %v4666_v59 = vmul.f32 8.0, %v4658_v51  ;;  %vm4730_vm15 = vcmp.lt.f32.partialorder %v11588_v5, %v11962_v22  ;;  %vm4690_vm5 = vcmp.gt.f32.partialorder %v11588_v5, %v11407_v0  ;;  %v3947_v21 = vmul.f32 8.0, %v3939_v19 }
 0x95c   :  { %vm4306_vm7 = vmand %vm4298_vm0, %vm4250_vm13  ;;  %vm4731_vm0 = vcmp.lt.f32.partialorder %v11588_v5, %v12010_v41  ;;  %v4012_v56 = vmul.f32 0.5, %v4004_v30  ;;  %v4579_v31 = vmul.f32 8.0, %v4571_v3  ;;  %v4659_v0 = vfloor.f32 %v4651_v2 }
 0x95d   :  { %vm4305_vm4 = vmand %vm4297_vm1, %vm4249_vm14  ;;  %vm4691_vm1 = vcmp.gt.f32.partialorder %v11588_v5, %v11415_v4  ;;  %v3955_v41 = vfloor.f32 %v3947_v21  ;;  %v5338_v4 = vld [vmem:[%s12867_s7 + $0x208] sm:$0xff] }
 0x95e   :  { %v12037_v62 = vpop.permute.xlu1 %4775  ;;  %vm4314_vm9 = vmand %vm4306_vm7, %vm4290_vm12  ;;  %vm4115_vm12 = vcmp.lt.f32.partialorder %v11836_v32, %v11459_v46  ;;  %v4020_v23 = vmul.f32 8.0, %v4012_v56  ;;  %v4587_v46 = vfloor.f32 %v4579_v31 }
 0x95f   :  { %v6655_v63 = vpop.f32.mrb[20].mxu1  ;;  %v6185_v58 = vsel %vm4314_vm9, 1.0, %v13081_v49  ;;  %vm13427_vm10 = vmmov %vm13426_vm11  ;;  %vm4794_vm9 = vcmp.gt.f32.partialorder %v11836_v32, %v12037_v62  ;;  %v4043_v39 = vadd.f32 %v4035_v61, %v3955_v41 }
 0x960   :  { %3847 = vrot.lane.b32.xlu0 %v6655_v63, %s7197_s25  ;;  %v3810_v6 = vpop.f32.mrb[21].mxu1  ;;  %v12095_v63 = vpop.permute.xlu0 %4870  ;;  %vm4738_vm7 = vmand %vm4690_vm5, %vm4730_vm15 }
 0x961   :  { %3845 = vst.msk [vmem:[#allocation2 + $0x58] sm:$0xff] %vm13425_vm8, %v3810_v6  ;;  %vm4059_vm8 = vcmp.gt.f32.partialorder %v11588_v5, %v11427_v43  ;;  %v4674_v6 = vadd.f32 %v4666_v59, %v4586_v18  ;;  %v3940_v43 = vmul.f32 0.5, %v3932_v11  ;;  %vm4739_vm14 = vmand %vm4691_vm1, %vm4731_vm0  ;;  %v7051_v47 = vtrunc.f32 %v4043_v39 }
 0x962   :  { %vm4107_vm13 = vmand %vm4059_vm8, %vm4099_vm2  ;;  %v4645_v18 = vmul.f32 0.5, %v4637_v9  ;;  %v5344_v9 = vld [vmem:[%s12867_s7 + $0x238] sm:$0xff] }
 0x963   :  { %v12044_v8 = vpop.permute.xlu1 %4090  ;;  %v3948_v62 = vmul.f32 8.0, %v3940_v43  ;;  %v7052_v51 = vcvt.f32.s32 %v7051_v47 }
 0x964   :  { %vm4100_vm8 = vcmp.lt.f32.partialorder %v11588_v5, %v12044_v8  ;;  %v4653_v43 = vmul.f32 8.0, %v4645_v18  ;;  %v5357_v8 = vld [vmem:[%s12867_s7 + $0x2a0] sm:$0xff]  ;;  %v5348_v18 = vld [vmem:[%s12867_s7 + $0x258] sm:$0xff] }
 0x965   :  { %v3956_v14 = vfloor.f32 %v3948_v62  ;;  %v5162_v62 = vld [vmem:[#allocation2 + $0x18] sm:$0xff] }
 0x966   :  { %v4661_v39 = vfloor.f32 %v4653_v43 }
 0x967   :  { %v4275_v27 = vpop.permute.xlu1 %4274 }
 0x968   :  { %vm4289_vm6 = vcmp.eq.s32.totalorder %v7048_v53, %v4275_v27  ;;  %v13433_v27 = vld [vmem:[#allocation7_spill] sm:$0xff] }
 0x969   :  { %vm4313_vm3 = vmand %vm4305_vm4, %vm4289_vm6  ;;  %vm4746_vm4 = vcmp.lt.f32.partialorder %v11836_v32, %v11449_v33  ;;  %v7063_v33 = vtrunc.f32 %v4674_v6  ;;  %vm4795_vm0 = vcmp.gt.f32.partialorder %v11836_v32, %v13433_v27  ;;  %v12199_v6 = vld [vmem:[%s12861_s1] ss:$0 sm:$0xff] }
 0x96a   :  { %v6184_v35 = vsel %vm4313_vm3, 1.0, %v13081_v49  ;;  %vm12105_vm6 = vmand %vm4107_vm13, %vm4115_vm12  ;;  %vm4747_vm3 = vcmp.lt.f32.partialorder %v11836_v32, %v13428_v42  ;;  %vm4060_vm13 = vcmp.gt.f32.partialorder %v11588_v5, %v11502_v55 }
 0x96b   :  { %v12052_v52 = vpop.permute.xlu1 %4827  ;;  %6667 = vmatprep.mubr.msk.f32.mxu0 %vm13426_vm11, %v6184_v35  ;;  %vm4754_vm11 = vmand %vm4738_vm7, %vm4746_vm4  ;;  %v12125_v35 = vpop.permute.xlu0 %4203  ;;  %v7064_v55 = vcvt.f32.s32 %v7063_v33 }
 0x96c   :  { %v6658_v54 = vpop.f32.mrb[22].mxu1  ;;  %6668 = vmatmul.mubr.msk.f32.gmra.mrb[28].mxu0 %vm13427_vm10, %v6185_v58  ;;  %vm4842_vm10 = vcmp.eq.s32.totalorder %v12052_v52, %v11730_v24  ;;  %vm12113_vm2 = vmand %vm4739_vm14, %vm4747_vm3  ;;  %v4667_v52 = vmul.f32 8.0, %v4659_v0  ;;  %v4028_v58 = vfloor.f32 %v4020_v23  ;;  %vm4882_vm14 = vcmp.ne.s32.totalorder %v12064_v45, %v7631_v15  ;;  %v5337_v0 = vld [vmem:[%s12867_s7 + $0x200] sm:$0xff] }
 0x96d   :  { %v3820_v17 = vpop.f32.mrb[23].mxu1  ;;  %vm4802_vm15 = vmand %vm4754_vm11, %vm4794_vm9 }
 0x96e   :  { %3852 = vrot.lane.b32.xlu0 %v3820_v17, %s7198_s26  ;;  %vm4930_vm5 = vmand %vm4802_vm15, %vm4842_vm10  ;;  %v4675_v36 = vadd.f32 %v4667_v52, %v4587_v46  ;;  %v4036_v42 = vmul.f32 8.0, %v4028_v58  ;;  %vm4116_vm10 = vcmp.lt.f32.partialorder %v11836_v32, %v11470_v60  ;;  %vm4211_vm15 = vcmp.eq.s32.totalorder %v12075_v12, %v11730_v24  ;;  %v5356_v46 = vld [vmem:[%s12867_s7 + $0x298] sm:$0xff]  ;;  %v5339_v52 = vld [vmem:[%s12867_s7 + $0x210] sm:$0xff] }
 0x96f   :  { %vm12133_vm7 = vmand %vm12113_vm2, %vm4795_vm0  ;;  %v4281_v13 = vpop.permute.xlu0 %4280  ;;  %vm13442_vm0 = vcmask 64512   ;;  %v4652_v60 = vmul.f32 8.0, %v4644_v1  ;;  %v5340_v58 = vld [vmem:[%s12867_s7 + $0x218] sm:$0xff]  ;;  %v5336_v17 = vld [vmem:[#allocation2 + $0x28] sm:$0xff] }
 0x970   :  { %v12062_v26 = vpop.permute.xlu1 %4150  ;;  %vm12141_vm12 = vmand %vm4060_vm13, %vm4100_vm8  ;;  %v7065_v20 = vtrunc.f32 %v4675_v36  ;;  %v4044_v38 = vadd.f32 %v4036_v42, %v3956_v14  ;;  %v6757_v47 = vpack.c.bf16 %v5340_v58, %v5339_v52  ;;  %v5342_v42 = vld [vmem:[%s12867_s7 + $0x228] sm:$0xff] }
 0x971   :  { %vm4163_vm1 = vcmp.gt.f32.partialorder %v11836_v32, %v12062_v26  ;;  %vm4938_vm4 = vmand %vm4930_vm5, %vm4882_vm14  ;;  %v4660_v59 = vfloor.f32 %v4652_v60  ;;  %v5343_v60 = vld [vmem:[%s12867_s7 + $0x230] sm:$0xff] }
 0x972   :  { %3857 = vrot.lane.b32.xlu0 %v6658_v54, %s7199_s27  ;;  %v4564_v54 = vsub.f32 %v11588_v5, %v11558_v25  ;;  %vm12147_vm9 = vmand %vm12105_vm6, %vm4163_vm1  ;;  %vm4291_vm1 = vcmp.eq.s32.totalorder %v7052_v51, %v4281_v13  ;;  %v7066_v19 = vcvt.f32.s32 %v7065_v20  ;;  %v7053_v30 = vtrunc.f32 %v4044_v38  ;;  %v5359_v13 = vld [vmem:[%s12867_s7 + $0x2b0] sm:$0xff] }
 0x973   :  { %vm12159_vm6 = vmand %vm12141_vm12, %vm4116_vm10  ;;  %v4284_v2 = vpop.permute.xlu0 %4283  ;;  %v6761_v51 = vpack.c.bf16 %v5342_v42, %v5341_v10 }
 0x974   :  { %v4572_v45 = vmul.f32 0.5, %v4564_v54  ;;  %vm4299_vm8 = vmand %vm12147_vm9, %vm4211_vm15  ;;  %vm4212_vm15 = vcmp.eq.s32.totalorder %v12125_v35, %v11730_v24  ;;  %v7054_v31 = vcvt.f32.s32 %v7053_v30  ;;  %v5358_v54 = vld [vmem:[%s12867_s7 + $0x2a8] sm:$0xff] }
 0x975   :  { %v12071_v40 = vpop.permute.xlu1 %4719  ;;  %vm13445_vm10 = vmmov %vm13442_vm0  ;;  %v6759_v1 = vpack.c.bf16 %v5358_v54, %v5357_v8  ;;  %v5351_v8 = vld [vmem:[%s12867_s7 + $0x270] sm:$0xff]  ;;  %v5352_v54 = vld [vmem:[%s12867_s7 + $0x278] sm:$0xff] }
 0x976   :  { %v4580_v12 = vmul.f32 8.0, %v4572_v45  ;;  %v4669_v45 = vmul.f32 8.0, %v4661_v39  ;;  %v5462_v39 = vld [vmem:[%s12867_s7 + $0x3a0] sm:$0xff] }
 0x977   :  { %v4874_v41 = vpop.permute.xlu0 %4873 }
 0x978   :  { %v4588_v21 = vfloor.f32 %v4580_v12  ;;  %v5362_v12 = vld [vmem:[%s12867_s7 + $0x2c8] sm:$0xff] }
 0x979   :  { %v12079_v50 = vpop.permute.xlu1 %4830 }
 0x97a   :  { %vm4843_vm11 = vcmp.eq.s32.totalorder %v12079_v50, %v11730_v24 }
 0x97b   :  { %vm4931_vm5 = vmand %vm12133_vm7, %vm4843_vm11  ;;  %v4914_v36 = vpop.permute.xlu0 %4913 }
 0x97e   :  { %v12097_v22 = vpop.permute.xlu1 %4154 }
 0x97f   :  { %vm4164_vm14 = vcmp.gt.f32.partialorder %v11836_v32, %v12097_v22  ;;  %v4668_v22 = vmul.f32 8.0, %v4660_v59  ;;  %v5346_v59 = vld [vmem:[%s12867_s7 + $0x248] sm:$0xff] }
 0x980   :  { %vm12184_vm7 = vmand %vm12159_vm6, %vm4164_vm14 }
 0x981   :  { %v4676_v61 = vadd.f32 %v4668_v22, %v4588_v21  ;;  %v5442_v21 = vld [vmem:[%s12867_s7 + $0x300] sm:$0xff]  ;;  %v5460_v22 = vld [vmem:[%s12867_s7 + $0x390] sm:$0xff] }
 0x983   :  { %v12119_v53 = vpop.permute.xlu1 %4723  ;;  %v7067_v27 = vtrunc.f32 %v4676_v61  ;;  %v5128_v61 = vld [vmem:[#allocation2 + $0x8] sm:$0xff] }
 0x987   :  { %v4908_v26 = vpop.permute.xlu1 %4907 }
 0x988   :  { %vm4922_vm3 = vcmp.eq.s32.totalorder %v7064_v55, %v4908_v26  ;;  %v13448_v55 = vld [vmem:[#allocation16_spill] sm:$0xff]  ;;  %v7068_v26 = vcvt.f32.s32 %v7067_v27  ;;  %v5463_v27 = vld [vmem:[%s12867_s7 + $0x3a8] sm:$0xff] }
 0x989   :  { %vm4946_vm2 = vmand %vm4938_vm4, %vm4922_vm3  ;;  %vm4883_vm4 = vcmp.ne.s32.totalorder %v12095_v63, %v7631_v15  ;;  %v4573_v63 = vmul.f32 0.5, %v4565_v37  ;;  %v5363_v37 = vld [vmem:[%s12867_s7 + $0x2d0] sm:$0xff] }
 0x98a   :  { %v6208_v57 = vsel %vm4946_vm2, 1.0, %v13081_v49  ;;  %vm4939_vm3 = vmand %vm4931_vm5, %vm4883_vm4  ;;  %vm4292_vm5 = vcmp.eq.s32.totalorder %v7054_v31, %v4284_v2  ;;  %v5347_v2 = vld [vmem:[%s12867_s7 + $0x250] sm:$0xff]  ;;  %v5365_v31 = vld [vmem:[%s12867_s7 + $0x2e0] sm:$0xff] }
 0x98b   :  { %v4241_v44 = vpop.permute.xlu1 %4240  ;;  %6681 = vmatprep.mubr.msk.f32.mxu1 %vm13442_vm0, %v6208_v57  ;;  %v4581_v34 = vmul.f32 8.0, %v4573_v63  ;;  %v5366_v63 = vld [vmem:[%s12867_s7 + $0x2e8] sm:$0xff] }
 0x98c   :  { %vm4251_vm13 = vcmp.ne.s32.totalorder %v4241_v44, %v7631_v15  ;;  %v6763_v44 = vpack.c.bf16 %v5360_v29, %v5359_v13  ;;  %v5548_v13 = vld [vmem:[%s12867_s7 + $0x408] sm:$0xff]  ;;  %v5448_v29 = vld [vmem:[%s12867_s7 + $0x330] sm:$0xff] }
 0x98d   :  { %vm4307_vm12 = vmand %vm4299_vm8, %vm4251_vm13  ;;  %vm4732_vm13 = vcmp.lt.f32.partialorder %v12199_v6, %v12071_v40  ;;  %v5355_v40 = vld [vmem:[%s12867_s7 + $0x290] sm:$0xff] }
 0x98e   :  { %vm4315_vm9 = vmand %vm4307_vm12, %vm4291_vm1  ;;  %vm4692_vm12 = vcmp.gt.f32.partialorder %v12199_v6, %v11558_v25  ;;  %v6753_v25 = vpack.c.bf16 %v5338_v4, %v5337_v0  ;;  %v6755_v35 = vpack.c.bf16 %v5356_v46, %v5355_v40  ;;  %v6773_v0 = vpack.c.bf16 %v5348_v18, %v5347_v2  ;;  %v5349_v4 = vld [vmem:[%s12867_s7 + $0x260] sm:$0xff] }
 0x98f   :  { %v4911_v50 = vpop.permute.xlu1 %4910  ;;  %v6186_v3 = vsel %vm4315_vm9, 1.0, %v13081_v49  ;;  %vm13446_vm8 = vmmov %vm13442_vm0  ;;  %v6775_v40 = vpack.c.bf16 %v5366_v63, %v5365_v31  ;;  %v5452_v31 = vld [vmem:[%s12867_s7 + $0x350] sm:$0xff] }
 0x990   :  { %vm4923_vm11 = vcmp.eq.s32.totalorder %v7066_v19, %v4911_v50  ;;  %6670 = vmatprep.mubr.msk.f32.mxu0 %vm13445_vm10, %v6186_v3  ;;  %vm4300_vm0 = vmand %vm12184_vm7, %vm4212_vm15  ;;  %vm4884_vm15 = vcmp.ne.s32.totalorder %v4874_v41, %v7631_v15  ;;  %v6765_v50 = vpack.c.bf16 %v5344_v9, %v5343_v60  ;;  %v5345_v3 = vld [vmem:[%s12867_s7 + $0x240] sm:$0xff]  ;;  %v5350_v41 = vld [vmem:[%s12867_s7 + $0x268] sm:$0xff] }
 0x991   :  { %vm4947_vm2 = vmand %vm4939_vm3, %vm4923_vm11  ;;  %vm4748_vm3 = vcmp.lt.f32.partialorder %v11836_v32, %v11497_v7  ;;  %v4589_v7 = vfloor.f32 %v4581_v34  ;;  %vm4796_vm11 = vcmp.gt.f32.partialorder %v11836_v32, %v13448_v55  ;;  %v6769_v11 = vpack.c.bf16 %v5346_v59, %v5345_v3  ;;  %v5445_v34 = vld [vmem:[%s12867_s7 + $0x318] sm:$0xff]  ;;  %v5447_v55 = vld [vmem:[%s12867_s7 + $0x328] sm:$0xff] }
 0x992   :  { %v6209_v56 = vsel %vm4947_vm2, 1.0, %v13081_v49  ;;  %vm4740_vm4 = vmand %vm4692_vm12, %vm4732_vm13  ;;  %v5467_v60 = vld [vmem:[%s12867_s7 + $0x3c8] sm:$0xff]  ;;  %v5335_v9 = vld [vmem:[#allocation2 + $0x20] sm:$0xff] }
 0x993   :  { %v4244_v5 = vpop.permute.xlu1 %4243  ;;  %6682 = vmatmul.mubr.msk.f32.gmra.mrb[28].mxu1 %vm13446_vm8, %v6209_v56  ;;  %vm13447_vm9 = vmmov %vm13446_vm8  ;;  %v4677_v57 = vadd.f32 %v4669_v45, %v4589_v7  ;;  %v5443_v56 = vld [vmem:[%s12867_s7 + $0x308] sm:$0xff]  ;;  %v5446_v7 = vld [vmem:[%s12867_s7 + $0x320] sm:$0xff] }
 0x994   :  { %vm4252_vm6 = vcmp.ne.s32.totalorder %v4244_v5, %v7631_v15  ;;  %vm4756_vm7 = vmand %vm4740_vm4, %vm4748_vm3  ;;  %v6793_v10 = vpack.c.bf16 %v5447_v55, %v5446_v7  ;;  %v5547_v45 = vld [vmem:[%s12867_s7 + $0x400] sm:$0xff]  ;;  %v5451_v59 = vld [vmem:[%s12867_s7 + $0x348] sm:$0xff] }
 0x995   :  { %vm4308_vm1 = vmand %vm4300_vm0, %vm4252_vm6  ;;  %vm4924_vm6 = vcmp.eq.s32.totalorder %v7068_v26, %v4914_v36  ;;  %v7069_v19 = vtrunc.f32 %v4677_v57  ;;  %v5563_v36 = vld [vmem:[%s12867_s7 + $0x480] sm:$0xff]  ;;  %v5465_v26 = vld [vmem:[%s12867_s7 + $0x3b8] sm:$0xff] }
 0x996   :  { %vm4316_vm14 = vmand %vm4308_vm1, %vm4292_vm5  ;;  %vm4733_vm5 = vcmp.lt.f32.partialorder %v12199_v6, %v12119_v53  ;;  %vm4693_vm1 = vcmp.gt.f32.partialorder %v12199_v6, %v11628_v28  ;;  %v5361_v53 = vld [vmem:[%s12867_s7 + $0x2c0] sm:$0xff]  ;;  %v5461_v6 = vld [vmem:[%s12867_s7 + $0x398] sm:$0xff] }
 0x997   :  { %v6187_v23 = vsel %vm4316_vm14, 1.0, %v13081_v49  ;;  %vm4804_vm10 = vmand %vm4756_vm7, %vm4796_vm11  ;;  %v6767_v28 = vpack.c.bf16 %v5362_v12, %v5361_v53  ;;  %v6787_v46 = vpack.c.bf16 %v5461_v6, %v5460_v22  ;;  %v6817_v53 = vpack.c.bf16 %v5548_v13, %v5547_v45  ;;  %v5453_v22 = vld [vmem:[%s12867_s7 + $0x358] sm:$0xff]  ;;  %v5569_v6 = vld [vmem:[%s12867_s7 + $0x4b0] sm:$0xff] }
 0x998   :  { %v12218_v33 = vpop.permute.xlu1 %4787  ;;  %6671 = vmatmul.mubr.msk.f32.gmra.mrb[30].mxu0 %vm13447_vm9, %v6187_v23  ;;  %vm13449_vm14 = vmmov %vm13447_vm9  ;;  %vm4749_vm9 = vcmp.lt.f32.partialorder %v11836_v32, %v11510_v48  ;;  %v5364_v48 = vld [vmem:[%s12867_s7 + $0x2d8] sm:$0xff]  ;;  %v5444_v23 = vld [vmem:[%s12867_s7 + $0x310] sm:$0xff] }
 0x999   :  { %5259 = vmatprep.mubr.f32.mxu0 %v5162_v62  ;;  %vm4741_vm12 = vmand %vm4693_vm1, %vm4733_vm5  ;;  %vm4797_vm4 = vcmp.gt.f32.partialorder %v11836_v32, %v12218_v33  ;;  %vm13451_vm5 = vcmask 523520   ;;  %v5367_v33 = vld [vmem:[%s12867_s7 + $0x2f0] sm:$0xff]  ;;  %v5368_v62 = vld [vmem:[%s12867_s7 + $0x2f8] sm:$0xff]  ;;  %v6789_v52 = vpack.c.bf16 %v5445_v34, %v5444_v23  ;;  %vm13453_vm1 = vcmask 1048320  }
 0x99a   :  { %vm4757_vm7 = vmand %vm4741_vm12, %vm4749_vm9  ;;  %v6779_v58 = vpack.c.bf16 %v5368_v62, %v5367_v33  ;;  %v5553_v23 = vld [vmem:[%s12867_s7 + $0x430] sm:$0xff]  ;;  %v5455_v62 = vld [vmem:[%s12867_s7 + $0x368] sm:$0xff]  ;;  %vm13455_vm12 = vcmask 261120  }
 0x99b   :  { %v5456_v7 = vld [vmem:[%s12867_s7 + $0x370] sm:$0xff]  ;;  %v5457_v55 = vld [vmem:[%s12867_s7 + $0x378] sm:$0xff]  ;;  %vm13457_vm9 = vmmov %vm13453_vm1 }
 0x99c   :  { %5260 = vmatmul.mubr.f32.vlgmr.msra.gmra.mrb[32].mxu0 %v5161_v16  ;;  %v5441_v16 = vld [vmem:[#allocation2 + $0x38] sm:$0xff]  ;;  %v5557_v45 = vld [vmem:[%s12867_s7 + $0x450] sm:$0xff] }
 0x99d   :  { %6754 = vmatpush3.bf16.msra.mxu0 %v6753_v25  ;;  %v4834_v14 = vpop.permute.xlu1 %4833  ;;  %5433 = vmatprep.mubr.f32.mxu0 %v5336_v17  ;;  %v5127_v25 = vld [vmem:[#allocation2] sm:$0xff]  ;;  %v6791_v17 = vpack.c.bf16 %v5463_v27, %v5462_v39  ;;  %v5572_v39 = vld [vmem:[%s12867_s7 + $0x4c8] sm:$0xff]  ;;  %v5472_v27 = vld [vmem:[%s12867_s7 + $0x3f0] sm:$0xff] }
 0x99e   :  { %vm4844_vm2 = vcmp.eq.s32.totalorder %v4834_v14, %v11730_v24  ;;  %6756 = vmatprep.subr.bf16.mxu0 %v6755_v35  ;;  %v6777_v35 = vpack.c.bf16 %v5350_v41, %v5349_v4  ;;  %v5564_v14 = vld [vmem:[%s12867_s7 + $0x488] sm:$0xff]  ;;  %v6805_v4 = vpack.c.bf16 %v5453_v22, %v5452_v31  ;;  %v5558_v13 = vld [vmem:[%s12867_s7 + $0x458] sm:$0xff]  ;;  %v5674_v22 = vld [vmem:[%s12867_s7 + $0x5b0] sm:$0xff] }
 0x99f   :  { %vm4932_vm8 = vmand %vm4804_vm10, %vm4844_vm2  ;;  %v6815_v42 = vpack.c.bf16 %v5564_v14, %v5563_v36  ;;  %v5573_v36 = vld [vmem:[%s12867_s7 + $0x4d0] sm:$0xff]  ;;  %v5574_v14 = vld [vmem:[%s12867_s7 + $0x4d8] sm:$0xff] }
 0x9a0   :  { %vm4940_vm0 = vmand %vm4932_vm8, %vm4884_vm15 }
 0x9a1   :  { %vm4948_vm13 = vmand %vm4940_vm0, %vm4924_vm6  ;;  %6758 = vmatpush3.bf16.msra.mxu0 %v6757_v47  ;;  %v4837_v20 = vpop.permute.xlu1 %4836  ;;  %v5464_v47 = vld [vmem:[%s12867_s7 + $0x3b0] sm:$0xff] }
 0x9a2   :  { %v6210_v38 = vsel %vm4948_vm13, 1.0, %v13081_v49  ;;  %6760 = vmatprep.subr.bf16.mxu0 %v6759_v1  ;;  %vm4845_vm3 = vcmp.eq.s32.totalorder %v4837_v20, %v11730_v24  ;;  %vm4805_vm10 = vmand %vm4757_vm7, %vm4797_vm4  ;;  %v7070_v24 = vcvt.f32.s32 %v7069_v19  ;;  %v6781_v1 = vpack.c.bf16 %v5352_v54, %v5351_v8  ;;  %v5449_v20 = vld [vmem:[%s12867_s7 + $0x338] sm:$0xff]  ;;  %v5555_v8 = vld [vmem:[%s12867_s7 + $0x440] sm:$0xff] }
 0x9a3   :  { %6684 = vmatprep.mubr.msk.f32.mxu1 %vm13449_vm14, %v6210_v38  ;;  %vm4933_vm2 = vmand %vm4805_vm10, %vm4845_vm3  ;;  %v6795_v57 = vpack.c.bf16 %v5465_v26, %v5464_v47  ;;  %v5566_v38 = vld [vmem:[%s12867_s7 + $0x498] sm:$0xff]  ;;  %v6797_v12 = vpack.c.bf16 %v5449_v20, %v5448_v29  ;;  %vm13452_vm13 = vcmask 785920   ;;  %v5556_v54 = vld [vmem:[%s12867_s7 + $0x448] sm:$0xff] }
 0x9a4   :  { %vm13450_vm0 = vmmov %vm13449_vm14  ;;  %v5668_v47 = vld [vmem:[%s12867_s7 + $0x580] sm:$0xff]  ;;  %v5669_v26 = vld [vmem:[%s12867_s7 + $0x588] sm:$0xff] }
 0x9a5   :  { %6762 = vmatpush3.bf16.msra.mxu0 %v6761_v51  ;;  %v4877_v30 = vpop.permute.xlu1 %4876  ;;  %v5565_v51 = vld [vmem:[%s12867_s7 + $0x490] sm:$0xff]  ;;  %v5652_v29 = vld [vmem:[%s12867_s7 + $0x500] sm:$0xff]  ;;  %v5653_v20 = vld [vmem:[%s12867_s7 + $0x508] sm:$0xff] }
 0x9a6   :  { %6764 = vmatprep.subr.bf16.mxu0 %v6763_v44  ;;  %vm4885_vm11 = vcmp.ne.s32.totalorder %v4877_v30, %v7631_v15  ;;  %v6771_v15 = vpack.c.bf16 %v5364_v48, %v5363_v37  ;;  %v5466_v44 = vld [vmem:[%s12867_s7 + $0x3c0] sm:$0xff]  ;;  %v6819_v19 = vpack.c.bf16 %v5566_v38, %v5565_v51  ;;  %v5549_v30 = vld [vmem:[%s12867_s7 + $0x410] sm:$0xff]  ;;  %v5568_v48 = vld [vmem:[%s12867_s7 + $0x4a8] sm:$0xff] }
 0x9a7   :  { %vm4941_vm15 = vmand %vm4933_vm2, %vm4885_vm11  ;;  %v6799_v3 = vpack.c.bf16 %v5467_v60, %v5466_v44  ;;  %v5567_v37 = vld [vmem:[%s12867_s7 + $0x4a0] sm:$0xff]  ;;  %v5576_v38 = vld [vmem:[%s12867_s7 + $0x4e8] sm:$0xff] }
 0x9a8   :  { %v6823_v18 = vpack.c.bf16 %v5568_v48, %v5567_v37  ;;  %v5575_v51 = vld [vmem:[%s12867_s7 + $0x4e0] sm:$0xff]  ;;  %v5670_v44 = vld [vmem:[%s12867_s7 + $0x590] sm:$0xff]  ;;  %v5671_v60 = vld [vmem:[%s12867_s7 + $0x598] sm:$0xff] }
 0x9a9   :  { %6766 = vmatpush3.bf16.msra.mxu0 %v6765_v50  ;;  %v4917_v32 = vpop.permute.xlu1 %4916  ;;  %v5550_v50 = vld [vmem:[%s12867_s7 + $0x418] sm:$0xff]  ;;  %v5440_v48 = vld [vmem:[#allocation2 + $0x30] sm:$0xff]  ;;  %vm13454_vm14 = vmmov %vm13451_vm5 }
 0x9aa   :  { %vm4925_vm8 = vcmp.eq.s32.totalorder %v7070_v24, %v4917_v32  ;;  %6768 = vmatprep.subr.bf16.mxu0 %v6767_v28  ;;  %v5450_v28 = vld [vmem:[%s12867_s7 + $0x340] sm:$0xff]  ;;  %v5546_v24 = vld [vmem:[#allocation2 + $0x48] sm:$0xff]  ;;  %v5468_v32 = vld [vmem:[%s12867_s7 + $0x3d0] sm:$0xff]  ;;  %v6821_v2 = vpack.c.bf16 %v5550_v50, %v5549_v30 }
 0x9ab   :  { %vm4949_vm6 = vmand %vm4941_vm15, %vm4925_vm8  ;;  %v5560_v30 = vld [vmem:[%s12867_s7 + $0x468] sm:$0xff]  ;;  %v5654_v50 = vld [vmem:[%s12867_s7 + $0x510] sm:$0xff] }
 0x9ac   :  { %v6211_v5 = vsel %vm4949_vm6, 1.0, %v13081_v49  ;;  %v6785_v49 = vpack.c.bf16 %v5443_v56, %v5442_v21  ;;  %v5551_v21 = vld [vmem:[%s12867_s7 + $0x420] sm:$0xff]  ;;  %v5552_v56 = vld [vmem:[%s12867_s7 + $0x428] sm:$0xff]  ;;  %v5578_v37 = vld [vmem:[%s12867_s7 + $0x4f8] sm:$0xff] }
 0x9ad   :  { %6770 = vmatpush3.bf16.msra.mxu0 %v6769_v11  ;;  %v3832_v43 = vpop.permute.xlu1 %3831  ;;  %6685 = vmatmul.mubr.msk.f32.gmra.mrb[30].mxu1 %vm13450_vm0, %v6211_v5  ;;  %v5469_v11 = vld [vmem:[%s12867_s7 + $0x3d8] sm:$0xff]  ;;  %vm13456_vm4 = vmmov %vm13452_vm13 }
 0x9ae   :  { %3834 = vst.msk [vmem:[#allocation2 + $0x50] sm:$0xff] %vm13451_vm5, %v3832_v43  ;;  %5329 = vmatprep.mubr.f32.mxu1 %v5128_v61  ;;  %6772 = vmatprep.subr.bf16.mxu0 %v6771_v15  ;;  %v6801_v15 = vpack.c.bf16 %v5451_v59, %v5450_v28  ;;  %v6803_v63 = vpack.c.bf16 %v5469_v11, %v5468_v32  ;;  %v5570_v43 = vld [vmem:[%s12867_s7 + $0x4b8] sm:$0xff]  ;;  %v5470_v61 = vld [vmem:[%s12867_s7 + $0x3e0] sm:$0xff]  ;;  %v5577_v59 = vld [vmem:[%s12867_s7 + $0x4f0] sm:$0xff] }
 0x9af   :  { %v6827_v41 = vpack.c.bf16 %v5570_v43, %v5569_v6  ;;  %v6851_v28 = vpack.c.bf16 %v5671_v60, %v5670_v44  ;;  %v5673_v32 = vld [vmem:[%s12867_s7 + $0x5a8] sm:$0xff]  ;;  %v5675_v6 = vld [vmem:[%s12867_s7 + $0x5b8] sm:$0xff]  ;;  %vm13458_vm3 = vmmov %vm13455_vm12 }
 0x9b0   :  { %vm13459_vm7 = vmmov %vm13458_vm3 }
 0x9b1   :  { %6774 = vmatpush3.bf16.msra.mxu0 %v6773_v0  ;;  %5330 = vmatmul.mubr.f32.vlgmr.msra.gmra.mrb[32].mxu1 %v5127_v25  ;;  %v5471_v0 = vld [vmem:[%s12867_s7 + $0x3e8] sm:$0xff]  ;;  %v5571_v25 = vld [vmem:[%s12867_s7 + $0x4c0] sm:$0xff]  ;;  %vm13460_vm11 = vmmov %vm13451_vm5 }
 0x9b2   :  { %6786 = vmatpush3.bf16.msra.mxu1 %v6785_v49  ;;  %5538 = vmatprep.mubr.f32.mxu1 %v5441_v16  ;;  %v6825_v49 = vpack.c.bf16 %v5552_v56, %v5551_v21  ;;  %v6807_v33 = vpack.c.bf16 %v5471_v0, %v5470_v61  ;;  %v5473_v16 = vld [vmem:[%s12867_s7 + $0x3f8] sm:$0xff]  ;;  %v5561_v21 = vld [vmem:[%s12867_s7 + $0x470] sm:$0xff]  ;;  %vm13461_vm10 = vmmov %vm13458_vm3 }
 0x9b3   :  { %6776 = vmatprep.subr.bf16.mxu0 %v6775_v40  ;;  %6788 = vmatprep.subr.bf16.mxu1 %v6787_v46  ;;  %v5554_v40 = vld [vmem:[%s12867_s7 + $0x438] sm:$0xff]  ;;  %v5454_v46 = vld [vmem:[%s12867_s7 + $0x360] sm:$0xff]  ;;  %vm13462_vm2 = vmmov %vm13456_vm4 }
 0x9b4   :  { %v5562_v56 = vld [vmem:[%s12867_s7 + $0x478] sm:$0xff]  ;;  %vm13463_vm15 = vmmov %vm13451_vm5 }
 0x9b5   :  { %6778 = vmatpush3.bf16.msra.mxu0 %v6777_v35  ;;  %v6829_v35 = vpack.c.bf16 %v5554_v40, %v5553_v23  ;;  %v6845_v43 = vpack.c.bf16 %v5562_v56, %v5561_v21  ;;  %v5676_v40 = vld [vmem:[%s12867_s7 + $0x5c0] sm:$0xff]  ;;  %v5778_v56 = vld [vmem:[%s12867_s7 + $0x6a8] sm:$0xff]  ;;  %vm13464_vm8 = vmmov %vm13451_vm5 }
 0x9b6   :  { %6790 = vmatpush3.bf16.msra.mxu1 %v6789_v52  ;;  %6780 = vmatprep.subr.bf16.mxu0 %v6779_v58  ;;  %v6809_v52 = vpack.c.bf16 %v5455_v62, %v5454_v46  ;;  %v6831_v58 = vpack.c.bf16 %v5572_v39, %v5571_v25  ;;  %v5677_v46 = vld [vmem:[%s12867_s7 + $0x5c8] sm:$0xff]  ;;  %v5660_v25 = vld [vmem:[%s12867_s7 + $0x540] sm:$0xff]  ;;  %vm13465_vm6 = vmmov %vm13451_vm5 }
 0x9b7   :  { %6792 = vmatprep.subr.bf16.mxu1 %v6791_v17  ;;  %v6811_v17 = vpack.c.bf16 %v5473_v16, %v5472_v27  ;;  %v6863_v62 = vpack.c.bf16 %v5677_v46, %v5676_v40  ;;  %v5661_v39 = vld [vmem:[%s12867_s7 + $0x548] sm:$0xff]  ;;  %v5678_v27 = vld [vmem:[%s12867_s7 + $0x5d0] sm:$0xff]  ;;  %v5679_v16 = vld [vmem:[%s12867_s7 + $0x5d8] sm:$0xff] }
 0x9b8   :  { %v5777_v21 = vld [vmem:[%s12867_s7 + $0x6a0] sm:$0xff]  ;;  %v5782_v40 = vld [vmem:[%s12867_s7 + $0x6c8] sm:$0xff]  ;;  %vm13466_vm0 = vmmov %vm13462_vm2 }
 0x9b9   :  { %6782 = vmatpush3.bf16.msra.mxu0 %v6781_v1  ;;  %v6833_v1 = vpack.c.bf16 %v5556_v54, %v5555_v8  ;;  %v5663_v8 = vld [vmem:[%s12867_s7 + $0x558] sm:$0xff]  ;;  %vm13467_vm5 = vmmov %vm13466_vm0 }
 0x9ba   :  { %6794 = vmatpush3.bf16.msra.mxu1 %v6793_v10  ;;  %6816 = vmatprep.subr.bf16.mxu0 %v6815_v42  ;;  %v6813_v10 = vpack.c.bf16 %v5457_v55, %v5456_v7  ;;  %v6835_v42 = vpack.c.bf16 %v5574_v14, %v5573_v36  ;;  %v5680_v7 = vld [vmem:[%s12867_s7 + $0x5e0] sm:$0xff] }
 0x9bb   :  { %6796 = vmatprep.subr.bf16.mxu1 %v6795_v57  ;;  %v6847_v57 = vpack.c.bf16 %v5669_v26, %v5668_v47  ;;  %v5664_v14 = vld [vmem:[%s12867_s7 + $0x560] sm:$0xff]  ;;  %v5665_v47 = vld [vmem:[%s12867_s7 + $0x568] sm:$0xff] }
 0x9bc   :  { %5434 = vmatmul.mubr.f32.vlgmr.msra.gmra.mrb[34].mxu0 %v5335_v9  ;;  %v6837_v9 = vpack.c.bf16 %v5558_v13, %v5557_v45  ;;  %v5666_v13 = vld [vmem:[%s12867_s7 + $0x570] sm:$0xff] }
 0x9bd   :  { %6818 = vmatpush3.bf16.msra.mxu0 %v6817_v53  ;;  %5643 = vmatprep.mubr.f32.mxu0 %v5546_v24  ;;  %v6849_v53 = vpack.c.bf16 %v5653_v20, %v5652_v29  ;;  %v5672_v24 = vld [vmem:[%s12867_s7 + $0x5a0] sm:$0xff]  ;;  %v5667_v29 = vld [vmem:[%s12867_s7 + $0x578] sm:$0xff] }
 0x9be   :  { %6798 = vmatpush3.bf16.msra.mxu1 %v6797_v12  ;;  %6820 = vmatprep.subr.bf16.mxu0 %v6819_v19  ;;  %v6839_v12 = vpack.c.bf16 %v5576_v38, %v5575_v51  ;;  %v5559_v19 = vld [vmem:[%s12867_s7 + $0x460] sm:$0xff]  ;;  %v6855_v31 = vpack.c.bf16 %v5673_v32, %v5672_v24  ;;  %v5776_v24 = vld [vmem:[%s12867_s7 + $0x698] sm:$0xff] }
 0x9bf   :  { %v3837_v5 = vpop.permute.xlu1 %3836  ;;  %6800 = vmatprep.subr.bf16.mxu1 %v6799_v3  ;;  %v5655_v3 = vld [vmem:[%s12867_s7 + $0x518] sm:$0xff]  ;;  %v6841_v11 = vpack.c.bf16 %v5560_v30, %v5559_v19 }
 0x9c0   :  { %3839 = vst.msk [vmem:[#allocation2 + $0x50] sm:$0xff] %vm13452_vm13, %v3837_v5  ;;  %v5656_v5 = vld [vmem:[%s12867_s7 + $0x520] sm:$0xff]  ;;  %vm13468_vm13 = vmmov %vm13453_vm1 }
 0x9c1   :  { %6822 = vmatpush3.bf16.msra.mxu0 %v6821_v2 }
 0x9c2   :  { %6802 = vmatpush3.bf16.msra.mxu1 %v6801_v15  ;;  %6824 = vmatprep.subr.bf16.mxu0 %v6823_v18  ;;  %v6853_v15 = vpack.c.bf16 %v5655_v3, %v5654_v50  ;;  %v6843_v18 = vpack.c.bf16 %v5578_v37, %v5577_v59  ;;  %v5773_v50 = vld [vmem:[%s12867_s7 + $0x680] sm:$0xff]  ;;  %v5758_v37 = vld [vmem:[%s12867_s7 + $0x608] sm:$0xff] }
 0x9c3   :  { %v3842_v34 = vpop.permute.xlu1 %3841  ;;  %6804 = vmatprep.subr.bf16.mxu1 %v6803_v63  ;;  %v5657_v63 = vld [vmem:[%s12867_s7 + $0x528] sm:$0xff]  ;;  %v5757_v3 = vld [vmem:[%s12867_s7 + $0x600] sm:$0xff] }
 0x9c4   :  { %3844 = vst.msk [vmem:[#allocation2 + $0x50] sm:$0xff] %vm13453_vm1, %v3842_v34  ;;  %v6857_v61 = vpack.c.bf16 %v5657_v63, %v5656_v5  ;;  %v6887_v5 = vpack.c.bf16 %v5778_v56, %v5777_v21  ;;  %v5761_v63 = vld [vmem:[%s12867_s7 + $0x620] sm:$0xff]  ;;  %v5868_v21 = vld [vmem:[%s12867_s7 + $0x730] sm:$0xff]  ;;  %v5869_v56 = vld [vmem:[%s12867_s7 + $0x738] sm:$0xff] }
 0x9c5   :  { %6826 = vmatpush3.bf16.msra.mxu0 %v6825_v49  ;;  %v6859_v49 = vpack.c.bf16 %v5675_v6, %v5674_v22  ;;  %v5762_v22 = vld [vmem:[%s12867_s7 + $0x628] sm:$0xff]  ;;  %v5779_v6 = vld [vmem:[%s12867_s7 + $0x6b0] sm:$0xff] }
 0x9c6   :  { %6806 = vmatpush3.bf16.msra.mxu1 %v6805_v4  ;;  %6828 = vmatprep.subr.bf16.mxu0 %v6827_v41  ;;  %v5658_v4 = vld [vmem:[%s12867_s7 + $0x530] sm:$0xff]  ;;  %v5659_v41 = vld [vmem:[%s12867_s7 + $0x538] sm:$0xff] }
 0x9c7   :  { %6808 = vmatprep.subr.bf16.mxu1 %v6807_v33  ;;  %v6861_v34 = vpack.c.bf16 %v5659_v41, %v5658_v4  ;;  %v5545_v33 = vld [vmem:[#allocation2 + $0x40] sm:$0xff]  ;;  %v5764_v4 = vld [vmem:[%s12867_s7 + $0x638] sm:$0xff] }
 0x9c9   :  { %6830 = vmatpush3.bf16.msra.mxu0 %v6829_v35  ;;  %v6865_v35 = vpack.c.bf16 %v5661_v39, %v5660_v25  ;;  %v5879_v39 = vld [vmem:[%s12867_s7 + $0x788] sm:$0xff] }
 0x9ca   :  { %6810 = vmatpush3.bf16.msra.mxu1 %v6809_v52  ;;  %6832 = vmatprep.subr.bf16.mxu0 %v6831_v58  ;;  %v6867_v52 = vpack.c.bf16 %v5679_v16, %v5678_v27  ;;  %v5662_v58 = vld [vmem:[%s12867_s7 + $0x550] sm:$0xff]  ;;  %v5862_v27 = vld [vmem:[%s12867_s7 + $0x700] sm:$0xff]  ;;  %v5863_v16 = vld [vmem:[%s12867_s7 + $0x708] sm:$0xff] }
 0x9cb   :  { %6812 = vmatprep.subr.bf16.mxu1 %v6811_v17  ;;  %v5681_v17 = vld [vmem:[%s12867_s7 + $0x5e8] sm:$0xff]  ;;  %v6869_v55 = vpack.c.bf16 %v5663_v8, %v5662_v58  ;;  %v5650_v51 = vld [vmem:[#allocation2 + $0x50] sm:$0xff]  ;;  %v5784_v8 = vld [vmem:[%s12867_s7 + $0x6d8] sm:$0xff] }
 0x9cc   :  { %v6871_v36 = vpack.c.bf16 %v5681_v17, %v5680_v7  ;;  %v5783_v58 = vld [vmem:[%s12867_s7 + $0x6d0] sm:$0xff] }
 0x9cd   :  { %6834 = vmatpush3.bf16.msra.mxu0 %v6833_v1  ;;  %v5682_v1 = vld [vmem:[%s12867_s7 + $0x5f0] sm:$0xff] }
 0x9ce   :  { %6814 = vmatpush3.bf16.msra.mxu1 %v6813_v10  ;;  %6836 = vmatprep.subr.bf16.mxu0 %v6835_v42  ;;  %v5683_v10 = vld [vmem:[%s12867_s7 + $0x5f8] sm:$0xff]  ;;  %v6873_v42 = vpack.c.bf16 %v5665_v47, %v5664_v14  ;;  %v5767_v17 = vld [vmem:[%s12867_s7 + $0x650] sm:$0xff] }
 0x9cf   :  { %6848 = vmatprep.subr.bf16.mxu1 %v6847_v57  ;;  %v6875_v45 = vpack.c.bf16 %v5683_v10, %v5682_v1  ;;  %v6877_v57 = vpack.c.bf16 %v5667_v29, %v5666_v13  ;;  %v5864_v1 = vld [vmem:[%s12867_s7 + $0x710] sm:$0xff]  ;;  %v5865_v10 = vld [vmem:[%s12867_s7 + $0x718] sm:$0xff]  ;;  %v5785_v13 = vld [vmem:[%s12867_s7 + $0x6e0] sm:$0xff] }
 0x9d0   :  { %v5786_v29 = vld [vmem:[%s12867_s7 + $0x6e8] sm:$0xff] }
 0x9d1   :  { %5539 = vmatmul.mubr.f32.vlgmr.msra.gmra.mrb[34].mxu1 %v5440_v48  ;;  %6838 = vmatpush3.bf16.msra.mxu0 %v6837_v9  ;;  %v5775_v48 = vld [vmem:[%s12867_s7 + $0x690] sm:$0xff] }
 0x9d2   :  { %6850 = vmatpush3.bf16.msra.mxu1 %v6849_v53  ;;  %v3848_v2 = vpop.permute.xlu0 %3847  ;;  %6840 = vmatprep.subr.bf16.mxu0 %v6839_v12 }
 0x9d3   :  { %3850 = vst.msk [vmem:[#allocation2 + $0x58] sm:$0xff] %vm13454_vm14, %v3848_v2  ;;  %6852 = vmatprep.subr.bf16.mxu1 %v6851_v28  ;;  %v5774_v28 = vld [vmem:[%s12867_s7 + $0x688] sm:$0xff]  ;;  %v6883_v2 = vpack.c.bf16 %v5776_v24, %v5775_v48  ;;  %v5788_v48 = vld [vmem:[%s12867_s7 + $0x6f8] sm:$0xff]  ;;  %vm13469_vm14 = vmmov %vm13453_vm1 }
 0x9d4   :  { %v6879_v59 = vpack.c.bf16 %v5774_v28, %v5773_v50  ;;  %v5866_v50 = vld [vmem:[%s12867_s7 + $0x720] sm:$0xff]  ;;  %v5867_v28 = vld [vmem:[%s12867_s7 + $0x728] sm:$0xff] }
 0x9d5   :  { %6842 = vmatpush3.bf16.msra.mxu0 %v6841_v11  ;;  %v6881_v11 = vpack.c.bf16 %v5758_v37, %v5757_v3  ;;  %v5787_v3 = vld [vmem:[%s12867_s7 + $0x6f0] sm:$0xff]  ;;  %v6921_v37 = vpack.c.bf16 %v5867_v28, %v5866_v50 }
 0x9d6   :  { %6854 = vmatpush3.bf16.msra.mxu1 %v6853_v15  ;;  %6844 = vmatprep.subr.bf16.mxu0 %v6843_v18  ;;  %v5759_v15 = vld [vmem:[%s12867_s7 + $0x610] sm:$0xff]  ;;  %v5760_v18 = vld [vmem:[%s12867_s7 + $0x618] sm:$0xff] }
 0x9d7   :  { %v6663_v0 = vpop.f32.mrb[24].mxu0  ;;  %6856 = vmatprep.subr.bf16.mxu1 %v6855_v31  ;;  %v6885_v31 = vpack.c.bf16 %v5760_v18, %v5759_v15  ;;  %v5885_v18 = vld [vmem:[%s12867_s7 + $0x7b8] sm:$0xff] }
 0x9d8   :  { %4464 = vrot.lane.b32.xlu1 %v6663_v0, %s7197_s25  ;;  %v4423_v23 = vpop.f32.mrb[25].mxu0 }
 0x9d9   :  { %4462 = vst.msk [vmem:[#allocation2 + $0x60] sm:$0xff] %vm13455_vm12, %v4423_v23  ;;  %6846 = vmatpush3.bf16.msra.mxu0 %v6845_v43  ;;  %v6889_v43 = vpack.c.bf16 %v5762_v22, %v5761_v63  ;;  %v5781_v23 = vld [vmem:[%s12867_s7 + $0x6c0] sm:$0xff]  ;;  %v6925_v63 = vpack.c.bf16 %v5869_v56, %v5868_v21  ;;  %vm13470_vm12 = vmmov %vm13466_vm0 }
 0x9da   :  { %6858 = vmatpush3.bf16.msra.mxu1 %v6857_v61  ;;  %6880 = vmatprep.subr.bf16.mxu0 %v6879_v59  ;;  %v5780_v61 = vld [vmem:[%s12867_s7 + $0x6b8] sm:$0xff]  ;;  %v6895_v46 = vpack.c.bf16 %v5782_v40, %v5781_v23  ;;  %v5872_v40 = vld [vmem:[%s12867_s7 + $0x750] sm:$0xff] }
 0x9db   :  { %6860 = vmatprep.subr.bf16.mxu1 %v6859_v49  ;;  %v6891_v0 = vpack.c.bf16 %v5780_v61, %v5779_v6  ;;  %v5763_v49 = vld [vmem:[%s12867_s7 + $0x630] sm:$0xff]  ;;  %v5886_v6 = vld [vmem:[%s12867_s7 + $0x7c0] sm:$0xff]  ;;  %v5889_v23 = vld [vmem:[%s12867_s7 + $0x7d8] sm:$0xff] }
 0x9dc   :  { %5644 = vmatmul.mubr.f32.vlgmr.msra.gmra.mrb[36].mxu0 %v5545_v33  ;;  %v6893_v41 = vpack.c.bf16 %v5764_v4, %v5763_v49  ;;  %v5766_v33 = vld [vmem:[%s12867_s7 + $0x648] sm:$0xff]  ;;  %v5870_v61 = vld [vmem:[%s12867_s7 + $0x740] sm:$0xff] }
 0x9dd   :  { %6882 = vmatpush3.bf16.msra.mxu0 %v6881_v11  ;;  %v5771_v11 = vld [vmem:[%s12867_s7 + $0x670] sm:$0xff]  ;;  %v5871_v49 = vld [vmem:[%s12867_s7 + $0x748] sm:$0xff] }
 0x9de   :  { %6862 = vmatpush3.bf16.msra.mxu1 %v6861_v34  ;;  %6884 = vmatprep.subr.bf16.mxu0 %v6883_v2  ;;  %v5765_v34 = vld [vmem:[%s12867_s7 + $0x640] sm:$0xff]  ;;  %v5772_v2 = vld [vmem:[%s12867_s7 + $0x678] sm:$0xff]  ;;  %v6929_v4 = vpack.c.bf16 %v5871_v49, %v5870_v61 }
 0x9df   :  { %6864 = vmatprep.subr.bf16.mxu1 %v6863_v62  ;;  %v5878_v62 = vld [vmem:[%s12867_s7 + $0x780] sm:$0xff]  ;;  %v6897_v25 = vpack.c.bf16 %v5766_v33, %v5765_v34  ;;  %v6909_v15 = vpack.c.bf16 %v5772_v2, %v5771_v11  ;;  %v5891_v33 = vld [vmem:[%s12867_s7 + $0x7e8] sm:$0xff] }
 0x9e0   :  { %v3853_v54 = vpop.permute.xlu0 %3852  ;;  %v6220_v49 = vld [vmem:[%s12868_s8] ss:$0 sm:$0xff] }
 0x9e1   :  { %3855 = vst.msk [vmem:[#allocation2 + $0x58] sm:$0xff] %vm13456_vm4, %v3853_v54  ;;  %6886 = vmatpush3.bf16.msra.mxu0 %v6885_v31  ;;  %v6899_v54 = vpack.c.bf16 %v5784_v8, %v5783_v58  ;;  %v5876_v58 = vld [vmem:[%s12867_s7 + $0x770] sm:$0xff]  ;;  %v5877_v8 = vld [vmem:[%s12867_s7 + $0x778] sm:$0xff]  ;;  %vm13471_vm4 = vmmov %vm13453_vm1 }
 0x9e2   :  { %6866 = vmatpush3.bf16.msra.mxu1 %v6865_v35  ;;  %6888 = vmatprep.subr.bf16.mxu0 %v6887_v5  ;;  %v6911_v35 = vpack.c.bf16 %v5879_v39, %v5878_v62  ;;  %v5874_v62 = vld [vmem:[%s12867_s7 + $0x760] sm:$0xff]  ;;  %v5875_v39 = vld [vmem:[%s12867_s7 + $0x768] sm:$0xff] }
 0x9e3   :  { %6868 = vmatprep.subr.bf16.mxu1 %v6867_v52  ;;  %v6913_v52 = vpack.c.bf16 %v5863_v16, %v5862_v27  ;;  %v5892_v27 = vld [vmem:[%s12867_s7 + $0x7f0] sm:$0xff]  ;;  %v5893_v16 = vld [vmem:[%s12867_s7 + $0x7f8] sm:$0xff] }
 0x9e4   :  { %v3858_v26 = vpop.permute.xlu0 %3857 }
 0x9e5   :  { %3860 = vst.msk [vmem:[#allocation2 + $0x58] sm:$0xff] %vm13457_vm9, %v3858_v26  ;;  %6890 = vmatpush3.bf16.msra.mxu0 %v6889_v43  ;;  %v5881_v26 = vld [vmem:[%s12867_s7 + $0x798] sm:$0xff]  ;;  %v5887_v43 = vld [vmem:[%s12867_s7 + $0x7c8] sm:$0xff] }
 0x9e6   :  { %6870 = vmatpush3.bf16.msra.mxu1 %v6869_v55  ;;  %6892 = vmatprep.subr.bf16.mxu0 %v6891_v0  ;;  %v5768_v55 = vld [vmem:[%s12867_s7 + $0x658] sm:$0xff] }
 0x9e7   :  { %6872 = vmatprep.subr.bf16.mxu1 %v6871_v36  ;;  %v5880_v36 = vld [vmem:[%s12867_s7 + $0x790] sm:$0xff]  ;;  %v6901_v47 = vpack.c.bf16 %v5768_v55, %v5767_v17 }
 0x9e9   :  { %6894 = vmatpush3.bf16.msra.mxu0 %v6893_v41  ;;  %v5888_v41 = vld [vmem:[%s12867_s7 + $0x7d0] sm:$0xff] }
 0x9ea   :  { %6874 = vmatpush3.bf16.msra.mxu1 %v6873_v42  ;;  %6896 = vmatprep.subr.bf16.mxu0 %v6895_v46  ;;  %v6915_v42 = vpack.c.bf16 %v5881_v26, %v5880_v36  ;;  %v6931_v46 = vpack.c.bf16 %v5889_v23, %v5888_v41 }
 0x9eb   :  { %6876 = vmatprep.subr.bf16.mxu1 %v6875_v45  ;;  %v6917_v45 = vpack.c.bf16 %v5865_v10, %v5864_v1 }
 0x9ec   :  { %v5651_v20 = vld [vmem:[#allocation2 + $0x58] sm:$0xff] }
 0x9ed   :  { %5748 = vmatprep.mubr.f32.mxu1 %v5651_v20  ;;  %6898 = vmatpush3.bf16.msra.mxu0 %v6897_v25  ;;  %v6903_v20 = vpack.c.bf16 %v5786_v29, %v5785_v13 }
 0x9ee   :  { %6878 = vmatpush3.bf16.msra.mxu1 %v6877_v57  ;;  %6900 = vmatprep.subr.bf16.mxu0 %v6899_v54  ;;  %v5769_v57 = vld [vmem:[%s12867_s7 + $0x660] sm:$0xff]  ;;  %v6941_v54 = vpack.c.bf16 %v5877_v8, %v5876_v58 }
 0x9ef   :  { %6912 = vmatprep.subr.bf16.mxu1 %v6911_v35  ;;  %v6937_v35 = vpack.c.bf16 %v5875_v39, %v5874_v62 }
 0x9f1   :  { %5749 = vmatmul.mubr.f32.vlgmr.msra.gmra.mrb[36].mxu1 %v5650_v51  ;;  %6902 = vmatpush3.bf16.msra.mxu0 %v6901_v47  ;;  %v5770_v51 = vld [vmem:[%s12867_s7 + $0x668] sm:$0xff] }
 0x9f2   :  { %6914 = vmatpush3.bf16.msra.mxu1 %v6913_v52  ;;  %6904 = vmatprep.subr.bf16.mxu0 %v6903_v20  ;;  %v6939_v52 = vpack.c.bf16 %v5893_v16, %v5892_v27 }
 0x9f3   :  { %6916 = vmatprep.subr.bf16.mxu1 %v6915_v42 }
 0x9f6   :  { %6918 = vmatpush3.bf16.msra.mxu1 %v6917_v45 }
 0x9fb   :  { %v12609_v38 = vpop.f32.mrb[24].mxu1 }
 0x9fc   :  { %v5056_v44 = vpop.f32.mrb[25].mxu1 }
 0x9fd   :  { %5095 = vst.msk [vmem:[#allocation2 + $0x70] sm:$0xff] %vm13458_vm3, %v5056_v44  ;;  %v5882_v44 = vld [vmem:[%s12867_s7 + $0x7a0] sm:$0xff] }
 0xa0d   :  { %v12612_v60 = vpop.f32.mrb[26].mxu0 }
 0xa0e   :  { %v4433_v9 = vpop.f32.mrb[27].mxu0 }
 0xa0f   :  { %4469 = vrot.lane.b32.xlu1 %v4433_v9, %s7198_s26  ;;  %v5883_v9 = vld [vmem:[%s12867_s7 + $0x7a8] sm:$0xff] }
 0xa2d   :  { %v12615_v53 = vpop.f32.mrb[26].mxu1 }
 0xa2e   :  { %v12617_v12 = vpop.f32.mrb[27].mxu1 }
 0xa3f   :  { %v6669_v19 = vpop.f32.mrb[28].mxu0 }
 0xa40   :  { %4480 = vrot.lane.b32.xlu0 %v6669_v19, %s7197_s25  ;;  %v4443_v30 = vpop.f32.mrb[29].mxu0  ;;  %v6905_v19 = vpack.c.bf16 %v5770_v51, %v5769_v57 }
 0xa41   :  { %4478 = vst.msk [vmem:[#allocation2 + $0x68] sm:$0xff] %vm13459_vm7, %v4443_v30  ;;  %v6919_v30 = vpack.c.bf16 %v5883_v9, %v5882_v44 }
 0xa42   :  { %6906 = vmatpush3.bf16.msra.mxu0 %v6905_v19 }
 0xa43   :  { %6920 = vmatprep.subr.bf16.mxu1 %v6919_v30 }
 0xa44   :  { %6922 = vmatpush3.bf16.msra.mxu1 %v6921_v37 }
 0xa4a   :  { %v4465_v32 = vpop.permute.xlu1 %4464 }
 0xa4b   :  { %4467 = vst.msk [vmem:[#allocation2 + $0x60] sm:$0xff] %vm13460_vm11, %v4465_v32  ;;  %v6907_v32 = vpack.c.bf16 %v5788_v48, %v5787_v3 }
 0xa4d   :  { %6908 = vmatprep.subr.bf16.mxu0 %v6907_v32 }
 0xa4e   :  { %6910 = vmatpush3.bf16.msra.mxu0 %v6909_v15 }
 0xa66   :  { %v6683_v7 = vpop.f32.mrb[28].mxu1 }
 0xa67   :  { %5113 = vrot.lane.b32.xlu1 %v6683_v7, %s7197_s25  ;;  %v5076_v14 = vpop.f32.mrb[29].mxu1 }
 0xa68   :  { %5111 = vst.msk [vmem:[#allocation2 + $0x78] sm:$0xff] %vm13461_vm10, %v5076_v14 }
 0xa6b   :  { %5097 = vrot.lane.b32.xlu1 %v12609_v38, %s7197_s25  ;;  %v6672_v59 = vpop.f32.mrb[30].mxu0  ;;  %v5884_v38 = vld [vmem:[%s12867_s7 + $0x7b0] sm:$0xff] }
 0xa6c   :  { %v4453_v24 = vpop.f32.mrb[31].mxu0  ;;  %v6923_v31 = vpack.c.bf16 %v5885_v18, %v5884_v38 }
 0xa6d   :  { %4485 = vrot.lane.b32.xlu0 %v4453_v24, %s7198_s26 }
 0xa6e   :  { %6924 = vmatprep.subr.bf16.mxu1 %v6923_v31 }
 0xa6f   :  { %5102 = vrot.lane.b32.xlu1 %v12617_v12, %s7198_s26  ;;  %v6327_v5 = vpop.f32.mrb[32].mxu0  ;;  %v6927_v12 = vpack.c.bf16 %v5887_v43, %v5886_v6  ;;  %6926 = vmatpush3.bf16.msra.mxu1 %v6925_v63 }
 0xa70   :  { %v6328_v22 = vpop.f32.mrb[33].mxu0 }
 0xa71   :  { %v6329_v0 = vadd.f32 %v6328_v22, %v6327_v5  ;;  %4490 = vrot.lane.b32.xlu0 %v6672_v59, %s7199_s27  ;;  %6928 = vmatprep.subr.bf16.mxu1 %v6927_v12 }
 0xa73   :  { %5107 = vrot.lane.b32.xlu1 %v12615_v53, %s7199_s27  ;;  %v5873_v53 = vld [vmem:[%s12867_s7 + $0x758] sm:$0xff]  ;;  %6930 = vmatpush3.bf16.msra.mxu1 %v6929_v4 }
 0xa74   :  { %v6933_v34 = vpack.c.bf16 %v5873_v53, %v5872_v40  ;;  %6932 = vmatprep.subr.bf16.mxu1 %v6931_v46 }
 0xa75   :  { %4474 = vrot.lane.b32.xlu0 %v12612_v60, %s7199_s27  ;;  %v5890_v60 = vld [vmem:[%s12867_s7 + $0x7e0] sm:$0xff] }
 0xa76   :  { %v6935_v25 = vpack.c.bf16 %v5891_v33, %v5890_v60 }
 0xa77   :  { %6934 = vmatpush3.bf16.msra.mxu1 %v6933_v34 }
 0xa78   :  { %6936 = vmatprep.subr.bf16.mxu1 %v6935_v25 }
 0xa7b   :  { %6938 = vmatpush3.bf16.msra.mxu1 %v6937_v35 }
 0xa7c   :  { %6940 = vmatprep.subr.bf16.mxu1 %v6939_v52 }
 0xa7f   :  { %6942 = vmatpush3.bf16.msra.mxu1 %v6941_v54 }
 0xa80   :  { %v6686_v7 = vpop.f32.mrb[30].mxu1 }
 0xa81   :  { %v4470_v17 = vpop.permute.xlu1 %4469  ;;  %v5086_v55 = vpop.f32.mrb[31].mxu1 }
 0xa82   :  { %4472 = vst.msk [vmem:[#allocation2 + $0x60] sm:$0xff] %vm13462_vm2, %v4470_v17  ;;  %5118 = vrot.lane.b32.xlu0 %v5086_v55, %s7198_s26  ;;  %v6221_v17 = vld [vmem:[%s12869_s9] ss:$0 sm:$0xff] }
 0xa84   :  { %v6362_v36 = vpop.f32.mrb[32].mxu1 }
 0xa85   :  { %v6363_v14 = vpop.f32.mrb[33].mxu1 }
 0xa86   :  { %v6364_v47 = vadd.f32 %v6363_v14, %v6362_v36  ;;  %5123 = vrot.lane.b32.xlu0 %v6686_v7, %s7199_s27  ;;  %v6222_v36 = vld [vmem:[%s12870_s10] ss:$0 sm:$0xff] }
 0xa88   :  { %v5332_v26 = vadd.f32 %v6364_v47, %v6329_v0 }
 0xa8f   :  { %v6397_v1 = vpop.f32.mrb[34].mxu0 }
 0xa90   :  { %v6398_v10 = vpop.f32.mrb[35].mxu0 }
 0xa91   :  { %v6399_v42 = vadd.f32 %v6398_v10, %v6397_v1 }
 0xa93   :  { %v5439_v45 = vadd.f32 %v6399_v42, %v5332_v26 }
 0xaa4   :  { %v6432_v13 = vpop.f32.mrb[34].mxu1 }
 0xaa5   :  { %v6433_v29 = vpop.f32.mrb[35].mxu1 }
 0xaa6   :  { %v6434_v57 = vadd.f32 %v6433_v29, %v6432_v13 }
 0xaa8   :  { %v5544_v20 = vadd.f32 %v6434_v57, %v5439_v45 }
 0xaaf   :  { %v6467_v51 = vpop.f32.mrb[36].mxu0 }
 0xab0   :  { %v6468_v44 = vpop.f32.mrb[37].mxu0 }
 0xab1   :  { %v6469_v9 = vadd.f32 %v6468_v44, %v6467_v51 }
 0xab2   :  { %v4481_v19 = vpop.permute.xlu0 %4480 }
 0xab3   :  { %v5649_v30 = vadd.f32 %v6469_v9, %v5544_v20  ;;  %4483 = vst.msk [vmem:[#allocation2 + $0x68] sm:$0xff] %vm13463_vm15, %v4481_v19 }
 0xac4   :  { %v6502_v50 = vpop.f32.mrb[36].mxu1 }
 0xac5   :  { %v6503_v28 = vpop.f32.mrb[37].mxu1 }
 0xac6   :  { %v6504_v3 = vadd.f32 %v6503_v28, %v6502_v50 }
 0xac8   :  { %v5754_v59 = vadd.f32 %v6504_v3, %v5649_v30 }
 0xad9   :  { %v5114_v37 = vpop.permute.xlu1 %5113 }
 0xada   :  { %5116 = vst.msk [vmem:[#allocation2 + $0x78] sm:$0xff] %vm13464_vm8, %v5114_v37 }
 0xadd   :  { %v5098_v48 = vpop.permute.xlu1 %5097 }
 0xade   :  { %5100 = vst.msk [vmem:[#allocation2 + $0x70] sm:$0xff] %vm13465_vm6, %v5098_v48 }
 0xadf   :  { %v4486_v24 = vpop.permute.xlu0 %4485 }
 0xae0   :  { %4488 = vst.msk [vmem:[#allocation2 + $0x68] sm:$0xff] %vm13466_vm0, %v4486_v24 }
 0xae1   :  { %v5103_v32 = vpop.permute.xlu1 %5102 }
 0xae2   :  { %5105 = vst.msk [vmem:[#allocation2 + $0x70] sm:$0xff] %vm13467_vm5, %v5103_v32 }
 0xae3   :  { %v4491_v11 = vpop.permute.xlu0 %4490 }
 0xae4   :  { %4493 = vst.msk [vmem:[#allocation2 + $0x68] sm:$0xff] %vm13468_vm13, %v4491_v11 }
 0xae5   :  { %v5108_v2 = vpop.permute.xlu1 %5107 }
 0xae6   :  { %5110 = vst.msk [vmem:[#allocation2 + $0x70] sm:$0xff] %vm13453_vm1, %v5108_v2 }
 0xae7   :  { %v4475_v38 = vpop.permute.xlu0 %4474 }
 0xae8   :  { %4477 = vst.msk [vmem:[#allocation2 + $0x60] sm:$0xff] %vm13469_vm14, %v4475_v38 }
 0xaeb   :  { %v5756_v15 = vld [vmem:[#allocation2 + $0x68] sm:$0xff] }
 0xaec   :  { %5853 = vmatprep.mubr.f32.mxu0 %v5756_v15 }
 0xaed   :  { %v5860_v5 = vld [vmem:[#allocation2 + $0x70] sm:$0xff] }
 0xaef   :  { %v5755_v18 = vld [vmem:[#allocation2 + $0x60] sm:$0xff] }
 0xaf0   :  { %5854 = vmatmul.mubr.f32.vlgmr.msra.gmra.mrb[38].mxu0 %v5755_v18 }
 0xaf4   :  { %v5119_v21 = vpop.permute.xlu0 %5118 }
 0xaf5   :  { %5121 = vst.msk [vmem:[#allocation2 + $0x78] sm:$0xff] %vm13470_vm12, %v5119_v21 }
 0xaf8   :  { %v5124_v56 = vpop.permute.xlu0 %5123 }
 0xaf9   :  { %5126 = vst.msk [vmem:[#allocation2 + $0x78] sm:$0xff] %vm13471_vm4, %v5124_v56 }
 0xb00   :  { %v5861_v31 = vld [vmem:[#allocation2 + $0x78] sm:$0xff] }
 0xb01   :  { %5958 = vmatprep.mubr.f32.mxu1 %v5861_v31 }
 0xb02   :  { %5959 = vmatmul.mubr.f32.vlgmr.msra.gmra.mrb[38].mxu1 %v5860_v5 }
 0xbc3   :  { %v6537_v63 = vpop.f32.mrb[38].mxu0 }
 0xbc4   :  { %v6538_v22 = vpop.f32.mrb[39].mxu0 }
 0xbc5   :  { %v6539_v6 = vadd.f32 %v6538_v22, %v6537_v63 }
 0xbc7   :  { %v5859_v43 = vadd.f32 %v6539_v6, %v5754_v59 }
 0xbd5   :  { %v6572_v61 = vpop.f32.mrb[38].mxu1 }
 0xbd6   :  { %v6573_v0 = vpop.f32.mrb[39].mxu1 }
 0xbd7   :  { %v6574_v12 = vadd.f32 %v6573_v0, %v6572_v61 }
 0xbd9   :  { %v5964_v4 = vadd.f32 %v6574_v12, %v5859_v43 }
 0xbdb   :  { %v5972_v41 = vadd.f32 %v6220_v49, %v5964_v4 }
 0xbdd   :  { %v5973_v23 = vrot.slane %v5972_v41, 4 }
 0xbdf   :  { %v5974_v40 = vadd.f32 %v5973_v23, %v5972_v41 }
 0xbe1   :  { %v5975_v46 = vrot.slane %v5974_v40, 2 }
 0xbe3   :  { %v5976_v53 = vadd.f32 %v5975_v46, %v5974_v40 }
 0xbe5   :  { %v5977_v34 = vrot.slane %v5976_v53, 1 }
 0xbe7   :  { %v5978_v60 = vadd.f32 %v5977_v34, %v5976_v53 }
 0xbe9   :  { %v5980_v33 = vmul.f32 0.125, %v5978_v60 }
 0xbeb   :  { %v5981_v62 = vsub.f32 %v5972_v41, %v5980_v33 }
 0xbed   :  { %v5982_v25 = vmul.f32 %v5981_v62, %v5981_v62 }
 0xbef   :  { %v5983_v39 = vrot.slane %v5982_v25, 4 }
 0xbf1   :  { %v5984_v27 = vadd.f32 %v5983_v39, %v5982_v25 }
 0xbf3   :  { %v5985_v16 = vrot.slane %v5984_v27, 2 }
 0xbf5   :  { %v5986_v35 = vadd.f32 %v5985_v16, %v5984_v27 }
 0xbf7   :  { %v5987_v52 = vrot.slane %v5986_v35, 1 }
 0xbf9   :  { %v5988_v58 = vadd.f32 %v5987_v52, %v5986_v35 }
 0xbfb   :  { %v5989_v8 = vmul.f32 0.125, %v5988_v58 }
 0xbfd   :  { %v5990_v54 = vadd.f32 1e-05, %v5989_v8 }
 0xbff   :  { %7151 = vrsqrt.f32 %v5990_v54 }
 0xc09   :  { %v7152_v7 = vpop.eup %7151 }
 0xc0a   :  { %v5992_v55 = vmul.f32 %v7152_v7, %v5981_v62 }
 0xc0c   :  { %v6000_v14 = vmul.f32 %v6221_v17, %v5992_v55 }
 0xc0e   :  { %v6008_v47 = vadd.f32 %v6222_v36, %v6000_v14 }
 0xc10   :  { %v6009_v26 = vmax.f32 %v6008_v47, 0.0 }
 0xc12   :  { %6010 = vst [vmem:[#allocation3] sm:$0xff] %v6009_v26 }
 0xc13   :  { %7181 = shalt.err (!%p7178_p4)
}
 0xc14   :  { %s7182_s3 = scalar_lea.hbm %s12871_s11, 128 }
 0xc15   :  { %p7183_p5 = scmp.ne.s32.totalorder %s12871_s11, %s7182_s3  ;;  %p7186_p6 = scmp.lt.u32.totalorder %s7182_s3, %s12871_s11 }
 0xc17   :  { %p7188_p7 = pnand %p7186_p6, %p7183_p5 }
 0xc19   :  { %7191 = shalt.err (!%p7188_p7)
}
 0xc1a   :  { %6020 = dma.vmem_to_hbm [thread:$0]  %s6018_s21, 128, %s12871_s11, [#allocation4]  }
 0xc1b   :  { %7192 = dma.done.wait [#allocation4], 128  }
 0xc1c   :  { %7193 = vsyncadd [#allocation4], 4294967168 }
 0xc1d   :  { %6024 = vsyncpa [#allocation4], 1 }

</bundles_post_ra>
